<compile_context>
chip_gen: v6e
topology: v6e:2x2x1
jax: 0.10.0
libtpu: 0.0.40
codegen_flags: <defaults>
</compile_context>

<pallas_src>
import functools

import jax
import jax.numpy as jnp
from jax.experimental import pallas as pl
from jax.experimental.pallas import tpu as pltpu

_SQRT_HALF = 0.7071067811865476


def _erf(x):
    # Abramowitz & Stegun 7.1.26 (max abs err ~1.5e-7); only uses abs / exp /
    # where, all of which lower cleanly in Mosaic (exp -> EUP slot).
    ax = jnp.abs(x)
    t = 1.0 / (1.0 + 0.3275911 * ax)
    poly = ((((1.061405429 * t - 1.453152027) * t + 1.421413741) * t
             - 0.284496736) * t + 0.254829592) * t
    y = 1.0 - poly * jnp.exp(-ax * ax)
    return jnp.where(x >= 0.0, y, -y)


def _gelu_exact(x):
    # PyTorch nn.GELU() default (approximate='none'): 0.5*x*(1+erf(x/sqrt(2))).
    return 0.5 * x * (1.0 + _erf(x * _SQRT_HALF))


def _dwconv_gelu_kernel(H, W, x_ref, w_ref, b_ref, o_ref):
    # x_ref: (H+4, W+4, C)  zero-padded NHWC tile for one batch element
    # w_ref: (25, C)        depthwise taps, row t = di*5 + dj
    # b_ref: (1, C)
    # o_ref: (H, W, C)      lane-dense output tile (C on lanes)
    C = o_ref.shape[-1]
    w = w_ref[...]                                    # (25, C), loaded once
    acc = jnp.zeros((H, W, C), jnp.float32)
    for t in range(25):                               # fully unrolled at trace
        di, dj = divmod(t, 5)
        acc = acc + x_ref[di:di + H, dj:dj + W, :] * w[t:t + 1, :]
    acc = acc + b_ref[...]
    o_ref[...] = _gelu_exact(acc).astype(o_ref.dtype)


def dwconv_gelu_pallas(x, w_taps, bias2d, x_size):
    """x: (B, N, C) tokens, w_taps: (25, C), bias2d: (1, C) -> (B, N, C)."""
    B, N, C = x.shape
    H, W = x_size
    assert N == H * W
    x_nhwc = x.reshape(B, H, W, C)                    # free reshape (NHWC view)
    x_pad = jnp.pad(x_nhwc, ((0, 0), (2, 2), (2, 2), (0, 0)))  # zero halo
    kernel = functools.partial(_dwconv_gelu_kernel, H, W)
    out = pl.pallas_call(
        kernel,
        out_shape=jax.ShapeDtypeStruct((B, H, W, C), x.dtype),
        grid=(B,),
        in_specs=[
            pl.BlockSpec((None, H + 4, W + 4, C), lambda b: (b, 0, 0, 0)),
            pl.BlockSpec((25, C), lambda b: (0, 0)),
            pl.BlockSpec((1, C), lambda b: (0, 0)),
        ],
        out_specs=pl.BlockSpec((None, H, W, C), lambda b: (b, 0, 0, 0)),
        compiler_params=pltpu.CompilerParams(dimension_semantics=("parallel",)),
    )(x_pad, w_taps, bias2d)
    return out.reshape(B, N, C)


class DWConvPallas:
    """Pallas port of the PyTorch `dwconv` module (depthwise 5x5 conv + GELU)."""

    def __init__(self, hidden_features, key):
        self.hidden_features = hidden_features
        bound = 1.0 / (25.0 ** 0.5)                   # Conv2d fan_in = 1*5*5
        kw, kb = jax.random.split(key)
        # PyTorch depthwise weight layout (C, 1, 5, 5) -> stored as (C, 5, 5).
        self.weight = jax.random.uniform(
            kw, (hidden_features, 5, 5), jnp.float32, minval=-bound, maxval=bound)
        self.bias = jax.random.uniform(
            kb, (hidden_features,), jnp.float32, minval=-bound, maxval=bound)
        # Static precompute: tap-major layout (25, C) consumed by the kernel.
        self.w_taps = jnp.transpose(self.weight.reshape(hidden_features, 25))
        self.bias2d = self.bias.reshape(1, hidden_features)

    def __call__(self, x, x_size):
        return dwconv_gelu_pallas(x, self.w_taps, self.bias2d, x_size)

    # Pure-XLA reference mirroring the PyTorch forward, for sanity checking.
    def reference(self, x, x_size):
        B, N, C = x.shape
        H, W = x_size
        xn = x.reshape(B, H, W, C)
        w_hwio = jnp.transpose(self.weight, (1, 2, 0))[:, :, None, :]  # (5,5,1,C)
        y = jax.lax.conv_general_dilated(
            xn, w_hwio, window_strides=(1, 1), padding=((2, 2), (2, 2)),
            dimension_numbers=("NHWC", "HWIO", "NHWC"),
            feature_group_count=C)
        y = y + self.bias[None, None, None, :]
        y = 0.5 * y * (1.0 + jax.scipy.special.erf(y * _SQRT_HALF))  # exact GELU
        return y.reshape(B, N, C)


if __name__ == "__main__":
    hidden_features = 128          # lane-dense channel count (multiple of 128)
    B = 2
    H = W = 16
    N = H * W

    key = jax.random.PRNGKey(0)
    kx, kp = jax.random.split(key)
    x = jax.random.normal(kx, (B, N, hidden_features), dtype=jnp.float32)

    model = DWConvPallas(hidden_features, kp)

    out = jax.block_until_ready(model(x, (H, W)))
    assert out.shape == (B, N, hidden_features)

    ref = model.reference(x, (H, W))
    assert jnp.allclose(out, ref, atol=1e-3, rtol=1e-3), (
        float(jnp.max(jnp.abs(out - ref))))

    print("KERNEL_OK")
</pallas_src>

<mosaic_0001>
module attributes {stable_mosaic.version = 11 : i64} {
  func.func @_dwconv_gelu_kernel(%arg0: i32, %arg1: memref<1x20x20x128xf32, #tpu.memory_space<vmem>>, %arg2: memref<25x128xf32, #tpu.memory_space<vmem>>, %arg3: memref<1x128xf32, #tpu.memory_space<vmem>>, %arg4: memref<1x16x16x128xf32, #tpu.memory_space<vmem>>) attributes {dimension_semantics = [#tpu.dimension_semantics<parallel>], iteration_bounds = array<i64: 2>, scalar_prefetch = 0 : i64, scratch_operands = 0 : i64, tpu.core_type = #tpu.core_type<tc>, window_params = [{transform_indices = @transform_0, window_bounds = array<i64: 1, 20, 20, 128>}, {pipeline_mode = #tpu.pipeline_mode<synchronous>, transform_indices = @transform_1, window_bounds = array<i64: 25, 128>}, {pipeline_mode = #tpu.pipeline_mode<synchronous>, transform_indices = @transform_2, window_bounds = array<i64: 1, 128>}, {transform_indices = @transform_3, window_bounds = array<i64: 1, 16, 16, 128>}]} {
    %c0 = arith.constant 0 : index
    %c0_0 = arith.constant 0 : index
    %0 = vector.load %arg2[%c0, %c0_0] : memref<25x128xf32, #tpu.memory_space<vmem>>, vector<25x128xf32>
    %cst = arith.constant 0.000000e+00 : f32
    %1 = vector.broadcast %cst : f32 to vector<16x16x128xf32>
    %c0_1 = arith.constant 0 : index
    %c0_2 = arith.constant 0 : index
    %c0_3 = arith.constant 0 : index
    %c0_4 = arith.constant 0 : index
    %2 = vector.load %arg1[%c0_1, %c0_2, %c0_3, %c0_4] : memref<1x20x20x128xf32, #tpu.memory_space<vmem>>, vector<1x16x16x128xf32>
    %3 = vector.shape_cast %2 : vector<1x16x16x128xf32> to vector<16x16x128xf32>
    %4 = vector.extract_strided_slice %0 {offsets = [0, 0], sizes = [1, 128], strides = [1, 1]} : vector<25x128xf32> to vector<1x128xf32>
    %5 = vector.shape_cast %4 : vector<1x128xf32> to vector<1x1x128xf32>
    %6 = vector.broadcast %5 : vector<1x1x128xf32> to vector<16x16x128xf32>
    %7 = arith.mulf %3, %6 : vector<16x16x128xf32>
    %8 = arith.addf %1, %7 : vector<16x16x128xf32>
    %c0_5 = arith.constant 0 : index
    %c0_6 = arith.constant 0 : index
    %c1 = arith.constant 1 : index
    %c0_7 = arith.constant 0 : index
    %9 = vector.load %arg1[%c0_5, %c0_6, %c1, %c0_7] : memref<1x20x20x128xf32, #tpu.memory_space<vmem>>, vector<1x16x16x128xf32>
    %10 = vector.shape_cast %9 : vector<1x16x16x128xf32> to vector<16x16x128xf32>
    %11 = vector.extract_strided_slice %0 {offsets = [1, 0], sizes = [1, 128], strides = [1, 1]} : vector<25x128xf32> to vector<1x128xf32>
    %12 = vector.shape_cast %11 : vector<1x128xf32> to vector<1x1x128xf32>
    %13 = vector.broadcast %12 : vector<1x1x128xf32> to vector<16x16x128xf32>
    %14 = arith.mulf %10, %13 : vector<16x16x128xf32>
    %15 = arith.addf %8, %14 : vector<16x16x128xf32>
    %c0_8 = arith.constant 0 : index
    %c0_9 = arith.constant 0 : index
    %c2 = arith.constant 2 : index
    %c0_10 = arith.constant 0 : index
    %16 = vector.load %arg1[%c0_8, %c0_9, %c2, %c0_10] : memref<1x20x20x128xf32, #tpu.memory_space<vmem>>, vector<1x16x16x128xf32>
    %17 = vector.shape_cast %16 : vector<1x16x16x128xf32> to vector<16x16x128xf32>
    %18 = vector.extract_strided_slice %0 {offsets = [2, 0], sizes = [1, 128], strides = [1, 1]} : vector<25x128xf32> to vector<1x128xf32>
    %19 = vector.shape_cast %18 : vector<1x128xf32> to vector<1x1x128xf32>
    %20 = vector.broadcast %19 : vector<1x1x128xf32> to vector<16x16x128xf32>
    %21 = arith.mulf %17, %20 : vector<16x16x128xf32>
    %22 = arith.addf %15, %21 : vector<16x16x128xf32>
    %c0_11 = arith.constant 0 : index
    %c0_12 = arith.constant 0 : index
    %c3 = arith.constant 3 : index
    %c0_13 = arith.constant 0 : index
    %23 = vector.load %arg1[%c0_11, %c0_12, %c3, %c0_13] : memref<1x20x20x128xf32, #tpu.memory_space<vmem>>, vector<1x16x16x128xf32>
    %24 = vector.shape_cast %23 : vector<1x16x16x128xf32> to vector<16x16x128xf32>
    %25 = vector.extract_strided_slice %0 {offsets = [3, 0], sizes = [1, 128], strides = [1, 1]} : vector<25x128xf32> to vector<1x128xf32>
    %26 = vector.shape_cast %25 : vector<1x128xf32> to vector<1x1x128xf32>
    %27 = vector.broadcast %26 : vector<1x1x128xf32> to vector<16x16x128xf32>
    %28 = arith.mulf %24, %27 : vector<16x16x128xf32>
    %29 = arith.addf %22, %28 : vector<16x16x128xf32>
    %c0_14 = arith.constant 0 : index
    %c0_15 = arith.constant 0 : index
    %c4 = arith.constant 4 : index
    %c0_16 = arith.constant 0 : index
    %30 = vector.load %arg1[%c0_14, %c0_15, %c4, %c0_16] : memref<1x20x20x128xf32, #tpu.memory_space<vmem>>, vector<1x16x16x128xf32>
    %31 = vector.shape_cast %30 : vector<1x16x16x128xf32> to vector<16x16x128xf32>
    %32 = vector.extract_strided_slice %0 {offsets = [4, 0], sizes = [1, 128], strides = [1, 1]} : vector<25x128xf32> to vector<1x128xf32>
    %33 = vector.shape_cast %32 : vector<1x128xf32> to vector<1x1x128xf32>
    %34 = vector.broadcast %33 : vector<1x1x128xf32> to vector<16x16x128xf32>
    %35 = arith.mulf %31, %34 : vector<16x16x128xf32>
    %36 = arith.addf %29, %35 : vector<16x16x128xf32>
    %c0_17 = arith.constant 0 : index
    %c1_18 = arith.constant 1 : index
    %c0_19 = arith.constant 0 : index
    %c0_20 = arith.constant 0 : index
    %37 = vector.load %arg1[%c0_17, %c1_18, %c0_19, %c0_20] : memref<1x20x20x128xf32, #tpu.memory_space<vmem>>, vector<1x16x16x128xf32>
    %38 = vector.shape_cast %37 : vector<1x16x16x128xf32> to vector<16x16x128xf32>
    %39 = vector.extract_strided_slice %0 {offsets = [5, 0], sizes = [1, 128], strides = [1, 1]} : vector<25x128xf32> to vector<1x128xf32>
    %40 = vector.shape_cast %39 : vector<1x128xf32> to vector<1x1x128xf32>
    %41 = vector.broadcast %40 : vector<1x1x128xf32> to vector<16x16x128xf32>
    %42 = arith.mulf %38, %41 : vector<16x16x128xf32>
    %43 = arith.addf %36, %42 : vector<16x16x128xf32>
    %c0_21 = arith.constant 0 : index
    %c1_22 = arith.constant 1 : index
    %c1_23 = arith.constant 1 : index
    %c0_24 = arith.constant 0 : index
    %44 = vector.load %arg1[%c0_21, %c1_22, %c1_23, %c0_24] : memref<1x20x20x128xf32, #tpu.memory_space<vmem>>, vector<1x16x16x128xf32>
    %45 = vector.shape_cast %44 : vector<1x16x16x128xf32> to vector<16x16x128xf32>
    %46 = vector.extract_strided_slice %0 {offsets = [6, 0], sizes = [1, 128], strides = [1, 1]} : vector<25x128xf32> to vector<1x128xf32>
    %47 = vector.shape_cast %46 : vector<1x128xf32> to vector<1x1x128xf32>
    %48 = vector.broadcast %47 : vector<1x1x128xf32> to vector<16x16x128xf32>
    %49 = arith.mulf %45, %48 : vector<16x16x128xf32>
    %50 = arith.addf %43, %49 : vector<16x16x128xf32>
    %c0_25 = arith.constant 0 : index
    %c1_26 = arith.constant 1 : index
    %c2_27 = arith.constant 2 : index
    %c0_28 = arith.constant 0 : index
    %51 = vector.load %arg1[%c0_25, %c1_26, %c2_27, %c0_28] : memref<1x20x20x128xf32, #tpu.memory_space<vmem>>, vector<1x16x16x128xf32>
    %52 = vector.shape_cast %51 : vector<1x16x16x128xf32> to vector<16x16x128xf32>
    %53 = vector.extract_strided_slice %0 {offsets = [7, 0], sizes = [1, 128], strides = [1, 1]} : vector<25x128xf32> to vector<1x128xf32>
    %54 = vector.shape_cast %53 : vector<1x128xf32> to vector<1x1x128xf32>
    %55 = vector.broadcast %54 : vector<1x1x128xf32> to vector<16x16x128xf32>
    %56 = arith.mulf %52, %55 : vector<16x16x128xf32>
    %57 = arith.addf %50, %56 : vector<16x16x128xf32>
    %c0_29 = arith.constant 0 : index
    %c1_30 = arith.constant 1 : index
    %c3_31 = arith.constant 3 : index
    %c0_32 = arith.constant 0 : index
    %58 = vector.load %arg1[%c0_29, %c1_30, %c3_31, %c0_32] : memref<1x20x20x128xf32, #tpu.memory_space<vmem>>, vector<1x16x16x128xf32>
    %59 = vector.shape_cast %58 : vector<1x16x16x128xf32> to vector<16x16x128xf32>
    %60 = vector.extract_strided_slice %0 {offsets = [8, 0], sizes = [1, 128], strides = [1, 1]} : vector<25x128xf32> to vector<1x128xf32>
    %61 = vector.shape_cast %60 : vector<1x128xf32> to vector<1x1x128xf32>
    %62 = vector.broadcast %61 : vector<1x1x128xf32> to vector<16x16x128xf32>
    %63 = arith.mulf %59, %62 : vector<16x16x128xf32>
    %64 = arith.addf %57, %63 : vector<16x16x128xf32>
    %c0_33 = arith.constant 0 : index
    %c1_34 = arith.constant 1 : index
    %c4_35 = arith.constant 4 : index
    %c0_36 = arith.constant 0 : index
    %65 = vector.load %arg1[%c0_33, %c1_34, %c4_35, %c0_36] : memref<1x20x20x128xf32, #tpu.memory_space<vmem>>, vector<1x16x16x128xf32>
    %66 = vector.shape_cast %65 : vector<1x16x16x128xf32> to vector<16x16x128xf32>
    %67 = vector.extract_strided_slice %0 {offsets = [9, 0], sizes = [1, 128], strides = [1, 1]} : vector<25x128xf32> to vector<1x128xf32>
    %68 = vector.shape_cast %67 : vector<1x128xf32> to vector<1x1x128xf32>
    %69 = vector.broadcast %68 : vector<1x1x128xf32> to vector<16x16x128xf32>
    %70 = arith.mulf %66, %69 : vector<16x16x128xf32>
    %71 = arith.addf %64, %70 : vector<16x16x128xf32>
    %c0_37 = arith.constant 0 : index
    %c2_38 = arith.constant 2 : index
    %c0_39 = arith.constant 0 : index
    %c0_40 = arith.constant 0 : index
    %72 = vector.load %arg1[%c0_37, %c2_38, %c0_39, %c0_40] : memref<1x20x20x128xf32, #tpu.memory_space<vmem>>, vector<1x16x16x128xf32>
    %73 = vector.shape_cast %72 : vector<1x16x16x128xf32> to vector<16x16x128xf32>
    %74 = vector.extract_strided_slice %0 {offsets = [10, 0], sizes = [1, 128], strides = [1, 1]} : vector<25x128xf32> to vector<1x128xf32>
    %75 = vector.shape_cast %74 : vector<1x128xf32> to vector<1x1x128xf32>
    %76 = vector.broadcast %75 : vector<1x1x128xf32> to vector<16x16x128xf32>
    %77 = arith.mulf %73, %76 : vector<16x16x128xf32>
    %78 = arith.addf %71, %77 : vector<16x16x128xf32>
    %c0_41 = arith.constant 0 : index
    %c2_42 = arith.constant 2 : index
    %c1_43 = arith.constant 1 : index
    %c0_44 = arith.constant 0 : index
    %79 = vector.load %arg1[%c0_41, %c2_42, %c1_43, %c0_44] : memref<1x20x20x128xf32, #tpu.memory_space<vmem>>, vector<1x16x16x128xf32>
    %80 = vector.shape_cast %79 : vector<1x16x16x128xf32> to vector<16x16x128xf32>
    %81 = vector.extract_strided_slice %0 {offsets = [11, 0], sizes = [1, 128], strides = [1, 1]} : vector<25x128xf32> to vector<1x128xf32>
    %82 = vector.shape_cast %81 : vector<1x128xf32> to vector<1x1x128xf32>
    %83 = vector.broadcast %82 : vector<1x1x128xf32> to vector<16x16x128xf32>
    %84 = arith.mulf %80, %83 : vector<16x16x128xf32>
    %85 = arith.addf %78, %84 : vector<16x16x128xf32>
    %c0_45 = arith.constant 0 : index
    %c2_46 = arith.constant 2 : index
    %c2_47 = arith.constant 2 : index
    %c0_48 = arith.constant 0 : index
    %86 = vector.load %arg1[%c0_45, %c2_46, %c2_47, %c0_48] : memref<1x20x20x128xf32, #tpu.memory_space<vmem>>, vector<1x16x16x128xf32>
    %87 = vector.shape_cast %86 : vector<1x16x16x128xf32> to vector<16x16x128xf32>
    %88 = vector.extract_strided_slice %0 {offsets = [12, 0], sizes = [1, 128], strides = [1, 1]} : vector<25x128xf32> to vector<1x128xf32>
    %89 = vector.shape_cast %88 : vector<1x128xf32> to vector<1x1x128xf32>
    %90 = vector.broadcast %89 : vector<1x1x128xf32> to vector<16x16x128xf32>
    %91 = arith.mulf %87, %90 : vector<16x16x128xf32>
    %92 = arith.addf %85, %91 : vector<16x16x128xf32>
    %c0_49 = arith.constant 0 : index
    %c2_50 = arith.constant 2 : index
    %c3_51 = arith.constant 3 : index
    %c0_52 = arith.constant 0 : index
    %93 = vector.load %arg1[%c0_49, %c2_50, %c3_51, %c0_52] : memref<1x20x20x128xf32, #tpu.memory_space<vmem>>, vector<1x16x16x128xf32>
    %94 = vector.shape_cast %93 : vector<1x16x16x128xf32> to vector<16x16x128xf32>
    %95 = vector.extract_strided_slice %0 {offsets = [13, 0], sizes = [1, 128], strides = [1, 1]} : vector<25x128xf32> to vector<1x128xf32>
    %96 = vector.shape_cast %95 : vector<1x128xf32> to vector<1x1x128xf32>
    %97 = vector.broadcast %96 : vector<1x1x128xf32> to vector<16x16x128xf32>
    %98 = arith.mulf %94, %97 : vector<16x16x128xf32>
    %99 = arith.addf %92, %98 : vector<16x16x128xf32>
    %c0_53 = arith.constant 0 : index
    %c2_54 = arith.constant 2 : index
    %c4_55 = arith.constant 4 : index
    %c0_56 = arith.constant 0 : index
    %100 = vector.load %arg1[%c0_53, %c2_54, %c4_55, %c0_56] : memref<1x20x20x128xf32, #tpu.memory_space<vmem>>, vector<1x16x16x128xf32>
    %101 = vector.shape_cast %100 : vector<1x16x16x128xf32> to vector<16x16x128xf32>
    %102 = vector.extract_strided_slice %0 {offsets = [14, 0], sizes = [1, 128], strides = [1, 1]} : vector<25x128xf32> to vector<1x128xf32>
    %103 = vector.shape_cast %102 : vector<1x128xf32> to vector<1x1x128xf32>
    %104 = vector.broadcast %103 : vector<1x1x128xf32> to vector<16x16x128xf32>
    %105 = arith.mulf %101, %104 : vector<16x16x128xf32>
    %106 = arith.addf %99, %105 : vector<16x16x128xf32>
    %c0_57 = arith.constant 0 : index
    %c3_58 = arith.constant 3 : index
    %c0_59 = arith.constant 0 : index
    %c0_60 = arith.constant 0 : index
    %107 = vector.load %arg1[%c0_57, %c3_58, %c0_59, %c0_60] : memref<1x20x20x128xf32, #tpu.memory_space<vmem>>, vector<1x16x16x128xf32>
    %108 = vector.shape_cast %107 : vector<1x16x16x128xf32> to vector<16x16x128xf32>
    %109 = vector.extract_strided_slice %0 {offsets = [15, 0], sizes = [1, 128], strides = [1, 1]} : vector<25x128xf32> to vector<1x128xf32>
    %110 = vector.shape_cast %109 : vector<1x128xf32> to vector<1x1x128xf32>
    %111 = vector.broadcast %110 : vector<1x1x128xf32> to vector<16x16x128xf32>
    %112 = arith.mulf %108, %111 : vector<16x16x128xf32>
    %113 = arith.addf %106, %112 : vector<16x16x128xf32>
    %c0_61 = arith.constant 0 : index
    %c3_62 = arith.constant 3 : index
    %c1_63 = arith.constant 1 : index
    %c0_64 = arith.constant 0 : index
    %114 = vector.load %arg1[%c0_61, %c3_62, %c1_63, %c0_64] : memref<1x20x20x128xf32, #tpu.memory_space<vmem>>, vector<1x16x16x128xf32>
    %115 = vector.shape_cast %114 : vector<1x16x16x128xf32> to vector<16x16x128xf32>
    %116 = vector.extract_strided_slice %0 {offsets = [16, 0], sizes = [1, 128], strides = [1, 1]} : vector<25x128xf32> to vector<1x128xf32>
    %117 = vector.shape_cast %116 : vector<1x128xf32> to vector<1x1x128xf32>
    %118 = vector.broadcast %117 : vector<1x1x128xf32> to vector<16x16x128xf32>
    %119 = arith.mulf %115, %118 : vector<16x16x128xf32>
    %120 = arith.addf %113, %119 : vector<16x16x128xf32>
    %c0_65 = arith.constant 0 : index
    %c3_66 = arith.constant 3 : index
    %c2_67 = arith.constant 2 : index
    %c0_68 = arith.constant 0 : index
    %121 = vector.load %arg1[%c0_65, %c3_66, %c2_67, %c0_68] : memref<1x20x20x128xf32, #tpu.memory_space<vmem>>, vector<1x16x16x128xf32>
    %122 = vector.shape_cast %121 : vector<1x16x16x128xf32> to vector<16x16x128xf32>
    %123 = vector.extract_strided_slice %0 {offsets = [17, 0], sizes = [1, 128], strides = [1, 1]} : vector<25x128xf32> to vector<1x128xf32>
    %124 = vector.shape_cast %123 : vector<1x128xf32> to vector<1x1x128xf32>
    %125 = vector.broadcast %124 : vector<1x1x128xf32> to vector<16x16x128xf32>
    %126 = arith.mulf %122, %125 : vector<16x16x128xf32>
    %127 = arith.addf %120, %126 : vector<16x16x128xf32>
    %c0_69 = arith.constant 0 : index
    %c3_70 = arith.constant 3 : index
    %c3_71 = arith.constant 3 : index
    %c0_72 = arith.constant 0 : index
    %128 = vector.load %arg1[%c0_69, %c3_70, %c3_71, %c0_72] : memref<1x20x20x128xf32, #tpu.memory_space<vmem>>, vector<1x16x16x128xf32>
    %129 = vector.shape_cast %128 : vector<1x16x16x128xf32> to vector<16x16x128xf32>
    %130 = vector.extract_strided_slice %0 {offsets = [18, 0], sizes = [1, 128], strides = [1, 1]} : vector<25x128xf32> to vector<1x128xf32>
    %131 = vector.shape_cast %130 : vector<1x128xf32> to vector<1x1x128xf32>
    %132 = vector.broadcast %131 : vector<1x1x128xf32> to vector<16x16x128xf32>
    %133 = arith.mulf %129, %132 : vector<16x16x128xf32>
    %134 = arith.addf %127, %133 : vector<16x16x128xf32>
    %c0_73 = arith.constant 0 : index
    %c3_74 = arith.constant 3 : index
    %c4_75 = arith.constant 4 : index
    %c0_76 = arith.constant 0 : index
    %135 = vector.load %arg1[%c0_73, %c3_74, %c4_75, %c0_76] : memref<1x20x20x128xf32, #tpu.memory_space<vmem>>, vector<1x16x16x128xf32>
    %136 = vector.shape_cast %135 : vector<1x16x16x128xf32> to vector<16x16x128xf32>
    %137 = vector.extract_strided_slice %0 {offsets = [19, 0], sizes = [1, 128], strides = [1, 1]} : vector<25x128xf32> to vector<1x128xf32>
    %138 = vector.shape_cast %137 : vector<1x128xf32> to vector<1x1x128xf32>
    %139 = vector.broadcast %138 : vector<1x1x128xf32> to vector<16x16x128xf32>
    %140 = arith.mulf %136, %139 : vector<16x16x128xf32>
    %141 = arith.addf %134, %140 : vector<16x16x128xf32>
    %c0_77 = arith.constant 0 : index
    %c4_78 = arith.constant 4 : index
    %c0_79 = arith.constant 0 : index
    %c0_80 = arith.constant 0 : index
    %142 = vector.load %arg1[%c0_77, %c4_78, %c0_79, %c0_80] : memref<1x20x20x128xf32, #tpu.memory_space<vmem>>, vector<1x16x16x128xf32>
    %143 = vector.shape_cast %142 : vector<1x16x16x128xf32> to vector<16x16x128xf32>
    %144 = vector.extract_strided_slice %0 {offsets = [20, 0], sizes = [1, 128], strides = [1, 1]} : vector<25x128xf32> to vector<1x128xf32>
    %145 = vector.shape_cast %144 : vector<1x128xf32> to vector<1x1x128xf32>
    %146 = vector.broadcast %145 : vector<1x1x128xf32> to vector<16x16x128xf32>
    %147 = arith.mulf %143, %146 : vector<16x16x128xf32>
    %148 = arith.addf %141, %147 : vector<16x16x128xf32>
    %c0_81 = arith.constant 0 : index
    %c4_82 = arith.constant 4 : index
    %c1_83 = arith.constant 1 : index
    %c0_84 = arith.constant 0 : index
    %149 = vector.load %arg1[%c0_81, %c4_82, %c1_83, %c0_84] : memref<1x20x20x128xf32, #tpu.memory_space<vmem>>, vector<1x16x16x128xf32>
    %150 = vector.shape_cast %149 : vector<1x16x16x128xf32> to vector<16x16x128xf32>
    %151 = vector.extract_strided_slice %0 {offsets = [21, 0], sizes = [1, 128], strides = [1, 1]} : vector<25x128xf32> to vector<1x128xf32>
    %152 = vector.shape_cast %151 : vector<1x128xf32> to vector<1x1x128xf32>
    %153 = vector.broadcast %152 : vector<1x1x128xf32> to vector<16x16x128xf32>
    %154 = arith.mulf %150, %153 : vector<16x16x128xf32>
    %155 = arith.addf %148, %154 : vector<16x16x128xf32>
    %c0_85 = arith.constant 0 : index
    %c4_86 = arith.constant 4 : index
    %c2_87 = arith.constant 2 : index
    %c0_88 = arith.constant 0 : index
    %156 = vector.load %arg1[%c0_85, %c4_86, %c2_87, %c0_88] : memref<1x20x20x128xf32, #tpu.memory_space<vmem>>, vector<1x16x16x128xf32>
    %157 = vector.shape_cast %156 : vector<1x16x16x128xf32> to vector<16x16x128xf32>
    %158 = vector.extract_strided_slice %0 {offsets = [22, 0], sizes = [1, 128], strides = [1, 1]} : vector<25x128xf32> to vector<1x128xf32>
    %159 = vector.shape_cast %158 : vector<1x128xf32> to vector<1x1x128xf32>
    %160 = vector.broadcast %159 : vector<1x1x128xf32> to vector<16x16x128xf32>
    %161 = arith.mulf %157, %160 : vector<16x16x128xf32>
    %162 = arith.addf %155, %161 : vector<16x16x128xf32>
    %c0_89 = arith.constant 0 : index
    %c4_90 = arith.constant 4 : index
    %c3_91 = arith.constant 3 : index
    %c0_92 = arith.constant 0 : index
    %163 = vector.load %arg1[%c0_89, %c4_90, %c3_91, %c0_92] : memref<1x20x20x128xf32, #tpu.memory_space<vmem>>, vector<1x16x16x128xf32>
    %164 = vector.shape_cast %163 : vector<1x16x16x128xf32> to vector<16x16x128xf32>
    %165 = vector.extract_strided_slice %0 {offsets = [23, 0], sizes = [1, 128], strides = [1, 1]} : vector<25x128xf32> to vector<1x128xf32>
    %166 = vector.shape_cast %165 : vector<1x128xf32> to vector<1x1x128xf32>
    %167 = vector.broadcast %166 : vector<1x1x128xf32> to vector<16x16x128xf32>
    %168 = arith.mulf %164, %167 : vector<16x16x128xf32>
    %169 = arith.addf %162, %168 : vector<16x16x128xf32>
    %c0_93 = arith.constant 0 : index
    %c4_94 = arith.constant 4 : index
    %c4_95 = arith.constant 4 : index
    %c0_96 = arith.constant 0 : index
    %170 = vector.load %arg1[%c0_93, %c4_94, %c4_95, %c0_96] : memref<1x20x20x128xf32, #tpu.memory_space<vmem>>, vector<1x16x16x128xf32>
    %171 = vector.shape_cast %170 : vector<1x16x16x128xf32> to vector<16x16x128xf32>
    %172 = vector.extract_strided_slice %0 {offsets = [24, 0], sizes = [1, 128], strides = [1, 1]} : vector<25x128xf32> to vector<1x128xf32>
    %173 = vector.shape_cast %172 : vector<1x128xf32> to vector<1x1x128xf32>
    %174 = vector.broadcast %173 : vector<1x1x128xf32> to vector<16x16x128xf32>
    %175 = arith.mulf %171, %174 : vector<16x16x128xf32>
    %176 = arith.addf %169, %175 : vector<16x16x128xf32>
    %c0_97 = arith.constant 0 : index
    %c0_98 = arith.constant 0 : index
    %177 = vector.load %arg3[%c0_97, %c0_98] : memref<1x128xf32, #tpu.memory_space<vmem>>, vector<1x128xf32>
    %178 = vector.shape_cast %177 : vector<1x128xf32> to vector<1x1x128xf32>
    %179 = vector.broadcast %178 : vector<1x1x128xf32> to vector<16x16x128xf32>
    %180 = arith.addf %176, %179 : vector<16x16x128xf32>
    %cst_99 = arith.constant 5.000000e-01 : f32
    %181 = vector.broadcast %cst_99 : f32 to vector<16x16x128xf32>
    %182 = arith.mulf %181, %180 : vector<16x16x128xf32>
    %cst_100 = arith.constant 0.707106769 : f32
    %183 = vector.broadcast %cst_100 : f32 to vector<16x16x128xf32>
    %184 = arith.mulf %180, %183 : vector<16x16x128xf32>
    %185 = math.absf %184 : vector<16x16x128xf32>
    %cst_101 = arith.constant 0.327591091 : f32
    %186 = vector.broadcast %cst_101 : f32 to vector<16x16x128xf32>
    %187 = arith.mulf %186, %185 : vector<16x16x128xf32>
    %cst_102 = arith.constant 1.000000e+00 : f32
    %188 = vector.broadcast %cst_102 : f32 to vector<16x16x128xf32>
    %189 = arith.addf %188, %187 : vector<16x16x128xf32>
    %cst_103 = arith.constant 1.000000e+00 : f32
    %190 = vector.broadcast %cst_103 : f32 to vector<16x16x128xf32>
    %191 = arith.divf %190, %189 : vector<16x16x128xf32>
    %cst_104 = arith.constant 1.06140542 : f32
    %192 = vector.broadcast %cst_104 : f32 to vector<16x16x128xf32>
    %193 = arith.mulf %192, %191 : vector<16x16x128xf32>
    %cst_105 = arith.constant 1.45315206 : f32
    %194 = vector.broadcast %cst_105 : f32 to vector<16x16x128xf32>
    %195 = arith.subf %193, %194 : vector<16x16x128xf32>
    %196 = arith.mulf %195, %191 : vector<16x16x128xf32>
    %cst_106 = arith.constant 1.42141378 : f32
    %197 = vector.broadcast %cst_106 : f32 to vector<16x16x128xf32>
    %198 = arith.addf %196, %197 : vector<16x16x128xf32>
    %199 = arith.mulf %198, %191 : vector<16x16x128xf32>
    %cst_107 = arith.constant 0.284496725 : f32
    %200 = vector.broadcast %cst_107 : f32 to vector<16x16x128xf32>
    %201 = arith.subf %199, %200 : vector<16x16x128xf32>
    %202 = arith.mulf %201, %191 : vector<16x16x128xf32>
    %cst_108 = arith.constant 0.254829586 : f32
    %203 = vector.broadcast %cst_108 : f32 to vector<16x16x128xf32>
    %204 = arith.addf %202, %203 : vector<16x16x128xf32>
    %205 = arith.mulf %204, %191 : vector<16x16x128xf32>
    %cst_109 = arith.constant 0.000000e+00 : f32
    %206 = vector.broadcast %cst_109 : f32 to vector<16x16x128xf32>
    %207 = arith.subf %206, %185 : vector<16x16x128xf32>
    %208 = arith.mulf %207, %185 : vector<16x16x128xf32>
    %209 = math.exp %208 : vector<16x16x128xf32>
    %210 = arith.mulf %205, %209 : vector<16x16x128xf32>
    %cst_110 = arith.constant 1.000000e+00 : f32
    %211 = vector.broadcast %cst_110 : f32 to vector<16x16x128xf32>
    %212 = arith.subf %211, %210 : vector<16x16x128xf32>
    %cst_111 = arith.constant 0.000000e+00 : f32
    %213 = vector.broadcast %cst_111 : f32 to vector<16x16x128xf32>
    %214 = arith.cmpf oge, %184, %213 : vector<16x16x128xf32>
    %cst_112 = arith.constant 0.000000e+00 : f32
    %215 = vector.broadcast %cst_112 : f32 to vector<16x16x128xf32>
    %216 = arith.subf %215, %212 : vector<16x16x128xf32>
    %217 = arith.select %214, %212, %216 : vector<16x16x128xi1>, vector<16x16x128xf32>
    %cst_113 = arith.constant 1.000000e+00 : f32
    %218 = vector.broadcast %cst_113 : f32 to vector<16x16x128xf32>
    %219 = arith.addf %218, %217 : vector<16x16x128xf32>
    %220 = arith.mulf %182, %219 : vector<16x16x128xf32>
    %c0_114 = arith.constant 0 : index
    %c0_115 = arith.constant 0 : index
    %c0_116 = arith.constant 0 : index
    %c0_117 = arith.constant 0 : index
    %221 = vector.load %arg4[%c0_114, %c0_115, %c0_116, %c0_117] : memref<1x16x16x128xf32, #tpu.memory_space<vmem>>, vector<1x16x16x128xf32>
    %222 = vector.shape_cast %221 : vector<1x16x16x128xf32> to vector<16x16x128xf32>
    %223 = vector.shape_cast %220 : vector<16x16x128xf32> to vector<1x16x16x128xf32>
    tpu.vector_store %arg4[%c0_114, %c0_115, %c0_116, %c0_117], %223 {strides = array<i32>} : memref<1x16x16x128xf32, #tpu.memory_space<vmem>>, vector<1x16x16x128xf32>,
    return
  }
  func.func @transform_0(%arg0: i32) -> (i32, i32, i32, i32) {
    %c0_i32 = arith.constant 0 : i32
    %c0_i32_0 = arith.constant 0 : i32
    %c0_i32_1 = arith.constant 0 : i32
    %c0_i32_2 = arith.constant 0 : i32
    return %arg0, %c0_i32, %c0_i32_0, %c0_i32_1 : i32, i32, i32, i32
  }
  func.func @transform_1(%arg0: i32) -> (i32, i32) {
    %c0_i32 = arith.constant 0 : i32
    %c0_i32_0 = arith.constant 0 : i32
    %c0_i32_1 = arith.constant 0 : i32
    return %c0_i32, %c0_i32_0 : i32, i32
  }
  func.func @transform_2(%arg0: i32) -> (i32, i32) {
    %c0_i32 = arith.constant 0 : i32
    %c0_i32_0 = arith.constant 0 : i32
    %c0_i32_1 = arith.constant 0 : i32
    return %c0_i32, %c0_i32_0 : i32, i32
  }
  func.func @transform_3(%arg0: i32) -> (i32, i32, i32, i32) {
    %c0_i32 = arith.constant 0 : i32
    %c0_i32_0 = arith.constant 0 : i32
    %c0_i32_1 = arith.constant 0 : i32
    %c0_i32_2 = arith.constant 0 : i32
    return %arg0, %c0_i32, %c0_i32_0, %c0_i32_1 : i32, i32, i32, i32
  }
}

</mosaic_0001>

<bundles_post_ra>
// kernel: tpu_custom_call.1
= control target key start
LH: loop header
LB: loop body
LE: loop exit
PB: predicated region body
PF: predicated region fallthrough
CT: control target
= control target key end

     0   :  { %8 = vsyncpa [#allocation3], 0  ;;  %s10810_s0 = inlined_call_operand.vmem [shape: f32[2,20,20,128], index: 0, kind: input, shape index: {}]   ;;  %s10811_s1 = inlined_call_operand.vmem [shape: f32[25,128], index: 1, kind: input, shape index: {}]   ;;  %s10812_s2 = inlined_call_operand.vmem [shape: f32[1,128], index: 2, kind: input, shape index: {}]   ;;  %s10813_s3 = inlined_call_operand.hbm [shape: f32[2,16,16,128], index: 3, kind: output, shape index: {}]  }
   0x1   :  { %10 = vsyncpa [#allocation3 + $0x1], 0  ;;  %s4664_s12 = smov 0   ;;  %s4666_s13 = smov 0  }
   0x2   :  { %s4668_s14 = smov 0   ;;  %s4670_s15 = smov 0  }
   0x3 LB: > { %s4685_s16 = sadd.s32 4294967295, %s4639_s15   ;;  %s3688_s17 = sadd.s32 4294967294, %s4639_s15   ;;  %s4639_s15 = sphi %s4670_s15, %s12907_s15   ;;  %s4635_s14 = sphi %s4668_s14, %s12906_s14   ;;  %s4631_s13 = sphi %s4666_s13, %s12905_s13   ;;  %s4627_s12 = sphi %s4664_s12, %s12904_s12  }
   0x4   : > { %s4689_s18 = sadd.s32 1, %s4639_s15   ;;  %s91_s19 = sadd.s32 1, %s4635_s14 }
   0x5   : > { %s88_s20 = ssub.s32 %s4639_s15, %s4689_s18  ;;  %p101_p0 = scmp.ne.s32.totalorder %s4635_s14, %s4631_s13 }
   0x6   : > { %p89_p1 = scmp.eq.s32.totalorder %s88_s20, 0  ;;  %p102_p2 = scmp.eq.s32.totalorder %s4685_s16, 1 }
   0x7   : > { %p107_p3 = scmp.ne.s32.totalorder %s4631_s13, %s4627_s12  ;;  %p108_p4 = scmp.eq.s32.totalorder %s3688_s17, 1 }
   0x8   : > { %s4700_s21 = scalar_select %p89_p1, %s4635_s14, %s91_s19  }
   0x9   : > { %p4702_p5 = por %p102_p2, %p101_p0  ;;  %p4706_p6 = por %p108_p4, %p107_p3 }
   0xa   : > { %p3691_p7 = scmp.ge.s32.totalorder %s4639_s15, 1  ;;  %p140_p8 = scmp.lt.s32.totalorder %s4639_s15, 3 }
   0xc   : > { %p141_p9 = pnand %p3691_p7, %p140_p8 }
   0xe   : > { %144 = sbr.rel (%p141_p9) target bundleno = 794 (0x31a), region = 32 }
  0x13   : > { %p164_p10 = scmp.lt.s32.totalorder %s4685_s16, 1  ;;  %v205_v0 = vlaneseq  ;;  %v169_v3 = vld [vmem:[%s10811_s1] sm:$0xff]  ;;  %v170_v12 = vld [vmem:[%s10811_s1 + $0x8] sm:$0xff]  ;;  %s161_s27 = sand.u32 1, %s4631_s13  }
  0x14   : > { %s3692_s28 = sshll.u32 %s161_s27, 8  ;;  %s10770_s7 = scalar_lea.sflag [#allocation3], %s161_s27 }
  0x15   : > { %s165_s24 = scalar_select %p164_p10, %s4685_s16, 1  ;;  %v206_v1 = vshrl.u32 %v205_v0, 7 }
  0x16   : > { %s10702_s29 = scalar_lea.vmem [#allocation2], %s3692_s28  ;;  %s4641_s9 = smov [#allocation2]  }
  0x17   : > { %s4406_s25 = smul.u32 480, %s165_s24  ;;  %v4714_v2 = vsub.s32 0, %v206_v1  ;;  %v4719_v4 = vsub.s32 5, %v206_v1  ;;  %v4726_v5 = vsub.s32 1, %v206_v1  ;;  %v4728_v6 = vsub.s32 2, %v206_v1  ;;  %s3626_s4 = sshll.u32 %s10702_s29, 4  ;;  %s10752_s4 = int_to_ptr.vmem [resolvable:$true] %s3626_s4 }
  0x18   : > { %v4730_v7 = vsub.s32 3, %v206_v1  ;;  %v4732_v8 = vsub.s32 4, %v206_v1  ;;  %v4737_v10 = vsub.s32 6, %v206_v1  ;;  %v4739_v11 = vsub.s32 7, %v206_v1  ;;  %s4579_s8 = scalar_lea.vmem %s10752_s4, 4096  ;;  %s4583_s10 = sshll.u32 %s4641_s9, 4  ;;  %s4584_s10 = int_to_ptr.vmem [resolvable:$false] %s4583_s10 }
  0x19   : > { %11356 = vst [vmem:[#allocation5_spill] sm:$0xff] %v4714_v2  ;;  %11357 = vst [vmem:[#allocation6_spill] sm:$0xff] %v4719_v4  ;;  %s4724_s30 = scalar_lea.vmem %s10810_s0, %s4406_s25  ;;  %v4735_v9 = vrot.slane %v169_v3, %v4714_v2  ;;  %v4747_v15 = vrot.slane %v169_v3, %v4719_v4  ;;  %v4756_v22 = vrot.slane %v169_v3, %v4726_v5  ;;  %p4580_p11 = scmp.ne.s32.totalorder %s10752_s4, %s4579_s8 }
  0x1a   : > { %11358 = vst [vmem:[#allocation7_spill] sm:$0xff] %v4726_v5  ;;  %11359 = vst [vmem:[#allocation8_spill] sm:$0xff] %v4728_v6  ;;  %v173_v13 = vld [vmem:[%s4724_s30] sm:$0xff]  ;;  %v174_v14 = vld [vmem:[%s4724_s30 + $0x8] sm:$0xff]  ;;  %v4759_v23 = vrot.slane %v169_v3, %v4728_v6  ;;  %v4762_v24 = vrot.slane %v169_v3, %v4730_v7  ;;  %v4765_v25 = vrot.slane %v169_v3, %v4732_v8  ;;  %s4585_s11 = scalar_lea.vmem %s4584_s10, 8192  ;;  %p4586_p0 = scmp.lt.s32.totalorder %s10752_s4, %s4584_s10 }
  0x1b   : > { %11360 = vst [vmem:[#allocation9_spill] sm:$0xff] %v4730_v7  ;;  %11361 = vst [vmem:[#allocation10_spill] sm:$0xff] %v4732_v8  ;;  %v175_v16 = vld [vmem:[%s4724_s30 + $0x18] sm:$0xff]  ;;  %v176_v17 = vld [vmem:[%s4724_s30 + $0x20] sm:$0xff]  ;;  %v4773_v29 = vmul.f32 %v4735_v9, %v173_v13  ;;  %v4776_v30 = vrot.slane %v169_v3, %v4737_v10  ;;  %v4779_v31 = vrot.slane %v169_v3, %v4739_v11  ;;  %p4581_p12 = pnand %p4580_p11, %p4702_p5  ;;  %p4587_p1 = scmp.lt.s32.totalorder %s4585_s11, %s4579_s8 }
  0x1c   : > { %11362 = vst [vmem:[#allocation11_spill] sm:$0xff] %v4737_v10  ;;  %11363 = vst [vmem:[#allocation12_spill] sm:$0xff] %v4739_v11  ;;  %v177_v18 = vld [vmem:[%s4724_s30 + $0x30] sm:$0xff]  ;;  %v178_v19 = vld [vmem:[%s4724_s30 + $0x38] sm:$0xff]  ;;  %v4782_v32 = vrot.slane %v170_v12, %v4714_v2  ;;  %v4794_v36 = vmul.f32 %v4735_v9, %v174_v14  ;;  %v4797_v37 = vmul.f32 %v4735_v9, %v175_v16 }
  0x1d   : > { %11364 = vst [vmem:[#allocation13_spill] sm:$0xff] %v4747_v15  ;;  %v179_v20 = vld [vmem:[%s4724_s30 + $0x48] sm:$0xff]  ;;  %v180_v21 = vld [vmem:[%s4724_s30 + $0x50] sm:$0xff]  ;;  %11365 = vst [vmem:[#allocation14_spill] sm:$0xff] %v4762_v24  ;;  %v4800_v38 = vmul.f32 %v4735_v9, %v176_v17  ;;  %v4803_v39 = vmul.f32 %v4747_v15, %v175_v16  ;;  %v4815_v43 = vmul.f32 %v4735_v9, %v177_v18  ;;  %p4582_p13 = pneg %p4581_p12  ;;  %p4588_p2 = por %p4587_p1, %p4586_p0 }
  0x1e   : > { %11366 = vst [vmem:[#allocation15_spill] sm:$0xff] %v4765_v25  ;;  %v181_v26 = vld [vmem:[%s4724_s30 + $0x60] sm:$0xff]  ;;  %v182_v27 = vld [vmem:[%s4724_s30 + $0x68] sm:$0xff]  ;;  %v4770_v28 = vld [vmem:[%s4724_s30 + $0x78] sm:$0xff]  ;;  %v4818_v44 = vmul.f32 %v4735_v9, %v178_v19  ;;  %v4821_v45 = vmul.f32 %v4735_v9, %v179_v20  ;;  %v4824_v46 = vmul.f32 %v4747_v15, %v176_v17  ;;  %v4836_v50 = vmul.f32 %v4735_v9, %v180_v21 }
  0x1f   : > { %11367 = vst [vmem:[#allocation16_spill] sm:$0xff] %v4776_v30  ;;  %11368 = vst [vmem:[#allocation17_spill] sm:$0xff] %v4779_v31  ;;  %v4785_v33 = vld [vmem:[%s4724_s30 + $0x80] sm:$0xff]  ;;  %v4788_v34 = vld [vmem:[%s4724_s30 + $0x90] sm:$0xff]  ;;  %v4839_v51 = vmul.f32 %v4735_v9, %v181_v26  ;;  %v4842_v52 = vmul.f32 %v4735_v9, %v182_v27  ;;  %v4845_v53 = vmul.f32 %v4747_v15, %v177_v18  ;;  %p4589_p3 = pnand %p4588_p2, %p4582_p13 }
  0x20   : > { %11369 = vst [vmem:[#allocation18_spill] sm:$0xff] %v4782_v32  ;;  %v4791_v35 = vld [vmem:[%s4724_s30 + $0x98] sm:$0xff]  ;;  %11370 = vst [vmem:[#allocation19_spill] sm:$0xff] %v4803_v39  ;;  %v4806_v40 = vld [vmem:[%s4724_s30 + $0xa8] sm:$0xff]  ;;  %v4858_v57 = vmul.f32 %v4735_v9, %v4770_v28  ;;  %v4862_v58 = vmul.f32 %v4735_v9, %v4785_v33  ;;  %v4866_v59 = vmul.f32 %v4735_v9, %v4788_v34 }
  0x21   : > { %11371 = vst [vmem:[#allocation20_spill] sm:$0xff] %v4806_v40  ;;  %v4809_v41 = vld [vmem:[%s4724_s30 + $0xb0] sm:$0xff]  ;;  %v4812_v42 = vld [vmem:[%s4724_s30 + $0xc0] sm:$0xff]  ;;  %11374 = vst [vmem:[#allocation23_spill] sm:$0xff] %v4824_v46  ;;  %v4869_v60 = vmul.f32 %v4747_v15, %v178_v19  ;;  %v4882_v0 = vmul.f32 %v4735_v9, %v4791_v35  ;;  %v4886_v1 = vmul.f32 %v4735_v9, %v4806_v40 }
  0x22   : > { %11372 = vst [vmem:[#allocation21_spill] sm:$0xff] %v4809_v41  ;;  %11373 = vst [vmem:[#allocation22_spill] sm:$0xff] %v4812_v42  ;;  %v4827_v47 = vld [vmem:[%s4724_s30 + $0xc8] sm:$0xff]  ;;  %v4830_v48 = vld [vmem:[%s4724_s30 + $0xd8] sm:$0xff]  ;;  %v4890_v3 = vmul.f32 %v4735_v9, %v4809_v41  ;;  %v4893_v12 = vmul.f32 %v4747_v15, %v179_v20  ;;  %v4903_v16 = vmul.f32 %v4735_v9, %v4812_v42 }
  0x23   : > { %11375 = vst [vmem:[#allocation24_spill] sm:$0xff] %v4827_v47  ;;  %11376 = vst [vmem:[#allocation25_spill] sm:$0xff] %v4830_v48  ;;  %v4833_v49 = vld [vmem:[%s4724_s30 + $0xe0] sm:$0xff]  ;;  %v4848_v54 = vld [vmem:[%s4724_s30 + $0xf0] sm:$0xff]  ;;  %v4907_v17 = vmul.f32 %v4735_v9, %v4827_v47  ;;  %v4911_v18 = vmul.f32 %v4735_v9, %v4830_v48  ;;  %v4915_v20 = vmul.f32 %v4747_v15, %v180_v21 }
  0x24   : > { %11377 = vst [vmem:[#allocation26_spill] sm:$0xff] %v4833_v49  ;;  %11378 = vst [vmem:[#allocation27_spill] sm:$0xff] %v4845_v53  ;;  %v4851_v55 = vld [vmem:[%s4724_s30 + $0xf8] sm:$0xff]  ;;  %v4854_v56 = vld [vmem:[%s4724_s30 + $0x108] sm:$0xff]  ;;  %v4925_v10 = vmul.f32 %v4735_v9, %v4833_v49  ;;  %v4929_v4 = vmul.f32 %v4735_v9, %v4848_v54  ;;  %v4937_v7 = vmul.f32 %v4747_v15, %v181_v26 }
  0x25   : > { %11379 = vst [vmem:[#allocation28_spill] sm:$0xff] %v4848_v54  ;;  %11380 = vst [vmem:[#allocation29_spill] sm:$0xff] %v4851_v55  ;;  %v4872_v61 = vld [vmem:[%s4724_s30 + $0x110] sm:$0xff]  ;;  %v4875_v62 = vld [vmem:[%s4724_s30 + $0x120] sm:$0xff]  ;;  %v4933_v8 = vmul.f32 %v4735_v9, %v4851_v55  ;;  %v4947_v32 = vmul.f32 %v4735_v9, %v4854_v56 }
  0x26   : > { %11381 = vst [vmem:[#allocation30_spill] sm:$0xff] %v4854_v56  ;;  %11382 = vst [vmem:[#allocation31_spill] sm:$0xff] %v4869_v60  ;;  %v4878_v63 = vld [vmem:[%s4724_s30 + $0x128] sm:$0xff]  ;;  %v4896_v13 = vld [vmem:[%s4724_s30 + $0x138] sm:$0xff]  ;;  %v4951_v31 = vmul.f32 %v4735_v9, %v4872_v61  ;;  %v4955_v30 = vmul.f32 %v4735_v9, %v4875_v62 }
  0x27   : > { %11383 = vst [vmem:[#allocation32_spill] sm:$0xff] %v4872_v61  ;;  %11384 = vst [vmem:[#allocation33_spill] sm:$0xff] %v4875_v62  ;;  %v4899_v14 = vld [vmem:[%s4724_s30 + $0x140] sm:$0xff]  ;;  %v4918_v2 = vld [vmem:[%s4724_s30 + $0x150] sm:$0xff] }
  0x28   : > { %11385 = vst [vmem:[#allocation34_spill] sm:$0xff] %v4878_v63  ;;  %11386 = vst [vmem:[#allocation35_spill] sm:$0xff] %v4893_v12  ;;  %v273_v19 = vld [vmem:[%s4724_s30 + $0x1] sm:$0xff]  ;;  %v4921_v11 = vld [vmem:[%s4724_s30 + $0x158] sm:$0xff]  ;;  %v4969_v12 = vmul.f32 %v4735_v9, %v4896_v13  ;;  %v4988_v39 = vmul.f32 %v4735_v9, %v4918_v2 }
  0x29   : > { %11387 = vst [vmem:[#allocation36_spill] sm:$0xff] %v4896_v13  ;;  %11388 = vst [vmem:[#allocation37_spill] sm:$0xff] %v4899_v14  ;;  %v274_v21 = vld [vmem:[%s4724_s30 + $0x9] sm:$0xff]  ;;  %v4958_v26 = vld [vmem:[%s4724_s30 + $0x19] sm:$0xff]  ;;  %v309_v46 = vmul.f32 %v4756_v22, %v273_v19  ;;  %v4992_v13 = vmul.f32 %v4735_v9, %v4921_v11 }
  0x2a   : > { %11389 = vst [vmem:[#allocation38_spill] sm:$0xff] %v4915_v20  ;;  %11390 = vst [vmem:[#allocation39_spill] sm:$0xff] %v4918_v2  ;;  %v4940_v6 = vld [vmem:[%s4724_s30 + $0x168] sm:$0xff]  ;;  %v4943_v5 = vld [vmem:[%s4724_s30 + $0x170] sm:$0xff]  ;;  %v4965_v20 = vmul.f32 %v4735_v9, %v4878_v63  ;;  %v311_v56 = vmul.f32 %v4756_v22, %v4958_v26 }
  0x2b   : > { %11391 = vst [vmem:[#allocation40_spill] sm:$0xff] %v4921_v11  ;;  %11392 = vst [vmem:[#allocation41_spill] sm:$0xff] %v4937_v7  ;;  %v4961_v7 = vmul.f32 %v4747_v15, %v182_v27  ;;  %v4972_v60 = vld [vmem:[%s4724_s30 + $0x21] sm:$0xff]  ;;  %v4975_v53 = vld [vmem:[%s4724_s30 + $0x31] sm:$0xff]  ;;  %v4980_v27 = vmul.f32 %v4747_v15, %v4770_v28  ;;  %v5010_v2 = vmul.f32 %v4735_v9, %v4943_v5 }
  0x2c   : > { %11393 = vst [vmem:[#allocation42_spill] sm:$0xff] %v4940_v6  ;;  %11394 = vst [vmem:[#allocation43_spill] sm:$0xff] %v4943_v5  ;;  %v4995_v19 = vld [vmem:[%s4724_s30 + $0x39] sm:$0xff]  ;;  %v4998_v63 = vld [vmem:[%s4724_s30 + $0x49] sm:$0xff]  ;;  %v312_v55 = vmul.f32 %v4756_v22, %v4972_v60  ;;  %v313_v54 = vmul.f32 %v4756_v22, %v4975_v53 }
  0x2d   : > { %11395 = vst [vmem:[#allocation44_spill] sm:$0xff] %v4958_v26  ;;  %11396 = vst [vmem:[#allocation45_spill] sm:$0xff] %v4961_v7  ;;  %v4984_v7 = vmul.f32 %v4735_v9, %v4899_v14  ;;  %v5001_v28 = vld [vmem:[%s4724_s30 + $0x51] sm:$0xff]  ;;  %v5006_v14 = vmul.f32 %v4735_v9, %v4940_v6  ;;  %v5013_v11 = vld [vmem:[%s4724_s30 + $0x61] sm:$0xff]  ;;  %v5042_v26 = vmul.f32 %v4747_v15, %v4788_v34 }
  0x2e   : > { %11397 = vst [vmem:[#allocation46_spill] sm:$0xff] %v4972_v60  ;;  %11398 = vst [vmem:[#allocation47_spill] sm:$0xff] %v4975_v53  ;;  %v5016_v62 = vld [vmem:[%s4724_s30 + $0x69] sm:$0xff]  ;;  %v5019_v61 = vld [vmem:[%s4724_s30 + $0x79] sm:$0xff]  ;;  %v314_v53 = vmul.f32 %v4756_v22, %v4995_v19  ;;  %v315_v34 = vmul.f32 %v4756_v22, %v4998_v63  ;;  %v316_v60 = vmul.f32 %v4756_v22, %v5001_v28 }
  0x2f   : > { %11399 = vst [vmem:[#allocation48_spill] sm:$0xff] %v4980_v27  ;;  %11400 = vst [vmem:[#allocation49_spill] sm:$0xff] %v4995_v19  ;;  %v310_v27 = vmul.f32 %v4756_v22, %v274_v21  ;;  %v5025_v21 = vmul.f32 %v4747_v15, %v4785_v33  ;;  %v5028_v6 = vld [vmem:[%s4724_s30 + $0x81] sm:$0xff]  ;;  %v5031_v9 = vld [vmem:[%s4724_s30 + $0x91] sm:$0xff]  ;;  %v5046_v33 = vmul.f32 %v4747_v15, %v4791_v35 }
  0x30   : > { %11401 = vst [vmem:[#allocation50_spill] sm:$0xff] %v4998_v63  ;;  %11402 = vst [vmem:[#allocation51_spill] sm:$0xff] %v5001_v28  ;;  %v5034_v5 = vld [vmem:[%s4724_s30 + $0x99] sm:$0xff]  ;;  %v5052_v49 = vld [vmem:[%s4724_s30 + $0xb1] sm:$0xff]  ;;  %v5064_v35 = vadd.f32 %v309_v46, %v4773_v29  ;;  %v317_v19 = vmul.f32 %v4756_v22, %v5013_v11  ;;  %v318_v63 = vmul.f32 %v4756_v22, %v5016_v62 }
  0x31   : > { %11403 = vst [vmem:[#allocation52_spill] sm:$0xff] %v5013_v11  ;;  %11404 = vst [vmem:[#allocation53_spill] sm:$0xff] %v5016_v62  ;;  %v5055_v48 = vld [vmem:[%s4724_s30 + $0xc1] sm:$0xff]  ;;  %v319_v28 = vmul.f32 %v4756_v22, %v5019_v61  ;;  %v5082_v29 = vadd.f32 %v310_v27, %v4794_v36  ;;  %v5085_v46 = vld [vmem:[%s4724_s30 + $0xf1] sm:$0xff]  ;;  %v320_v11 = vmul.f32 %v4756_v22, %v5028_v6 }
  0x32   : > { %11405 = vst [vmem:[#allocation54_spill] sm:$0xff] %v5019_v61  ;;  %11406 = vst [vmem:[#allocation55_spill] sm:$0xff] %v5025_v21  ;;  %v5049_v21 = vld [vmem:[%s4724_s30 + $0xa9] sm:$0xff]  ;;  %v5073_v47 = vld [vmem:[%s4724_s30 + $0xe1] sm:$0xff]  ;;  %v321_v62 = vmul.f32 %v4756_v22, %v5031_v9  ;;  %v322_v61 = vmul.f32 %v4756_v22, %v5034_v5  ;;  %v5100_v36 = vadd.f32 %v311_v56, %v4797_v37 }
  0x33   : > { %11407 = vst [vmem:[#allocation56_spill] sm:$0xff] %v5028_v6  ;;  %11408 = vst [vmem:[#allocation57_spill] sm:$0xff] %v5031_v9  ;;  %v5088_v42 = vld [vmem:[%s4724_s30 + $0xf9] sm:$0xff]  ;;  %v5091_v41 = vld [vmem:[%s4724_s30 + $0x109] sm:$0xff]  ;;  %v323_v6 = vmul.f32 %v4756_v22, %v5049_v21  ;;  %v324_v9 = vmul.f32 %v4756_v22, %v5052_v49  ;;  %v5118_v37 = vadd.f32 %v312_v55, %v4800_v38 }
  0x34   : > { %11409 = vst [vmem:[#allocation58_spill] sm:$0xff] %v5034_v5  ;;  %11410 = vst [vmem:[#allocation59_spill] sm:$0xff] %v5042_v26  ;;  %v5070_v26 = vld [vmem:[%s4724_s30 + $0xd9] sm:$0xff]  ;;  %v5103_v27 = vld [vmem:[%s4724_s30 + $0x111] sm:$0xff]  ;;  %v325_v5 = vmul.f32 %v4756_v22, %v5055_v48 }
  0x35   : > { %11411 = vst [vmem:[#allocation60_spill] sm:$0xff] %v5046_v33  ;;  %11412 = vst [vmem:[#allocation61_spill] sm:$0xff] %v5049_v21  ;;  %v5067_v33 = vld [vmem:[%s4724_s30 + $0xc9] sm:$0xff]  ;;  %v5106_v15 = vld [vmem:[%s4724_s30 + $0x121] sm:$0xff]  ;;  %v327_v21 = vmul.f32 %v4756_v22, %v5070_v26 }
  0x36   : > { %11413 = vst [vmem:[#allocation62_spill] sm:$0xff] %v5052_v49  ;;  %11414 = vst [vmem:[#allocation63_spill] sm:$0xff] %v5055_v48  ;;  %v5109_v40 = vld [vmem:[%s4724_s30 + $0x129] sm:$0xff]  ;;  %v5121_v56 = vld [vmem:[%s4724_s30 + $0x139] sm:$0xff]  ;;  %v328_v49 = vmul.f32 %v4756_v22, %v5073_v47  ;;  %v5136_v48 = vadd.f32 %v313_v54, %v4815_v43  ;;  %v332_v43 = vmul.f32 %v4756_v22, %v5103_v27 }
  0x37   : > { %11415 = vst [vmem:[#allocation64_spill] sm:$0xff] %v5067_v33  ;;  %11416 = vst [vmem:[#allocation65_spill] sm:$0xff] %v5070_v26  ;;  %v5124_v25 = vld [vmem:[%s4724_s30 + $0x141] sm:$0xff]  ;;  %v5127_v24 = vld [vmem:[%s4724_s30 + $0x151] sm:$0xff]  ;;  %v331_v26 = vmul.f32 %v4756_v22, %v5091_v41  ;;  %v333_v54 = vmul.f32 %v4756_v22, %v5106_v15 }
  0x38   : > { %11417 = vst [vmem:[#allocation66_spill] sm:$0xff] %v5073_v47  ;;  %11418 = vst [vmem:[#allocation67_spill] sm:$0xff] %v5082_v29  ;;  %v5139_v38 = vld [vmem:[%s4724_s30 + $0x159] sm:$0xff]  ;;  %v5142_v55 = vld [vmem:[%s4724_s30 + $0x169] sm:$0xff]  ;;  %v329_v29 = vmul.f32 %v4756_v22, %v5085_v46  ;;  %v5154_v47 = vadd.f32 %v314_v53, %v4818_v44  ;;  %v336_v44 = vmul.f32 %v4756_v22, %v5124_v25 }
  0x39   : > { %11419 = vst [vmem:[#allocation68_spill] sm:$0xff] %v5085_v46  ;;  %11420 = vst [vmem:[#allocation69_spill] sm:$0xff] %v5088_v42  ;;  %v5163_v46 = vadd.f32 %v315_v34, %v4821_v45  ;;  %v337_v53 = vmul.f32 %v4756_v22, %v5127_v24  ;;  %v339_v45 = vmul.f32 %v4756_v22, %v5142_v55 }
  0x3a   : > { %11421 = vst [vmem:[#allocation70_spill] sm:$0xff] %v5091_v41  ;;  %11422 = vst [vmem:[#allocation71_spill] sm:$0xff] %v5100_v36  ;;  %v326_v36 = vmul.f32 %v4756_v22, %v5067_v33  ;;  %v330_v33 = vmul.f32 %v4756_v22, %v5088_v42  ;;  %v335_v42 = vmul.f32 %v4756_v22, %v5121_v56  ;;  %v5368_v41 = vld [vmem:[%s4724_s30 + $0x15a] sm:$0xff] }
  0x3b   : > { %11423 = vst [vmem:[#allocation72_spill] sm:$0xff] %v5103_v27  ;;  %11424 = vst [vmem:[#allocation73_spill] sm:$0xff] %v5106_v15  ;;  %v5172_v27 = vadd.f32 %v316_v60, %v4836_v50  ;;  %v5187_v50 = vadd.f32 %v319_v28, %v4858_v57  ;;  %v5190_v60 = vadd.f32 %v320_v11, %v4862_v58  ;;  %v374_v11 = vld [vmem:[%s4724_s30 + $0xa] sm:$0xff]  ;;  %v5210_v58 = vld [vmem:[%s4724_s30 + $0x1a] sm:$0xff] }
  0x3c   : > { %11425 = vst [vmem:[#allocation74_spill] sm:$0xff] %v5109_v40  ;;  %11426 = vst [vmem:[#allocation75_spill] sm:$0xff] %v5118_v37  ;;  %v5145_v37 = vld [vmem:[%s4724_s30 + $0x171] sm:$0xff]  ;;  %v5206_v57 = vadd.f32 %v325_v5, %v4903_v16  ;;  %v5228_v5 = vadd.f32 %v329_v29, %v4929_v4  ;;  %v5240_v16 = vadd.f32 %v330_v33, %v4933_v8 }
  0x3d   : > { %11427 = vst [vmem:[#allocation76_spill] sm:$0xff] %v5121_v56  ;;  %11428 = vst [vmem:[#allocation77_spill] sm:$0xff] %v5124_v25  ;;  %v340_v34 = vmul.f32 %v4756_v22, %v5145_v37  ;;  %v5181_v25 = vadd.f32 %v317_v19, %v4839_v51  ;;  %v5200_v51 = vadd.f32 %v323_v6, %v4886_v1  ;;  %v5234_v1 = vld [vmem:[%s4724_s30 + $0x4a] sm:$0xff]  ;;  %v5258_v19 = vld [vmem:[%s4724_s30 + $0x7a] sm:$0xff] }
  0x3e   : > { %11429 = vst [vmem:[#allocation78_spill] sm:$0xff] %v5127_v24  ;;  %11430 = vst [vmem:[#allocation79_spill] sm:$0xff] %v5136_v48  ;;  %v334_v48 = vmul.f32 %v4756_v22, %v5109_v40  ;;  %v338_v40 = vmul.f32 %v4756_v22, %v5139_v38  ;;  %v5184_v24 = vadd.f32 %v318_v63, %v4842_v52  ;;  %v5276_v28 = vld [vmem:[%s4724_s30 + $0x92] sm:$0xff]  ;;  %v5301_v33 = vld [vmem:[%s4724_s30 + $0xca] sm:$0xff] }
  0x3f   : > { %11431 = vst [vmem:[#allocation80_spill] sm:$0xff] %v5139_v38  ;;  %11432 = vst [vmem:[#allocation81_spill] sm:$0xff] %v5142_v55  ;;  %v5193_v38 = vadd.f32 %v321_v62, %v4866_v59  ;;  %v373_v55 = vld [vmem:[%s4724_s30 + $0x2] sm:$0xff]  ;;  %v5197_v22 = vadd.f32 %v322_v61, %v4882_v0  ;;  %v5203_v52 = vadd.f32 %v324_v9, %v4890_v3  ;;  %v5216_v62 = vld [vmem:[%s4724_s30 + $0x32] sm:$0xff] }
  0x40   : > { %11433 = vst [vmem:[#allocation82_spill] sm:$0xff] %v5145_v37  ;;  %11434 = vst [vmem:[#allocation83_spill] sm:$0xff] %v5210_v58  ;;  %v5213_v59 = vld [vmem:[%s4724_s30 + $0x22] sm:$0xff]  ;;  %v5219_v61 = vadd.f32 %v326_v36, %v4907_v17  ;;  %v5222_v6 = vadd.f32 %v327_v21, %v4911_v18  ;;  %v5225_v63 = vadd.f32 %v328_v49, %v4925_v10  ;;  %v5231_v0 = vld [vmem:[%s4724_s30 + $0x3a] sm:$0xff] }
  0x41   : > { %11435 = vst [vmem:[#allocation84_spill] sm:$0xff] %v5213_v59  ;;  %11436 = vst [vmem:[#allocation85_spill] sm:$0xff] %v5216_v62  ;;  %v5237_v3 = vld [vmem:[%s4724_s30 + $0x52] sm:$0xff]  ;;  %v5243_v17 = vadd.f32 %v331_v26, %v4947_v32  ;;  %v5246_v10 = vadd.f32 %v332_v43, %v4951_v31  ;;  %v5249_v4 = vadd.f32 %v333_v54, %v4955_v30  ;;  %v5252_v49 = vld [vmem:[%s4724_s30 + $0x62] sm:$0xff] }
  0x42   : > { %11437 = vst [vmem:[#allocation86_spill] sm:$0xff] %v5231_v0  ;;  %11438 = vst [vmem:[#allocation87_spill] sm:$0xff] %v5234_v1  ;;  %v5255_v18 = vld [vmem:[%s4724_s30 + $0x6a] sm:$0xff]  ;;  %v5261_v8 = vadd.f32 %v334_v48, %v4965_v20  ;;  %v5264_v31 = vadd.f32 %v335_v42, %v4969_v12  ;;  %v5267_v32 = vadd.f32 %v336_v44, %v4984_v7  ;;  %v5273_v26 = vld [vmem:[%s4724_s30 + $0x82] sm:$0xff] }
  0x43   : > { %11439 = vst [vmem:[#allocation88_spill] sm:$0xff] %v5237_v3  ;;  %11440 = vst [vmem:[#allocation89_spill] sm:$0xff] %v5249_v4  ;;  %v5270_v30 = vadd.f32 %v337_v53, %v4988_v39  ;;  %v5279_v21 = vld [vmem:[%s4724_s30 + $0x9a] sm:$0xff]  ;;  %v5282_v48 = vadd.f32 %v338_v40, %v4992_v13  ;;  %v5285_v42 = vadd.f32 %v339_v45, %v5006_v14  ;;  %v5291_v39 = vld [vmem:[%s4724_s30 + $0xaa] sm:$0xff] }
  0x44   : > { %11441 = vst [vmem:[#allocation90_spill] sm:$0xff] %v5252_v49  ;;  %11442 = vst [vmem:[#allocation91_spill] sm:$0xff] %v5255_v18  ;;  %v5288_v7 = vadd.f32 %v340_v34, %v5010_v2  ;;  %v5294_v12 = vld [vmem:[%s4724_s30 + $0xb2] sm:$0xff]  ;;  %v5297_v20 = vld [vmem:[%s4724_s30 + $0xc2] sm:$0xff]  ;;  %v409_v9 = vmul.f32 %v4759_v23, %v373_v55  ;;  %v410_v2 = vmul.f32 %v4759_v23, %v374_v11 }
  0x45   : > { %11443 = vst [vmem:[#allocation92_spill] sm:$0xff] %v5258_v19  ;;  %11444 = vst [vmem:[#allocation93_spill] sm:$0xff] %v5261_v8  ;;  %v5304_v40 = vld [vmem:[%s4724_s30 + $0xda] sm:$0xff]  ;;  %v5307_v13 = vld [vmem:[%s4724_s30 + $0xe2] sm:$0xff]  ;;  %v411_v14 = vmul.f32 %v4759_v23, %v5210_v58  ;;  %v412_v29 = vmul.f32 %v4759_v23, %v5213_v59  ;;  %v413_v36 = vmul.f32 %v4759_v23, %v5216_v62 }
  0x46   : > { %11445 = vst [vmem:[#allocation94_spill] sm:$0xff] %v5264_v31  ;;  %11446 = vst [vmem:[#allocation95_spill] sm:$0xff] %v5267_v32  ;;  %v5317_v55 = vld [vmem:[%s4724_s30 + $0xf2] sm:$0xff]  ;;  %v5320_v43 = vld [vmem:[%s4724_s30 + $0xfa] sm:$0xff]  ;;  %v414_v44 = vmul.f32 %v4759_v23, %v5231_v0  ;;  %v415_v53 = vmul.f32 %v4759_v23, %v5234_v1  ;;  %v416_v45 = vmul.f32 %v4759_v23, %v5237_v3 }
  0x47   : > { %11447 = vst [vmem:[#allocation96_spill] sm:$0xff] %v5270_v30  ;;  %11448 = vst [vmem:[#allocation97_spill] sm:$0xff] %v5273_v26  ;;  %v5323_v54 = vld [vmem:[%s4724_s30 + $0x10a] sm:$0xff]  ;;  %v417_v34 = vmul.f32 %v4759_v23, %v5252_v49  ;;  %v5334_v11 = vld [vmem:[%s4724_s30 + $0x112] sm:$0xff]  ;;  %v418_v0 = vmul.f32 %v4759_v23, %v5255_v18  ;;  %v419_v1 = vmul.f32 %v4759_v23, %v5258_v19 }
  0x48   : > { %11449 = vst [vmem:[#allocation98_spill] sm:$0xff] %v5276_v28  ;;  %11450 = vst [vmem:[#allocation99_spill] sm:$0xff] %v5279_v21  ;;  %v5337_v62 = vld [vmem:[%s4724_s30 + $0x122] sm:$0xff]  ;;  %v5340_v59 = vld [vmem:[%s4724_s30 + $0x12a] sm:$0xff]  ;;  %v420_v3 = vmul.f32 %v4759_v23, %v5273_v26  ;;  %v421_v49 = vmul.f32 %v4759_v23, %v5276_v28  ;;  %v422_v15 = vmul.f32 %v4759_v23, %v5279_v21 }
  0x49   : > { %11451 = vst [vmem:[#allocation100_spill] sm:$0xff] %v5282_v48  ;;  %11452 = vst [vmem:[#allocation101_spill] sm:$0xff] %v5285_v42  ;;  %v5351_v58 = vld [vmem:[%s4724_s30 + $0x13a] sm:$0xff]  ;;  %v5354_v37 = vld [vmem:[%s4724_s30 + $0x142] sm:$0xff]  ;;  %v423_v18 = vmul.f32 %v4759_v23, %v5291_v39  ;;  %v424_v19 = vmul.f32 %v4759_v23, %v5294_v12  ;;  %v425_v26 = vmul.f32 %v4759_v23, %v5297_v20 }
  0x4a   : > { %11453 = vst [vmem:[#allocation102_spill] sm:$0xff] %v5288_v7  ;;  %11454 = vst [vmem:[#allocation103_spill] sm:$0xff] %v5291_v39  ;;  %v5357_v56 = vld [vmem:[%s4724_s30 + $0x152] sm:$0xff]  ;;  %v5371_v28 = vld [vmem:[%s4724_s30 + $0x16a] sm:$0xff]  ;;  %v426_v42 = vmul.f32 %v4759_v23, %v5301_v33  ;;  %v427_v21 = vmul.f32 %v4759_v23, %v5304_v40  ;;  %v428_v39 = vmul.f32 %v4759_v23, %v5307_v13 }
  0x4b   : > { %11455 = vst [vmem:[#allocation104_spill] sm:$0xff] %v5294_v12  ;;  %11456 = vst [vmem:[#allocation105_spill] sm:$0xff] %v5297_v20  ;;  %v5374_v7 = vld [vmem:[%s4724_s30 + $0x172] sm:$0xff]  ;;  %v429_v12 = vmul.f32 %v4759_v23, %v5317_v55  ;;  %v430_v20 = vmul.f32 %v4759_v23, %v5320_v43  ;;  %v431_v48 = vmul.f32 %v4759_v23, %v5323_v54 }
  0x4c   : > { %11457 = vst [vmem:[#allocation106_spill] sm:$0xff] %v5301_v33  ;;  %11458 = vst [vmem:[#allocation107_spill] sm:$0xff] %v5304_v40  ;;  %v432_v30 = vmul.f32 %v4759_v23, %v5334_v11  ;;  %v433_v33 = vmul.f32 %v4759_v23, %v5337_v62  ;;  %v434_v40 = vmul.f32 %v4759_v23, %v5340_v59 }
  0x4d   : > { %11459 = vst [vmem:[#allocation108_spill] sm:$0xff] %v5307_v13  ;;  %11460 = vst [vmem:[#allocation109_spill] sm:$0xff] %v5317_v55  ;;  %v435_v13 = vmul.f32 %v4759_v23, %v5351_v58  ;;  %v436_v55 = vmul.f32 %v4759_v23, %v5354_v37 }
  0x4e   : > { %11461 = vst [vmem:[#allocation110_spill] sm:$0xff] %v5320_v43  ;;  %11462 = vst [vmem:[#allocation111_spill] sm:$0xff] %v5323_v54  ;;  %v437_v43 = vmul.f32 %v4759_v23, %v5357_v56  ;;  %v438_v54 = vmul.f32 %v4759_v23, %v5368_v41 }
  0x4f   : > { %11463 = vst [vmem:[#allocation112_spill] sm:$0xff] %v5334_v11  ;;  %11464 = vst [vmem:[#allocation113_spill] sm:$0xff] %v5337_v62  ;;  %v439_v11 = vmul.f32 %v4759_v23, %v5371_v28  ;;  %v440_v62 = vmul.f32 %v4759_v23, %v5374_v7  ;;  %v5422_v23 = vadd.f32 %v414_v44, %v5154_v47  ;;  %v5544_v44 = vld [vmem:[%s4724_s30 + $0xb3] sm:$0xff] }
  0x50   : > { %11465 = vst [vmem:[#allocation114_spill] sm:$0xff] %v5340_v59  ;;  %11466 = vst [vmem:[#allocation115_spill] sm:$0xff] %v5351_v58  ;;  %v5407_v59 = vadd.f32 %v409_v9, %v5064_v35  ;;  %v11472_v58 = vld [vmem:[#allocation67_spill] sm:$0xff]  ;;  %v5425_v35 = vadd.f32 %v415_v53, %v5163_v46  ;;  %v5440_v47 = vadd.f32 %v420_v3, %v5190_v60  ;;  %v5547_v53 = vld [vmem:[%s4724_s30 + $0xc3] sm:$0xff] }
  0x51   : > { %11467 = vst [vmem:[#allocation116_spill] sm:$0xff] %v5354_v37  ;;  %11468 = vst [vmem:[#allocation117_spill] sm:$0xff] %v5357_v56  ;;  %v5410_v32 = vadd.f32 %v410_v2, %v11472_v58  ;;  %v11473_v37 = vld [vmem:[#allocation71_spill] sm:$0xff]  ;;  %v5428_v58 = vadd.f32 %v416_v45, %v5172_v27  ;;  %v5443_v46 = vadd.f32 %v421_v49, %v5193_v38  ;;  %v473_v27 = vld [vmem:[%s4724_s30 + $0x3] sm:$0xff] }
  0x52   : > { %11469 = vst [vmem:[#allocation118_spill] sm:$0xff] %v5368_v41  ;;  %11470 = vst [vmem:[#allocation119_spill] sm:$0xff] %v5371_v28  ;;  %v5413_v31 = vadd.f32 %v411_v14, %v11473_v37  ;;  %v11474_v56 = vld [vmem:[#allocation75_spill] sm:$0xff]  ;;  %v5431_v37 = vadd.f32 %v417_v34, %v5181_v25  ;;  %v5447_v9 = vadd.f32 %v422_v15, %v5197_v22  ;;  %v5463_v38 = vld [vmem:[%s4724_s30 + $0x23] sm:$0xff] }
  0x53   : > { %11471 = vst [vmem:[#allocation120_spill] sm:$0xff] %v5374_v7  ;;  %v5416_v8 = vadd.f32 %v412_v29, %v11474_v56  ;;  %v11475_v41 = vld [vmem:[#allocation79_spill] sm:$0xff]  ;;  %v5434_v56 = vadd.f32 %v418_v0, %v5184_v24  ;;  %v5450_v25 = vadd.f32 %v423_v18, %v5200_v51  ;;  %v5453_v24 = vadd.f32 %v424_v19, %v5203_v52  ;;  %v5460_v0 = vld [vmem:[%s4724_s30 + $0x1b] sm:$0xff]  ;;  %v5502_v19 = vld [vmem:[%s4724_s30 + $0x63] sm:$0xff] }
  0x54   : > { %v5419_v4 = vadd.f32 %v413_v36, %v11475_v41  ;;  %v5437_v41 = vadd.f32 %v419_v1, %v5187_v50  ;;  %v5456_v50 = vadd.f32 %v425_v26, %v5206_v57  ;;  %v474_v60 = vld [vmem:[%s4724_s30 + $0xb] sm:$0xff]  ;;  %11476 = vst [vmem:[#allocation67_spill] sm:$0xff] %v5460_v0  ;;  %11477 = vst [vmem:[#allocation71_spill] sm:$0xff] %v5463_v38  ;;  %v5466_v1 = vld [vmem:[%s4724_s30 + $0x33] sm:$0xff] }
  0x55   : > { %11478 = vst [vmem:[#allocation75_spill] sm:$0xff] %v5466_v1  ;;  %v5469_v15 = vadd.f32 %v426_v42, %v5219_v61  ;;  %v5472_v22 = vadd.f32 %v427_v21, %v5222_v6  ;;  %v5475_v51 = vadd.f32 %v428_v39, %v5225_v63  ;;  %v5478_v52 = vadd.f32 %v429_v12, %v5228_v5  ;;  %v5481_v57 = vld [vmem:[%s4724_s30 + $0x3b] sm:$0xff]  ;;  %v5484_v3 = vld [vmem:[%s4724_s30 + $0x4b] sm:$0xff]  ;;  %v5487_v49 = vld [vmem:[%s4724_s30 + $0x53] sm:$0xff] }
  0x56   : > { %11479 = vst [vmem:[#allocation79_spill] sm:$0xff] %v5481_v57  ;;  %11480 = vst [vmem:[#allocation121_spill] sm:$0xff] %v5484_v3  ;;  %v5490_v61 = vadd.f32 %v430_v20, %v5240_v16  ;;  %v5493_v6 = vadd.f32 %v431_v48, %v5243_v17  ;;  %v5496_v63 = vadd.f32 %v432_v30, %v5246_v10  ;;  %v11482_v5 = vld [vmem:[#allocation89_spill] sm:$0xff]  ;;  %v5505_v26 = vld [vmem:[%s4724_s30 + $0x6b] sm:$0xff] }
  0x57   : > { %11481 = vst [vmem:[#allocation122_spill] sm:$0xff] %v5487_v49  ;;  %v5499_v18 = vadd.f32 %v433_v33, %v11482_v5  ;;  %11484 = vst [vmem:[#allocation123_spill] sm:$0xff] %v5502_v19  ;;  %v5508_v21 = vld [vmem:[%s4724_s30 + $0x7b] sm:$0xff]  ;;  %v11489_v48 = vld [vmem:[#allocation94_spill] sm:$0xff] }
  0x58   : > { %11485 = vst [vmem:[#allocation124_spill] sm:$0xff] %v5505_v26  ;;  %11486 = vst [vmem:[#allocation125_spill] sm:$0xff] %v5508_v21  ;;  %v11487_v16 = vld [vmem:[#allocation93_spill] sm:$0xff]  ;;  %v5514_v10 = vadd.f32 %v435_v13, %v11489_v48  ;;  %v11491_v30 = vld [vmem:[#allocation95_spill] sm:$0xff] }
  0x59   : > { %11483 = vst [vmem:[#allocation89_spill] sm:$0xff] %v5499_v18  ;;  %v5511_v17 = vadd.f32 %v434_v40, %v11487_v16  ;;  %v5517_v42 = vadd.f32 %v436_v55, %v11491_v30  ;;  %v11493_v39 = vld [vmem:[#allocation96_spill] sm:$0xff]  ;;  %v5523_v20 = vld [vmem:[%s4724_s30 + $0x83] sm:$0xff]  ;;  %11505 = vst [vmem:[#allocation130_spill] sm:$0xff] %v5544_v44 }
  0x5a   : > { %11490 = vst [vmem:[#allocation94_spill] sm:$0xff] %v5514_v10  ;;  %v5520_v12 = vadd.f32 %v437_v43, %v11493_v39  ;;  %11495 = vst [vmem:[#allocation126_spill] sm:$0xff] %v5523_v20  ;;  %v5526_v33 = vld [vmem:[%s4724_s30 + $0x93] sm:$0xff]  ;;  %v5529_v2 = vld [vmem:[%s4724_s30 + $0x9b] sm:$0xff] }
  0x5b   : > { %11488 = vst [vmem:[#allocation93_spill] sm:$0xff] %v5511_v17  ;;  %11492 = vst [vmem:[#allocation95_spill] sm:$0xff] %v5517_v42  ;;  %v11498_v14 = vld [vmem:[#allocation100_spill] sm:$0xff]  ;;  %v11500_v29 = vld [vmem:[#allocation101_spill] sm:$0xff] }
  0x5c   : > { %11494 = vst [vmem:[#allocation96_spill] sm:$0xff] %v5520_v12  ;;  %11496 = vst [vmem:[#allocation127_spill] sm:$0xff] %v5526_v33  ;;  %v5532_v40 = vadd.f32 %v438_v54, %v11498_v14  ;;  %v5535_v13 = vadd.f32 %v439_v11, %v11500_v29  ;;  %v11502_v36 = vld [vmem:[#allocation102_spill] sm:$0xff]  ;;  %v5554_v54 = vld [vmem:[%s4724_s30 + $0xdb] sm:$0xff] }
  0x5d   : > { %11497 = vst [vmem:[#allocation128_spill] sm:$0xff] %v5529_v2  ;;  %v5538_v55 = vadd.f32 %v440_v62, %v11502_v36  ;;  %v5541_v43 = vld [vmem:[%s4724_s30 + $0xab] sm:$0xff]  ;;  %11506 = vst [vmem:[#allocation131_spill] sm:$0xff] %v5547_v53  ;;  %v5557_v11 = vld [vmem:[%s4724_s30 + $0xe3] sm:$0xff] }
  0x5e   : > { %11499 = vst [vmem:[#allocation100_spill] sm:$0xff] %v5532_v40  ;;  %11501 = vst [vmem:[#allocation101_spill] sm:$0xff] %v5535_v13  ;;  %v11507_v45 = vld [vmem:[#allocation14_spill] sm:$0xff]  ;;  %v5567_v30 = vld [vmem:[%s4724_s30 + $0xf3] sm:$0xff] }
  0x5f   : > { %11503 = vst [vmem:[#allocation102_spill] sm:$0xff] %v5538_v55  ;;  %11504 = vst [vmem:[#allocation129_spill] sm:$0xff] %v5541_v43  ;;  %v509_v34 = vmul.f32 %v11507_v45, %v473_v27  ;;  %v5551_v5 = vld [vmem:[%s4724_s30 + $0xcb] sm:$0xff]  ;;  %v510_v62 = vmul.f32 %v11507_v45, %v474_v60  ;;  %v511_v16 = vmul.f32 %v11507_v45, %v5460_v0  ;;  %v5570_v39 = vld [vmem:[%s4724_s30 + $0xfb] sm:$0xff] }
  0x60   : > { %11508 = vst [vmem:[#allocation14_spill] sm:$0xff] %v5551_v5  ;;  %11509 = vst [vmem:[#allocation132_spill] sm:$0xff] %v5554_v54  ;;  %v512_v48 = vmul.f32 %v11507_v45, %v5463_v38  ;;  %v513_v27 = vmul.f32 %v11507_v45, %v5466_v1  ;;  %v5573_v14 = vld [vmem:[%s4724_s30 + $0x10b] sm:$0xff]  ;;  %v514_v60 = vmul.f32 %v11507_v45, %v5481_v57  ;;  %v5584_v38 = vld [vmem:[%s4724_s30 + $0x113] sm:$0xff] }
  0x61   : > { %11510 = vst [vmem:[#allocation133_spill] sm:$0xff] %v5557_v11  ;;  %11511 = vst [vmem:[#allocation134_spill] sm:$0xff] %v5567_v30  ;;  %v515_v29 = vmul.f32 %v11507_v45, %v5484_v3  ;;  %v516_v36 = vmul.f32 %v11507_v45, %v5487_v49  ;;  %v517_v1 = vmul.f32 %v11507_v45, %v5502_v19  ;;  %v5587_v0 = vld [vmem:[%s4724_s30 + $0x123] sm:$0xff]  ;;  %v5590_v7 = vld [vmem:[%s4724_s30 + $0x12b] sm:$0xff] }
  0x62   : > { %11512 = vst [vmem:[#allocation135_spill] sm:$0xff] %v5570_v39  ;;  %11513 = vst [vmem:[#allocation136_spill] sm:$0xff] %v5573_v14  ;;  %v518_v57 = vmul.f32 %v11507_v45, %v5505_v26  ;;  %v519_v3 = vmul.f32 %v11507_v45, %v5508_v21  ;;  %v520_v49 = vmul.f32 %v11507_v45, %v5523_v20  ;;  %v5601_v28 = vld [vmem:[%s4724_s30 + $0x13b] sm:$0xff]  ;;  %v5604_v55 = vld [vmem:[%s4724_s30 + $0x143] sm:$0xff] }
  0x63   : > { %11514 = vst [vmem:[#allocation137_spill] sm:$0xff] %v5584_v38  ;;  %11515 = vst [vmem:[#allocation138_spill] sm:$0xff] %v5587_v0  ;;  %v521_v19 = vmul.f32 %v11507_v45, %v5526_v33  ;;  %v5607_v13 = vld [vmem:[%s4724_s30 + $0x153] sm:$0xff]  ;;  %v522_v40 = vmul.f32 %v11507_v45, %v5529_v2  ;;  %v523_v26 = vmul.f32 %v11507_v45, %v5541_v43  ;;  %v5618_v12 = vld [vmem:[%s4724_s30 + $0x15b] sm:$0xff] }
  0x64   : > { %11516 = vst [vmem:[#allocation139_spill] sm:$0xff] %v5590_v7  ;;  %11517 = vst [vmem:[#allocation140_spill] sm:$0xff] %v5601_v28  ;;  %v524_v21 = vmul.f32 %v11507_v45, %v5544_v44  ;;  %v525_v20 = vmul.f32 %v11507_v45, %v5547_v53  ;;  %v5621_v33 = vld [vmem:[%s4724_s30 + $0x16b] sm:$0xff]  ;;  %v5624_v42 = vld [vmem:[%s4724_s30 + $0x173] sm:$0xff]  ;;  %v526_v10 = vmul.f32 %v11507_v45, %v5551_v5 }
  0x65   : > { %11518 = vst [vmem:[#allocation141_spill] sm:$0xff] %v5604_v55  ;;  %11519 = vst [vmem:[#allocation142_spill] sm:$0xff] %v5607_v13  ;;  %v527_v2 = vmul.f32 %v11507_v45, %v5554_v54  ;;  %v528_v43 = vmul.f32 %v11507_v45, %v5557_v11  ;;  %v529_v44 = vmul.f32 %v11507_v45, %v5567_v30 }
  0x66   : > { %11520 = vst [vmem:[#allocation143_spill] sm:$0xff] %v5618_v12  ;;  %11521 = vst [vmem:[#allocation144_spill] sm:$0xff] %v5621_v33  ;;  %v530_v53 = vmul.f32 %v11507_v45, %v5570_v39  ;;  %v531_v17 = vmul.f32 %v11507_v45, %v5573_v14  ;;  %v532_v18 = vmul.f32 %v11507_v45, %v5584_v38 }
  0x67   : > { %11522 = vst [vmem:[#allocation145_spill] sm:$0xff] %v5624_v42  ;;  %v533_v5 = vmul.f32 %v11507_v45, %v5587_v0  ;;  %v534_v54 = vmul.f32 %v11507_v45, %v5590_v7  ;;  %v535_v11 = vmul.f32 %v11507_v45, %v5601_v28  ;;  %v536_v30 = vmul.f32 %v11507_v45, %v5604_v55 }
  0x68   : > { %v537_v39 = vmul.f32 %v11507_v45, %v5607_v13  ;;  %v538_v14 = vmul.f32 %v11507_v45, %v5618_v12  ;;  %v539_v38 = vmul.f32 %v11507_v45, %v5621_v33  ;;  %v540_v0 = vmul.f32 %v11507_v45, %v5624_v42  ;;  %v5840_v42 = vld [vmem:[%s4724_s30 + $0x12c] sm:$0xff]  ;;  %v5851_v33 = vld [vmem:[%s4724_s30 + $0x13c] sm:$0xff] }
  0x69   : > { %v5657_v7 = vadd.f32 %v509_v34, %v5407_v59  ;;  %v5660_v28 = vadd.f32 %v510_v62, %v5410_v32  ;;  %v5663_v55 = vadd.f32 %v511_v16, %v5413_v31  ;;  %v5666_v13 = vadd.f32 %v512_v48, %v5416_v8  ;;  %v11548_v62 = vld [vmem:[#allocation100_spill] sm:$0xff]  ;;  %v11550_v16 = vld [vmem:[#allocation101_spill] sm:$0xff]  ;;  %v11552_v48 = vld [vmem:[#allocation102_spill] sm:$0xff]  ;;  %11566 = vst [vmem:[#allocation171_spill] sm:$0xff] %v5840_v42 }
  0x6a   : > { %v5669_v12 = vadd.f32 %v513_v27, %v5419_v4  ;;  %v5672_v45 = vadd.f32 %v514_v60, %v5422_v23  ;;  %v5675_v59 = vadd.f32 %v515_v29, %v5425_v35  ;;  %v5678_v32 = vadd.f32 %v516_v36, %v5428_v58  ;;  %v573_v58 = vld [vmem:[%s4724_s30 + $0x4] sm:$0xff]  ;;  %v11557_v29 = vld [vmem:[#allocation15_spill] sm:$0xff]  ;;  %11567 = vst [vmem:[#allocation172_spill] sm:$0xff] %v5851_v33 }
  0x6b   : > { %v5681_v31 = vadd.f32 %v517_v1, %v5431_v37  ;;  %v5684_v8 = vadd.f32 %v518_v57, %v5434_v56  ;;  %v5687_v4 = vadd.f32 %v519_v3, %v5437_v41  ;;  %v5690_v23 = vadd.f32 %v520_v49, %v5440_v47  ;;  %v574_v47 = vld [vmem:[%s4724_s30 + $0xc] sm:$0xff]  ;;  %v5710_v1 = vld [vmem:[%s4724_s30 + $0x1c] sm:$0xff]  ;;  %v5716_v57 = vld [vmem:[%s4724_s30 + $0x34] sm:$0xff] }
  0x6c   : > { %v5693_v35 = vadd.f32 %v521_v19, %v5443_v46  ;;  %v5697_v34 = vadd.f32 %v522_v40, %v5447_v9  ;;  %v5700_v37 = vadd.f32 %v523_v26, %v5450_v25  ;;  %v5703_v56 = vadd.f32 %v524_v21, %v5453_v24  ;;  %11523 = vst [vmem:[#allocation146_spill] sm:$0xff] %v5710_v1  ;;  %v5713_v46 = vld [vmem:[%s4724_s30 + $0x24] sm:$0xff]  ;;  %v5731_v3 = vld [vmem:[%s4724_s30 + $0x3c] sm:$0xff]  ;;  %v5734_v49 = vld [vmem:[%s4724_s30 + $0x4c] sm:$0xff] }
  0x6d   : > { %v5706_v41 = vadd.f32 %v525_v20, %v5456_v50  ;;  %11524 = vst [vmem:[#allocation147_spill] sm:$0xff] %v5713_v46  ;;  %11525 = vst [vmem:[#allocation148_spill] sm:$0xff] %v5716_v57  ;;  %v5719_v9 = vadd.f32 %v526_v10, %v5469_v15  ;;  %v5722_v25 = vadd.f32 %v527_v2, %v5472_v22  ;;  %v5737_v19 = vld [vmem:[%s4724_s30 + $0x54] sm:$0xff]  ;;  %v5752_v21 = vld [vmem:[%s4724_s30 + $0x64] sm:$0xff] }
  0x6e   : > { %v5725_v24 = vadd.f32 %v528_v43, %v5475_v51  ;;  %v5728_v50 = vadd.f32 %v529_v44, %v5478_v52  ;;  %11526 = vst [vmem:[#allocation149_spill] sm:$0xff] %v5731_v3  ;;  %11527 = vst [vmem:[#allocation150_spill] sm:$0xff] %v5734_v49  ;;  %v5740_v15 = vadd.f32 %v530_v53, %v5490_v61  ;;  %v11532_v52 = vld [vmem:[#allocation89_spill] sm:$0xff]  ;;  %v5755_v10 = vld [vmem:[%s4724_s30 + $0x6c] sm:$0xff] }
  0x6f   : > { %11528 = vst [vmem:[#allocation151_spill] sm:$0xff] %v5737_v19  ;;  %v5743_v22 = vadd.f32 %v531_v17, %v5493_v6  ;;  %v5746_v51 = vadd.f32 %v532_v18, %v5496_v63  ;;  %v5749_v26 = vadd.f32 %v533_v5, %v11532_v52  ;;  %11534 = vst [vmem:[#allocation155_spill] sm:$0xff] %v5752_v21  ;;  %v5758_v20 = vld [vmem:[%s4724_s30 + $0x7c] sm:$0xff]  ;;  %v11539_v17 = vld [vmem:[#allocation94_spill] sm:$0xff] }
  0x70   : > { %11529 = vst [vmem:[#allocation152_spill] sm:$0xff] %v5740_v15  ;;  %11535 = vst [vmem:[#allocation156_spill] sm:$0xff] %v5755_v10  ;;  %v11537_v61 = vld [vmem:[#allocation93_spill] sm:$0xff]  ;;  %v5764_v63 = vadd.f32 %v535_v11, %v11539_v17  ;;  %v11541_v18 = vld [vmem:[#allocation95_spill] sm:$0xff]  ;;  %v5785_v11 = vadd.f32 %v539_v38, %v11550_v16  ;;  %v5788_v27 = vadd.f32 %v540_v0, %v11552_v48 }
  0x71   : > { %11530 = vst [vmem:[#allocation153_spill] sm:$0xff] %v5743_v22  ;;  %11531 = vst [vmem:[#allocation154_spill] sm:$0xff] %v5746_v51  ;;  %v5761_v6 = vadd.f32 %v534_v54, %v11537_v61  ;;  %v5767_v2 = vadd.f32 %v536_v30, %v11541_v18  ;;  %v11543_v40 = vld [vmem:[#allocation96_spill] sm:$0xff]  ;;  %v5773_v44 = vld [vmem:[%s4724_s30 + $0x84] sm:$0xff]  ;;  %v5782_v54 = vadd.f32 %v538_v14, %v11548_v62 }
  0x72   : > { %11533 = vst [vmem:[#allocation89_spill] sm:$0xff] %v5749_v26  ;;  %11536 = vst [vmem:[#allocation157_spill] sm:$0xff] %v5758_v20  ;;  %v5770_v43 = vadd.f32 %v537_v39, %v11543_v40  ;;  %v5776_v53 = vld [vmem:[%s4724_s30 + $0x94] sm:$0xff]  ;;  %v5779_v5 = vld [vmem:[%s4724_s30 + $0x9c] sm:$0xff]  ;;  %v609_v36 = vmul.f32 %v11557_v29, %v573_v58  ;;  %v610_v0 = vmul.f32 %v11557_v29, %v574_v47 }
  0x73   : > { %11538 = vst [vmem:[#allocation93_spill] sm:$0xff] %v5761_v6  ;;  %11540 = vst [vmem:[#allocation94_spill] sm:$0xff] %v5764_v63  ;;  %v5791_v30 = vld [vmem:[%s4724_s30 + $0xac] sm:$0xff]  ;;  %v5794_v39 = vld [vmem:[%s4724_s30 + $0xb4] sm:$0xff]  ;;  %v611_v61 = vmul.f32 %v11557_v29, %v5710_v1  ;;  %v612_v17 = vmul.f32 %v11557_v29, %v5713_v46  ;;  %v613_v58 = vmul.f32 %v11557_v29, %v5716_v57 }
  0x74   : > { %11542 = vst [vmem:[#allocation95_spill] sm:$0xff] %v5767_v2  ;;  %11544 = vst [vmem:[#allocation96_spill] sm:$0xff] %v5770_v43  ;;  %v5797_v60 = vld [vmem:[%s4724_s30 + $0xc4] sm:$0xff]  ;;  %v5801_v52 = vld [vmem:[%s4724_s30 + $0xcc] sm:$0xff]  ;;  %v614_v47 = vmul.f32 %v11557_v29, %v5731_v3  ;;  %v615_v16 = vmul.f32 %v11557_v29, %v5734_v49  ;;  %v616_v48 = vmul.f32 %v11557_v29, %v5737_v19 }
  0x75   : > { %11545 = vst [vmem:[#allocation158_spill] sm:$0xff] %v5773_v44  ;;  %11546 = vst [vmem:[#allocation159_spill] sm:$0xff] %v5776_v53  ;;  %v5804_v14 = vld [vmem:[%s4724_s30 + $0xdc] sm:$0xff]  ;;  %v5807_v38 = vld [vmem:[%s4724_s30 + $0xe4] sm:$0xff]  ;;  %v617_v57 = vmul.f32 %v11557_v29, %v5752_v21  ;;  %v618_v3 = vmul.f32 %v11557_v29, %v5755_v10  ;;  %v619_v49 = vmul.f32 %v11557_v29, %v5758_v20 }
  0x76   : > { %11547 = vst [vmem:[#allocation160_spill] sm:$0xff] %v5779_v5  ;;  %11549 = vst [vmem:[#allocation100_spill] sm:$0xff] %v5782_v54  ;;  %v5817_v18 = vld [vmem:[%s4724_s30 + $0xf4] sm:$0xff]  ;;  %v5820_v40 = vld [vmem:[%s4724_s30 + $0xfc] sm:$0xff]  ;;  %v620_v19 = vmul.f32 %v11557_v29, %v5773_v44  ;;  %v621_v21 = vmul.f32 %v11557_v29, %v5776_v53  ;;  %v622_v54 = vmul.f32 %v11557_v29, %v5779_v5 }
  0x77   : > { %11551 = vst [vmem:[#allocation101_spill] sm:$0xff] %v5785_v11  ;;  %11553 = vst [vmem:[#allocation102_spill] sm:$0xff] %v5788_v27  ;;  %v5823_v62 = vld [vmem:[%s4724_s30 + $0x10c] sm:$0xff]  ;;  %v5834_v46 = vld [vmem:[%s4724_s30 + $0x114] sm:$0xff]  ;;  %v623_v10 = vmul.f32 %v11557_v29, %v5791_v30  ;;  %v624_v20 = vmul.f32 %v11557_v29, %v5794_v39  ;;  %v625_v44 = vmul.f32 %v11557_v29, %v5797_v60 }
  0x78   : > { %11554 = vst [vmem:[#allocation161_spill] sm:$0xff] %v5791_v30  ;;  %11555 = vst [vmem:[#allocation162_spill] sm:$0xff] %v5794_v39  ;;  %v5837_v1 = vld [vmem:[%s4724_s30 + $0x124] sm:$0xff]  ;;  %v5857_v11 = vld [vmem:[%s4724_s30 + $0x154] sm:$0xff]  ;;  %v626_v63 = vmul.f32 %v11557_v29, %v5801_v52  ;;  %v627_v5 = vmul.f32 %v11557_v29, %v5804_v14  ;;  %v628_v30 = vmul.f32 %v11557_v29, %v5807_v38 }
  0x79   : > { %11556 = vst [vmem:[#allocation163_spill] sm:$0xff] %v5797_v60  ;;  %11558 = vst [vmem:[#allocation15_spill] sm:$0xff] %v5801_v52  ;;  %v5854_v27 = vld [vmem:[%s4724_s30 + $0x144] sm:$0xff]  ;;  %v5868_v43 = vld [vmem:[%s4724_s30 + $0x15c] sm:$0xff]  ;;  %v629_v39 = vmul.f32 %v11557_v29, %v5817_v18  ;;  %v630_v60 = vmul.f32 %v11557_v29, %v5820_v40  ;;  %v631_v6 = vmul.f32 %v11557_v29, %v5823_v62 }
  0x7a   : > { %11559 = vst [vmem:[#allocation164_spill] sm:$0xff] %v5804_v14  ;;  %11560 = vst [vmem:[#allocation165_spill] sm:$0xff] %v5807_v38  ;;  %v5871_v53 = vld [vmem:[%s4724_s30 + $0x16c] sm:$0xff]  ;;  %v5874_v2 = vld [vmem:[%s4724_s30 + $0x174] sm:$0xff]  ;;  %v632_v26 = vmul.f32 %v11557_v29, %v5834_v46  ;;  %v633_v52 = vmul.f32 %v11557_v29, %v5837_v1  ;;  %v634_v14 = vmul.f32 %v11557_v29, %v5840_v42 }
  0x7b   : > { %11561 = vst [vmem:[#allocation166_spill] sm:$0xff] %v5817_v18  ;;  %11562 = vst [vmem:[#allocation167_spill] sm:$0xff] %v5820_v40  ;;  %v635_v38 = vmul.f32 %v11557_v29, %v5851_v33  ;;  %v636_v18 = vmul.f32 %v11557_v29, %v5854_v27  ;;  %v637_v40 = vmul.f32 %v11557_v29, %v5857_v11 }
  0x7c   : > { %11563 = vst [vmem:[#allocation168_spill] sm:$0xff] %v5823_v62  ;;  %11564 = vst [vmem:[#allocation169_spill] sm:$0xff] %v5834_v46  ;;  %v638_v62 = vmul.f32 %v11557_v29, %v5868_v43  ;;  %v639_v46 = vmul.f32 %v11557_v29, %v5871_v53  ;;  %v641_v42 = vadd.f32 %v609_v36, %v5657_v7 }
  0x7d   : > { %11565 = vst [vmem:[#allocation170_spill] sm:$0xff] %v5837_v1  ;;  %11568 = vst [vmem:[#allocation173_spill] sm:$0xff] %v5854_v27  ;;  %v640_v1 = vmul.f32 %v11557_v29, %v5874_v2  ;;  %v642_v51 = vadd.f32 %v610_v0, %v5660_v28  ;;  %v643_v33 = vadd.f32 %v611_v61, %v5663_v55  ;;  %v11589_v61 = vld [vmem:[#allocation25_spill] sm:$0xff] }
  0x7e   : > { %11569 = vst [vmem:[#allocation174_spill] sm:$0xff] %v5857_v11  ;;  %11570 = vst [vmem:[#allocation175_spill] sm:$0xff] %v5868_v43  ;;  %v644_v27 = vadd.f32 %v612_v17, %v5666_v13  ;;  %v645_v22 = vadd.f32 %v613_v58, %v5669_v12  ;;  %v646_v11 = vadd.f32 %v614_v47, %v5672_v45  ;;  %v5949_v58 = vld [vmem:[%s4724_s30 + $0x180] sm:$0xff] }
  0x7f   : > { %11571 = vst [vmem:[#allocation176_spill] sm:$0xff] %v5871_v53  ;;  %11572 = vst [vmem:[#allocation177_spill] sm:$0xff] %v5874_v2  ;;  %v647_v43 = vadd.f32 %v615_v16, %v5675_v59  ;;  %v648_v15 = vadd.f32 %v616_v48, %v5678_v32  ;;  %v649_v53 = vadd.f32 %v617_v57, %v5681_v31  ;;  %v11573_v57 = vld [vmem:[#allocation152_spill] sm:$0xff]  ;;  %v11594_v47 = vld [vmem:[#allocation29_spill] sm:$0xff] }
  0x80   : > { %v650_v29 = vadd.f32 %v618_v3, %v5684_v8  ;;  %v651_v7 = vadd.f32 %v619_v49, %v5687_v4  ;;  %v652_v28 = vadd.f32 %v620_v19, %v5690_v23  ;;  %v653_v55 = vadd.f32 %v621_v21, %v5693_v35  ;;  %v11574_v3 = vld [vmem:[#allocation153_spill] sm:$0xff]  ;;  %v11578_v21 = vld [vmem:[#allocation94_spill] sm:$0xff]  ;;  %11590 = vst [vmem:[#allocation152_spill] sm:$0xff] %v5949_v58  ;;  %v11610_v2 = vld [vmem:[#allocation31_spill] sm:$0xff] }
  0x81   : > { %v654_v13 = vadd.f32 %v622_v54, %v5697_v34  ;;  %v655_v12 = vadd.f32 %v623_v10, %v5700_v37  ;;  %v656_v45 = vadd.f32 %v624_v20, %v5703_v56  ;;  %v657_v59 = vadd.f32 %v625_v44, %v5706_v41  ;;  %v11575_v34 = vld [vmem:[#allocation154_spill] sm:$0xff]  ;;  %v11576_v49 = vld [vmem:[#allocation89_spill] sm:$0xff]  ;;  %v11579_v10 = vld [vmem:[#allocation95_spill] sm:$0xff] }
  0x82   : > { %v658_v32 = vadd.f32 %v626_v63, %v5719_v9  ;;  %v659_v31 = vadd.f32 %v627_v5, %v5722_v25  ;;  %v660_v8 = vadd.f32 %v628_v30, %v5725_v24  ;;  %v661_v4 = vadd.f32 %v629_v39, %v5728_v50  ;;  %v11577_v19 = vld [vmem:[#allocation93_spill] sm:$0xff]  ;;  %v11580_v20 = vld [vmem:[#allocation96_spill] sm:$0xff]  ;;  %v11583_v54 = vld [vmem:[#allocation102_spill] sm:$0xff] }
  0x83   : > { %v662_v23 = vadd.f32 %v630_v60, %v11573_v57  ;;  %v663_v35 = vadd.f32 %v631_v6, %v11574_v3  ;;  %v664_v37 = vadd.f32 %v632_v26, %v11575_v34  ;;  %v665_v56 = vadd.f32 %v633_v52, %v11576_v49  ;;  %v11581_v63 = vld [vmem:[#allocation100_spill] sm:$0xff]  ;;  %v11582_v44 = vld [vmem:[#allocation101_spill] sm:$0xff]  ;;  %v11587_v52 = vld [vmem:[#allocation22_spill] sm:$0xff] }
  0x84   : > { %v666_v41 = vadd.f32 %v634_v14, %v11577_v19  ;;  %v667_v9 = vadd.f32 %v635_v38, %v11578_v21  ;;  %v668_v25 = vadd.f32 %v636_v18, %v11579_v10  ;;  %v669_v24 = vadd.f32 %v637_v40, %v11580_v20  ;;  %v11584_v6 = vld [vmem:[#allocation20_spill] sm:$0xff]  ;;  %v11585_v39 = vld [vmem:[#allocation13_spill] sm:$0xff]  ;;  %v11595_v48 = vld [vmem:[#allocation30_spill] sm:$0xff] }
  0x85   : > { %v670_v50 = vadd.f32 %v638_v62, %v11581_v63  ;;  %v671_v5 = vadd.f32 %v639_v46, %v11582_v44  ;;  %v672_v30 = vadd.f32 %v640_v1, %v11583_v54  ;;  %v722_v60 = vmul.f32 %v11585_v39, %v11584_v6  ;;  %v11586_v26 = vld [vmem:[#allocation21_spill] sm:$0xff]  ;;  %v11588_v38 = vld [vmem:[#allocation24_spill] sm:$0xff]  ;;  %v5952_v46 = vld [vmem:[%s4724_s30 + $0x188] sm:$0xff] }
  0x86   : > { %v723_v36 = vmul.f32 %v11585_v39, %v11586_v26  ;;  %v724_v14 = vmul.f32 %v11585_v39, %v11587_v52  ;;  %v725_v0 = vmul.f32 %v11585_v39, %v11588_v38  ;;  %v726_v17 = vmul.f32 %v11585_v39, %v11589_v61  ;;  %11591 = vst [vmem:[#allocation153_spill] sm:$0xff] %v5952_v46  ;;  %v11592_v1 = vld [vmem:[#allocation26_spill] sm:$0xff]  ;;  %v11593_v40 = vld [vmem:[#allocation28_spill] sm:$0xff]  ;;  %v11597_v49 = vld [vmem:[#allocation33_spill] sm:$0xff] }
  0x87   : > { %v727_v18 = vmul.f32 %v11585_v39, %v11592_v1  ;;  %v728_v62 = vmul.f32 %v11585_v39, %v11593_v40  ;;  %v729_v16 = vmul.f32 %v11585_v39, %v11594_v47  ;;  %v730_v57 = vmul.f32 %v11585_v39, %v11595_v48  ;;  %v11596_v3 = vld [vmem:[#allocation32_spill] sm:$0xff]  ;;  %v11598_v21 = vld [vmem:[#allocation34_spill] sm:$0xff]  ;;  %v11600_v44 = vld [vmem:[#allocation37_spill] sm:$0xff] }
  0x88   : > { %v731_v34 = vmul.f32 %v11585_v39, %v11596_v3  ;;  %v732_v19 = vmul.f32 %v11585_v39, %v11597_v49  ;;  %v733_v10 = vmul.f32 %v11585_v39, %v11598_v21  ;;  %v11599_v20 = vld [vmem:[#allocation36_spill] sm:$0xff]  ;;  %v735_v54 = vmul.f32 %v11585_v39, %v11600_v44  ;;  %v11601_v6 = vld [vmem:[#allocation39_spill] sm:$0xff]  ;;  %v11603_v61 = vld [vmem:[#allocation42_spill] sm:$0xff] }
  0x89   : > { %v734_v63 = vmul.f32 %v11585_v39, %v11599_v20  ;;  %v736_v26 = vmul.f32 %v11585_v39, %v11601_v6  ;;  %v11602_v52 = vld [vmem:[#allocation40_spill] sm:$0xff]  ;;  %v738_v1 = vmul.f32 %v11585_v39, %v11603_v61  ;;  %v11604_v40 = vld [vmem:[#allocation43_spill] sm:$0xff]  ;;  %v740_v48 = vmul.f32 %v5949_v58, %v11585_v39 }
  0x8a   : > { %v737_v38 = vmul.f32 %v11585_v39, %v11602_v52  ;;  %v739_v47 = vmul.f32 %v11585_v39, %v11604_v40  ;;  %v741_v3 = vmul.f32 %v5952_v46, %v11585_v39  ;;  %v11605_v49 = vld [vmem:[#allocation19_spill] sm:$0xff]  ;;  %v5994_v61 = vadd.f32 %v11610_v2, %v644_v27  ;;  %v11612_v39 = vld [vmem:[#allocation38_spill] sm:$0xff] }
  0x8b   : > { %v5985_v21 = vadd.f32 %v11605_v49, %v641_v42  ;;  %v11607_v20 = vld [vmem:[#allocation23_spill] sm:$0xff]  ;;  %v6000_v46 = vadd.f32 %v11612_v39, %v646_v11  ;;  %v11613_v42 = vld [vmem:[#allocation41_spill] sm:$0xff]  ;;  %v6020_v11 = vadd.f32 %v722_v60, %v653_v55  ;;  %v6022_v39 = vadd.f32 %v723_v36, %v654_v13  ;;  %v11628_v60 = vld [vmem:[#allocation16_spill] sm:$0xff] }
  0x8c   : > { %v5988_v44 = vadd.f32 %v11607_v20, %v642_v51  ;;  %v11609_v6 = vld [vmem:[#allocation27_spill] sm:$0xff]  ;;  %v6003_v49 = vadd.f32 %v11613_v42, %v647_v43  ;;  %v11615_v51 = vld [vmem:[#allocation48_spill] sm:$0xff]  ;;  %v6024_v43 = vadd.f32 %v724_v14, %v655_v12  ;;  %v6034_v42 = vadd.f32 %v729_v16, %v660_v8  ;;  %v11629_v36 = vld [vmem:[#allocation46_spill] sm:$0xff] }
  0x8d   : > { %11606 = vst [vmem:[#allocation154_spill] sm:$0xff] %v5985_v21  ;;  %v5991_v52 = vadd.f32 %v11609_v6, %v643_v33  ;;  %v11611_v40 = vld [vmem:[#allocation35_spill] sm:$0xff]  ;;  %v11614_v21 = vld [vmem:[#allocation45_spill] sm:$0xff]  ;;  %v6040_v55 = vadd.f32 %v732_v19, %v663_v35  ;;  %v6042_v13 = vadd.f32 %v733_v10, %v664_v37  ;;  %v6044_v12 = vadd.f32 %v734_v63, %v665_v56  ;;  %v11627_v35 = vld [vmem:[#allocation44_spill] sm:$0xff] }
  0x8e   : > { %11608 = vst [vmem:[#allocation89_spill] sm:$0xff] %v5988_v44  ;;  %v5997_v58 = vadd.f32 %v11611_v40, %v645_v22  ;;  %v6006_v20 = vadd.f32 %v11614_v21, %v648_v15  ;;  %v6009_v44 = vadd.f32 %v11615_v51, %v649_v53  ;;  %v11616_v33 = vld [vmem:[#allocation55_spill] sm:$0xff]  ;;  %v11618_v22 = vld [vmem:[#allocation60_spill] sm:$0xff]  ;;  %v6026_v15 = vadd.f32 %v725_v0, %v656_v45  ;;  %v11636_v16 = vld [vmem:[#allocation54_spill] sm:$0xff] }
  0x8f   : > { %v6012_v6 = vadd.f32 %v11616_v33, %v650_v29  ;;  %v11617_v2 = vld [vmem:[#allocation59_spill] sm:$0xff]  ;;  %v6018_v40 = vadd.f32 %v11618_v22, %v652_v28  ;;  %v6028_v21 = vadd.f32 %v726_v17, %v657_v59  ;;  %v6030_v53 = vadd.f32 %v727_v18, %v658_v32  ;;  %11619 = vst [vmem:[#allocation93_spill] sm:$0xff] %v6044_v12  ;;  %v11634_v0 = vld [vmem:[#allocation52_spill] sm:$0xff]  ;;  %v11635_v18 = vld [vmem:[#allocation53_spill] sm:$0xff] }
  0x90   : > { %v6015_v27 = vadd.f32 %v11617_v2, %v651_v7  ;;  %v6032_v29 = vadd.f32 %v728_v62, %v659_v31  ;;  %v6036_v7 = vadd.f32 %v730_v57, %v661_v4  ;;  %v6038_v28 = vadd.f32 %v731_v34, %v662_v23  ;;  %v11633_v14 = vld [vmem:[#allocation51_spill] sm:$0xff]  ;;  %v11637_v34 = vld [vmem:[#allocation56_spill] sm:$0xff]  ;;  %v11638_v10 = vld [vmem:[#allocation57_spill] sm:$0xff] }
  0x91   : > { %v6046_v45 = vadd.f32 %v735_v54, %v666_v41  ;;  %v6048_v59 = vadd.f32 %v736_v26, %v667_v9  ;;  %v6050_v32 = vadd.f32 %v737_v38, %v668_v25  ;;  %v6052_v31 = vadd.f32 %v738_v1, %v669_v24  ;;  %v11630_v41 = vld [vmem:[#allocation47_spill] sm:$0xff]  ;;  %v11631_v25 = vld [vmem:[#allocation49_spill] sm:$0xff]  ;;  %v11639_v54 = vld [vmem:[#allocation58_spill] sm:$0xff] }
  0x92   : > { %v6054_v8 = vadd.f32 %v739_v47, %v670_v50  ;;  %v6056_v4 = vadd.f32 %v740_v48, %v671_v5  ;;  %v6058_v23 = vadd.f32 %v741_v3, %v672_v30  ;;  %v810_v37 = vmul.f32 %v11628_v60, %v11627_v35  ;;  %v11632_v50 = vld [vmem:[#allocation50_spill] sm:$0xff]  ;;  %v11640_v38 = vld [vmem:[#allocation61_spill] sm:$0xff]  ;;  %v11642_v3 = vld [vmem:[#allocation63_spill] sm:$0xff] }
  0x93   : > { %11620 = vst [vmem:[#allocation94_spill] sm:$0xff] %v6046_v45  ;;  %11621 = vst [vmem:[#allocation95_spill] sm:$0xff] %v6048_v59  ;;  %v811_v56 = vmul.f32 %v11628_v60, %v11629_v36  ;;  %v812_v9 = vmul.f32 %v11628_v60, %v11630_v41  ;;  %v813_v24 = vmul.f32 %v11628_v60, %v11631_v25  ;;  %v11641_v47 = vld [vmem:[#allocation62_spill] sm:$0xff]  ;;  %v11643_v33 = vld [vmem:[#allocation64_spill] sm:$0xff] }
  0x94   : > { %11622 = vst [vmem:[#allocation96_spill] sm:$0xff] %v6050_v32  ;;  %11623 = vst [vmem:[#allocation100_spill] sm:$0xff] %v6052_v31  ;;  %v814_v5 = vmul.f32 %v11628_v60, %v11632_v50  ;;  %v815_v30 = vmul.f32 %v11628_v60, %v11633_v14  ;;  %v816_v17 = vmul.f32 %v11628_v60, %v11634_v0  ;;  %v11644_v22 = vld [vmem:[#allocation65_spill] sm:$0xff]  ;;  %v6098_v41 = vld [vmem:[%s4724_s30 + $0x189] sm:$0xff] }
  0x95   : > { %11624 = vst [vmem:[#allocation101_spill] sm:$0xff] %v6054_v8  ;;  %11625 = vst [vmem:[#allocation102_spill] sm:$0xff] %v6056_v4  ;;  %v817_v62 = vmul.f32 %v11628_v60, %v11635_v18  ;;  %v818_v57 = vmul.f32 %v11628_v60, %v11636_v16  ;;  %v819_v19 = vmul.f32 %v11628_v60, %v11637_v34  ;;  %v6095_v36 = vld [vmem:[%s4724_s30 + $0x181] sm:$0xff]  ;;  %v11648_v14 = vld [vmem:[#allocation68_spill] sm:$0xff] }
  0x96   : > { %11626 = vst [vmem:[#allocation20_spill] sm:$0xff] %v6058_v23  ;;  %v820_v63 = vmul.f32 %v11628_v60, %v11638_v10  ;;  %v821_v26 = vmul.f32 %v11628_v60, %v11639_v54  ;;  %v822_v1 = vmul.f32 %v11628_v60, %v11640_v38  ;;  %v823_v48 = vmul.f32 %v11628_v60, %v11641_v47  ;;  %v11647_v25 = vld [vmem:[#allocation66_spill] sm:$0xff]  ;;  %v11649_v18 = vld [vmem:[#allocation69_spill] sm:$0xff]  ;;  %v11651_v54 = vld [vmem:[#allocation72_spill] sm:$0xff] }
  0x97   : > { %v824_v51 = vmul.f32 %v11628_v60, %v11642_v3  ;;  %v825_v2 = vmul.f32 %v11628_v60, %v11643_v33  ;;  %v826_v35 = vmul.f32 %v11628_v60, %v11644_v22  ;;  %11645 = vst [vmem:[#allocation13_spill] sm:$0xff] %v6095_v36  ;;  %11646 = vst [vmem:[#allocation21_spill] sm:$0xff] %v6098_v41  ;;  %v11650_v34 = vld [vmem:[#allocation70_spill] sm:$0xff]  ;;  %v11652_v47 = vld [vmem:[#allocation73_spill] sm:$0xff] }
  0x98   : > { %v827_v50 = vmul.f32 %v11628_v60, %v11647_v25  ;;  %v828_v0 = vmul.f32 %v11628_v60, %v11648_v14  ;;  %v829_v16 = vmul.f32 %v11628_v60, %v11649_v18  ;;  %v830_v10 = vmul.f32 %v11628_v60, %v11650_v34  ;;  %v11653_v33 = vld [vmem:[#allocation74_spill] sm:$0xff]  ;;  %v11654_v23 = vld [vmem:[#allocation76_spill] sm:$0xff]  ;;  %v11655_v4 = vld [vmem:[#allocation77_spill] sm:$0xff] }
  0x99   : > { %v831_v38 = vmul.f32 %v11628_v60, %v11651_v54  ;;  %v832_v3 = vmul.f32 %v11628_v60, %v11652_v47  ;;  %v833_v22 = vmul.f32 %v11628_v60, %v11653_v33  ;;  %v834_v25 = vmul.f32 %v11628_v60, %v11654_v23  ;;  %v11656_v8 = vld [vmem:[#allocation78_spill] sm:$0xff]  ;;  %v11657_v31 = vld [vmem:[#allocation80_spill] sm:$0xff]  ;;  %v11658_v32 = vld [vmem:[#allocation81_spill] sm:$0xff] }
  0x9a   : > { %v835_v14 = vmul.f32 %v11628_v60, %v11655_v4  ;;  %v836_v18 = vmul.f32 %v11628_v60, %v11656_v8  ;;  %v837_v34 = vmul.f32 %v11628_v60, %v11657_v31  ;;  %v838_v54 = vmul.f32 %v11628_v60, %v11658_v32  ;;  %v11659_v59 = vld [vmem:[#allocation82_spill] sm:$0xff]  ;;  %v11661_v12 = vld [vmem:[#allocation89_spill] sm:$0xff] }
  0x9b   : > { %v839_v47 = vmul.f32 %v11628_v60, %v11659_v59  ;;  %v840_v33 = vmul.f32 %v6095_v36, %v11628_v60  ;;  %v841_v23 = vmul.f32 %v6098_v41, %v11628_v60  ;;  %v11660_v45 = vld [vmem:[#allocation154_spill] sm:$0xff]  ;;  %v6134_v8 = vadd.f32 %v811_v56, %v11661_v12 }
  0x9c   : > { %v6131_v4 = vadd.f32 %v810_v37, %v11660_v45  ;;  %v6137_v31 = vadd.f32 %v812_v9, %v5991_v52  ;;  %v6140_v32 = vadd.f32 %v813_v24, %v5994_v61  ;;  %v6143_v59 = vadd.f32 %v814_v5, %v5997_v58 }
  0x9d   : > { %v6146_v36 = vadd.f32 %v815_v30, %v6000_v46  ;;  %v6149_v60 = vadd.f32 %v816_v17, %v6003_v49  ;;  %v6152_v45 = vadd.f32 %v817_v62, %v6006_v20  ;;  %v6155_v12 = vadd.f32 %v818_v57, %v6009_v44  ;;  %v11676_v62 = vld [vmem:[#allocation20_spill] sm:$0xff] }
  0x9e   : > { %v6158_v52 = vadd.f32 %v819_v19, %v6012_v6  ;;  %v6161_v61 = vadd.f32 %v820_v63, %v6015_v27  ;;  %v6164_v58 = vadd.f32 %v821_v26, %v6018_v40  ;;  %v6167_v46 = vadd.f32 %v822_v1, %v6020_v11  ;;  %v11678_v19 = vld [vmem:[#allocation83_spill] sm:$0xff]  ;;  %v11679_v63 = vld [vmem:[#allocation17_spill] sm:$0xff]  ;;  %v11680_v1 = vld [vmem:[#allocation84_spill] sm:$0xff] }
  0x9f   : > { %v6170_v49 = vadd.f32 %v823_v48, %v6022_v39  ;;  %v6173_v20 = vadd.f32 %v824_v51, %v6024_v43  ;;  %v6176_v44 = vadd.f32 %v825_v2, %v6026_v15  ;;  %v6179_v6 = vadd.f32 %v826_v35, %v6028_v21  ;;  %v11681_v51 = vld [vmem:[#allocation85_spill] sm:$0xff]  ;;  %v11682_v35 = vld [vmem:[#allocation86_spill] sm:$0xff] }
  0xa0   : > { %v6182_v27 = vadd.f32 %v827_v50, %v6030_v53  ;;  %v6185_v40 = vadd.f32 %v828_v0, %v6032_v29  ;;  %v6188_v11 = vadd.f32 %v829_v16, %v6034_v42  ;;  %v6191_v39 = vadd.f32 %v830_v10, %v6036_v7  ;;  %v11662_v53 = vld [vmem:[#allocation93_spill] sm:$0xff]  ;;  %v11664_v29 = vld [vmem:[#allocation94_spill] sm:$0xff]  ;;  %v11666_v42 = vld [vmem:[#allocation95_spill] sm:$0xff] }
  0xa1   : > { %v6194_v43 = vadd.f32 %v831_v38, %v6038_v28  ;;  %v6197_v15 = vadd.f32 %v832_v3, %v6040_v55  ;;  %v6200_v21 = vadd.f32 %v833_v22, %v6042_v13  ;;  %v6203_v37 = vadd.f32 %v834_v25, %v11662_v53  ;;  %v11668_v7 = vld [vmem:[#allocation96_spill] sm:$0xff]  ;;  %v11672_v55 = vld [vmem:[#allocation101_spill] sm:$0xff]  ;;  %v11674_v13 = vld [vmem:[#allocation102_spill] sm:$0xff] }
  0xa2   : > { %v6206_v56 = vadd.f32 %v835_v14, %v11664_v29  ;;  %v6209_v9 = vadd.f32 %v836_v18, %v11666_v42  ;;  %v6212_v24 = vadd.f32 %v837_v34, %v11668_v7  ;;  %v11670_v28 = vld [vmem:[#allocation100_spill] sm:$0xff]  ;;  %v6218_v30 = vadd.f32 %v839_v47, %v11672_v55  ;;  %v11683_v0 = vld [vmem:[#allocation87_spill] sm:$0xff]  ;;  %v11685_v3 = vld [vmem:[#allocation90_spill] sm:$0xff] }
  0xa3   : > { %11663 = vst [vmem:[#allocation22_spill] sm:$0xff] %v6203_v37  ;;  %v6215_v5 = vadd.f32 %v838_v54, %v11670_v28  ;;  %v6221_v17 = vadd.f32 %v840_v33, %v11674_v13  ;;  %v6224_v57 = vadd.f32 %v841_v23, %v11676_v62  ;;  %v910_v26 = vmul.f32 %v11679_v63, %v11678_v19  ;;  %v11684_v10 = vld [vmem:[#allocation88_spill] sm:$0xff]  ;;  %v11686_v25 = vld [vmem:[#allocation91_spill] sm:$0xff]  ;;  %v11688_v54 = vld [vmem:[#allocation97_spill] sm:$0xff] }
  0xa4   : > { %11665 = vst [vmem:[#allocation24_spill] sm:$0xff] %v6206_v56  ;;  %11667 = vst [vmem:[#allocation25_spill] sm:$0xff] %v6209_v9  ;;  %v911_v48 = vmul.f32 %v11679_v63, %v11680_v1  ;;  %v912_v2 = vmul.f32 %v11679_v63, %v11681_v51  ;;  %v913_v50 = vmul.f32 %v11679_v63, %v11682_v35  ;;  %v11687_v18 = vld [vmem:[#allocation92_spill] sm:$0xff]  ;;  %v11689_v33 = vld [vmem:[#allocation98_spill] sm:$0xff] }
  0xa5   : > { %11669 = vst [vmem:[#allocation26_spill] sm:$0xff] %v6212_v24  ;;  %11671 = vst [vmem:[#allocation28_spill] sm:$0xff] %v6215_v5  ;;  %v914_v16 = vmul.f32 %v11679_v63, %v11683_v0  ;;  %v915_v38 = vmul.f32 %v11679_v63, %v11684_v10  ;;  %v916_v22 = vmul.f32 %v11679_v63, %v11685_v3  ;;  %v11690_v53 = vld [vmem:[#allocation99_spill] sm:$0xff]  ;;  %v11692_v28 = vld [vmem:[#allocation104_spill] sm:$0xff] }
  0xa6   : > { %11673 = vst [vmem:[#allocation29_spill] sm:$0xff] %v6218_v30  ;;  %11675 = vst [vmem:[#allocation30_spill] sm:$0xff] %v6221_v17  ;;  %v917_v14 = vmul.f32 %v11679_v63, %v11686_v25  ;;  %v918_v34 = vmul.f32 %v11679_v63, %v11687_v18  ;;  %v919_v47 = vmul.f32 %v11679_v63, %v11688_v54  ;;  %v11691_v42 = vld [vmem:[#allocation103_spill] sm:$0xff]  ;;  %v11693_v13 = vld [vmem:[#allocation105_spill] sm:$0xff] }
  0xa7   : > { %11677 = vst [vmem:[#allocation32_spill] sm:$0xff] %v6224_v57  ;;  %v920_v23 = vmul.f32 %v11679_v63, %v11689_v33  ;;  %v921_v29 = vmul.f32 %v11679_v63, %v11690_v53  ;;  %v922_v7 = vmul.f32 %v11679_v63, %v11691_v42  ;;  %v923_v55 = vmul.f32 %v11679_v63, %v11692_v28  ;;  %v11694_v19 = vld [vmem:[#allocation106_spill] sm:$0xff]  ;;  %v11695_v51 = vld [vmem:[#allocation107_spill] sm:$0xff]  ;;  %v11698_v3 = vld [vmem:[#allocation108_spill] sm:$0xff] }
  0xa8   : > { %v924_v62 = vmul.f32 %v11679_v63, %v11693_v13  ;;  %v925_v1 = vmul.f32 %v11679_v63, %v11694_v19  ;;  %v926_v35 = vmul.f32 %v11679_v63, %v11695_v51  ;;  %v6261_v0 = vld [vmem:[%s4724_s30 + $0x182] sm:$0xff]  ;;  %v6264_v10 = vld [vmem:[%s4724_s30 + $0x18a] sm:$0xff]  ;;  %v927_v25 = vmul.f32 %v11679_v63, %v11698_v3  ;;  %v11702_v13 = vld [vmem:[#allocation112_spill] sm:$0xff] }
  0xa9   : > { %11696 = vst [vmem:[#allocation33_spill] sm:$0xff] %v6261_v0  ;;  %11697 = vst [vmem:[#allocation34_spill] sm:$0xff] %v6264_v10  ;;  %v11699_v18 = vld [vmem:[#allocation109_spill] sm:$0xff]  ;;  %v11700_v33 = vld [vmem:[#allocation110_spill] sm:$0xff]  ;;  %v931_v19 = vmul.f32 %v11679_v63, %v11702_v13 }
  0xaa   : > { %v928_v54 = vmul.f32 %v11679_v63, %v11699_v18  ;;  %v929_v53 = vmul.f32 %v11679_v63, %v11700_v33  ;;  %v11701_v42 = vld [vmem:[#allocation111_spill] sm:$0xff]  ;;  %v11703_v51 = vld [vmem:[#allocation113_spill] sm:$0xff]  ;;  %v11704_v57 = vld [vmem:[#allocation114_spill] sm:$0xff] }
  0xab   : > { %v930_v28 = vmul.f32 %v11679_v63, %v11701_v42  ;;  %v932_v41 = vmul.f32 %v11679_v63, %v11703_v51  ;;  %v933_v17 = vmul.f32 %v11679_v63, %v11704_v57  ;;  %v11705_v30 = vld [vmem:[#allocation115_spill] sm:$0xff]  ;;  %v11706_v5 = vld [vmem:[#allocation116_spill] sm:$0xff]  ;;  %v11707_v24 = vld [vmem:[#allocation117_spill] sm:$0xff]  ;;  %v940_v57 = vmul.f32 %v6261_v0, %v11679_v63 }
  0xac   : > { %v934_v3 = vmul.f32 %v11679_v63, %v11705_v30  ;;  %v935_v18 = vmul.f32 %v11679_v63, %v11706_v5  ;;  %v936_v33 = vmul.f32 %v11679_v63, %v11707_v24  ;;  %v11708_v9 = vld [vmem:[#allocation118_spill] sm:$0xff]  ;;  %v11709_v56 = vld [vmem:[#allocation119_spill] sm:$0xff]  ;;  %v11710_v37 = vld [vmem:[#allocation120_spill] sm:$0xff]  ;;  %v941_v30 = vmul.f32 %v6264_v10, %v11679_v63 }
  0xad   : > { %v937_v42 = vmul.f32 %v11679_v63, %v11708_v9  ;;  %v938_v13 = vmul.f32 %v11679_v63, %v11709_v56  ;;  %v939_v51 = vmul.f32 %v11679_v63, %v11710_v37  ;;  %v6297_v5 = vadd.f32 %v910_v26, %v6131_v4 }
  0xae   : > { %v6300_v24 = vadd.f32 %v911_v48, %v6134_v8  ;;  %v6303_v9 = vadd.f32 %v912_v2, %v6137_v31  ;;  %v6306_v56 = vadd.f32 %v913_v50, %v6140_v32  ;;  %v6309_v37 = vadd.f32 %v914_v16, %v6143_v59 }
  0xaf   : > { %v6312_v0 = vadd.f32 %v915_v38, %v6146_v36  ;;  %v6315_v63 = vadd.f32 %v916_v22, %v6149_v60  ;;  %v6318_v4 = vadd.f32 %v917_v14, %v6152_v45  ;;  %v6321_v8 = vadd.f32 %v918_v34, %v6155_v12  ;;  %v11725_v38 = vld [vmem:[#allocation32_spill] sm:$0xff]  ;;  %v11727_v14 = vld [vmem:[#allocation67_spill] sm:$0xff]  ;;  %v11728_v34 = vld [vmem:[#allocation18_spill] sm:$0xff] }
  0xb0   : > { %v6324_v31 = vadd.f32 %v919_v47, %v6158_v52  ;;  %v6327_v32 = vadd.f32 %v920_v23, %v6161_v61  ;;  %v6330_v59 = vadd.f32 %v921_v29, %v6164_v58  ;;  %v6333_v36 = vadd.f32 %v922_v7, %v6167_v46  ;;  %v11729_v23 = vld [vmem:[#allocation71_spill] sm:$0xff] }
  0xb1   : > { %v6336_v60 = vadd.f32 %v923_v55, %v6170_v49  ;;  %v6339_v45 = vadd.f32 %v924_v62, %v6173_v20  ;;  %v6342_v12 = vadd.f32 %v925_v1, %v6176_v44  ;;  %v6345_v52 = vadd.f32 %v926_v35, %v6179_v6  ;;  %v11730_v7 = vld [vmem:[#allocation75_spill] sm:$0xff]  ;;  %v11732_v35 = vld [vmem:[#allocation121_spill] sm:$0xff] }
  0xb2   : > { %v6348_v61 = vadd.f32 %v927_v25, %v6182_v27  ;;  %v6351_v58 = vadd.f32 %v928_v54, %v6185_v40  ;;  %v6354_v46 = vadd.f32 %v929_v53, %v6188_v11  ;;  %v6357_v49 = vadd.f32 %v930_v28, %v6191_v39  ;;  %v11711_v27 = vld [vmem:[#allocation22_spill] sm:$0xff]  ;;  %v11713_v40 = vld [vmem:[#allocation24_spill] sm:$0xff]  ;;  %v11715_v11 = vld [vmem:[#allocation25_spill] sm:$0xff] }
  0xb3   : > { %v6360_v20 = vadd.f32 %v931_v19, %v6194_v43  ;;  %v6363_v44 = vadd.f32 %v932_v41, %v6197_v15  ;;  %v6366_v6 = vadd.f32 %v933_v17, %v6200_v21  ;;  %v6369_v26 = vadd.f32 %v934_v3, %v11711_v27  ;;  %v11717_v39 = vld [vmem:[#allocation26_spill] sm:$0xff]  ;;  %v11719_v43 = vld [vmem:[#allocation28_spill] sm:$0xff]  ;;  %v11721_v41 = vld [vmem:[#allocation29_spill] sm:$0xff] }
  0xb4   : > { %v6372_v48 = vadd.f32 %v935_v18, %v11713_v40  ;;  %v6375_v2 = vadd.f32 %v936_v33, %v11715_v11  ;;  %v6378_v50 = vadd.f32 %v937_v42, %v11717_v39  ;;  %v6381_v16 = vadd.f32 %v938_v13, %v11719_v43  ;;  %v11723_v21 = vld [vmem:[#allocation30_spill] sm:$0xff]  ;;  %v11731_v62 = vld [vmem:[#allocation79_spill] sm:$0xff]  ;;  %v11735_v3 = vld [vmem:[#allocation124_spill] sm:$0xff] }
  0xb5   : > { %11712 = vst [vmem:[#allocation36_spill] sm:$0xff] %v6369_v26  ;;  %v6384_v15 = vadd.f32 %v939_v51, %v11721_v41  ;;  %v6387_v17 = vadd.f32 %v940_v57, %v11723_v21  ;;  %v6390_v22 = vadd.f32 %v941_v30, %v11725_v38  ;;  %v1010_v47 = vmul.f32 %v11728_v34, %v11727_v14  ;;  %v11733_v54 = vld [vmem:[#allocation122_spill] sm:$0xff]  ;;  %v11734_v28 = vld [vmem:[#allocation123_spill] sm:$0xff]  ;;  %v11736_v33 = vld [vmem:[#allocation125_spill] sm:$0xff] }
  0xb6   : > { %11714 = vst [vmem:[#allocation37_spill] sm:$0xff] %v6372_v48  ;;  %11716 = vst [vmem:[#allocation39_spill] sm:$0xff] %v6375_v2  ;;  %v1011_v29 = vmul.f32 %v11728_v34, %v11729_v23  ;;  %v1012_v55 = vmul.f32 %v11728_v34, %v11730_v7  ;;  %v1013_v1 = vmul.f32 %v11728_v34, %v11731_v62  ;;  %v11737_v13 = vld [vmem:[#allocation126_spill] sm:$0xff]  ;;  %v11738_v57 = vld [vmem:[#allocation127_spill] sm:$0xff] }
  0xb7   : > { %11718 = vst [vmem:[#allocation40_spill] sm:$0xff] %v6378_v50  ;;  %11720 = vst [vmem:[#allocation42_spill] sm:$0xff] %v6381_v16  ;;  %v1014_v25 = vmul.f32 %v11728_v34, %v11732_v35  ;;  %v1015_v53 = vmul.f32 %v11728_v34, %v11733_v54  ;;  %v1016_v19 = vmul.f32 %v11728_v34, %v11734_v28  ;;  %v11739_v27 = vld [vmem:[#allocation128_spill] sm:$0xff]  ;;  %v11740_v11 = vld [vmem:[#allocation129_spill] sm:$0xff] }
  0xb8   : > { %11722 = vst [vmem:[#allocation43_spill] sm:$0xff] %v6384_v15  ;;  %11724 = vst [vmem:[#allocation19_spill] sm:$0xff] %v6387_v17  ;;  %v1017_v18 = vmul.f32 %v11728_v34, %v11735_v3  ;;  %v1018_v42 = vmul.f32 %v11728_v34, %v11736_v33  ;;  %v1019_v51 = vmul.f32 %v11728_v34, %v11737_v13  ;;  %v11741_v43 = vld [vmem:[#allocation130_spill] sm:$0xff]  ;;  %v11742_v21 = vld [vmem:[#allocation131_spill] sm:$0xff] }
  0xb9   : > { %11726 = vst [vmem:[#allocation23_spill] sm:$0xff] %v6390_v22  ;;  %v1020_v30 = vmul.f32 %v11728_v34, %v11738_v57  ;;  %v1021_v40 = vmul.f32 %v11728_v34, %v11739_v27  ;;  %v1022_v39 = vmul.f32 %v11728_v34, %v11740_v11  ;;  %v1023_v41 = vmul.f32 %v11728_v34, %v11741_v43  ;;  %v11743_v14 = vld [vmem:[#allocation14_spill] sm:$0xff]  ;;  %v11744_v7 = vld [vmem:[#allocation132_spill] sm:$0xff]  ;;  %v11747_v28 = vld [vmem:[#allocation133_spill] sm:$0xff] }
  0xba   : > { %v1024_v38 = vmul.f32 %v11728_v34, %v11742_v21  ;;  %v1025_v23 = vmul.f32 %v11728_v34, %v11743_v14  ;;  %v1026_v62 = vmul.f32 %v11728_v34, %v11744_v7  ;;  %v6427_v35 = vld [vmem:[%s4724_s30 + $0x183] sm:$0xff]  ;;  %v6430_v54 = vld [vmem:[%s4724_s30 + $0x18b] sm:$0xff]  ;;  %v1027_v3 = vmul.f32 %v11728_v34, %v11747_v28  ;;  %v11750_v11 = vld [vmem:[#allocation136_spill] sm:$0xff] }
  0xbb   : > { %11745 = vst [vmem:[#allocation27_spill] sm:$0xff] %v6427_v35  ;;  %11746 = vst [vmem:[#allocation31_spill] sm:$0xff] %v6430_v54  ;;  %v11748_v33 = vld [vmem:[#allocation134_spill] sm:$0xff]  ;;  %v11749_v57 = vld [vmem:[#allocation135_spill] sm:$0xff]  ;;  %v1030_v43 = vmul.f32 %v11728_v34, %v11750_v11 }
  0xbc   : > { %v1028_v13 = vmul.f32 %v11728_v34, %v11748_v33  ;;  %v1029_v27 = vmul.f32 %v11728_v34, %v11749_v57  ;;  %v11751_v21 = vld [vmem:[#allocation137_spill] sm:$0xff]  ;;  %v11752_v7 = vld [vmem:[#allocation138_spill] sm:$0xff]  ;;  %v11753_v22 = vld [vmem:[#allocation139_spill] sm:$0xff] }
  0xbd   : > { %v1031_v14 = vmul.f32 %v11728_v34, %v11751_v21  ;;  %v1032_v10 = vmul.f32 %v11728_v34, %v11752_v7  ;;  %v1033_v17 = vmul.f32 %v11728_v34, %v11753_v22  ;;  %v11754_v15 = vld [vmem:[#allocation140_spill] sm:$0xff]  ;;  %v11755_v16 = vld [vmem:[#allocation141_spill] sm:$0xff]  ;;  %v11756_v50 = vld [vmem:[#allocation142_spill] sm:$0xff]  ;;  %v1040_v22 = vmul.f32 %v6427_v35, %v11728_v34 }
  0xbe   : > { %v1034_v28 = vmul.f32 %v11728_v34, %v11754_v15  ;;  %v1035_v33 = vmul.f32 %v11728_v34, %v11755_v16  ;;  %v1036_v57 = vmul.f32 %v11728_v34, %v11756_v50  ;;  %v11757_v2 = vld [vmem:[#allocation143_spill] sm:$0xff]  ;;  %v11758_v48 = vld [vmem:[#allocation144_spill] sm:$0xff]  ;;  %v11759_v26 = vld [vmem:[#allocation145_spill] sm:$0xff]  ;;  %v1041_v15 = vmul.f32 %v6430_v54, %v11728_v34 }
  0xbf   : > { %v1037_v11 = vmul.f32 %v11728_v34, %v11757_v2  ;;  %v1038_v21 = vmul.f32 %v11728_v34, %v11758_v48  ;;  %v1039_v7 = vmul.f32 %v11728_v34, %v11759_v26  ;;  %v6463_v16 = vadd.f32 %v1010_v47, %v6297_v5  ;;  %v11810_v54 = vld [vmem:[#allocation164_spill] sm:$0xff] }
  0xc0   : > { %v6466_v50 = vadd.f32 %v1011_v29, %v6300_v24  ;;  %v6469_v2 = vadd.f32 %v1012_v55, %v6303_v9  ;;  %v6472_v48 = vadd.f32 %v1013_v1, %v6306_v56  ;;  %v6475_v26 = vadd.f32 %v1014_v25, %v6309_v37  ;;  %v11772_v1 = vld [vmem:[#allocation42_spill] sm:$0xff] }
  0xc1   : > { %v6478_v35 = vadd.f32 %v1015_v53, %v6312_v0  ;;  %v6481_v34 = vadd.f32 %v1016_v19, %v6315_v63  ;;  %v6484_v5 = vadd.f32 %v1017_v18, %v6318_v4  ;;  %v6487_v24 = vadd.f32 %v1018_v42, %v6321_v8  ;;  %v11774_v53 = vld [vmem:[#allocation43_spill] sm:$0xff] }
  0xc2   : > { %v6490_v9 = vadd.f32 %v1019_v51, %v6324_v31  ;;  %v6493_v56 = vadd.f32 %v1020_v30, %v6327_v32  ;;  %v6496_v37 = vadd.f32 %v1021_v40, %v6330_v59  ;;  %v6499_v0 = vadd.f32 %v1022_v39, %v6333_v36  ;;  %v11776_v18 = vld [vmem:[#allocation19_spill] sm:$0xff]  ;;  %v11780_v40 = vld [vmem:[#allocation8_spill] sm:$0xff] }
  0xc3   : > { %v6502_v63 = vadd.f32 %v1023_v41, %v6336_v60  ;;  %v6505_v4 = vadd.f32 %v1024_v38, %v6339_v45  ;;  %v6508_v8 = vadd.f32 %v1025_v23, %v6342_v12  ;;  %v6511_v31 = vadd.f32 %v1026_v62, %v6345_v52  ;;  %v11778_v51 = vld [vmem:[#allocation23_spill] sm:$0xff]  ;;  %v11782_v41 = vld [vmem:[#allocation9_spill] sm:$0xff]  ;;  %v11784_v23 = vld [vmem:[#allocation10_spill] sm:$0xff] }
  0xc4   : > { %v6514_v32 = vadd.f32 %v1027_v3, %v6348_v61  ;;  %v6517_v59 = vadd.f32 %v1028_v13, %v6351_v58  ;;  %v6520_v36 = vadd.f32 %v1029_v27, %v6354_v46  ;;  %v6523_v60 = vadd.f32 %v1030_v43, %v6357_v49  ;;  %v4576_v61 = vld [vmem:[%s10811_s1 + $0x8] sm:$0xff]  ;;  %v11763_v58 = vld [vmem:[#allocation7_spill] sm:$0xff]  ;;  %v11764_v49 = vld [vmem:[#allocation36_spill] sm:$0xff] }
  0xc5   : > { %v6526_v45 = vadd.f32 %v1031_v14, %v6360_v20  ;;  %v6529_v12 = vadd.f32 %v1032_v10, %v6363_v44  ;;  %v6532_v52 = vadd.f32 %v1033_v17, %v6366_v6  ;;  %v1109_v47 = vrot.slane %v4576_v61, %v11763_v58  ;;  %v171_v46 = vld [vmem:[%s10811_s1 + $0x10] sm:$0xff]  ;;  %v11766_v20 = vld [vmem:[#allocation37_spill] sm:$0xff]  ;;  %v11770_v6 = vld [vmem:[#allocation40_spill] sm:$0xff] }
  0xc6   : > { %v6542_v29 = vadd.f32 %v1034_v28, %v11764_v49  ;;  %v6545_v55 = vadd.f32 %v1035_v33, %v11766_v20  ;;  %v11768_v10 = vld [vmem:[#allocation39_spill] sm:$0xff]  ;;  %v6551_v17 = vadd.f32 %v1037_v11, %v11770_v6  ;;  %v6554_v25 = vadd.f32 %v1038_v21, %v11772_v1  ;;  %v11786_v3 = vld [vmem:[#allocation6_spill] sm:$0xff]  ;;  %v11791_v33 = vld [vmem:[#allocation12_spill] sm:$0xff] }
  0xc7   : > { %11760 = vst [vmem:[#allocation35_spill] sm:$0xff] %v6526_v45  ;;  %11761 = vst [vmem:[#allocation38_spill] sm:$0xff] %v6529_v12  ;;  %v6548_v44 = vadd.f32 %v1036_v57, %v11768_v10  ;;  %v6557_v19 = vadd.f32 %v1039_v7, %v11774_v53  ;;  %v6560_v42 = vadd.f32 %v1040_v22, %v11776_v18  ;;  %v11788_v27 = vld [vmem:[#allocation146_spill] sm:$0xff]  ;;  %v11789_v14 = vld [vmem:[#allocation11_spill] sm:$0xff] }
  0xc8   : > { %11762 = vst [vmem:[#allocation41_spill] sm:$0xff] %v6532_v52  ;;  %11765 = vst [vmem:[#allocation45_spill] sm:$0xff] %v6542_v29  ;;  %v6563_v30 = vadd.f32 %v1041_v15, %v11778_v51  ;;  %v6566_v39 = vrot.slane %v4576_v61, %v11780_v40  ;;  %v6569_v38 = vrot.slane %v4576_v61, %v11782_v41  ;;  %v11793_v11 = vld [vmem:[#allocation5_spill] sm:$0xff]  ;;  %v11795_v7 = vld [vmem:[#allocation147_spill] sm:$0xff] }
  0xc9   : > { %11767 = vst [vmem:[#allocation48_spill] sm:$0xff] %v6545_v55  ;;  %11769 = vst [vmem:[#allocation55_spill] sm:$0xff] %v6548_v44  ;;  %v6572_v62 = vrot.slane %v4576_v61, %v11784_v23  ;;  %v6575_v13 = vrot.slane %v4576_v61, %v11786_v3  ;;  %v1110_v43 = vmul.f32 %v1109_v47, %v11788_v27  ;;  %v11796_v15 = vld [vmem:[#allocation148_spill] sm:$0xff]  ;;  %v11797_v20 = vld [vmem:[#allocation149_spill] sm:$0xff] }
  0xca   : > { %11771 = vst [vmem:[#allocation59_spill] sm:$0xff] %v6551_v17  ;;  %11773 = vst [vmem:[#allocation60_spill] sm:$0xff] %v6554_v25  ;;  %v6579_v28 = vrot.slane %v4576_v61, %v11789_v14  ;;  %v6582_v57 = vrot.slane %v4576_v61, %v11791_v33  ;;  %v6585_v21 = vrot.slane %v171_v46, %v11793_v11  ;;  %v11798_v6 = vld [vmem:[#allocation150_spill] sm:$0xff]  ;;  %v11799_v53 = vld [vmem:[#allocation151_spill] sm:$0xff] }
  0xcb   : > { %11775 = vst [vmem:[#allocation44_spill] sm:$0xff] %v6557_v19  ;;  %11777 = vst [vmem:[#allocation16_spill] sm:$0xff] %v6560_v42  ;;  %v1111_v22 = vmul.f32 %v1109_v47, %v11795_v7  ;;  %v1112_v49 = vmul.f32 %v1109_v47, %v11796_v15  ;;  %v1113_v10 = vmul.f32 %v1109_v47, %v11797_v20  ;;  %v11800_v51 = vld [vmem:[#allocation155_spill] sm:$0xff]  ;;  %v11801_v14 = vld [vmem:[#allocation156_spill] sm:$0xff] }
  0xcc   : > { %11779 = vst [vmem:[#allocation46_spill] sm:$0xff] %v6563_v30  ;;  %11781 = vst [vmem:[#allocation47_spill] sm:$0xff] %v6566_v39  ;;  %v1114_v1 = vmul.f32 %v1109_v47, %v11798_v6  ;;  %v1115_v18 = vmul.f32 %v1109_v47, %v11799_v53  ;;  %v1116_v27 = vmul.f32 %v1109_v47, %v11800_v51  ;;  %v11802_v33 = vld [vmem:[#allocation157_spill] sm:$0xff]  ;;  %v11803_v46 = vld [vmem:[#allocation158_spill] sm:$0xff] }
  0xcd   : > { %11783 = vst [vmem:[#allocation49_spill] sm:$0xff] %v6569_v38  ;;  %11785 = vst [vmem:[#allocation50_spill] sm:$0xff] %v6572_v62  ;;  %v1117_v61 = vmul.f32 %v1109_v47, %v11801_v14  ;;  %v1118_v3 = vmul.f32 %v1109_v47, %v11802_v33  ;;  %v1119_v11 = vmul.f32 %v1109_v47, %v11803_v46  ;;  %v11804_v23 = vld [vmem:[#allocation159_spill] sm:$0xff]  ;;  %v11805_v41 = vld [vmem:[#allocation160_spill] sm:$0xff] }
  0xce   : > { %11787 = vst [vmem:[#allocation51_spill] sm:$0xff] %v6575_v13  ;;  %11790 = vst [vmem:[#allocation52_spill] sm:$0xff] %v6579_v28  ;;  %v1120_v7 = vmul.f32 %v1109_v47, %v11804_v23  ;;  %v1121_v40 = vmul.f32 %v1109_v47, %v11805_v41  ;;  %v11806_v15 = vld [vmem:[#allocation161_spill] sm:$0xff]  ;;  %v11809_v28 = vld [vmem:[#allocation15_spill] sm:$0xff]  ;;  %v1126_v51 = vmul.f32 %v1109_v47, %v11810_v54 }
  0xcf   : > { %11792 = vst [vmem:[#allocation53_spill] sm:$0xff] %v6582_v57  ;;  %11794 = vst [vmem:[#allocation54_spill] sm:$0xff] %v6585_v21  ;;  %v1122_v58 = vmul.f32 %v1109_v47, %v11806_v15  ;;  %v11807_v21 = vld [vmem:[#allocation162_spill] sm:$0xff]  ;;  %v11808_v57 = vld [vmem:[#allocation163_spill] sm:$0xff]  ;;  %v1125_v53 = vmul.f32 %v1109_v47, %v11809_v28 }
  0xd0   : > { %v1123_v20 = vmul.f32 %v1109_v47, %v11807_v21  ;;  %v1124_v6 = vmul.f32 %v1109_v47, %v11808_v57  ;;  %v6604_v13 = vld [vmem:[%s4724_s30 + $0x184] sm:$0xff]  ;;  %v6607_v14 = vld [vmem:[%s4724_s30 + $0x18c] sm:$0xff]  ;;  %v11816_v39 = vld [vmem:[#allocation168_spill] sm:$0xff] }
  0xd1   : > { %11811 = vst [vmem:[#allocation56_spill] sm:$0xff] %v6604_v13  ;;  %11812 = vst [vmem:[#allocation57_spill] sm:$0xff] %v6607_v14  ;;  %v11813_v33 = vld [vmem:[#allocation165_spill] sm:$0xff]  ;;  %v11814_v62 = vld [vmem:[#allocation166_spill] sm:$0xff]  ;;  %v1130_v15 = vmul.f32 %v1109_v47, %v11816_v39  ;;  %v1140_v39 = vmul.f32 %v6604_v13, %v1109_v47 }
  0xd2   : > { %v1127_v46 = vmul.f32 %v1109_v47, %v11813_v33  ;;  %v1128_v23 = vmul.f32 %v1109_v47, %v11814_v62  ;;  %v11815_v38 = vld [vmem:[#allocation167_spill] sm:$0xff]  ;;  %v11817_v30 = vld [vmem:[#allocation169_spill] sm:$0xff]  ;;  %v11818_v42 = vld [vmem:[#allocation170_spill] sm:$0xff] }
  0xd3   : > { %v1129_v41 = vmul.f32 %v1109_v47, %v11815_v38  ;;  %v1131_v21 = vmul.f32 %v1109_v47, %v11817_v30  ;;  %v1132_v57 = vmul.f32 %v1109_v47, %v11818_v42  ;;  %v11819_v19 = vld [vmem:[#allocation171_spill] sm:$0xff]  ;;  %v11820_v25 = vld [vmem:[#allocation172_spill] sm:$0xff]  ;;  %v11821_v17 = vld [vmem:[#allocation173_spill] sm:$0xff]  ;;  %v1141_v30 = vmul.f32 %v6607_v14, %v1109_v47 }
  0xd4   : > { %v1133_v28 = vmul.f32 %v1109_v47, %v11819_v19  ;;  %v1134_v54 = vmul.f32 %v1109_v47, %v11820_v25  ;;  %v1135_v44 = vmul.f32 %v1109_v47, %v11821_v17  ;;  %v11822_v55 = vld [vmem:[#allocation174_spill] sm:$0xff]  ;;  %v11823_v52 = vld [vmem:[#allocation175_spill] sm:$0xff]  ;;  %v11824_v12 = vld [vmem:[#allocation176_spill] sm:$0xff]  ;;  %v6625_v42 = vadd.f32 %v1110_v43, %v6463_v16 }
  0xd5   : > { %v1136_v29 = vmul.f32 %v1109_v47, %v11822_v55  ;;  %v1137_v33 = vmul.f32 %v1109_v47, %v11823_v52  ;;  %v1138_v62 = vmul.f32 %v1109_v47, %v11824_v12  ;;  %v11825_v45 = vld [vmem:[#allocation177_spill] sm:$0xff]  ;;  %v6628_v25 = vadd.f32 %v1111_v22, %v6466_v50  ;;  %v6678_v55 = vld [vmem:[%s4724_s30 + $0x48] sm:$0xff] }
  0xd6   : > { %v1139_v38 = vmul.f32 %v1109_v47, %v11825_v45  ;;  %v6631_v17 = vadd.f32 %v1112_v49, %v6469_v2  ;;  %v6634_v52 = vadd.f32 %v1113_v10, %v6472_v48  ;;  %v6637_v45 = vadd.f32 %v1114_v1, %v6475_v26  ;;  %11826 = vst [vmem:[#allocation58_spill] sm:$0xff] %v6678_v55  ;;  %v6699_v19 = vld [vmem:[%s4724_s30 + $0x68] sm:$0xff]  ;;  %v6717_v10 = vld [vmem:[%s4724_s30 + $0x80] sm:$0xff]  ;;  %v6720_v1 = vld [vmem:[%s4724_s30 + $0x90] sm:$0xff] }
  0xd7   : > { %v6640_v12 = vadd.f32 %v1115_v18, %v6478_v35  ;;  %v6643_v16 = vadd.f32 %v1116_v27, %v6481_v34  ;;  %v6646_v50 = vadd.f32 %v1117_v61, %v6484_v5  ;;  %v6649_v2 = vadd.f32 %v1118_v3, %v6487_v24  ;;  %v3854_v5 = vld [vmem:[%s4724_s30 + $0x30] sm:$0xff]  ;;  %11829 = vst [vmem:[#allocation63_spill] sm:$0xff] %v6699_v19  ;;  %v6723_v18 = vld [vmem:[%s4724_s30 + $0x98] sm:$0xff]  ;;  %v6819_v13 = vld [vmem:[%s4724_s30 + $0x168] sm:$0xff] }
  0xd8   : > { %v6652_v48 = vadd.f32 %v1119_v11, %v6490_v9  ;;  %v6655_v26 = vadd.f32 %v1120_v7, %v6493_v56  ;;  %v6658_v35 = vadd.f32 %v1121_v40, %v6496_v37  ;;  %v6661_v34 = vadd.f32 %v1122_v58, %v6499_v0  ;;  %v3855_v37 = vld [vmem:[%s4724_s30 + $0x38] sm:$0xff]  ;;  %v6681_v0 = vld [vmem:[%s4724_s30 + $0x50] sm:$0xff]  ;;  %v6696_v58 = vld [vmem:[%s4724_s30 + $0x60] sm:$0xff]  ;;  %11836 = vst [vmem:[#allocation66_spill] sm:$0xff] %v6717_v10 }
  0xd9   : > { %v6665_v47 = vadd.f32 %v1123_v20, %v6502_v63  ;;  %v6668_v24 = vadd.f32 %v1124_v6, %v6505_v4  ;;  %v6671_v9 = vadd.f32 %v1125_v53, %v6508_v8  ;;  %v6674_v56 = vadd.f32 %v1126_v51, %v6511_v31  ;;  %11827 = vst [vmem:[#allocation61_spill] sm:$0xff] %v6681_v0  ;;  %v6702_v40 = vld [vmem:[%s4724_s30 + $0x78] sm:$0xff]  ;;  %v11841_v11 = vld [vmem:[#allocation55_spill] sm:$0xff] }
  0xda   : > { %v6684_v63 = vadd.f32 %v1127_v46, %v6514_v32  ;;  %v6687_v4 = vadd.f32 %v1128_v23, %v6517_v59  ;;  %v6690_v8 = vadd.f32 %v1129_v41, %v6520_v36  ;;  %v6693_v31 = vadd.f32 %v1130_v15, %v6523_v60  ;;  %11828 = vst [vmem:[#allocation62_spill] sm:$0xff] %v6696_v58  ;;  %v11831_v32 = vld [vmem:[#allocation35_spill] sm:$0xff]  ;;  %v11832_v59 = vld [vmem:[#allocation38_spill] sm:$0xff]  ;;  %v11833_v36 = vld [vmem:[#allocation41_spill] sm:$0xff] }
  0xdb   : > { %11830 = vst [vmem:[#allocation64_spill] sm:$0xff] %v6702_v40  ;;  %v6705_v3 = vadd.f32 %v1131_v21, %v11831_v32  ;;  %v6708_v43 = vadd.f32 %v1132_v57, %v11832_v59  ;;  %v6711_v22 = vadd.f32 %v1133_v28, %v11833_v36  ;;  %v11834_v60 = vld [vmem:[#allocation45_spill] sm:$0xff]  ;;  %11837 = vst [vmem:[#allocation68_spill] sm:$0xff] %v6720_v1  ;;  %v11839_v27 = vld [vmem:[#allocation48_spill] sm:$0xff] }
  0xdc   : > { %v6714_v49 = vadd.f32 %v1134_v54, %v11834_v60  ;;  %11838 = vst [vmem:[#allocation69_spill] sm:$0xff] %v6723_v18  ;;  %v6726_v61 = vadd.f32 %v1135_v44, %v11839_v27  ;;  %v6729_v7 = vadd.f32 %v1136_v29, %v11841_v11  ;;  %v11843_v20 = vld [vmem:[#allocation59_spill] sm:$0xff]  ;;  %v11845_v53 = vld [vmem:[#allocation60_spill] sm:$0xff]  ;;  %v6738_v46 = vld [vmem:[%s4724_s30 + $0xa8] sm:$0xff] }
  0xdd   : > { %v6732_v6 = vadd.f32 %v1137_v33, %v11843_v20  ;;  %v6735_v51 = vadd.f32 %v1138_v62, %v11845_v53  ;;  %11847 = vst [vmem:[#allocation76_spill] sm:$0xff] %v6738_v46  ;;  %v6741_v23 = vld [vmem:[%s4724_s30 + $0xb0] sm:$0xff]  ;;  %v6744_v41 = vld [vmem:[%s4724_s30 + $0xc0] sm:$0xff]  ;;  %v11850_v15 = vld [vmem:[#allocation44_spill] sm:$0xff] }
  0xde   : > { %11835 = vst [vmem:[#allocation65_spill] sm:$0xff] %v6714_v49  ;;  %11840 = vst [vmem:[#allocation70_spill] sm:$0xff] %v6726_v61  ;;  %v6747_v44 = vadd.f32 %v1139_v38, %v11850_v15  ;;  %v11852_v21 = vld [vmem:[#allocation16_spill] sm:$0xff]  ;;  %v11854_v57 = vld [vmem:[#allocation46_spill] sm:$0xff] }
  0xdf   : > { %11842 = vst [vmem:[#allocation72_spill] sm:$0xff] %v6729_v7  ;;  %11844 = vst [vmem:[#allocation73_spill] sm:$0xff] %v6732_v6  ;;  %v6750_v29 = vadd.f32 %v1140_v39, %v11852_v21  ;;  %v6753_v28 = vadd.f32 %v1141_v30, %v11854_v57  ;;  %v6756_v54 = vld [vmem:[%s4724_s30 + $0xc8] sm:$0xff]  ;;  %v6759_v33 = vld [vmem:[%s4724_s30 + $0xd8] sm:$0xff] }
  0xe0   : > { %11846 = vst [vmem:[#allocation74_spill] sm:$0xff] %v6735_v51  ;;  %11848 = vst [vmem:[#allocation77_spill] sm:$0xff] %v6741_v23  ;;  %v6762_v62 = vld [vmem:[%s4724_s30 + $0xe0] sm:$0xff]  ;;  %v11859_v32 = vld [vmem:[#allocation47_spill] sm:$0xff] }
  0xe1   : > { %11849 = vst [vmem:[#allocation78_spill] sm:$0xff] %v6744_v41  ;;  %11851 = vst [vmem:[#allocation80_spill] sm:$0xff] %v6747_v44  ;;  %v1211_v59 = vmul.f32 %v3854_v5, %v11859_v32  ;;  %v6766_v36 = vld [vmem:[%s4724_s30 + $0xf0] sm:$0xff]  ;;  %v6769_v38 = vld [vmem:[%s4724_s30 + $0xf8] sm:$0xff]  ;;  %v1212_v30 = vmul.f32 %v3855_v37, %v11859_v32  ;;  %v1213_v60 = vmul.f32 %v6678_v55, %v11859_v32 }
  0xe2   : > { %11853 = vst [vmem:[#allocation81_spill] sm:$0xff] %v6750_v29  ;;  %11855 = vst [vmem:[#allocation82_spill] sm:$0xff] %v6753_v28  ;;  %v6772_v39 = vld [vmem:[%s4724_s30 + $0x108] sm:$0xff]  ;;  %v1214_v27 = vmul.f32 %v6681_v0, %v11859_v32  ;;  %v1215_v5 = vmul.f32 %v6696_v58, %v11859_v32  ;;  %v6782_v11 = vld [vmem:[%s4724_s30 + $0x110] sm:$0xff]  ;;  %v1216_v37 = vmul.f32 %v6699_v19, %v11859_v32 }
  0xe3   : > { %11856 = vst [vmem:[#allocation154_spill] sm:$0xff] %v6756_v54  ;;  %11857 = vst [vmem:[#allocation89_spill] sm:$0xff] %v6759_v33  ;;  %v6785_v20 = vld [vmem:[%s4724_s30 + $0x120] sm:$0xff]  ;;  %v6788_v53 = vld [vmem:[%s4724_s30 + $0x128] sm:$0xff]  ;;  %v1217_v15 = vmul.f32 %v6702_v40, %v11859_v32  ;;  %v1218_v21 = vmul.f32 %v6717_v10, %v11859_v32  ;;  %v1219_v57 = vmul.f32 %v6720_v1, %v11859_v32 }
  0xe4   : > { %11858 = vst [vmem:[#allocation93_spill] sm:$0xff] %v6762_v62  ;;  %11860 = vst [vmem:[#allocation94_spill] sm:$0xff] %v6766_v36  ;;  %v6799_v58 = vld [vmem:[%s4724_s30 + $0x138] sm:$0xff]  ;;  %v6802_v0 = vld [vmem:[%s4724_s30 + $0x140] sm:$0xff]  ;;  %v1220_v19 = vmul.f32 %v6723_v18, %v11859_v32  ;;  %v1221_v40 = vmul.f32 %v6738_v46, %v11859_v32  ;;  %v1222_v10 = vmul.f32 %v6741_v23, %v11859_v32 }
  0xe5   : > { %11861 = vst [vmem:[#allocation95_spill] sm:$0xff] %v6769_v38  ;;  %11862 = vst [vmem:[#allocation96_spill] sm:$0xff] %v6772_v39  ;;  %v6805_v55 = vld [vmem:[%s4724_s30 + $0x150] sm:$0xff]  ;;  %v1223_v14 = vmul.f32 %v6744_v41, %v11859_v32  ;;  %v6816_v1 = vld [vmem:[%s4724_s30 + $0x158] sm:$0xff]  ;;  %v1224_v29 = vmul.f32 %v6756_v54, %v11859_v32  ;;  %v1225_v18 = vmul.f32 %v6759_v33, %v11859_v32 }
  0xe6   : > { %11863 = vst [vmem:[#allocation100_spill] sm:$0xff] %v6782_v11  ;;  %11864 = vst [vmem:[#allocation101_spill] sm:$0xff] %v6785_v20  ;;  %v6822_v28 = vld [vmem:[%s4724_s30 + $0x170] sm:$0xff]  ;;  %v1226_v46 = vmul.f32 %v6762_v62, %v11859_v32  ;;  %v1227_v23 = vmul.f32 %v6766_v36, %v11859_v32  ;;  %v6833_v44 = vld [vmem:[%s4724_s30 + $0x198] sm:$0xff]  ;;  %v1228_v51 = vmul.f32 %v6769_v38, %v11859_v32 }
  0xe7   : > { %11865 = vst [vmem:[#allocation102_spill] sm:$0xff] %v6788_v53  ;;  %11866 = vst [vmem:[#allocation20_spill] sm:$0xff] %v6799_v58  ;;  %v6836_v41 = vld [vmem:[%s4724_s30 + $0x1a0] sm:$0xff]  ;;  %v1229_v6 = vmul.f32 %v6772_v39, %v11859_v32  ;;  %v1230_v54 = vmul.f32 %v6782_v11, %v11859_v32  ;;  %v1231_v33 = vmul.f32 %v6785_v20, %v11859_v32 }
  0xe8   : > { %11867 = vst [vmem:[#allocation83_spill] sm:$0xff] %v6802_v0  ;;  %11868 = vst [vmem:[#allocation17_spill] sm:$0xff] %v6805_v55  ;;  %v1232_v62 = vmul.f32 %v6788_v53, %v11859_v32  ;;  %v1233_v36 = vmul.f32 %v6799_v58, %v11859_v32  ;;  %v1234_v7 = vmul.f32 %v6802_v0, %v11859_v32  ;;  %v11874_v53 = vld [vmem:[#allocation152_spill] sm:$0xff]  ;;  %v11875_v58 = vld [vmem:[#allocation153_spill] sm:$0xff] }
  0xe9   : > { %11869 = vst [vmem:[#allocation84_spill] sm:$0xff] %v6816_v1  ;;  %11870 = vst [vmem:[#allocation85_spill] sm:$0xff] %v6819_v13  ;;  %v1235_v38 = vmul.f32 %v6805_v55, %v11859_v32  ;;  %v1236_v39 = vmul.f32 %v6816_v1, %v11859_v32  ;;  %v1237_v11 = vmul.f32 %v6819_v13, %v11859_v32 }
  0xea   : > { %11871 = vst [vmem:[#allocation86_spill] sm:$0xff] %v6822_v28  ;;  %11872 = vst [vmem:[#allocation87_spill] sm:$0xff] %v6833_v44  ;;  %v1238_v20 = vmul.f32 %v6822_v28, %v11859_v32  ;;  %v1239_v61 = vmul.f32 %v11874_v53, %v11859_v32  ;;  %v1240_v49 = vmul.f32 %v11875_v58, %v11859_v32 }
  0xeb   : > { %11873 = vst [vmem:[#allocation88_spill] sm:$0xff] %v6836_v41  ;;  %v1241_v0 = vmul.f32 %v6833_v44, %v11859_v32  ;;  %v1242_v55 = vmul.f32 %v6836_v41, %v11859_v32  ;;  %v6869_v1 = vadd.f32 %v1211_v59, %v6625_v42  ;;  %v6872_v13 = vadd.f32 %v1212_v30, %v6628_v25  ;;  %v11897_v30 = vld [vmem:[#allocation80_spill] sm:$0xff]  ;;  %v7063_v44 = vld [vmem:[%s4724_s30 + $0x169] sm:$0xff] }
  0xec   : > { %v6875_v28 = vadd.f32 %v1213_v60, %v6631_v17  ;;  %v6878_v53 = vadd.f32 %v1214_v27, %v6634_v52  ;;  %v6881_v58 = vadd.f32 %v1215_v5, %v6637_v45  ;;  %v6884_v32 = vadd.f32 %v1216_v37, %v6640_v12  ;;  %v11899_v60 = vld [vmem:[#allocation81_spill] sm:$0xff]  ;;  %v11901_v5 = vld [vmem:[#allocation82_spill] sm:$0xff]  ;;  %11917 = vst [vmem:[#allocation67_spill] sm:$0xff] %v7063_v44 }
  0xed   : > { %v6887_v42 = vadd.f32 %v1217_v15, %v6643_v16  ;;  %v6890_v25 = vadd.f32 %v1218_v21, %v6646_v50  ;;  %v6893_v17 = vadd.f32 %v1219_v57, %v6649_v2  ;;  %v6896_v52 = vadd.f32 %v1220_v19, %v6652_v48  ;;  %v3886_v50 = vld [vmem:[%s4724_s30 + $0x31] sm:$0xff]  ;;  %v6922_v19 = vld [vmem:[%s4724_s30 + $0x49] sm:$0xff]  ;;  %v7006_v37 = vld [vmem:[%s4724_s30 + $0xe1] sm:$0xff] }
  0xee   : > { %v6899_v45 = vadd.f32 %v1221_v40, %v6655_v26  ;;  %v6902_v12 = vadd.f32 %v1222_v10, %v6658_v35  ;;  %v6905_v16 = vadd.f32 %v1223_v14, %v6661_v34  ;;  %v6909_v59 = vadd.f32 %v1224_v29, %v6665_v47  ;;  %v3887_v35 = vld [vmem:[%s4724_s30 + $0x39] sm:$0xff]  ;;  %11876 = vst [vmem:[#allocation90_spill] sm:$0xff] %v6922_v19  ;;  %v6925_v14 = vld [vmem:[%s4724_s30 + $0x51] sm:$0xff]  ;;  %v6943_v40 = vld [vmem:[%s4724_s30 + $0x69] sm:$0xff] }
  0xef   : > { %v6912_v2 = vadd.f32 %v1225_v18, %v6668_v24  ;;  %v6915_v48 = vadd.f32 %v1226_v46, %v6671_v9  ;;  %v6918_v26 = vadd.f32 %v1227_v23, %v6674_v56  ;;  %11877 = vst [vmem:[#allocation91_spill] sm:$0xff] %v6925_v14  ;;  %v6928_v34 = vadd.f32 %v1228_v51, %v6684_v63  ;;  %v6940_v56 = vld [vmem:[%s4724_s30 + $0x61] sm:$0xff]  ;;  %v6946_v10 = vld [vmem:[%s4724_s30 + $0x79] sm:$0xff]  ;;  %v6964_v51 = vld [vmem:[%s4724_s30 + $0x91] sm:$0xff] }
  0xf0   : > { %v6931_v47 = vadd.f32 %v1229_v6, %v6687_v4  ;;  %v6934_v24 = vadd.f32 %v1230_v54, %v6690_v8  ;;  %v6937_v9 = vadd.f32 %v1231_v33, %v6693_v31  ;;  %11878 = vst [vmem:[#allocation92_spill] sm:$0xff] %v6940_v56  ;;  %11879 = vst [vmem:[#allocation97_spill] sm:$0xff] %v6943_v40  ;;  %v11881_v31 = vld [vmem:[#allocation65_spill] sm:$0xff]  ;;  %v11888_v23 = vld [vmem:[#allocation72_spill] sm:$0xff] }
  0xf1   : > { %11880 = vst [vmem:[#allocation98_spill] sm:$0xff] %v6946_v10  ;;  %v6949_v63 = vadd.f32 %v1232_v62, %v6705_v3  ;;  %v6952_v4 = vadd.f32 %v1233_v36, %v6708_v43  ;;  %v6955_v8 = vadd.f32 %v1234_v7, %v6711_v22  ;;  %v6958_v18 = vadd.f32 %v1235_v38, %v11881_v31  ;;  %v6961_v6 = vld [vmem:[%s4724_s30 + $0x81] sm:$0xff]  ;;  %v6967_v46 = vld [vmem:[%s4724_s30 + $0x99] sm:$0xff]  ;;  %v6982_v62 = vld [vmem:[%s4724_s30 + $0xa9] sm:$0xff] }
  0xf2   : > { %11883 = vst [vmem:[#allocation103_spill] sm:$0xff] %v6961_v6  ;;  %11884 = vst [vmem:[#allocation104_spill] sm:$0xff] %v6964_v51  ;;  %v11886_v3 = vld [vmem:[#allocation70_spill] sm:$0xff]  ;;  %v6973_v22 = vadd.f32 %v1237_v11, %v11888_v23  ;;  %v11890_v7 = vld [vmem:[#allocation73_spill] sm:$0xff]  ;;  %v6994_v27 = vadd.f32 %v1241_v0, %v11899_v60  ;;  %v6997_v11 = vadd.f32 %v1242_v55, %v11901_v5 }
  0xf3   : > { %11882 = vst [vmem:[#allocation99_spill] sm:$0xff] %v6958_v18  ;;  %11885 = vst [vmem:[#allocation105_spill] sm:$0xff] %v6967_v46  ;;  %v6970_v43 = vadd.f32 %v1236_v39, %v11886_v3  ;;  %v6976_v29 = vadd.f32 %v1238_v20, %v11890_v7  ;;  %v11892_v54 = vld [vmem:[#allocation74_spill] sm:$0xff]  ;;  %v6985_v36 = vld [vmem:[%s4724_s30 + $0xb1] sm:$0xff]  ;;  %v6991_v39 = vadd.f32 %v1240_v49, %v11897_v30 }
  0xf4   : > { %11889 = vst [vmem:[#allocation107_spill] sm:$0xff] %v6973_v22  ;;  %v6979_v33 = vadd.f32 %v1239_v61, %v11892_v54  ;;  %11894 = vst [vmem:[#allocation110_spill] sm:$0xff] %v6982_v62  ;;  %v6988_v38 = vld [vmem:[%s4724_s30 + $0xc1] sm:$0xff]  ;;  %v7000_v61 = vld [vmem:[%s4724_s30 + $0xc9] sm:$0xff] }
  0xf5   : > { %11887 = vst [vmem:[#allocation106_spill] sm:$0xff] %v6970_v43  ;;  %11891 = vst [vmem:[#allocation108_spill] sm:$0xff] %v6976_v29  ;;  %v7003_v20 = vld [vmem:[%s4724_s30 + $0xd9] sm:$0xff]  ;;  %v7010_v57 = vld [vmem:[%s4724_s30 + $0xf1] sm:$0xff] }
  0xf6   : > { %11893 = vst [vmem:[#allocation109_spill] sm:$0xff] %v6979_v33  ;;  %11895 = vst [vmem:[#allocation111_spill] sm:$0xff] %v6985_v36  ;;  %v11906_v15 = vld [vmem:[#allocation49_spill] sm:$0xff]  ;;  %v7016_v0 = vld [vmem:[%s4724_s30 + $0x109] sm:$0xff] }
  0xf7   : > { %11896 = vst [vmem:[#allocation112_spill] sm:$0xff] %v6988_v38  ;;  %11898 = vst [vmem:[#allocation113_spill] sm:$0xff] %v6991_v39  ;;  %v1311_v21 = vmul.f32 %v3886_v50, %v11906_v15  ;;  %v7013_v49 = vld [vmem:[%s4724_s30 + $0xf9] sm:$0xff]  ;;  %v1312_v55 = vmul.f32 %v3887_v35, %v11906_v15  ;;  %v1313_v31 = vmul.f32 %v6922_v19, %v11906_v15  ;;  %v7026_v23 = vld [vmem:[%s4724_s30 + $0x111] sm:$0xff] }
  0xf8   : > { %11900 = vst [vmem:[#allocation114_spill] sm:$0xff] %v6994_v27  ;;  %11902 = vst [vmem:[#allocation115_spill] sm:$0xff] %v6997_v11  ;;  %v1314_v3 = vmul.f32 %v6925_v14, %v11906_v15  ;;  %v1315_v50 = vmul.f32 %v6940_v56, %v11906_v15  ;;  %v7029_v7 = vld [vmem:[%s4724_s30 + $0x121] sm:$0xff]  ;;  %v7032_v54 = vld [vmem:[%s4724_s30 + $0x129] sm:$0xff]  ;;  %v1316_v35 = vmul.f32 %v6943_v40, %v11906_v15 }
  0xf9   : > { %11903 = vst [vmem:[#allocation116_spill] sm:$0xff] %v7000_v61  ;;  %11904 = vst [vmem:[#allocation117_spill] sm:$0xff] %v7003_v20  ;;  %v1317_v30 = vmul.f32 %v6946_v10, %v11906_v15  ;;  %v1318_v60 = vmul.f32 %v6961_v6, %v11906_v15  ;;  %v1319_v5 = vmul.f32 %v6964_v51, %v11906_v15  ;;  %v7043_v56 = vld [vmem:[%s4724_s30 + $0x139] sm:$0xff]  ;;  %v7046_v14 = vld [vmem:[%s4724_s30 + $0x141] sm:$0xff] }
  0xfa   : > { %11905 = vst [vmem:[#allocation118_spill] sm:$0xff] %v7006_v37  ;;  %11907 = vst [vmem:[#allocation119_spill] sm:$0xff] %v7010_v57  ;;  %v7049_v19 = vld [vmem:[%s4724_s30 + $0x151] sm:$0xff]  ;;  %v1320_v40 = vmul.f32 %v6967_v46, %v11906_v15  ;;  %v1321_v10 = vmul.f32 %v6982_v62, %v11906_v15  ;;  %v1322_v6 = vmul.f32 %v6985_v36, %v11906_v15  ;;  %v7060_v51 = vld [vmem:[%s4724_s30 + $0x159] sm:$0xff] }
  0xfb   : > { %11908 = vst [vmem:[#allocation120_spill] sm:$0xff] %v7013_v49  ;;  %11909 = vst [vmem:[#allocation22_spill] sm:$0xff] %v7016_v0  ;;  %v1323_v41 = vmul.f32 %v6988_v38, %v11906_v15  ;;  %v7066_v11 = vld [vmem:[%s4724_s30 + $0x171] sm:$0xff]  ;;  %v1324_v27 = vmul.f32 %v7000_v61, %v11906_v15  ;;  %v1325_v46 = vmul.f32 %v7003_v20, %v11906_v15  ;;  %v7077_v39 = vld [vmem:[%s4724_s30 + $0x199] sm:$0xff] }
  0xfc   : > { %11910 = vst [vmem:[#allocation24_spill] sm:$0xff] %v7026_v23  ;;  %11911 = vst [vmem:[#allocation25_spill] sm:$0xff] %v7029_v7  ;;  %v1326_v62 = vmul.f32 %v7006_v37, %v11906_v15  ;;  %v1327_v36 = vmul.f32 %v7010_v57, %v11906_v15  ;;  %v7080_v38 = vld [vmem:[%s4724_s30 + $0x1a1] sm:$0xff]  ;;  %v1328_v33 = vmul.f32 %v7013_v49, %v11906_v15 }
  0xfd   : > { %11912 = vst [vmem:[#allocation26_spill] sm:$0xff] %v7032_v54  ;;  %11913 = vst [vmem:[#allocation28_spill] sm:$0xff] %v7043_v56  ;;  %v1329_v29 = vmul.f32 %v7016_v0, %v11906_v15  ;;  %v1330_v61 = vmul.f32 %v7026_v23, %v11906_v15  ;;  %v1331_v20 = vmul.f32 %v7029_v7, %v11906_v15 }
  0xfe   : > { %11914 = vst [vmem:[#allocation29_spill] sm:$0xff] %v7046_v14  ;;  %11915 = vst [vmem:[#allocation30_spill] sm:$0xff] %v7049_v19  ;;  %v1332_v37 = vmul.f32 %v7032_v54, %v11906_v15  ;;  %v1333_v57 = vmul.f32 %v7043_v56, %v11906_v15  ;;  %v1334_v22 = vmul.f32 %v7046_v14, %v11906_v15  ;;  %v11921_v54 = vld [vmem:[#allocation13_spill] sm:$0xff] }
  0xff   : > { %11916 = vst [vmem:[#allocation32_spill] sm:$0xff] %v7060_v51  ;;  %11918 = vst [vmem:[#allocation18_spill] sm:$0xff] %v7066_v11  ;;  %v1335_v49 = vmul.f32 %v7049_v19, %v11906_v15  ;;  %v1336_v0 = vmul.f32 %v7060_v51, %v11906_v15  ;;  %v1337_v23 = vmul.f32 %v7063_v44, %v11906_v15  ;;  %v11922_v56 = vld [vmem:[#allocation21_spill] sm:$0xff] }
 0x100   : > { %11919 = vst [vmem:[#allocation71_spill] sm:$0xff] %v7077_v39  ;;  %11920 = vst [vmem:[#allocation75_spill] sm:$0xff] %v7080_v38  ;;  %v1338_v7 = vmul.f32 %v7066_v11, %v11906_v15  ;;  %v1339_v43 = vmul.f32 %v11921_v54, %v11906_v15  ;;  %v1340_v18 = vmul.f32 %v11922_v56, %v11906_v15 }
 0x101   : > { %v1341_v14 = vmul.f32 %v7077_v39, %v11906_v15  ;;  %v1342_v19 = vmul.f32 %v7080_v38, %v11906_v15  ;;  %v7113_v51 = vadd.f32 %v1311_v21, %v6869_v1  ;;  %v7116_v44 = vadd.f32 %v1312_v55, %v6872_v13  ;;  %v11944_v55 = vld [vmem:[#allocation113_spill] sm:$0xff]  ;;  %v7307_v39 = vld [vmem:[%s4724_s30 + $0x16a] sm:$0xff] }
 0x102   : > { %v7119_v11 = vadd.f32 %v1313_v31, %v6875_v28  ;;  %v7122_v54 = vadd.f32 %v1314_v3, %v6878_v53  ;;  %v7125_v56 = vadd.f32 %v1315_v50, %v6881_v58  ;;  %v7128_v15 = vadd.f32 %v1316_v35, %v6884_v32  ;;  %v11946_v31 = vld [vmem:[#allocation114_spill] sm:$0xff]  ;;  %v11948_v50 = vld [vmem:[#allocation115_spill] sm:$0xff]  ;;  %11964 = vst [vmem:[#allocation43_spill] sm:$0xff] %v7307_v39 }
 0x103   : > { %v7131_v1 = vadd.f32 %v1317_v30, %v6887_v42  ;;  %v7134_v13 = vadd.f32 %v1318_v60, %v6890_v25  ;;  %v7137_v28 = vadd.f32 %v1319_v5, %v6893_v17  ;;  %v7140_v53 = vadd.f32 %v1320_v40, %v6896_v52  ;;  %v3918_v25 = vld [vmem:[%s4724_s30 + $0x32] sm:$0xff]  ;;  %v7166_v40 = vld [vmem:[%s4724_s30 + $0x4a] sm:$0xff]  ;;  %v7250_v35 = vld [vmem:[%s4724_s30 + $0xe2] sm:$0xff] }
 0x104   : > { %v7143_v58 = vadd.f32 %v1321_v10, %v6899_v45  ;;  %v7146_v32 = vadd.f32 %v1322_v6, %v6902_v12  ;;  %v7149_v42 = vadd.f32 %v1323_v41, %v6905_v16  ;;  %v7153_v21 = vadd.f32 %v1324_v27, %v6909_v59  ;;  %v3919_v12 = vld [vmem:[%s4724_s30 + $0x3a] sm:$0xff]  ;;  %11923 = vst [vmem:[#allocation79_spill] sm:$0xff] %v7166_v40  ;;  %v7169_v41 = vld [vmem:[%s4724_s30 + $0x52] sm:$0xff]  ;;  %v7187_v10 = vld [vmem:[%s4724_s30 + $0x6a] sm:$0xff] }
 0x105   : > { %v7156_v17 = vadd.f32 %v1325_v46, %v6912_v2  ;;  %v7159_v52 = vadd.f32 %v1326_v62, %v6915_v48  ;;  %v7162_v45 = vadd.f32 %v1327_v36, %v6918_v26  ;;  %11924 = vst [vmem:[#allocation121_spill] sm:$0xff] %v7169_v41  ;;  %v7172_v16 = vadd.f32 %v1328_v33, %v6928_v34  ;;  %v7184_v26 = vld [vmem:[%s4724_s30 + $0x62] sm:$0xff]  ;;  %v7190_v6 = vld [vmem:[%s4724_s30 + $0x7a] sm:$0xff]  ;;  %v7208_v33 = vld [vmem:[%s4724_s30 + $0x92] sm:$0xff] }
 0x106   : > { %v7175_v59 = vadd.f32 %v1329_v29, %v6931_v47  ;;  %v7178_v2 = vadd.f32 %v1330_v61, %v6934_v24  ;;  %v7181_v48 = vadd.f32 %v1331_v20, %v6937_v9  ;;  %11925 = vst [vmem:[#allocation122_spill] sm:$0xff] %v7184_v26  ;;  %11926 = vst [vmem:[#allocation123_spill] sm:$0xff] %v7187_v10  ;;  %v11928_v9 = vld [vmem:[#allocation99_spill] sm:$0xff]  ;;  %v7205_v29 = vld [vmem:[%s4724_s30 + $0x82] sm:$0xff] }
 0x107   : > { %11927 = vst [vmem:[#allocation124_spill] sm:$0xff] %v7190_v6  ;;  %v7193_v34 = vadd.f32 %v1332_v37, %v6949_v63  ;;  %v7196_v47 = vadd.f32 %v1333_v57, %v6952_v4  ;;  %v7199_v24 = vadd.f32 %v1334_v22, %v6955_v8  ;;  %v7202_v46 = vadd.f32 %v1335_v49, %v11928_v9  ;;  %v7211_v62 = vld [vmem:[%s4724_s30 + $0x9a] sm:$0xff]  ;;  %v11933_v63 = vld [vmem:[#allocation106_spill] sm:$0xff]  ;;  %v11935_v36 = vld [vmem:[#allocation107_spill] sm:$0xff] }
 0x108   : > { %11930 = vst [vmem:[#allocation126_spill] sm:$0xff] %v7205_v29  ;;  %11931 = vst [vmem:[#allocation127_spill] sm:$0xff] %v7208_v33  ;;  %v7214_v4 = vadd.f32 %v1336_v0, %v11933_v63  ;;  %v7217_v8 = vadd.f32 %v1337_v23, %v11935_v36  ;;  %v11937_v22 = vld [vmem:[#allocation108_spill] sm:$0xff]  ;;  %v11939_v61 = vld [vmem:[#allocation109_spill] sm:$0xff]  ;;  %v7235_v0 = vadd.f32 %v1340_v18, %v11944_v55 }
 0x109   : > { %11929 = vst [vmem:[#allocation125_spill] sm:$0xff] %v7202_v46  ;;  %11932 = vst [vmem:[#allocation128_spill] sm:$0xff] %v7211_v62  ;;  %v7220_v27 = vadd.f32 %v1338_v7, %v11937_v22  ;;  %v7223_v20 = vadd.f32 %v1339_v43, %v11939_v61  ;;  %v7226_v37 = vld [vmem:[%s4724_s30 + $0xaa] sm:$0xff]  ;;  %v7229_v57 = vld [vmem:[%s4724_s30 + $0xb2] sm:$0xff]  ;;  %v7238_v3 = vadd.f32 %v1341_v14, %v11946_v31 }
 0x10a   : > { %11934 = vst [vmem:[#allocation129_spill] sm:$0xff] %v7214_v4  ;;  %11936 = vst [vmem:[#allocation130_spill] sm:$0xff] %v7217_v8  ;;  %v7232_v49 = vld [vmem:[%s4724_s30 + $0xc2] sm:$0xff]  ;;  %v7241_v23 = vadd.f32 %v1342_v19, %v11948_v50  ;;  %v7244_v43 = vld [vmem:[%s4724_s30 + $0xca] sm:$0xff] }
 0x10b   : > { %11938 = vst [vmem:[#allocation131_spill] sm:$0xff] %v7220_v27  ;;  %11940 = vst [vmem:[#allocation14_spill] sm:$0xff] %v7223_v20  ;;  %v7247_v7 = vld [vmem:[%s4724_s30 + $0xda] sm:$0xff]  ;;  %v11953_v30 = vld [vmem:[#allocation50_spill] sm:$0xff] }
 0x10c   : > { %11941 = vst [vmem:[#allocation132_spill] sm:$0xff] %v7226_v37  ;;  %11942 = vst [vmem:[#allocation133_spill] sm:$0xff] %v7229_v57  ;;  %v1411_v60 = vmul.f32 %v3918_v25, %v11953_v30  ;;  %v7254_v5 = vld [vmem:[%s4724_s30 + $0xf2] sm:$0xff]  ;;  %v7257_v18 = vld [vmem:[%s4724_s30 + $0xfa] sm:$0xff]  ;;  %v1412_v19 = vmul.f32 %v3919_v12, %v11953_v30  ;;  %v1413_v9 = vmul.f32 %v7166_v40, %v11953_v30 }
 0x10d   : > { %11943 = vst [vmem:[#allocation134_spill] sm:$0xff] %v7232_v49  ;;  %11945 = vst [vmem:[#allocation135_spill] sm:$0xff] %v7235_v0  ;;  %v7260_v14 = vld [vmem:[%s4724_s30 + $0x10a] sm:$0xff]  ;;  %v1414_v63 = vmul.f32 %v7169_v41, %v11953_v30  ;;  %v1415_v25 = vmul.f32 %v7184_v26, %v11953_v30  ;;  %v7270_v36 = vld [vmem:[%s4724_s30 + $0x112] sm:$0xff]  ;;  %v1416_v12 = vmul.f32 %v7187_v10, %v11953_v30 }
 0x10e   : > { %11947 = vst [vmem:[#allocation136_spill] sm:$0xff] %v7238_v3  ;;  %11949 = vst [vmem:[#allocation137_spill] sm:$0xff] %v7241_v23  ;;  %v7273_v22 = vld [vmem:[%s4724_s30 + $0x122] sm:$0xff]  ;;  %v7276_v61 = vld [vmem:[%s4724_s30 + $0x12a] sm:$0xff]  ;;  %v1417_v55 = vmul.f32 %v7190_v6, %v11953_v30  ;;  %v1418_v31 = vmul.f32 %v7205_v29, %v11953_v30  ;;  %v1419_v50 = vmul.f32 %v7208_v33, %v11953_v30 }
 0x10f   : > { %11950 = vst [vmem:[#allocation138_spill] sm:$0xff] %v7244_v43  ;;  %11951 = vst [vmem:[#allocation139_spill] sm:$0xff] %v7247_v7  ;;  %v7287_v26 = vld [vmem:[%s4724_s30 + $0x13a] sm:$0xff]  ;;  %v7290_v41 = vld [vmem:[%s4724_s30 + $0x142] sm:$0xff]  ;;  %v1420_v10 = vmul.f32 %v7211_v62, %v11953_v30  ;;  %v1421_v6 = vmul.f32 %v7226_v37, %v11953_v30  ;;  %v1422_v29 = vmul.f32 %v7229_v57, %v11953_v30 }
 0x110   : > { %11952 = vst [vmem:[#allocation140_spill] sm:$0xff] %v7250_v35  ;;  %11954 = vst [vmem:[#allocation141_spill] sm:$0xff] %v7254_v5  ;;  %v7293_v40 = vld [vmem:[%s4724_s30 + $0x152] sm:$0xff]  ;;  %v1423_v38 = vmul.f32 %v7232_v49, %v11953_v30  ;;  %v7304_v33 = vld [vmem:[%s4724_s30 + $0x15a] sm:$0xff]  ;;  %v1424_v3 = vmul.f32 %v7244_v43, %v11953_v30  ;;  %v1425_v62 = vmul.f32 %v7247_v7, %v11953_v30 }
 0x111   : > { %11955 = vst [vmem:[#allocation142_spill] sm:$0xff] %v7257_v18  ;;  %11956 = vst [vmem:[#allocation143_spill] sm:$0xff] %v7260_v14  ;;  %v7310_v23 = vld [vmem:[%s4724_s30 + $0x172] sm:$0xff]  ;;  %v1426_v37 = vmul.f32 %v7250_v35, %v11953_v30  ;;  %v1427_v57 = vmul.f32 %v7254_v5, %v11953_v30  ;;  %v7321_v0 = vld [vmem:[%s4724_s30 + $0x19a] sm:$0xff]  ;;  %v1428_v20 = vmul.f32 %v7257_v18, %v11953_v30 }
 0x112   : > { %11957 = vst [vmem:[#allocation144_spill] sm:$0xff] %v7270_v36  ;;  %11958 = vst [vmem:[#allocation145_spill] sm:$0xff] %v7273_v22  ;;  %v7324_v49 = vld [vmem:[%s4724_s30 + $0x1a2] sm:$0xff]  ;;  %v1429_v27 = vmul.f32 %v7260_v14, %v11953_v30  ;;  %v1430_v43 = vmul.f32 %v7270_v36, %v11953_v30  ;;  %v1431_v7 = vmul.f32 %v7273_v22, %v11953_v30 }
 0x113   : > { %11959 = vst [vmem:[#allocation36_spill] sm:$0xff] %v7276_v61  ;;  %11960 = vst [vmem:[#allocation37_spill] sm:$0xff] %v7287_v26  ;;  %v1432_v35 = vmul.f32 %v7276_v61, %v11953_v30  ;;  %v1433_v5 = vmul.f32 %v7287_v26, %v11953_v30  ;;  %v1434_v8 = vmul.f32 %v7290_v41, %v11953_v30  ;;  %v11968_v61 = vld [vmem:[#allocation33_spill] sm:$0xff]  ;;  %v11969_v26 = vld [vmem:[#allocation34_spill] sm:$0xff] }
 0x114   : > { %11961 = vst [vmem:[#allocation39_spill] sm:$0xff] %v7290_v41  ;;  %11962 = vst [vmem:[#allocation40_spill] sm:$0xff] %v7293_v40  ;;  %v1435_v18 = vmul.f32 %v7293_v40, %v11953_v30  ;;  %v1436_v14 = vmul.f32 %v7304_v33, %v11953_v30  ;;  %v1437_v36 = vmul.f32 %v7307_v39, %v11953_v30 }
 0x115   : > { %11963 = vst [vmem:[#allocation42_spill] sm:$0xff] %v7304_v33  ;;  %11965 = vst [vmem:[#allocation19_spill] sm:$0xff] %v7310_v23  ;;  %v1438_v22 = vmul.f32 %v7310_v23, %v11953_v30  ;;  %v1439_v4 = vmul.f32 %v11968_v61, %v11953_v30  ;;  %v1440_v46 = vmul.f32 %v11969_v26, %v11953_v30 }
 0x116   : > { %11966 = vst [vmem:[#allocation23_spill] sm:$0xff] %v7321_v0  ;;  %11967 = vst [vmem:[#allocation146_spill] sm:$0xff] %v7324_v49  ;;  %v1441_v41 = vmul.f32 %v7321_v0, %v11953_v30  ;;  %v1442_v40 = vmul.f32 %v7324_v49, %v11953_v30  ;;  %v7357_v33 = vadd.f32 %v1411_v60, %v7113_v51  ;;  %v7551_v0 = vld [vmem:[%s4724_s30 + $0x16b] sm:$0xff] }
 0x117   : > { %v7360_v39 = vadd.f32 %v1412_v19, %v7116_v44  ;;  %v7363_v23 = vadd.f32 %v1413_v9, %v7119_v11  ;;  %v7366_v61 = vadd.f32 %v1414_v63, %v7122_v54  ;;  %v7369_v26 = vadd.f32 %v1415_v25, %v7125_v56  ;;  %v11991_v19 = vld [vmem:[#allocation135_spill] sm:$0xff]  ;;  %v11993_v9 = vld [vmem:[#allocation136_spill] sm:$0xff]  ;;  %v11995_v25 = vld [vmem:[#allocation137_spill] sm:$0xff]  ;;  %12011 = vst [vmem:[#allocation41_spill] sm:$0xff] %v7551_v0 }
 0x118   : > { %v7372_v30 = vadd.f32 %v1416_v12, %v7128_v15  ;;  %v7375_v51 = vadd.f32 %v1417_v55, %v7131_v1  ;;  %v7378_v44 = vadd.f32 %v1418_v31, %v7134_v13  ;;  %v7381_v11 = vadd.f32 %v1419_v50, %v7137_v28  ;;  %v3950_v13 = vld [vmem:[%s4724_s30 + $0x33] sm:$0xff]  ;;  %v7494_v12 = vld [vmem:[%s4724_s30 + $0xe3] sm:$0xff] }
 0x119   : > { %v7384_v54 = vadd.f32 %v1420_v10, %v7140_v53  ;;  %v7387_v56 = vadd.f32 %v1421_v6, %v7143_v58  ;;  %v7390_v15 = vadd.f32 %v1422_v29, %v7146_v32  ;;  %v7393_v1 = vadd.f32 %v1423_v38, %v7149_v42  ;;  %v3951_v32 = vld [vmem:[%s4724_s30 + $0x3b] sm:$0xff]  ;;  %v7410_v10 = vld [vmem:[%s4724_s30 + $0x4b] sm:$0xff]  ;;  %v7413_v38 = vld [vmem:[%s4724_s30 + $0x53] sm:$0xff]  ;;  %11999 = vst [vmem:[#allocation169_spill] sm:$0xff] %v7494_v12 }
 0x11a   : > { %v7397_v60 = vadd.f32 %v1424_v3, %v7153_v21  ;;  %v7400_v28 = vadd.f32 %v1425_v62, %v7156_v17  ;;  %v7403_v53 = vadd.f32 %v1426_v37, %v7159_v52  ;;  %v7406_v58 = vadd.f32 %v1427_v57, %v7162_v45  ;;  %11970 = vst [vmem:[#allocation5_spill] sm:$0xff] %v7410_v10  ;;  %v7428_v45 = vld [vmem:[%s4724_s30 + $0x63] sm:$0xff]  ;;  %v7431_v6 = vld [vmem:[%s4724_s30 + $0x6b] sm:$0xff]  ;;  %v7434_v29 = vld [vmem:[%s4724_s30 + $0x7b] sm:$0xff] }
 0x11b   : > { %11971 = vst [vmem:[#allocation147_spill] sm:$0xff] %v7413_v38  ;;  %v7416_v42 = vadd.f32 %v1428_v20, %v7172_v16  ;;  %v7419_v21 = vadd.f32 %v1429_v27, %v7175_v59  ;;  %v7422_v17 = vadd.f32 %v1430_v43, %v7178_v2  ;;  %v7425_v52 = vadd.f32 %v1431_v7, %v7181_v48  ;;  %v11975_v48 = vld [vmem:[#allocation125_spill] sm:$0xff]  ;;  %v7452_v20 = vld [vmem:[%s4724_s30 + $0x93] sm:$0xff]  ;;  %v11982_v57 = vld [vmem:[#allocation130_spill] sm:$0xff] }
 0x11c   : > { %11972 = vst [vmem:[#allocation148_spill] sm:$0xff] %v7428_v45  ;;  %11973 = vst [vmem:[#allocation149_spill] sm:$0xff] %v7431_v6  ;;  %v7437_v16 = vadd.f32 %v1432_v35, %v7193_v34  ;;  %v7440_v59 = vadd.f32 %v1433_v5, %v7196_v47  ;;  %v7443_v2 = vadd.f32 %v1434_v8, %v7199_v24  ;;  %v7449_v27 = vld [vmem:[%s4724_s30 + $0x83] sm:$0xff]  ;;  %v7455_v37 = vld [vmem:[%s4724_s30 + $0x9b] sm:$0xff] }
 0x11d   : > { %11974 = vst [vmem:[#allocation150_spill] sm:$0xff] %v7434_v29  ;;  %v7446_v62 = vadd.f32 %v1435_v18, %v11975_v48  ;;  %11977 = vst [vmem:[#allocation155_spill] sm:$0xff] %v7449_v27  ;;  %v11980_v34 = vld [vmem:[#allocation129_spill] sm:$0xff]  ;;  %v7461_v24 = vadd.f32 %v1437_v36, %v11982_v57  ;;  %v11984_v8 = vld [vmem:[#allocation131_spill] sm:$0xff]  ;;  %v7482_v63 = vadd.f32 %v1441_v41, %v11993_v9 }
 0x11e   : > { %11978 = vst [vmem:[#allocation156_spill] sm:$0xff] %v7452_v20  ;;  %11979 = vst [vmem:[#allocation157_spill] sm:$0xff] %v7455_v37  ;;  %v7458_v47 = vadd.f32 %v1436_v14, %v11980_v34  ;;  %v7464_v3 = vadd.f32 %v1438_v22, %v11984_v8  ;;  %v11986_v43 = vld [vmem:[#allocation14_spill] sm:$0xff]  ;;  %v7473_v5 = vld [vmem:[%s4724_s30 + $0xb3] sm:$0xff]  ;;  %v7479_v14 = vadd.f32 %v1440_v46, %v11991_v19 }
 0x11f   : > { %11976 = vst [vmem:[#allocation151_spill] sm:$0xff] %v7446_v62  ;;  %11983 = vst [vmem:[#allocation159_spill] sm:$0xff] %v7461_v24  ;;  %v7467_v7 = vadd.f32 %v1439_v4, %v11986_v43  ;;  %v7470_v35 = vld [vmem:[%s4724_s30 + $0xab] sm:$0xff]  ;;  %v7476_v18 = vld [vmem:[%s4724_s30 + $0xc3] sm:$0xff]  ;;  %v7485_v36 = vadd.f32 %v1442_v40, %v11995_v25 }
 0x120   : > { %11981 = vst [vmem:[#allocation158_spill] sm:$0xff] %v7458_v47  ;;  %11985 = vst [vmem:[#allocation160_spill] sm:$0xff] %v7464_v3  ;;  %v7488_v4 = vld [vmem:[%s4724_s30 + $0xcb] sm:$0xff]  ;;  %v7491_v22 = vld [vmem:[%s4724_s30 + $0xdb] sm:$0xff] }
 0x121   : > { %11987 = vst [vmem:[#allocation161_spill] sm:$0xff] %v7467_v7  ;;  %11988 = vst [vmem:[#allocation162_spill] sm:$0xff] %v7470_v35  ;;  %v12000_v55 = vld [vmem:[#allocation51_spill] sm:$0xff]  ;;  %v7501_v46 = vld [vmem:[%s4724_s30 + $0xfb] sm:$0xff] }
 0x122   : > { %11989 = vst [vmem:[#allocation163_spill] sm:$0xff] %v7473_v5  ;;  %11990 = vst [vmem:[#allocation15_spill] sm:$0xff] %v7476_v18  ;;  %v1511_v31 = vmul.f32 %v3950_v13, %v12000_v55  ;;  %v7498_v50 = vld [vmem:[%s4724_s30 + $0xf3] sm:$0xff]  ;;  %v7504_v41 = vld [vmem:[%s4724_s30 + $0x10b] sm:$0xff]  ;;  %v1512_v40 = vmul.f32 %v3951_v32, %v12000_v55  ;;  %v1513_v48 = vmul.f32 %v7410_v10, %v12000_v55 }
 0x123   : > { %11992 = vst [vmem:[#allocation164_spill] sm:$0xff] %v7479_v14  ;;  %11994 = vst [vmem:[#allocation165_spill] sm:$0xff] %v7482_v63  ;;  %v1514_v34 = vmul.f32 %v7413_v38, %v12000_v55  ;;  %v1515_v13 = vmul.f32 %v7428_v45, %v12000_v55  ;;  %v7514_v57 = vld [vmem:[%s4724_s30 + $0x113] sm:$0xff]  ;;  %v7517_v8 = vld [vmem:[%s4724_s30 + $0x123] sm:$0xff]  ;;  %v1516_v32 = vmul.f32 %v7431_v6, %v12000_v55 }
 0x124   : > { %11996 = vst [vmem:[#allocation166_spill] sm:$0xff] %v7485_v36  ;;  %11997 = vst [vmem:[#allocation167_spill] sm:$0xff] %v7488_v4  ;;  %v7520_v43 = vld [vmem:[%s4724_s30 + $0x12b] sm:$0xff]  ;;  %v1517_v19 = vmul.f32 %v7434_v29, %v12000_v55  ;;  %v1518_v9 = vmul.f32 %v7449_v27, %v12000_v55  ;;  %v1519_v25 = vmul.f32 %v7452_v20, %v12000_v55  ;;  %v7531_v45 = vld [vmem:[%s4724_s30 + $0x13b] sm:$0xff] }
 0x125   : > { %11998 = vst [vmem:[#allocation168_spill] sm:$0xff] %v7491_v22  ;;  %12001 = vst [vmem:[#allocation170_spill] sm:$0xff] %v7498_v50  ;;  %v7534_v38 = vld [vmem:[%s4724_s30 + $0x143] sm:$0xff]  ;;  %v7537_v10 = vld [vmem:[%s4724_s30 + $0x153] sm:$0xff]  ;;  %v1520_v6 = vmul.f32 %v7455_v37, %v12000_v55  ;;  %v1521_v29 = vmul.f32 %v7470_v35, %v12000_v55  ;;  %v1522_v27 = vmul.f32 %v7473_v5, %v12000_v55 }
 0x126   : > { %12002 = vst [vmem:[#allocation171_spill] sm:$0xff] %v7501_v46  ;;  %12003 = vst [vmem:[#allocation172_spill] sm:$0xff] %v7504_v41  ;;  %v1523_v49 = vmul.f32 %v7476_v18, %v12000_v55  ;;  %v7548_v20 = vld [vmem:[%s4724_s30 + $0x15b] sm:$0xff]  ;;  %v7554_v36 = vld [vmem:[%s4724_s30 + $0x173] sm:$0xff]  ;;  %v1524_v63 = vmul.f32 %v7488_v4, %v12000_v55  ;;  %v1525_v37 = vmul.f32 %v7491_v22, %v12000_v55 }
 0x127   : > { %12004 = vst [vmem:[#allocation173_spill] sm:$0xff] %v7514_v57  ;;  %12005 = vst [vmem:[#allocation174_spill] sm:$0xff] %v7517_v8  ;;  %v1526_v35 = vmul.f32 %v7494_v12, %v12000_v55  ;;  %v1527_v5 = vmul.f32 %v7498_v50, %v12000_v55  ;;  %v7565_v14 = vld [vmem:[%s4724_s30 + $0x19b] sm:$0xff]  ;;  %v7568_v18 = vld [vmem:[%s4724_s30 + $0x1a3] sm:$0xff]  ;;  %v1528_v7 = vmul.f32 %v7501_v46, %v12000_v55 }
 0x128   : > { %12006 = vst [vmem:[#allocation175_spill] sm:$0xff] %v7520_v43  ;;  %12007 = vst [vmem:[#allocation176_spill] sm:$0xff] %v7531_v45  ;;  %v1529_v3 = vmul.f32 %v7504_v41, %v12000_v55  ;;  %v1530_v4 = vmul.f32 %v7514_v57, %v12000_v55  ;;  %v1531_v22 = vmul.f32 %v7517_v8, %v12000_v55 }
 0x129   : > { %12008 = vst [vmem:[#allocation177_spill] sm:$0xff] %v7534_v38  ;;  %12009 = vst [vmem:[#allocation35_spill] sm:$0xff] %v7537_v10  ;;  %v1532_v12 = vmul.f32 %v7520_v43, %v12000_v55  ;;  %v1533_v50 = vmul.f32 %v7531_v45, %v12000_v55  ;;  %v1534_v24 = vmul.f32 %v7534_v38, %v12000_v55  ;;  %v12015_v43 = vld [vmem:[#allocation27_spill] sm:$0xff] }
 0x12a   : > { %12010 = vst [vmem:[#allocation38_spill] sm:$0xff] %v7548_v20  ;;  %12012 = vst [vmem:[#allocation45_spill] sm:$0xff] %v7554_v36  ;;  %v1535_v46 = vmul.f32 %v7537_v10, %v12000_v55  ;;  %v1536_v41 = vmul.f32 %v7548_v20, %v12000_v55  ;;  %v1537_v57 = vmul.f32 %v7551_v0, %v12000_v55  ;;  %v12016_v45 = vld [vmem:[#allocation31_spill] sm:$0xff] }
 0x12b   : > { %12013 = vst [vmem:[#allocation48_spill] sm:$0xff] %v7565_v14  ;;  %12014 = vst [vmem:[#allocation55_spill] sm:$0xff] %v7568_v18  ;;  %v1538_v8 = vmul.f32 %v7554_v36, %v12000_v55  ;;  %v1539_v47 = vmul.f32 %v12015_v43, %v12000_v55  ;;  %v1540_v62 = vmul.f32 %v12016_v45, %v12000_v55 }
 0x12c   : > { %v1541_v38 = vmul.f32 %v7565_v14, %v12000_v55  ;;  %v1542_v10 = vmul.f32 %v7568_v18, %v12000_v55  ;;  %v7601_v20 = vadd.f32 %v1511_v31, %v7357_v33  ;;  %v7604_v0 = vadd.f32 %v1512_v40, %v7360_v39  ;;  %v12038_v40 = vld [vmem:[#allocation164_spill] sm:$0xff]  ;;  %v7795_v14 = vld [vmem:[%s4724_s30 + $0x16c] sm:$0xff] }
 0x12d   : > { %v7607_v36 = vadd.f32 %v1513_v48, %v7363_v23  ;;  %v7610_v43 = vadd.f32 %v1514_v34, %v7366_v61  ;;  %v7613_v45 = vadd.f32 %v1515_v13, %v7369_v26  ;;  %v7616_v55 = vadd.f32 %v1516_v32, %v7372_v30  ;;  %v12040_v48 = vld [vmem:[#allocation165_spill] sm:$0xff]  ;;  %v12042_v13 = vld [vmem:[#allocation166_spill] sm:$0xff]  ;;  %12058 = vst [vmem:[#allocation130_spill] sm:$0xff] %v7795_v14 }
 0x12e   : > { %v7619_v33 = vadd.f32 %v1517_v19, %v7375_v51  ;;  %v7622_v39 = vadd.f32 %v1518_v9, %v7378_v44  ;;  %v7625_v23 = vadd.f32 %v1519_v25, %v7381_v11  ;;  %v7628_v61 = vadd.f32 %v1520_v6, %v7384_v54  ;;  %v3982_v44 = vld [vmem:[%s4724_s30 + $0x34] sm:$0xff]  ;;  %v7654_v6 = vld [vmem:[%s4724_s30 + $0x4c] sm:$0xff]  ;;  %v7738_v32 = vld [vmem:[%s4724_s30 + $0xe4] sm:$0xff] }
 0x12f   : > { %v7631_v26 = vadd.f32 %v1521_v29, %v7387_v56  ;;  %v7634_v30 = vadd.f32 %v1522_v27, %v7390_v15  ;;  %v7637_v51 = vadd.f32 %v1523_v49, %v7393_v1  ;;  %v7641_v31 = vadd.f32 %v1524_v63, %v7397_v60  ;;  %v3983_v15 = vld [vmem:[%s4724_s30 + $0x3c] sm:$0xff]  ;;  %12017 = vst [vmem:[#allocation59_spill] sm:$0xff] %v7654_v6  ;;  %v7657_v49 = vld [vmem:[%s4724_s30 + $0x54] sm:$0xff]  ;;  %v7675_v29 = vld [vmem:[%s4724_s30 + $0x6c] sm:$0xff] }
 0x130   : > { %v7644_v11 = vadd.f32 %v1525_v37, %v7400_v28  ;;  %v7647_v54 = vadd.f32 %v1526_v35, %v7403_v53  ;;  %v7650_v56 = vadd.f32 %v1527_v5, %v7406_v58  ;;  %12018 = vst [vmem:[#allocation60_spill] sm:$0xff] %v7657_v49  ;;  %v7660_v1 = vadd.f32 %v1528_v7, %v7416_v42  ;;  %v7672_v58 = vld [vmem:[%s4724_s30 + $0x64] sm:$0xff]  ;;  %v7678_v27 = vld [vmem:[%s4724_s30 + $0x7c] sm:$0xff]  ;;  %v7696_v7 = vld [vmem:[%s4724_s30 + $0x94] sm:$0xff] }
 0x131   : > { %v7663_v60 = vadd.f32 %v1529_v3, %v7419_v21  ;;  %v7666_v28 = vadd.f32 %v1530_v4, %v7422_v17  ;;  %v7669_v53 = vadd.f32 %v1531_v22, %v7425_v52  ;;  %12019 = vst [vmem:[#allocation44_spill] sm:$0xff] %v7672_v58  ;;  %12020 = vst [vmem:[#allocation16_spill] sm:$0xff] %v7675_v29  ;;  %v12022_v52 = vld [vmem:[#allocation151_spill] sm:$0xff]  ;;  %v7693_v3 = vld [vmem:[%s4724_s30 + $0x84] sm:$0xff] }
 0x132   : > { %12021 = vst [vmem:[#allocation46_spill] sm:$0xff] %v7678_v27  ;;  %v7681_v42 = vadd.f32 %v1532_v12, %v7437_v16  ;;  %v7684_v21 = vadd.f32 %v1533_v50, %v7440_v59  ;;  %v7687_v17 = vadd.f32 %v1534_v24, %v7443_v2  ;;  %v7690_v37 = vadd.f32 %v1535_v46, %v12022_v52  ;;  %v7699_v35 = vld [vmem:[%s4724_s30 + $0x9c] sm:$0xff]  ;;  %v12027_v16 = vld [vmem:[#allocation158_spill] sm:$0xff]  ;;  %v12029_v5 = vld [vmem:[#allocation159_spill] sm:$0xff] }
 0x133   : > { %12024 = vst [vmem:[#allocation152_spill] sm:$0xff] %v7693_v3  ;;  %12025 = vst [vmem:[#allocation153_spill] sm:$0xff] %v7696_v7  ;;  %v7702_v59 = vadd.f32 %v1536_v41, %v12027_v16  ;;  %v7705_v2 = vadd.f32 %v1537_v57, %v12029_v5  ;;  %v12031_v24 = vld [vmem:[#allocation160_spill] sm:$0xff]  ;;  %v12033_v4 = vld [vmem:[#allocation161_spill] sm:$0xff]  ;;  %v7723_v41 = vadd.f32 %v1540_v62, %v12038_v40 }
 0x134   : > { %12023 = vst [vmem:[#allocation47_spill] sm:$0xff] %v7690_v37  ;;  %12026 = vst [vmem:[#allocation65_spill] sm:$0xff] %v7699_v35  ;;  %v7708_v63 = vadd.f32 %v1538_v8, %v12031_v24  ;;  %v7711_v22 = vadd.f32 %v1539_v47, %v12033_v4  ;;  %v7714_v12 = vld [vmem:[%s4724_s30 + $0xac] sm:$0xff]  ;;  %v7717_v50 = vld [vmem:[%s4724_s30 + $0xb4] sm:$0xff]  ;;  %v7726_v34 = vadd.f32 %v1541_v38, %v12040_v48 }
 0x135   : > { %12028 = vst [vmem:[#allocation70_spill] sm:$0xff] %v7702_v59  ;;  %12030 = vst [vmem:[#allocation72_spill] sm:$0xff] %v7705_v2  ;;  %v7720_v46 = vld [vmem:[%s4724_s30 + $0xc4] sm:$0xff]  ;;  %v7729_v57 = vadd.f32 %v1542_v10, %v12042_v13  ;;  %v7732_v47 = vld [vmem:[%s4724_s30 + $0xcc] sm:$0xff] }
 0x136   : > { %12032 = vst [vmem:[#allocation73_spill] sm:$0xff] %v7708_v63  ;;  %12034 = vst [vmem:[#allocation74_spill] sm:$0xff] %v7711_v22  ;;  %v7735_v8 = vld [vmem:[%s4724_s30 + $0xdc] sm:$0xff]  ;;  %v7742_v25 = vld [vmem:[%s4724_s30 + $0xf4] sm:$0xff] }
 0x137   : > { %12035 = vst [vmem:[#allocation80_spill] sm:$0xff] %v7714_v12  ;;  %12036 = vst [vmem:[#allocation81_spill] sm:$0xff] %v7717_v50  ;;  %v12047_v19 = vld [vmem:[#allocation52_spill] sm:$0xff]  ;;  %v7748_v38 = vld [vmem:[%s4724_s30 + $0x10c] sm:$0xff] }
 0x138   : > { %12037 = vst [vmem:[#allocation82_spill] sm:$0xff] %v7720_v46  ;;  %12039 = vst [vmem:[#allocation49_spill] sm:$0xff] %v7723_v41  ;;  %v1611_v9 = vmul.f32 %v3982_v44, %v12047_v19  ;;  %v7745_v62 = vld [vmem:[%s4724_s30 + $0xfc] sm:$0xff]  ;;  %v1612_v10 = vmul.f32 %v3983_v15, %v12047_v19  ;;  %v1613_v52 = vmul.f32 %v7654_v6, %v12047_v19  ;;  %v7758_v5 = vld [vmem:[%s4724_s30 + $0x114] sm:$0xff] }
 0x139   : > { %12041 = vst [vmem:[#allocation13_spill] sm:$0xff] %v7726_v34  ;;  %12043 = vst [vmem:[#allocation21_spill] sm:$0xff] %v7729_v57  ;;  %v1614_v16 = vmul.f32 %v7657_v49, %v12047_v19  ;;  %v1615_v44 = vmul.f32 %v7672_v58, %v12047_v19  ;;  %v7761_v24 = vld [vmem:[%s4724_s30 + $0x124] sm:$0xff]  ;;  %v7764_v4 = vld [vmem:[%s4724_s30 + $0x12c] sm:$0xff]  ;;  %v1616_v15 = vmul.f32 %v7675_v29, %v12047_v19 }
 0x13a   : > { %12044 = vst [vmem:[#allocation99_spill] sm:$0xff] %v7732_v47  ;;  %12045 = vst [vmem:[#allocation106_spill] sm:$0xff] %v7735_v8  ;;  %v1617_v40 = vmul.f32 %v7678_v27, %v12047_v19  ;;  %v1618_v48 = vmul.f32 %v7693_v3, %v12047_v19  ;;  %v1619_v13 = vmul.f32 %v7696_v7, %v12047_v19  ;;  %v7775_v58 = vld [vmem:[%s4724_s30 + $0x13c] sm:$0xff]  ;;  %v7778_v49 = vld [vmem:[%s4724_s30 + $0x144] sm:$0xff] }
 0x13b   : > { %12046 = vst [vmem:[#allocation107_spill] sm:$0xff] %v7738_v32  ;;  %12048 = vst [vmem:[#allocation108_spill] sm:$0xff] %v7742_v25  ;;  %v7781_v6 = vld [vmem:[%s4724_s30 + $0x154] sm:$0xff]  ;;  %v1620_v29 = vmul.f32 %v7699_v35, %v12047_v19  ;;  %v1621_v27 = vmul.f32 %v7714_v12, %v12047_v19  ;;  %v1622_v3 = vmul.f32 %v7717_v50, %v12047_v19  ;;  %v7792_v7 = vld [vmem:[%s4724_s30 + $0x15c] sm:$0xff] }
 0x13c   : > { %12049 = vst [vmem:[#allocation109_spill] sm:$0xff] %v7745_v62  ;;  %12050 = vst [vmem:[#allocation113_spill] sm:$0xff] %v7748_v38  ;;  %v1623_v18 = vmul.f32 %v7720_v46, %v12047_v19  ;;  %v7798_v57 = vld [vmem:[%s4724_s30 + $0x174] sm:$0xff]  ;;  %v1624_v34 = vmul.f32 %v7732_v47, %v12047_v19  ;;  %v1625_v35 = vmul.f32 %v7735_v8, %v12047_v19  ;;  %v7809_v41 = vld [vmem:[%s4724_s30 + $0x19c] sm:$0xff] }
 0x13d   : > { %12051 = vst [vmem:[#allocation114_spill] sm:$0xff] %v7758_v5  ;;  %12052 = vst [vmem:[#allocation115_spill] sm:$0xff] %v7761_v24  ;;  %v1626_v12 = vmul.f32 %v7738_v32, %v12047_v19  ;;  %v1627_v50 = vmul.f32 %v7742_v25, %v12047_v19  ;;  %v7812_v46 = vld [vmem:[%s4724_s30 + $0x1a4] sm:$0xff]  ;;  %v1628_v22 = vmul.f32 %v7745_v62, %v12047_v19 }
 0x13e   : > { %12053 = vst [vmem:[#allocation50_spill] sm:$0xff] %v7764_v4  ;;  %12054 = vst [vmem:[#allocation33_spill] sm:$0xff] %v7775_v58  ;;  %v1629_v63 = vmul.f32 %v7748_v38, %v12047_v19  ;;  %v1630_v47 = vmul.f32 %v7758_v5, %v12047_v19  ;;  %v1631_v8 = vmul.f32 %v7761_v24, %v12047_v19 }
 0x13f   : > { %12055 = vst [vmem:[#allocation34_spill] sm:$0xff] %v7778_v49  ;;  %12056 = vst [vmem:[#allocation125_spill] sm:$0xff] %v7781_v6  ;;  %v1632_v32 = vmul.f32 %v7764_v4, %v12047_v19  ;;  %v1633_v25 = vmul.f32 %v7775_v58, %v12047_v19  ;;  %v1634_v2 = vmul.f32 %v7778_v49, %v12047_v19  ;;  %v12062_v4 = vld [vmem:[#allocation56_spill] sm:$0xff]  ;;  %v12063_v58 = vld [vmem:[#allocation57_spill] sm:$0xff] }
 0x140   : > { %12057 = vst [vmem:[#allocation129_spill] sm:$0xff] %v7792_v7  ;;  %12059 = vst [vmem:[#allocation131_spill] sm:$0xff] %v7798_v57  ;;  %v1635_v62 = vmul.f32 %v7781_v6, %v12047_v19  ;;  %v1636_v38 = vmul.f32 %v7792_v7, %v12047_v19  ;;  %v1637_v5 = vmul.f32 %v7795_v14, %v12047_v19 }
 0x141   : > { %12060 = vst [vmem:[#allocation14_spill] sm:$0xff] %v7809_v41  ;;  %12061 = vst [vmem:[#allocation135_spill] sm:$0xff] %v7812_v46  ;;  %v1638_v24 = vmul.f32 %v7798_v57, %v12047_v19  ;;  %v1639_v59 = vmul.f32 %v12062_v4, %v12047_v19  ;;  %v1640_v37 = vmul.f32 %v12063_v58, %v12047_v19 }
 0x142   : > { %v1641_v49 = vmul.f32 %v7809_v41, %v12047_v19  ;;  %v1642_v6 = vmul.f32 %v7812_v46, %v12047_v19  ;;  %v7845_v7 = vadd.f32 %v1611_v9, %v7601_v20  ;;  %v7848_v14 = vadd.f32 %v1612_v10, %v7604_v0  ;;  %v12087_v10 = vld [vmem:[#allocation68_spill] sm:$0xff] }
 0x143   : > { %v7851_v57 = vadd.f32 %v1613_v52, %v7607_v36  ;;  %v7854_v4 = vadd.f32 %v1614_v16, %v7610_v43  ;;  %v7857_v58 = vadd.f32 %v1615_v44, %v7613_v45  ;;  %v7860_v41 = vadd.f32 %v1616_v15, %v7616_v55  ;;  %v12088_v16 = vld [vmem:[#allocation69_spill] sm:$0xff] }
 0x144   : > { %v7863_v19 = vadd.f32 %v1617_v40, %v7619_v33  ;;  %v7866_v20 = vadd.f32 %v1618_v48, %v7622_v39  ;;  %v7869_v0 = vadd.f32 %v1619_v13, %v7625_v23  ;;  %v7872_v36 = vadd.f32 %v1620_v29, %v7628_v61  ;;  %v12090_v15 = vld [vmem:[#allocation77_spill] sm:$0xff]  ;;  %v12091_v48 = vld [vmem:[#allocation78_spill] sm:$0xff] }
 0x145   : > { %v7875_v43 = vadd.f32 %v1621_v27, %v7631_v26  ;;  %v7878_v45 = vadd.f32 %v1622_v3, %v7634_v30  ;;  %v7881_v55 = vadd.f32 %v1623_v18, %v7637_v51  ;;  %v7884_v33 = vadd.f32 %v1624_v34, %v7641_v31  ;;  %v12081_v34 = vld [vmem:[#allocation58_spill] sm:$0xff] }
 0x146   : > { %v7887_v39 = vadd.f32 %v1625_v35, %v7644_v11  ;;  %v7890_v23 = vadd.f32 %v1626_v12, %v7647_v54  ;;  %v7893_v61 = vadd.f32 %v1627_v50, %v7650_v56  ;;  %v7896_v26 = vadd.f32 %v1628_v22, %v7660_v1  ;;  %v12064_v56 = vld [vmem:[#allocation47_spill] sm:$0xff]  ;;  %v12078_v22 = vld [vmem:[#allocation21_spill] sm:$0xff] }
 0x147   : > { %v7899_v30 = vadd.f32 %v1629_v63, %v7663_v60  ;;  %v7902_v18 = vadd.f32 %v1630_v47, %v7666_v28  ;;  %v7905_v51 = vadd.f32 %v1631_v8, %v7669_v53  ;;  %v7908_v31 = vadd.f32 %v1632_v32, %v7681_v42  ;;  %v12066_v60 = vld [vmem:[#allocation70_spill] sm:$0xff]  ;;  %v12068_v28 = vld [vmem:[#allocation72_spill] sm:$0xff]  ;;  %v12070_v53 = vld [vmem:[#allocation73_spill] sm:$0xff] }
 0x148   : > { %v7911_v11 = vadd.f32 %v1633_v25, %v7684_v21  ;;  %v7914_v54 = vadd.f32 %v1634_v2, %v7687_v17  ;;  %v7917_v1 = vadd.f32 %v1635_v62, %v12064_v56  ;;  %v7920_v29 = vadd.f32 %v1636_v38, %v12066_v60  ;;  %v12072_v42 = vld [vmem:[#allocation74_spill] sm:$0xff]  ;;  %v12074_v21 = vld [vmem:[#allocation49_spill] sm:$0xff]  ;;  %v12085_v62 = vld [vmem:[#allocation64_spill] sm:$0xff] }
 0x149   : > { %v7923_v27 = vadd.f32 %v1637_v5, %v12068_v28  ;;  %v7926_v3 = vadd.f32 %v1638_v24, %v12070_v53  ;;  %v7929_v35 = vadd.f32 %v1639_v59, %v12072_v42  ;;  %v7932_v63 = vadd.f32 %v1640_v37, %v12074_v21  ;;  %v12076_v17 = vld [vmem:[#allocation13_spill] sm:$0xff]  ;;  %v12083_v59 = vld [vmem:[#allocation62_spill] sm:$0xff]  ;;  %v12084_v37 = vld [vmem:[#allocation63_spill] sm:$0xff] }
 0x14a   : > { %12065 = vst [vmem:[#allocation136_spill] sm:$0xff] %v7917_v1  ;;  %12067 = vst [vmem:[#allocation137_spill] sm:$0xff] %v7920_v29  ;;  %v7935_v2 = vadd.f32 %v1641_v49, %v12076_v17  ;;  %v7938_v12 = vadd.f32 %v1642_v6, %v12078_v22  ;;  %v12080_v50 = vld [vmem:[#allocation53_spill] sm:$0xff]  ;;  %v12086_v38 = vld [vmem:[#allocation66_spill] sm:$0xff] }
 0x14b   : > { %12069 = vst [vmem:[#allocation51_spill] sm:$0xff] %v7923_v27  ;;  %12071 = vst [vmem:[#allocation27_spill] sm:$0xff] %v7926_v3  ;;  %v1712_v47 = vmul.f32 %v12081_v34, %v12080_v50  ;;  %v12082_v8 = vld [vmem:[#allocation61_spill] sm:$0xff]  ;;  %v1714_v9 = vmul.f32 %v12083_v59, %v12080_v50  ;;  %v1715_v25 = vmul.f32 %v12084_v37, %v12080_v50  ;;  %v12089_v5 = vld [vmem:[#allocation76_spill] sm:$0xff] }
 0x14c   : > { %12073 = vst [vmem:[#allocation31_spill] sm:$0xff] %v7929_v35  ;;  %12075 = vst [vmem:[#allocation151_spill] sm:$0xff] %v7932_v63  ;;  %v1713_v32 = vmul.f32 %v12082_v8, %v12080_v50  ;;  %v1716_v49 = vmul.f32 %v12085_v62, %v12080_v50  ;;  %v1717_v6 = vmul.f32 %v12086_v38, %v12080_v50  ;;  %v12092_v56 = vld [vmem:[#allocation154_spill] sm:$0xff]  ;;  %v12093_v28 = vld [vmem:[#allocation89_spill] sm:$0xff] }
 0x14d   : > { %12077 = vst [vmem:[#allocation158_spill] sm:$0xff] %v7935_v2  ;;  %12079 = vst [vmem:[#allocation159_spill] sm:$0xff] %v7938_v12  ;;  %v1718_v52 = vmul.f32 %v12087_v10, %v12080_v50  ;;  %v1719_v44 = vmul.f32 %v12088_v16, %v12080_v50  ;;  %v1720_v24 = vmul.f32 %v12089_v5, %v12080_v50  ;;  %v7967_v42 = vld [vmem:[%s4724_s30 + $0x180] sm:$0xff]  ;;  %v7970_v21 = vld [vmem:[%s4724_s30 + $0x188] sm:$0xff] }
 0x14e   : > { %v1721_v40 = vmul.f32 %v12090_v15, %v12080_v50  ;;  %v1722_v13 = vmul.f32 %v12091_v48, %v12080_v50  ;;  %v1723_v60 = vmul.f32 %v12092_v56, %v12080_v50  ;;  %v1724_v53 = vmul.f32 %v12093_v28, %v12080_v50  ;;  %12094 = vst [vmem:[#allocation160_spill] sm:$0xff] %v7967_v42  ;;  %v12096_v17 = vld [vmem:[#allocation93_spill] sm:$0xff]  ;;  %v12097_v34 = vld [vmem:[#allocation94_spill] sm:$0xff]  ;;  %v12098_v59 = vld [vmem:[#allocation95_spill] sm:$0xff] }
 0x14f   : > { %12095 = vst [vmem:[#allocation161_spill] sm:$0xff] %v7970_v21  ;;  %v1725_v22 = vmul.f32 %v12096_v17, %v12080_v50  ;;  %v1726_v8 = vmul.f32 %v12097_v34, %v12080_v50  ;;  %v1727_v37 = vmul.f32 %v12098_v59, %v12080_v50  ;;  %v12099_v62 = vld [vmem:[#allocation96_spill] sm:$0xff]  ;;  %v7981_v10 = vld [vmem:[%s4724_s30 + $0x1b0] sm:$0xff]  ;;  %v12103_v48 = vld [vmem:[#allocation101_spill] sm:$0xff] }
 0x150   : > { %v1728_v38 = vmul.f32 %v12099_v62, %v12080_v50  ;;  %12100 = vst [vmem:[#allocation164_spill] sm:$0xff] %v7981_v10  ;;  %v7984_v16 = vld [vmem:[%s4724_s30 + $0x1b8] sm:$0xff]  ;;  %v1730_v56 = vmul.f32 %v12103_v48, %v12080_v50  ;;  %v12104_v28 = vld [vmem:[#allocation102_spill] sm:$0xff]  ;;  %v12106_v59 = vld [vmem:[#allocation83_spill] sm:$0xff] }
 0x151   : > { %12101 = vst [vmem:[#allocation165_spill] sm:$0xff] %v7984_v16  ;;  %v12102_v5 = vld [vmem:[#allocation100_spill] sm:$0xff]  ;;  %v1731_v17 = vmul.f32 %v12104_v28, %v12080_v50  ;;  %v1733_v12 = vmul.f32 %v12106_v59, %v12080_v50  ;;  %v12107_v62 = vld [vmem:[#allocation17_spill] sm:$0xff]  ;;  %v12110_v48 = vld [vmem:[#allocation86_spill] sm:$0xff]  ;;  %v1738_v28 = vmul.f32 %v7967_v42, %v12080_v50  ;;  %v8020_v42 = vadd.f32 %v1713_v32, %v7848_v14 }
 0x152   : > { %v1729_v15 = vmul.f32 %v12102_v5, %v12080_v50  ;;  %v12105_v34 = vld [vmem:[#allocation20_spill] sm:$0xff]  ;;  %v1734_v2 = vmul.f32 %v12107_v62, %v12080_v50  ;;  %v12109_v5 = vld [vmem:[#allocation85_spill] sm:$0xff]  ;;  %v1737_v27 = vmul.f32 %v12110_v48, %v12080_v50  ;;  %v12111_v59 = vld [vmem:[#allocation87_spill] sm:$0xff]  ;;  %v8017_v48 = vadd.f32 %v1712_v47, %v7845_v7 }
 0x153   : > { %v1732_v46 = vmul.f32 %v12105_v34, %v12080_v50  ;;  %v12108_v63 = vld [vmem:[#allocation84_spill] sm:$0xff]  ;;  %v1736_v3 = vmul.f32 %v12109_v5, %v12080_v50  ;;  %v1739_v34 = vmul.f32 %v7970_v21, %v12080_v50  ;;  %v1740_v29 = vmul.f32 %v12111_v59, %v12080_v50 }
 0x154   : > { %v1735_v35 = vmul.f32 %v12108_v63, %v12080_v50  ;;  %v12112_v62 = vld [vmem:[#allocation88_spill] sm:$0xff]  ;;  %v1742_v63 = vmul.f32 %v7981_v10, %v12080_v50  ;;  %v1743_v5 = vmul.f32 %v7984_v16, %v12080_v50  ;;  %v8023_v21 = vadd.f32 %v1714_v9, %v7851_v57 }
 0x155   : > { %v1741_v1 = vmul.f32 %v12112_v62, %v12080_v50  ;;  %v8026_v59 = vadd.f32 %v1715_v25, %v7854_v4  ;;  %v8029_v62 = vadd.f32 %v1716_v49, %v7857_v58  ;;  %v8032_v10 = vadd.f32 %v1717_v6, %v7860_v41  ;;  %v12129_v25 = vld [vmem:[#allocation54_spill] sm:$0xff] }
 0x156   : > { %v8035_v50 = vadd.f32 %v1718_v52, %v7863_v19  ;;  %v8038_v7 = vadd.f32 %v1719_v44, %v7866_v20  ;;  %v8041_v14 = vadd.f32 %v1720_v24, %v7869_v0  ;;  %v8044_v57 = vadd.f32 %v1721_v40, %v7872_v36  ;;  %v12130_v49 = vld [vmem:[#allocation90_spill] sm:$0xff]  ;;  %v12131_v52 = vld [vmem:[#allocation91_spill] sm:$0xff] }
 0x157   : > { %v8047_v4 = vadd.f32 %v1722_v13, %v7875_v43  ;;  %v8050_v58 = vadd.f32 %v1723_v60, %v7878_v45  ;;  %v8053_v41 = vadd.f32 %v1724_v53, %v7881_v55  ;;  %v8056_v19 = vadd.f32 %v1725_v22, %v7884_v33  ;;  %v12134_v13 = vld [vmem:[#allocation98_spill] sm:$0xff]  ;;  %v12135_v53 = vld [vmem:[#allocation103_spill] sm:$0xff] }
 0x158   : > { %v8059_v20 = vadd.f32 %v1726_v8, %v7887_v39  ;;  %v8062_v0 = vadd.f32 %v1727_v37, %v7890_v23  ;;  %v8065_v36 = vadd.f32 %v1728_v38, %v7893_v61  ;;  %v8068_v43 = vadd.f32 %v1729_v15, %v7896_v26  ;;  %v12113_v26 = vld [vmem:[#allocation136_spill] sm:$0xff]  ;;  %v12137_v38 = vld [vmem:[#allocation105_spill] sm:$0xff] }
 0x159   : > { %v8071_v45 = vadd.f32 %v1730_v56, %v7899_v30  ;;  %v8074_v55 = vadd.f32 %v1731_v17, %v7902_v18  ;;  %v8077_v33 = vadd.f32 %v1732_v46, %v7905_v51  ;;  %v8080_v39 = vadd.f32 %v1733_v12, %v7908_v31  ;;  %v12115_v30 = vld [vmem:[#allocation137_spill] sm:$0xff]  ;;  %v12117_v18 = vld [vmem:[#allocation51_spill] sm:$0xff]  ;;  %v12136_v8 = vld [vmem:[#allocation104_spill] sm:$0xff] }
 0x15a   : > { %v8083_v23 = vadd.f32 %v1734_v2, %v7911_v11  ;;  %v8086_v61 = vadd.f32 %v1735_v35, %v7914_v54  ;;  %v8089_v47 = vadd.f32 %v1736_v3, %v12113_v26  ;;  %v8092_v32 = vadd.f32 %v1737_v27, %v12115_v30  ;;  %v12119_v46 = vld [vmem:[#allocation27_spill] sm:$0xff]  ;;  %v12125_v54 = vld [vmem:[#allocation158_spill] sm:$0xff]  ;;  %v12141_v26 = vld [vmem:[#allocation116_spill] sm:$0xff] }
 0x15b   : > { %v8095_v9 = vadd.f32 %v1738_v28, %v12117_v18  ;;  %v8098_v51 = vadd.f32 %v1739_v34, %v12119_v46  ;;  %v12121_v31 = vld [vmem:[#allocation31_spill] sm:$0xff]  ;;  %v8107_v35 = vadd.f32 %v1742_v63, %v12125_v54  ;;  %v1812_v6 = vmul.f32 %v12130_v49, %v12129_v25  ;;  %v12138_v56 = vld [vmem:[#allocation110_spill] sm:$0xff]  ;;  %v12140_v63 = vld [vmem:[#allocation112_spill] sm:$0xff] }
 0x15c   : > { %12114 = vst [vmem:[#allocation166_spill] sm:$0xff] %v8089_v47  ;;  %12116 = vst [vmem:[#allocation52_spill] sm:$0xff] %v8092_v32  ;;  %v8101_v12 = vadd.f32 %v1740_v29, %v12121_v31  ;;  %v12123_v11 = vld [vmem:[#allocation151_spill] sm:$0xff]  ;;  %v1813_v44 = vmul.f32 %v12131_v52, %v12129_v25  ;;  %v12132_v29 = vld [vmem:[#allocation92_spill] sm:$0xff]  ;;  %v1816_v60 = vmul.f32 %v12134_v13, %v12129_v25 }
 0x15d   : > { %12118 = vst [vmem:[#allocation56_spill] sm:$0xff] %v8095_v9  ;;  %12120 = vst [vmem:[#allocation57_spill] sm:$0xff] %v8098_v51  ;;  %v8104_v2 = vadd.f32 %v1741_v1, %v12123_v11  ;;  %v12127_v3 = vld [vmem:[#allocation159_spill] sm:$0xff]  ;;  %v1814_v24 = vmul.f32 %v12132_v29, %v12129_v25  ;;  %v12133_v1 = vld [vmem:[#allocation97_spill] sm:$0xff]  ;;  %v1817_v22 = vmul.f32 %v12135_v53, %v12129_v25 }
 0x15e   : > { %12122 = vst [vmem:[#allocation47_spill] sm:$0xff] %v8101_v12  ;;  %12126 = vst [vmem:[#allocation72_spill] sm:$0xff] %v8107_v35  ;;  %v8110_v27 = vadd.f32 %v1743_v5, %v12127_v3  ;;  %v1815_v40 = vmul.f32 %v12133_v1, %v12129_v25  ;;  %v1818_v37 = vmul.f32 %v12136_v8, %v12129_v25  ;;  %v12139_v28 = vld [vmem:[#allocation111_spill] sm:$0xff]  ;;  %v12142_v18 = vld [vmem:[#allocation117_spill] sm:$0xff] }
 0x15f   : > { %12124 = vst [vmem:[#allocation70_spill] sm:$0xff] %v8104_v2  ;;  %v1819_v15 = vmul.f32 %v12137_v38, %v12129_v25  ;;  %v1820_v17 = vmul.f32 %v12138_v56, %v12129_v25  ;;  %v1821_v34 = vmul.f32 %v12139_v28, %v12129_v25  ;;  %v1822_v5 = vmul.f32 %v12140_v63, %v12129_v25  ;;  %v8139_v31 = vld [vmem:[%s4724_s30 + $0x181] sm:$0xff]  ;;  %v8142_v11 = vld [vmem:[%s4724_s30 + $0x189] sm:$0xff]  ;;  %v12147_v29 = vld [vmem:[#allocation120_spill] sm:$0xff] }
 0x160   : > { %12128 = vst [vmem:[#allocation73_spill] sm:$0xff] %v8110_v27  ;;  %v1823_v30 = vmul.f32 %v12141_v26, %v12129_v25  ;;  %v1824_v46 = vmul.f32 %v12142_v18, %v12129_v25  ;;  %12143 = vst [vmem:[#allocation74_spill] sm:$0xff] %v8139_v31  ;;  %v12145_v54 = vld [vmem:[#allocation118_spill] sm:$0xff]  ;;  %v12146_v49 = vld [vmem:[#allocation119_spill] sm:$0xff]  ;;  %v1827_v1 = vmul.f32 %v12147_v29, %v12129_v25 }
 0x161   : > { %12144 = vst [vmem:[#allocation49_spill] sm:$0xff] %v8142_v11  ;;  %v1825_v3 = vmul.f32 %v12145_v54, %v12129_v25  ;;  %v1826_v52 = vmul.f32 %v12146_v49, %v12129_v25  ;;  %v12148_v13 = vld [vmem:[#allocation22_spill] sm:$0xff]  ;;  %v8153_v8 = vld [vmem:[%s4724_s30 + $0x1b1] sm:$0xff]  ;;  %v8156_v38 = vld [vmem:[%s4724_s30 + $0x1b9] sm:$0xff] }
 0x162   : > { %v1828_v53 = vmul.f32 %v12148_v13, %v12129_v25  ;;  %12149 = vst [vmem:[#allocation13_spill] sm:$0xff] %v8153_v8  ;;  %12150 = vst [vmem:[#allocation21_spill] sm:$0xff] %v8156_v38  ;;  %v12151_v56 = vld [vmem:[#allocation24_spill] sm:$0xff]  ;;  %v12152_v63 = vld [vmem:[#allocation25_spill] sm:$0xff] }
 0x163   : > { %v1829_v28 = vmul.f32 %v12151_v56, %v12129_v25  ;;  %v1830_v26 = vmul.f32 %v12152_v63, %v12129_v25  ;;  %v12153_v18 = vld [vmem:[#allocation26_spill] sm:$0xff]  ;;  %v12154_v49 = vld [vmem:[#allocation28_spill] sm:$0xff]  ;;  %v12155_v29 = vld [vmem:[#allocation29_spill] sm:$0xff] }
 0x164   : > { %v1831_v54 = vmul.f32 %v12153_v18, %v12129_v25  ;;  %v1832_v16 = vmul.f32 %v12154_v49, %v12129_v25  ;;  %v1833_v27 = vmul.f32 %v12155_v29, %v12129_v25  ;;  %v12156_v13 = vld [vmem:[#allocation30_spill] sm:$0xff]  ;;  %v12157_v2 = vld [vmem:[#allocation32_spill] sm:$0xff]  ;;  %v12158_v56 = vld [vmem:[#allocation67_spill] sm:$0xff]  ;;  %v1838_v18 = vmul.f32 %v8139_v31, %v12129_v25 }
 0x165   : > { %v1834_v35 = vmul.f32 %v12156_v13, %v12129_v25  ;;  %v1835_v12 = vmul.f32 %v12157_v2, %v12129_v25  ;;  %v1836_v51 = vmul.f32 %v12158_v56, %v12129_v25  ;;  %v12159_v63 = vld [vmem:[#allocation18_spill] sm:$0xff]  ;;  %v1839_v49 = vmul.f32 %v8142_v11, %v12129_v25  ;;  %v12160_v29 = vld [vmem:[#allocation71_spill] sm:$0xff] }
 0x166   : > { %v1837_v9 = vmul.f32 %v12159_v63, %v12129_v25  ;;  %v1840_v32 = vmul.f32 %v12160_v29, %v12129_v25  ;;  %v12161_v13 = vld [vmem:[#allocation75_spill] sm:$0xff]  ;;  %v1842_v2 = vmul.f32 %v8153_v8, %v12129_v25  ;;  %v1843_v56 = vmul.f32 %v8156_v38, %v12129_v25 }
 0x167   : > { %v1841_v47 = vmul.f32 %v12161_v13, %v12129_v25  ;;  %v8189_v63 = vadd.f32 %v1812_v6, %v8017_v48  ;;  %v8192_v31 = vadd.f32 %v1813_v44, %v8020_v42  ;;  %v8195_v11 = vadd.f32 %v1814_v24, %v8023_v21  ;;  %v4302_v44 = vld [vmem:[%s4724_s30 + $0x64] sm:$0xff]  ;;  %v12174_v24 = vld [vmem:[#allocation47_spill] sm:$0xff] }
 0x168   : > { %v8198_v29 = vadd.f32 %v1815_v40, %v8026_v59  ;;  %v8201_v13 = vadd.f32 %v1816_v60, %v8029_v62  ;;  %v8204_v8 = vadd.f32 %v1817_v22, %v8032_v10  ;;  %v8207_v25 = vadd.f32 %v1818_v37, %v8035_v50  ;;  %v12176_v60 = vld [vmem:[#allocation70_spill] sm:$0xff]  ;;  %v12178_v37 = vld [vmem:[#allocation72_spill] sm:$0xff]  ;;  %v12213_v38 = vld [vmem:[#allocation143_spill] sm:$0xff] }
 0x169   : > { %v8210_v48 = vadd.f32 %v1819_v15, %v8038_v7  ;;  %v8213_v42 = vadd.f32 %v1820_v17, %v8041_v14  ;;  %v8216_v21 = vadd.f32 %v1821_v34, %v8044_v57  ;;  %v8219_v59 = vadd.f32 %v1822_v5, %v8047_v4  ;;  %v12184_v5 = vld [vmem:[#allocation9_spill] sm:$0xff] }
 0x16a   : > { %v8222_v62 = vadd.f32 %v1823_v30, %v8050_v58  ;;  %v8225_v10 = vadd.f32 %v1824_v46, %v8053_v41  ;;  %v8228_v50 = vadd.f32 %v1825_v3, %v8056_v19  ;;  %v8231_v7 = vadd.f32 %v1826_v52, %v8059_v20  ;;  %v12186_v46 = vld [vmem:[#allocation10_spill] sm:$0xff] }
 0x16b   : > { %v8234_v14 = vadd.f32 %v1827_v1, %v8062_v0  ;;  %v8237_v57 = vadd.f32 %v1828_v53, %v8065_v36  ;;  %v8240_v4 = vadd.f32 %v1829_v28, %v8068_v43  ;;  %v8243_v58 = vadd.f32 %v1830_v26, %v8071_v45  ;;  %v4577_v43 = vld [vmem:[%s10811_s1 + $0x10] sm:$0xff]  ;;  %v12193_v26 = vld [vmem:[#allocation12_spill] sm:$0xff] }
 0x16c   : > { %v8246_v41 = vadd.f32 %v1831_v54, %v8074_v55  ;;  %v8249_v19 = vadd.f32 %v1832_v16, %v8077_v33  ;;  %v8252_v20 = vadd.f32 %v1833_v27, %v8080_v39  ;;  %v8255_v0 = vadd.f32 %v1834_v35, %v8083_v23  ;;  %v12165_v45 = vld [vmem:[#allocation7_spill] sm:$0xff]  ;;  %v4334_v16 = vld [vmem:[%s10811_s1 + $0x18] ss:$0 sm:$0xff]  ;;  %v12166_v55 = vld [vmem:[#allocation166_spill] sm:$0xff] }
 0x16d   : > { %v8258_v36 = vadd.f32 %v1835_v12, %v8086_v61  ;;  %v1911_v6 = vrot.slane %v4577_v43, %v12165_v45  ;;  %v8268_v33 = vadd.f32 %v1836_v51, %v12166_v55  ;;  %v12168_v39 = vld [vmem:[#allocation52_spill] sm:$0xff]  ;;  %v12172_v61 = vld [vmem:[#allocation57_spill] sm:$0xff]  ;;  %v8281_v40 = vadd.f32 %v1840_v32, %v12174_v24  ;;  %v12188_v32 = vld [vmem:[#allocation6_spill] sm:$0xff] }
 0x16e   : > { %12162 = vst [vmem:[#allocation53_spill] sm:$0xff] %v8252_v20  ;;  %12163 = vst [vmem:[#allocation58_spill] sm:$0xff] %v8255_v0  ;;  %v8271_v27 = vadd.f32 %v1837_v9, %v12168_v39  ;;  %v12170_v23 = vld [vmem:[#allocation56_spill] sm:$0xff]  ;;  %v8277_v12 = vadd.f32 %v1839_v49, %v12172_v61  ;;  %v8284_v22 = vadd.f32 %v1841_v47, %v12176_v60  ;;  %v12180_v51 = vld [vmem:[#allocation73_spill] sm:$0xff] }
 0x16f   : > { %12164 = vst [vmem:[#allocation61_spill] sm:$0xff] %v8258_v36  ;;  %12167 = vst [vmem:[#allocation62_spill] sm:$0xff] %v8268_v33  ;;  %v8274_v35 = vadd.f32 %v1838_v18, %v12170_v23  ;;  %v8287_v15 = vadd.f32 %v1842_v2, %v12178_v37  ;;  %v8290_v17 = vadd.f32 %v1843_v56, %v12180_v51  ;;  %v12182_v9 = vld [vmem:[#allocation8_spill] sm:$0xff]  ;;  %v12190_v47 = vld [vmem:[#allocation79_spill] sm:$0xff] }
 0x170   : > { %12169 = vst [vmem:[#allocation63_spill] sm:$0xff] %v8271_v27  ;;  %12173 = vst [vmem:[#allocation66_spill] sm:$0xff] %v8277_v12  ;;  %v8293_v34 = vrot.slane %v4577_v43, %v12182_v9  ;;  %v8296_v30 = vrot.slane %v4577_v43, %v12184_v5  ;;  %v8299_v3 = vrot.slane %v4577_v43, %v12186_v46  ;;  %v12191_v53 = vld [vmem:[#allocation11_spill] sm:$0xff]  ;;  %v12196_v49 = vld [vmem:[#allocation121_spill] sm:$0xff] }
 0x171   : > { %12171 = vst [vmem:[#allocation64_spill] sm:$0xff] %v8274_v35  ;;  %12175 = vst [vmem:[#allocation68_spill] sm:$0xff] %v8281_v40  ;;  %v8302_v52 = vrot.slane %v4577_v43, %v12188_v32  ;;  %v1912_v1 = vmul.f32 %v12190_v47, %v1911_v6  ;;  %v8306_v28 = vrot.slane %v4577_v43, %v12191_v53  ;;  %v12197_v56 = vld [vmem:[#allocation122_spill] sm:$0xff]  ;;  %v12198_v55 = vld [vmem:[#allocation123_spill] sm:$0xff] }
 0x172   : > { %12177 = vst [vmem:[#allocation69_spill] sm:$0xff] %v8284_v22  ;;  %12179 = vst [vmem:[#allocation76_spill] sm:$0xff] %v8287_v15  ;;  %v8309_v54 = vrot.slane %v4577_v43, %v12193_v26  ;;  %v8311_v18 = vmul.f32 %v4334_v16, %v4302_v44  ;;  %v1913_v2 = vmul.f32 %v12196_v49, %v1911_v6  ;;  %v12199_v23 = vld [vmem:[#allocation124_spill] sm:$0xff]  ;;  %v12200_v24 = vld [vmem:[#allocation126_spill] sm:$0xff] }
 0x173   : > { %12181 = vst [vmem:[#allocation77_spill] sm:$0xff] %v8290_v17  ;;  %12183 = vst [vmem:[#allocation78_spill] sm:$0xff] %v8293_v34  ;;  %v1914_v45 = vmul.f32 %v12197_v56, %v1911_v6  ;;  %v1915_v39 = vmul.f32 %v12198_v55, %v1911_v6  ;;  %v1916_v61 = vmul.f32 %v12199_v23, %v1911_v6  ;;  %v12201_v37 = vld [vmem:[#allocation127_spill] sm:$0xff]  ;;  %v12202_v9 = vld [vmem:[#allocation128_spill] sm:$0xff] }
 0x174   : > { %12185 = vst [vmem:[#allocation154_spill] sm:$0xff] %v8296_v30  ;;  %12187 = vst [vmem:[#allocation89_spill] sm:$0xff] %v8299_v3  ;;  %v1917_v60 = vmul.f32 %v12200_v24, %v1911_v6  ;;  %v1918_v51 = vmul.f32 %v12201_v37, %v1911_v6  ;;  %v1919_v5 = vmul.f32 %v12202_v9, %v1911_v6  ;;  %v12203_v43 = vld [vmem:[#allocation132_spill] sm:$0xff]  ;;  %v12204_v16 = vld [vmem:[#allocation133_spill] sm:$0xff] }
 0x175   : > { %12189 = vst [vmem:[#allocation93_spill] sm:$0xff] %v8302_v52  ;;  %12192 = vst [vmem:[#allocation94_spill] sm:$0xff] %v8306_v28  ;;  %v1920_v46 = vmul.f32 %v12203_v43, %v1911_v6  ;;  %v1921_v44 = vmul.f32 %v12204_v16, %v1911_v6  ;;  %v12205_v32 = vld [vmem:[#allocation134_spill] sm:$0xff]  ;;  %v12207_v49 = vld [vmem:[#allocation139_spill] sm:$0xff]  ;;  %v1928_v43 = vmul.f32 %v12213_v38, %v1911_v6 }
 0x176   : > { %12194 = vst [vmem:[#allocation95_spill] sm:$0xff] %v8309_v54  ;;  %12195 = vst [vmem:[#allocation96_spill] sm:$0xff] %v8311_v18  ;;  %v1922_v47 = vmul.f32 %v12205_v32, %v1911_v6  ;;  %v12206_v53 = vld [vmem:[#allocation138_spill] sm:$0xff]  ;;  %v1924_v56 = vmul.f32 %v12207_v49, %v1911_v6  ;;  %v12210_v18 = vld [vmem:[#allocation140_spill] sm:$0xff] }
 0x177   : > { %v1923_v26 = vmul.f32 %v12206_v53, %v1911_v6  ;;  %v8326_v55 = vld [vmem:[%s4724_s30 + $0x182] sm:$0xff]  ;;  %v8329_v23 = vld [vmem:[%s4724_s30 + $0x18a] sm:$0xff]  ;;  %v1925_v24 = vmul.f32 %v12210_v18, %v1911_v6  ;;  %v8336_v52 = vld [vmem:[%s4724_s30 + $0x1b2] sm:$0xff] }
 0x178   : > { %12208 = vst [vmem:[#allocation100_spill] sm:$0xff] %v8326_v55  ;;  %12209 = vst [vmem:[#allocation101_spill] sm:$0xff] %v8329_v23  ;;  %v12211_v54 = vld [vmem:[#allocation141_spill] sm:$0xff]  ;;  %v12212_v28 = vld [vmem:[#allocation142_spill] sm:$0xff]  ;;  %v1938_v36 = vmul.f32 %v8326_v55, %v1911_v6 }
 0x179   : > { %v1926_v37 = vmul.f32 %v12211_v54, %v1911_v6  ;;  %v1927_v9 = vmul.f32 %v12212_v28, %v1911_v6  ;;  %12214 = vst [vmem:[#allocation102_spill] sm:$0xff] %v8336_v52  ;;  %v8339_v16 = vld [vmem:[%s4724_s30 + $0x1ba] sm:$0xff]  ;;  %v12220_v22 = vld [vmem:[#allocation39_spill] sm:$0xff]  ;;  %v12222_v12 = vld [vmem:[#allocation42_spill] sm:$0xff] }
 0x17a   : > { %12215 = vst [vmem:[#allocation20_spill] sm:$0xff] %v8339_v16  ;;  %v12216_v32 = vld [vmem:[#allocation144_spill] sm:$0xff]  ;;  %v12217_v3 = vld [vmem:[#allocation145_spill] sm:$0xff]  ;;  %v1933_v18 = vmul.f32 %v12220_v22, %v1911_v6  ;;  %v1935_v28 = vmul.f32 %v12222_v12, %v1911_v6  ;;  %v12223_v35 = vld [vmem:[#allocation43_spill] sm:$0xff]  ;;  %v1943_v22 = vmul.f32 %v8339_v16, %v1911_v6  ;;  %v8360_v12 = vadd.f32 %v1913_v2, %v8192_v31 }
 0x17b   : > { %v1929_v53 = vmul.f32 %v12216_v32, %v1911_v6  ;;  %v1930_v49 = vmul.f32 %v12217_v3, %v1911_v6  ;;  %v12218_v30 = vld [vmem:[#allocation36_spill] sm:$0xff]  ;;  %v12219_v17 = vld [vmem:[#allocation37_spill] sm:$0xff]  ;;  %v1936_v38 = vmul.f32 %v12223_v35, %v1911_v6  ;;  %v12224_v27 = vld [vmem:[#allocation19_spill] sm:$0xff]  ;;  %v1939_v32 = vmul.f32 %v8329_v23, %v1911_v6 }
 0x17c   : > { %v1931_v34 = vmul.f32 %v12218_v30, %v1911_v6  ;;  %v1932_v15 = vmul.f32 %v12219_v17, %v1911_v6  ;;  %v12221_v40 = vld [vmem:[#allocation40_spill] sm:$0xff]  ;;  %v1937_v33 = vmul.f32 %v12224_v27, %v1911_v6  ;;  %v12225_v0 = vld [vmem:[#allocation23_spill] sm:$0xff]  ;;  %v12226_v20 = vld [vmem:[#allocation146_spill] sm:$0xff]  ;;  %v1942_v17 = vmul.f32 %v8336_v52, %v1911_v6 }
 0x17d   : > { %v1934_v54 = vmul.f32 %v12221_v40, %v1911_v6  ;;  %v1940_v3 = vmul.f32 %v12225_v0, %v1911_v6  ;;  %v1941_v30 = vmul.f32 %v12226_v20, %v1911_v6  ;;  %v8357_v40 = vadd.f32 %v1912_v1, %v8189_v63  ;;  %v12269_v16 = vld [vmem:[#allocation174_spill] sm:$0xff] }
 0x17e   : > { %v8363_v27 = vadd.f32 %v1914_v45, %v8195_v11  ;;  %v8366_v35 = vadd.f32 %v1915_v39, %v8198_v29  ;;  %v8369_v0 = vadd.f32 %v1916_v61, %v8201_v13  ;;  %v8372_v20 = vadd.f32 %v1917_v60, %v8204_v8  ;;  %v12238_v60 = vld [vmem:[#allocation68_spill] sm:$0xff] }
 0x17f   : > { %v8375_v6 = vadd.f32 %v1918_v51, %v8207_v25  ;;  %v8378_v63 = vadd.f32 %v1919_v5, %v8210_v48  ;;  %v8381_v31 = vadd.f32 %v1920_v46, %v8213_v42  ;;  %v8384_v11 = vadd.f32 %v1921_v44, %v8216_v21  ;;  %v12240_v5 = vld [vmem:[#allocation69_spill] sm:$0xff]  ;;  %v12242_v44 = vld [vmem:[#allocation76_spill] sm:$0xff] }
 0x180   : > { %v8387_v29 = vadd.f32 %v1922_v47, %v8219_v59  ;;  %v8390_v13 = vadd.f32 %v1923_v26, %v8222_v62  ;;  %v8393_v8 = vadd.f32 %v1924_v56, %v8225_v10  ;;  %v8396_v25 = vadd.f32 %v1925_v24, %v8228_v50  ;;  %v12244_v26 = vld [vmem:[#allocation77_spill] sm:$0xff]  ;;  %v12246_v56 = vld [vmem:[#allocation78_spill] sm:$0xff] }
 0x181   : > { %v8399_v48 = vadd.f32 %v1926_v37, %v8231_v7  ;;  %v8402_v42 = vadd.f32 %v1927_v9, %v8234_v14  ;;  %v8405_v21 = vadd.f32 %v1928_v43, %v8237_v57  ;;  %v8408_v59 = vadd.f32 %v1929_v53, %v8240_v4  ;;  %v12227_v7 = vld [vmem:[#allocation53_spill] sm:$0xff]  ;;  %v12228_v14 = vld [vmem:[#allocation58_spill] sm:$0xff]  ;;  %v12248_v37 = vld [vmem:[#allocation147_spill] sm:$0xff] }
 0x182   : > { %v8411_v62 = vadd.f32 %v1930_v49, %v8243_v58  ;;  %v8414_v10 = vadd.f32 %v1931_v34, %v8246_v41  ;;  %v8417_v50 = vadd.f32 %v1932_v15, %v8249_v19  ;;  %v8420_v1 = vadd.f32 %v1933_v18, %v12227_v7  ;;  %v12229_v57 = vld [vmem:[#allocation61_spill] sm:$0xff]  ;;  %v12230_v4 = vld [vmem:[#allocation62_spill] sm:$0xff]  ;;  %v12232_v58 = vld [vmem:[#allocation63_spill] sm:$0xff] }
 0x183   : > { %v8423_v2 = vadd.f32 %v1934_v54, %v12228_v14  ;;  %v8426_v45 = vadd.f32 %v1935_v28, %v12229_v57  ;;  %v8429_v39 = vadd.f32 %v1936_v38, %v12230_v4  ;;  %v8432_v61 = vadd.f32 %v1937_v33, %v12232_v58  ;;  %v12234_v41 = vld [vmem:[#allocation64_spill] sm:$0xff]  ;;  %v12236_v19 = vld [vmem:[#allocation66_spill] sm:$0xff]  ;;  %v12250_v49 = vld [vmem:[#allocation149_spill] sm:$0xff] }
 0x184   : > { %v8435_v34 = vadd.f32 %v1938_v36, %v12234_v41  ;;  %v8438_v15 = vadd.f32 %v1939_v32, %v12236_v19  ;;  %v8441_v51 = vadd.f32 %v1940_v3, %v12238_v60  ;;  %v8444_v46 = vadd.f32 %v1941_v30, %v12240_v5  ;;  %v12247_v36 = vld [vmem:[#allocation5_spill] sm:$0xff]  ;;  %v12249_v43 = vld [vmem:[#allocation148_spill] sm:$0xff]  ;;  %v12251_v54 = vld [vmem:[#allocation150_spill] sm:$0xff] }
 0x185   : > { %12231 = vst [vmem:[#allocation83_spill] sm:$0xff] %v8429_v39  ;;  %12233 = vst [vmem:[#allocation17_spill] sm:$0xff] %v8432_v61  ;;  %v8447_v47 = vadd.f32 %v1942_v17, %v12242_v44  ;;  %v8450_v33 = vadd.f32 %v1943_v22, %v12244_v26  ;;  %v2012_v24 = vmul.f32 %v12247_v36, %v12246_v56  ;;  %v12252_v38 = vld [vmem:[#allocation155_spill] sm:$0xff]  ;;  %v12253_v3 = vld [vmem:[#allocation156_spill] sm:$0xff] }
 0x186   : > { %12235 = vst [vmem:[#allocation84_spill] sm:$0xff] %v8435_v34  ;;  %12237 = vst [vmem:[#allocation85_spill] sm:$0xff] %v8438_v15  ;;  %v2013_v9 = vmul.f32 %v12248_v37, %v12246_v56  ;;  %v2014_v53 = vmul.f32 %v12249_v43, %v12246_v56  ;;  %v2015_v18 = vmul.f32 %v12250_v49, %v12246_v56  ;;  %v12254_v17 = vld [vmem:[#allocation157_spill] sm:$0xff]  ;;  %v12255_v7 = vld [vmem:[#allocation162_spill] sm:$0xff] }
 0x187   : > { %12239 = vst [vmem:[#allocation86_spill] sm:$0xff] %v8441_v51  ;;  %12241 = vst [vmem:[#allocation87_spill] sm:$0xff] %v8444_v46  ;;  %v2016_v28 = vmul.f32 %v12251_v54, %v12246_v56  ;;  %v2017_v32 = vmul.f32 %v12252_v38, %v12246_v56  ;;  %v2018_v30 = vmul.f32 %v12253_v3, %v12246_v56  ;;  %v12256_v57 = vld [vmem:[#allocation163_spill] sm:$0xff]  ;;  %v12259_v5 = vld [vmem:[#allocation168_spill] sm:$0xff] }
 0x188   : > { %12243 = vst [vmem:[#allocation88_spill] sm:$0xff] %v8447_v47  ;;  %12245 = vst [vmem:[#allocation136_spill] sm:$0xff] %v8450_v33  ;;  %v2019_v22 = vmul.f32 %v12254_v17, %v12246_v56  ;;  %v2020_v14 = vmul.f32 %v12255_v7, %v12246_v56  ;;  %v2021_v4 = vmul.f32 %v12256_v57, %v12246_v56  ;;  %v12257_v58 = vld [vmem:[#allocation15_spill] sm:$0xff]  ;;  %v8479_v26 = vld [vmem:[%s4724_s30 + $0x183] sm:$0xff] }
 0x189   : > { %v2022_v41 = vmul.f32 %v12257_v58, %v12246_v56  ;;  %v12258_v19 = vld [vmem:[#allocation167_spill] sm:$0xff]  ;;  %v2024_v44 = vmul.f32 %v12259_v5, %v12246_v56  ;;  %12260 = vst [vmem:[#allocation137_spill] sm:$0xff] %v8479_v26  ;;  %v12262_v37 = vld [vmem:[#allocation169_spill] sm:$0xff]  ;;  %v12263_v49 = vld [vmem:[#allocation170_spill] sm:$0xff]  ;;  %v2030_v52 = vmul.f32 %v12269_v16, %v12246_v56 }
 0x18a   : > { %v2023_v60 = vmul.f32 %v12258_v19, %v12246_v56  ;;  %v8482_v36 = vld [vmem:[%s4724_s30 + $0x18b] sm:$0xff]  ;;  %v2025_v43 = vmul.f32 %v12262_v37, %v12246_v56  ;;  %v2026_v54 = vmul.f32 %v12263_v49, %v12246_v56  ;;  %v12265_v17 = vld [vmem:[#allocation172_spill] sm:$0xff]  ;;  %v12268_v19 = vld [vmem:[#allocation173_spill] sm:$0xff] }
 0x18b   : > { %12261 = vst [vmem:[#allocation51_spill] sm:$0xff] %v8482_v36  ;;  %v12264_v38 = vld [vmem:[#allocation171_spill] sm:$0xff]  ;;  %v2028_v7 = vmul.f32 %v12265_v17, %v12246_v56  ;;  %v8496_v58 = vld [vmem:[%s4724_s30 + $0x1bb] sm:$0xff]  ;;  %v2029_v5 = vmul.f32 %v12268_v19, %v12246_v56  ;;  %v12274_v46 = vld [vmem:[#allocation38_spill] sm:$0xff] }
 0x18c   : > { %v2027_v3 = vmul.f32 %v12264_v38, %v12246_v56  ;;  %v8493_v57 = vld [vmem:[%s4724_s30 + $0x1b3] sm:$0xff]  ;;  %12267 = vst [vmem:[#allocation31_spill] sm:$0xff] %v8496_v58  ;;  %v12272_v38 = vld [vmem:[#allocation177_spill] sm:$0xff]  ;;  %v2035_v51 = vmul.f32 %v12274_v46, %v12246_v56 }
 0x18d   : > { %12266 = vst [vmem:[#allocation27_spill] sm:$0xff] %v8493_v57  ;;  %v12270_v37 = vld [vmem:[#allocation175_spill] sm:$0xff]  ;;  %v12271_v49 = vld [vmem:[#allocation176_spill] sm:$0xff]  ;;  %v2033_v33 = vmul.f32 %v12272_v38, %v12246_v56  ;;  %v12275_v19 = vld [vmem:[#allocation41_spill] sm:$0xff]  ;;  %v2042_v46 = vmul.f32 %v8493_v57, %v12246_v56  ;;  %v8544_v57 = vadd.f32 %v2017_v32, %v8372_v20  ;;  %v8565_v20 = vadd.f32 %v2024_v44, %v8393_v8 }
 0x18e   : > { %v2031_v23 = vmul.f32 %v12270_v37, %v12246_v56  ;;  %v2032_v55 = vmul.f32 %v12271_v49, %v12246_v56  ;;  %v12273_v17 = vld [vmem:[#allocation35_spill] sm:$0xff]  ;;  %v2036_v15 = vmul.f32 %v12275_v19, %v12246_v56  ;;  %v12276_v16 = vld [vmem:[#allocation45_spill] sm:$0xff]  ;;  %v2038_v37 = vmul.f32 %v8479_v26, %v12246_v56  ;;  %v12277_v38 = vld [vmem:[#allocation48_spill] sm:$0xff] }
 0x18f   : > { %v2034_v47 = vmul.f32 %v12273_v17, %v12246_v56  ;;  %v2037_v34 = vmul.f32 %v12276_v16, %v12246_v56  ;;  %v2039_v49 = vmul.f32 %v8482_v36, %v12246_v56  ;;  %v2040_v61 = vmul.f32 %v12277_v38, %v12246_v56  ;;  %v12278_v17 = vld [vmem:[#allocation55_spill] sm:$0xff]  ;;  %v12302_v44 = vld [vmem:[#allocation153_spill] sm:$0xff] }
 0x190   : > { %v2041_v39 = vmul.f32 %v12278_v17, %v12246_v56  ;;  %v2043_v19 = vmul.f32 %v8496_v58, %v12246_v56  ;;  %v8529_v16 = vadd.f32 %v2012_v24, %v8357_v40  ;;  %v8532_v26 = vadd.f32 %v2013_v9, %v8360_v12  ;;  %v12295_v9 = vld [vmem:[#allocation154_spill] sm:$0xff] }
 0x191   : > { %v8535_v36 = vadd.f32 %v2014_v53, %v8363_v27  ;;  %v8538_v38 = vadd.f32 %v2015_v18, %v8366_v35  ;;  %v8541_v17 = vadd.f32 %v2016_v28, %v8369_v0  ;;  %v8547_v56 = vadd.f32 %v2018_v30, %v8375_v6  ;;  %v12296_v53 = vld [vmem:[#allocation59_spill] sm:$0xff]  ;;  %v12297_v28 = vld [vmem:[#allocation60_spill] sm:$0xff] }
 0x192   : > { %v8550_v40 = vadd.f32 %v2019_v22, %v8378_v63  ;;  %v8553_v12 = vadd.f32 %v2020_v14, %v8381_v31  ;;  %v8556_v27 = vadd.f32 %v2021_v4, %v8384_v11  ;;  %v8559_v35 = vadd.f32 %v2022_v41, %v8387_v29  ;;  %v12300_v14 = vld [vmem:[#allocation46_spill] sm:$0xff]  ;;  %v12301_v41 = vld [vmem:[#allocation152_spill] sm:$0xff] }
 0x193   : > { %v8562_v0 = vadd.f32 %v2023_v60, %v8390_v13  ;;  %v8568_v6 = vadd.f32 %v2025_v43, %v8396_v25  ;;  %v8571_v63 = vadd.f32 %v2026_v54, %v8399_v48  ;;  %v8574_v31 = vadd.f32 %v2027_v3, %v8402_v42  ;;  %v12303_v54 = vld [vmem:[#allocation65_spill] sm:$0xff] }
 0x194   : > { %v8577_v11 = vadd.f32 %v2028_v7, %v8405_v21  ;;  %v8580_v29 = vadd.f32 %v2029_v5, %v8408_v59  ;;  %v8583_v13 = vadd.f32 %v2030_v52, %v8411_v62  ;;  %v8586_v8 = vadd.f32 %v2031_v23, %v8414_v10  ;;  %v12279_v59 = vld [vmem:[#allocation83_spill] sm:$0xff]  ;;  %v12281_v52 = vld [vmem:[#allocation17_spill] sm:$0xff]  ;;  %v12283_v23 = vld [vmem:[#allocation84_spill] sm:$0xff] }
 0x195   : > { %v8589_v25 = vadd.f32 %v2032_v55, %v8417_v50  ;;  %v8592_v48 = vadd.f32 %v2033_v33, %v8420_v1  ;;  %v8595_v42 = vadd.f32 %v2034_v47, %v8423_v2  ;;  %v8598_v21 = vadd.f32 %v2035_v51, %v8426_v45  ;;  %v12285_v55 = vld [vmem:[#allocation85_spill] sm:$0xff]  ;;  %v12287_v1 = vld [vmem:[#allocation86_spill] sm:$0xff]  ;;  %v12289_v2 = vld [vmem:[#allocation87_spill] sm:$0xff] }
 0x196   : > { %v8601_v24 = vadd.f32 %v2036_v15, %v12279_v59  ;;  %v8604_v62 = vadd.f32 %v2037_v34, %v12281_v52  ;;  %v8607_v10 = vadd.f32 %v2038_v37, %v12283_v23  ;;  %v8610_v50 = vadd.f32 %v2039_v49, %v12285_v55  ;;  %v12291_v45 = vld [vmem:[#allocation88_spill] sm:$0xff]  ;;  %v12305_v37 = vld [vmem:[#allocation81_spill] sm:$0xff]  ;;  %v12307_v59 = vld [vmem:[#allocation99_spill] sm:$0xff] }
 0x197   : > { %v8613_v33 = vadd.f32 %v2040_v61, %v12287_v1  ;;  %v8616_v47 = vadd.f32 %v2041_v39, %v12289_v2  ;;  %v8619_v51 = vadd.f32 %v2042_v46, %v12291_v45  ;;  %v12293_v15 = vld [vmem:[#allocation136_spill] sm:$0xff]  ;;  %v2112_v18 = vmul.f32 %v12296_v53, %v12295_v9  ;;  %v12306_v46 = vld [vmem:[#allocation82_spill] sm:$0xff]  ;;  %v12311_v45 = vld [vmem:[#allocation107_spill] sm:$0xff] }
 0x198   : > { %12280 = vst [vmem:[#allocation151_spill] sm:$0xff] %v8601_v24  ;;  %12282 = vst [vmem:[#allocation158_spill] sm:$0xff] %v8604_v62  ;;  %v8622_v34 = vadd.f32 %v2043_v19, %v12293_v15  ;;  %v2113_v32 = vmul.f32 %v12297_v28, %v12295_v9  ;;  %v12298_v61 = vld [vmem:[#allocation44_spill] sm:$0xff]  ;;  %v2116_v4 = vmul.f32 %v12300_v14, %v12295_v9  ;;  %v12308_v23 = vld [vmem:[#allocation106_spill] sm:$0xff] }
 0x199   : > { %12284 = vst [vmem:[#allocation159_spill] sm:$0xff] %v8607_v10  ;;  %12286 = vst [vmem:[#allocation54_spill] sm:$0xff] %v8610_v50  ;;  %v2114_v30 = vmul.f32 %v12298_v61, %v12295_v9  ;;  %v12299_v39 = vld [vmem:[#allocation16_spill] sm:$0xff]  ;;  %v2117_v60 = vmul.f32 %v12301_v41, %v12295_v9  ;;  %v2118_v43 = vmul.f32 %v12302_v44, %v12295_v9  ;;  %v8651_v1 = vld [vmem:[%s4724_s30 + $0x184] sm:$0xff] }
 0x19a   : > { %12288 = vst [vmem:[#allocation90_spill] sm:$0xff] %v8613_v33  ;;  %12290 = vst [vmem:[#allocation91_spill] sm:$0xff] %v8616_v47  ;;  %v2115_v22 = vmul.f32 %v12299_v39, %v12295_v9  ;;  %v2119_v3 = vmul.f32 %v12303_v54, %v12295_v9  ;;  %v12304_v7 = vld [vmem:[#allocation80_spill] sm:$0xff]  ;;  %v2121_v49 = vmul.f32 %v12305_v37, %v12295_v9  ;;  %v8654_v2 = vld [vmem:[%s4724_s30 + $0x18c] sm:$0xff] }
 0x19b   : > { %12292 = vst [vmem:[#allocation92_spill] sm:$0xff] %v8619_v51  ;;  %12294 = vst [vmem:[#allocation97_spill] sm:$0xff] %v8622_v34  ;;  %v2120_v5 = vmul.f32 %v12304_v7, %v12295_v9  ;;  %v2122_v19 = vmul.f32 %v12306_v46, %v12295_v9  ;;  %v2123_v52 = vmul.f32 %v12307_v59, %v12295_v9  ;;  %v12312_v53 = vld [vmem:[#allocation108_spill] sm:$0xff]  ;;  %v12313_v61 = vld [vmem:[#allocation109_spill] sm:$0xff] }
 0x19c   : > { %v2124_v55 = vmul.f32 %v12308_v23, %v12295_v9  ;;  %12309 = vst [vmem:[#allocation98_spill] sm:$0xff] %v8651_v1  ;;  %12310 = vst [vmem:[#allocation103_spill] sm:$0xff] %v8654_v2  ;;  %v2125_v15 = vmul.f32 %v12311_v45, %v12295_v9  ;;  %v2126_v28 = vmul.f32 %v12312_v53, %v12295_v9  ;;  %v12314_v14 = vld [vmem:[#allocation113_spill] sm:$0xff]  ;;  %v8665_v44 = vld [vmem:[%s4724_s30 + $0x1b4] sm:$0xff] }
 0x19d   : > { %v2127_v39 = vmul.f32 %v12313_v61, %v12295_v9  ;;  %v2128_v41 = vmul.f32 %v12314_v14, %v12295_v9  ;;  %12315 = vst [vmem:[#allocation104_spill] sm:$0xff] %v8665_v44  ;;  %v8668_v54 = vld [vmem:[%s4724_s30 + $0x1bc] sm:$0xff]  ;;  %v12317_v7 = vld [vmem:[#allocation114_spill] sm:$0xff]  ;;  %v12318_v46 = vld [vmem:[#allocation115_spill] sm:$0xff] }
 0x19e   : > { %12316 = vst [vmem:[#allocation105_spill] sm:$0xff] %v8668_v54  ;;  %v2129_v37 = vmul.f32 %v12317_v7, %v12295_v9  ;;  %v2130_v59 = vmul.f32 %v12318_v46, %v12295_v9  ;;  %v12319_v23 = vld [vmem:[#allocation50_spill] sm:$0xff]  ;;  %v12320_v53 = vld [vmem:[#allocation33_spill] sm:$0xff]  ;;  %v12325_v46 = vld [vmem:[#allocation131_spill] sm:$0xff] }
 0x19f   : > { %v2131_v45 = vmul.f32 %v12319_v23, %v12295_v9  ;;  %v2132_v58 = vmul.f32 %v12320_v53, %v12295_v9  ;;  %v12321_v61 = vld [vmem:[#allocation34_spill] sm:$0xff]  ;;  %v12322_v14 = vld [vmem:[#allocation125_spill] sm:$0xff]  ;;  %v2137_v10 = vmul.f32 %v12325_v46, %v12295_v9  ;;  %v2138_v23 = vmul.f32 %v8651_v1, %v12295_v9 }
 0x1a0   : > { %v2133_v34 = vmul.f32 %v12321_v61, %v12295_v9  ;;  %v2134_v51 = vmul.f32 %v12322_v14, %v12295_v9  ;;  %v12323_v47 = vld [vmem:[#allocation129_spill] sm:$0xff]  ;;  %v12324_v7 = vld [vmem:[#allocation130_spill] sm:$0xff]  ;;  %v2139_v53 = vmul.f32 %v8654_v2, %v12295_v9  ;;  %v12327_v14 = vld [vmem:[#allocation135_spill] sm:$0xff]  ;;  %v8701_v46 = vadd.f32 %v2112_v18, %v8529_v16 }
 0x1a1   : > { %v2135_v33 = vmul.f32 %v12323_v47, %v12295_v9  ;;  %v2136_v50 = vmul.f32 %v12324_v7, %v12295_v9  ;;  %v12326_v61 = vld [vmem:[#allocation14_spill] sm:$0xff]  ;;  %v2141_v24 = vmul.f32 %v12327_v14, %v12295_v9  ;;  %v2142_v47 = vmul.f32 %v8665_v44, %v12295_v9  ;;  %v4174_v18 = vld [vmem:[%s4724_s30 + $0x60] sm:$0xff] }
 0x1a2   : > { %v2140_v62 = vmul.f32 %v12326_v61, %v12295_v9  ;;  %v2143_v7 = vmul.f32 %v8668_v54, %v12295_v9  ;;  %v8704_v1 = vadd.f32 %v2113_v32, %v8532_v26  ;;  %v8707_v2 = vadd.f32 %v2114_v30, %v8535_v36  ;;  %v4176_v32 = vld [vmem:[%s4724_s30 + $0x78] sm:$0xff]  ;;  %v4178_v30 = vld [vmem:[%s4724_s30 + $0x90] sm:$0xff] }
 0x1a3   : > { %v8710_v61 = vadd.f32 %v2115_v22, %v8538_v38  ;;  %v8713_v14 = vadd.f32 %v2116_v4, %v8541_v17  ;;  %v8716_v9 = vadd.f32 %v2117_v60, %v8544_v57  ;;  %v8719_v16 = vadd.f32 %v2118_v43, %v8547_v56  ;;  %v4179_v22 = vld [vmem:[%s4724_s30 + $0x98] sm:$0xff]  ;;  %v4182_v43 = vld [vmem:[%s4724_s30 + $0xc0] sm:$0xff] }
 0x1a4   : > { %v8722_v26 = vadd.f32 %v2119_v3, %v8550_v40  ;;  %v8725_v36 = vadd.f32 %v2120_v5, %v8553_v12  ;;  %v8728_v38 = vadd.f32 %v2121_v49, %v8556_v27  ;;  %v8731_v17 = vadd.f32 %v2122_v19, %v8559_v35  ;;  %v12332_v3 = vld [vmem:[#allocation158_spill] sm:$0xff]  ;;  %v4184_v49 = vld [vmem:[%s4724_s30 + $0xd8] sm:$0xff]  ;;  %v4185_v19 = vld [vmem:[%s4724_s30 + $0xe0] sm:$0xff] }
 0x1a5   : > { %v8734_v57 = vadd.f32 %v2123_v52, %v8562_v0  ;;  %v8737_v56 = vadd.f32 %v2124_v55, %v8565_v20  ;;  %v8740_v40 = vadd.f32 %v2125_v15, %v8568_v6  ;;  %v8743_v12 = vadd.f32 %v2126_v28, %v8571_v63  ;;  %v4175_v0 = vld [vmem:[%s4724_s30 + $0x68] sm:$0xff]  ;;  %v12340_v52 = vld [vmem:[#allocation91_spill] sm:$0xff]  ;;  %v12344_v28 = vld [vmem:[#allocation97_spill] sm:$0xff] }
 0x1a6   : > { %v8746_v27 = vadd.f32 %v2127_v39, %v8574_v31  ;;  %v8749_v35 = vadd.f32 %v2128_v41, %v8577_v11  ;;  %v8755_v20 = vadd.f32 %v2129_v37, %v8580_v29  ;;  %v8758_v6 = vadd.f32 %v2130_v59, %v8583_v13  ;;  %v4177_v11 = vld [vmem:[%s4724_s30 + $0x80] sm:$0xff]  ;;  %v4186_v41 = vld [vmem:[%s4724_s30 + $0xf0] sm:$0xff]  ;;  %v4187_v37 = vld [vmem:[%s4724_s30 + $0xf8] sm:$0xff] }
 0x1a7   : > { %v8761_v63 = vadd.f32 %v2131_v45, %v8586_v8  ;;  %v8764_v31 = vadd.f32 %v2132_v58, %v8589_v25  ;;  %v8770_v4 = vadd.f32 %v2133_v34, %v8592_v48  ;;  %v8773_v29 = vadd.f32 %v2134_v51, %v8595_v42  ;;  %v12330_v8 = vld [vmem:[#allocation151_spill] sm:$0xff]  ;;  %v4180_v58 = vld [vmem:[%s4724_s30 + $0xa8] sm:$0xff] }
 0x1a8   : > { %v8776_v13 = vadd.f32 %v2135_v33, %v8598_v21  ;;  %v8779_v60 = vadd.f32 %v2136_v50, %v12330_v8  ;;  %v4181_v25 = vld [vmem:[%s4724_s30 + $0xb0] sm:$0xff]  ;;  %v8785_v48 = vadd.f32 %v2137_v10, %v12332_v3  ;;  %v12336_v51 = vld [vmem:[#allocation54_spill] sm:$0xff]  ;;  %v8800_v55 = vadd.f32 %v2141_v24, %v12340_v52  ;;  %v12342_v10 = vld [vmem:[#allocation92_spill] sm:$0xff] }
 0x1a9   : > { %12328 = vst [vmem:[#allocation110_spill] sm:$0xff] %v8773_v29  ;;  %v12334_v34 = vld [vmem:[#allocation159_spill] sm:$0xff]  ;;  %v8791_v21 = vadd.f32 %v2139_v53, %v12336_v51  ;;  %v12338_v33 = vld [vmem:[#allocation90_spill] sm:$0xff]  ;;  %v8803_v15 = vadd.f32 %v2142_v47, %v12342_v10  ;;  %v8806_v39 = vadd.f32 %v2143_v7, %v12344_v28  ;;  %v4190_v53 = vld [vmem:[%s4724_s30 + $0x120] sm:$0xff] }
 0x1aa   : > { %12329 = vst [vmem:[#allocation111_spill] sm:$0xff] %v8776_v13  ;;  %12331 = vst [vmem:[#allocation112_spill] sm:$0xff] %v8779_v60  ;;  %v8788_v42 = vadd.f32 %v2138_v23, %v12334_v34  ;;  %v8794_v5 = vadd.f32 %v2140_v62, %v12338_v33  ;;  %v4183_v50 = vld [vmem:[%s4724_s30 + $0xc8] sm:$0xff]  ;;  %v12346_v62 = vld [vmem:[#allocation89_spill] sm:$0xff] }
 0x1ab   : > { %12333 = vst [vmem:[#allocation116_spill] sm:$0xff] %v8785_v48  ;;  %12337 = vst [vmem:[#allocation118_spill] sm:$0xff] %v8791_v21  ;;  %v4188_v59 = vld [vmem:[%s4724_s30 + $0x108] sm:$0xff]  ;;  %v2213_v45 = vmul.f32 %v4174_v18, %v12346_v62  ;;  %v4189_v23 = vld [vmem:[%s4724_s30 + $0x110] sm:$0xff]  ;;  %v2214_v24 = vmul.f32 %v4175_v0, %v12346_v62  ;;  %v2215_v3 = vmul.f32 %v4176_v32, %v12346_v62 }
 0x1ac   : > { %12335 = vst [vmem:[#allocation117_spill] sm:$0xff] %v8788_v42  ;;  %12339 = vst [vmem:[#allocation119_spill] sm:$0xff] %v8794_v5  ;;  %v4191_v8 = vld [vmem:[%s4724_s30 + $0x128] sm:$0xff]  ;;  %v2216_v47 = vmul.f32 %v4177_v11, %v12346_v62  ;;  %v2217_v7 = vmul.f32 %v4178_v30, %v12346_v62  ;;  %v4192_v34 = vld [vmem:[%s4724_s30 + $0x138] sm:$0xff]  ;;  %v2218_v18 = vmul.f32 %v4179_v22, %v12346_v62 }
 0x1ad   : > { %12341 = vst [vmem:[#allocation120_spill] sm:$0xff] %v8800_v55  ;;  %12343 = vst [vmem:[#allocation22_spill] sm:$0xff] %v8803_v15  ;;  %v4193_v51 = vld [vmem:[%s4724_s30 + $0x140] sm:$0xff]  ;;  %v4194_v33 = vld [vmem:[%s4724_s30 + $0x150] sm:$0xff]  ;;  %v2219_v52 = vmul.f32 %v4180_v58, %v12346_v62  ;;  %v2220_v10 = vmul.f32 %v4181_v25, %v12346_v62  ;;  %v2221_v0 = vmul.f32 %v4182_v43, %v12346_v62 }
 0x1ae   : > { %12345 = vst [vmem:[#allocation24_spill] sm:$0xff] %v8806_v39  ;;  %v4195_v32 = vld [vmem:[%s4724_s30 + $0x158] sm:$0xff]  ;;  %v4196_v28 = vld [vmem:[%s4724_s30 + $0x168] sm:$0xff]  ;;  %v4197_v11 = vld [vmem:[%s4724_s30 + $0x170] sm:$0xff]  ;;  %v2222_v54 = vmul.f32 %v4183_v50, %v12346_v62  ;;  %v2223_v30 = vmul.f32 %v4184_v49, %v12346_v62  ;;  %v2224_v44 = vmul.f32 %v4185_v19, %v12346_v62  ;;  %v2225_v39 = vmul.f32 %v4186_v41, %v12346_v62 }
 0x1af   : > { %v4200_v22 = vld [vmem:[%s4724_s30 + $0x198] sm:$0xff]  ;;  %v4201_v15 = vld [vmem:[%s4724_s30 + $0x1a0] sm:$0xff]  ;;  %v2226_v58 = vmul.f32 %v4187_v37, %v12346_v62  ;;  %v2227_v25 = vmul.f32 %v4188_v59, %v12346_v62  ;;  %v2228_v55 = vmul.f32 %v4189_v23, %v12346_v62  ;;  %v2229_v43 = vmul.f32 %v4190_v53, %v12346_v62  ;;  %v4204_v5 = vld [vmem:[%s4724_s30 + $0x1c8] sm:$0xff] }
 0x1b0   : > { %v4205_v21 = vld [vmem:[%s4724_s30 + $0x1d0] sm:$0xff]  ;;  %v2230_v50 = vmul.f32 %v4191_v8, %v12346_v62  ;;  %v2231_v49 = vmul.f32 %v4192_v34, %v12346_v62  ;;  %v2232_v19 = vmul.f32 %v4193_v51, %v12346_v62  ;;  %v2233_v41 = vmul.f32 %v4194_v33, %v12346_v62  ;;  %v12347_v23 = vld [vmem:[#allocation160_spill] sm:$0xff]  ;;  %v12348_v53 = vld [vmem:[#allocation161_spill] sm:$0xff] }
 0x1b1   : > { %v2234_v42 = vmul.f32 %v4195_v32, %v12346_v62  ;;  %v2235_v37 = vmul.f32 %v4196_v28, %v12346_v62  ;;  %v2236_v59 = vmul.f32 %v4197_v11, %v12346_v62  ;;  %v2237_v48 = vmul.f32 %v12347_v23, %v12346_v62  ;;  %v12349_v51 = vld [vmem:[#allocation164_spill] sm:$0xff]  ;;  %v12350_v33 = vld [vmem:[#allocation165_spill] sm:$0xff] }
 0x1b2   : > { %v2238_v60 = vmul.f32 %v12348_v53, %v12346_v62  ;;  %v2239_v8 = vmul.f32 %v4200_v22, %v12346_v62  ;;  %v2240_v34 = vmul.f32 %v4201_v15, %v12346_v62  ;;  %v2241_v13 = vmul.f32 %v12349_v51, %v12346_v62  ;;  %v4221_v51 = vld [vmem:[%s4724_s30 + $0x111] sm:$0xff] }
 0x1b3   : > { %v2242_v32 = vmul.f32 %v12350_v33, %v12346_v62  ;;  %v2243_v28 = vmul.f32 %v4204_v5, %v12346_v62  ;;  %v2244_v11 = vmul.f32 %v4205_v21, %v12346_v62  ;;  %v8861_v29 = vadd.f32 %v2213_v45, %v8701_v46  ;;  %v4210_v5 = vld [vmem:[%s4724_s30 + $0x91] sm:$0xff]  ;;  %v4222_v33 = vld [vmem:[%s4724_s30 + $0x121] sm:$0xff] }
 0x1b4   : > { %v8864_v23 = vadd.f32 %v2214_v24, %v8704_v1  ;;  %v8867_v22 = vadd.f32 %v2215_v3, %v8707_v2  ;;  %v8870_v15 = vadd.f32 %v2216_v47, %v8710_v61  ;;  %v8873_v53 = vadd.f32 %v2217_v7, %v8713_v14  ;;  %v4213_v3 = vld [vmem:[%s4724_s30 + $0xb1] sm:$0xff]  ;;  %v4214_v47 = vld [vmem:[%s4724_s30 + $0xc1] sm:$0xff] }
 0x1b5   : > { %v8876_v21 = vadd.f32 %v2218_v18, %v8716_v9  ;;  %v8879_v46 = vadd.f32 %v2219_v52, %v8719_v16  ;;  %v8882_v1 = vadd.f32 %v2220_v10, %v8722_v26  ;;  %v8885_v2 = vadd.f32 %v2221_v0, %v8725_v36  ;;  %v12357_v7 = vld [vmem:[#allocation116_spill] sm:$0xff]  ;;  %v12361_v52 = vld [vmem:[#allocation118_spill] sm:$0xff]  ;;  %v12363_v0 = vld [vmem:[#allocation119_spill] sm:$0xff] }
 0x1b6   : > { %v8888_v61 = vadd.f32 %v2222_v54, %v8728_v38  ;;  %v8891_v14 = vadd.f32 %v2223_v30, %v8731_v17  ;;  %v8894_v9 = vadd.f32 %v2224_v44, %v8734_v57  ;;  %v8897_v16 = vadd.f32 %v2225_v39, %v8737_v56  ;;  %v4206_v17 = vld [vmem:[%s4724_s30 + $0x61] sm:$0xff]  ;;  %v4207_v44 = vld [vmem:[%s4724_s30 + $0x69] sm:$0xff]  ;;  %v4208_v57 = vld [vmem:[%s4724_s30 + $0x79] sm:$0xff] }
 0x1b7   : > { %v8900_v26 = vadd.f32 %v2226_v58, %v8740_v40  ;;  %v8903_v36 = vadd.f32 %v2227_v25, %v8743_v12  ;;  %v8906_v54 = vadd.f32 %v2228_v55, %v8746_v27  ;;  %v8909_v38 = vadd.f32 %v2229_v43, %v8749_v35  ;;  %v4209_v35 = vld [vmem:[%s4724_s30 + $0x81] sm:$0xff]  ;;  %v4211_v55 = vld [vmem:[%s4724_s30 + $0x99] sm:$0xff] }
 0x1b8   : > { %v8915_v56 = vadd.f32 %v2230_v50, %v8755_v20  ;;  %v8918_v40 = vadd.f32 %v2231_v49, %v8758_v6  ;;  %v8921_v12 = vadd.f32 %v2232_v19, %v8761_v63  ;;  %v8924_v27 = vadd.f32 %v2233_v41, %v8764_v31  ;;  %v12351_v20 = vld [vmem:[#allocation110_spill] sm:$0xff]  ;;  %v12353_v6 = vld [vmem:[#allocation111_spill] sm:$0xff]  ;;  %v12355_v63 = vld [vmem:[#allocation112_spill] sm:$0xff] }
 0x1b9   : > { %v8930_v39 = vadd.f32 %v2234_v42, %v8770_v4  ;;  %v8933_v62 = vadd.f32 %v2235_v37, %v12351_v20  ;;  %v8936_v45 = vadd.f32 %v2236_v59, %v12353_v6  ;;  %v8939_v24 = vadd.f32 %v2237_v48, %v12355_v63  ;;  %v4212_v31 = vld [vmem:[%s4724_s30 + $0xa9] sm:$0xff]  ;;  %v12359_v42 = vld [vmem:[#allocation117_spill] sm:$0xff]  ;;  %v12365_v43 = vld [vmem:[#allocation120_spill] sm:$0xff] }
 0x1ba   : > { %v8945_v4 = vadd.f32 %v2238_v60, %v12357_v7  ;;  %v8948_v18 = vadd.f32 %v2239_v8, %v12359_v42  ;;  %v8951_v10 = vadd.f32 %v2240_v34, %v12361_v52  ;;  %v8954_v30 = vadd.f32 %v2241_v13, %v12363_v0  ;;  %v4215_v48 = vld [vmem:[%s4724_s30 + $0xc9] sm:$0xff]  ;;  %v4216_v58 = vld [vmem:[%s4724_s30 + $0xd9] sm:$0xff]  ;;  %v4217_v25 = vld [vmem:[%s4724_s30 + $0xe1] sm:$0xff] }
 0x1bb   : > { %12352 = vst [vmem:[#allocation25_spill] sm:$0xff] %v8933_v62  ;;  %12354 = vst [vmem:[#allocation26_spill] sm:$0xff] %v8936_v45  ;;  %v8960_v50 = vadd.f32 %v2242_v32, %v12365_v43  ;;  %v12367_v60 = vld [vmem:[#allocation22_spill] sm:$0xff]  ;;  %v12369_v19 = vld [vmem:[#allocation24_spill] sm:$0xff] }
 0x1bc   : > { %12356 = vst [vmem:[#allocation28_spill] sm:$0xff] %v8939_v24  ;;  %12358 = vst [vmem:[#allocation29_spill] sm:$0xff] %v8945_v4  ;;  %v8963_v49 = vadd.f32 %v2243_v28, %v12367_v60  ;;  %v8966_v41 = vadd.f32 %v2244_v11, %v12369_v19  ;;  %v4218_v37 = vld [vmem:[%s4724_s30 + $0xf1] sm:$0xff]  ;;  %v4219_v59 = vld [vmem:[%s4724_s30 + $0xf9] sm:$0xff] }
 0x1bd   : > { %12360 = vst [vmem:[#allocation30_spill] sm:$0xff] %v8948_v18  ;;  %12362 = vst [vmem:[#allocation32_spill] sm:$0xff] %v8951_v10  ;;  %v4220_v8 = vld [vmem:[%s4724_s30 + $0x109] sm:$0xff]  ;;  %v12371_v13 = vld [vmem:[#allocation93_spill] sm:$0xff] }
 0x1be   : > { %12364 = vst [vmem:[#allocation67_spill] sm:$0xff] %v8954_v30  ;;  %12366 = vst [vmem:[#allocation18_spill] sm:$0xff] %v8960_v50  ;;  %v2313_v34 = vmul.f32 %v4206_v17, %v12371_v13  ;;  %v4223_v20 = vld [vmem:[%s4724_s30 + $0x129] sm:$0xff]  ;;  %v2314_v32 = vmul.f32 %v4207_v44, %v12371_v13  ;;  %v2315_v6 = vmul.f32 %v4208_v57, %v12371_v13  ;;  %v4224_v63 = vld [vmem:[%s4724_s30 + $0x139] sm:$0xff] }
 0x1bf   : > { %12368 = vst [vmem:[#allocation71_spill] sm:$0xff] %v8963_v49  ;;  %12370 = vst [vmem:[#allocation75_spill] sm:$0xff] %v8966_v41  ;;  %v2316_v28 = vmul.f32 %v4209_v35, %v12371_v13  ;;  %v2317_v11 = vmul.f32 %v4210_v5, %v12371_v13  ;;  %v4225_v7 = vld [vmem:[%s4724_s30 + $0x141] sm:$0xff]  ;;  %v4226_v42 = vld [vmem:[%s4724_s30 + $0x151] sm:$0xff]  ;;  %v2318_v17 = vmul.f32 %v4211_v55, %v12371_v13 }
 0x1c0   : > { %v2319_v52 = vmul.f32 %v4212_v31, %v12371_v13  ;;  %v2320_v0 = vmul.f32 %v4213_v3, %v12371_v13  ;;  %v2321_v44 = vmul.f32 %v4214_v47, %v12371_v13  ;;  %v4227_v57 = vld [vmem:[%s4724_s30 + $0x159] sm:$0xff]  ;;  %v4228_v43 = vld [vmem:[%s4724_s30 + $0x169] sm:$0xff]  ;;  %v4229_v35 = vld [vmem:[%s4724_s30 + $0x171] sm:$0xff]  ;;  %v2322_v60 = vmul.f32 %v4215_v48, %v12371_v13 }
 0x1c1   : > { %v2323_v5 = vmul.f32 %v4216_v58, %v12371_v13  ;;  %v2324_v19 = vmul.f32 %v4217_v25, %v12371_v13  ;;  %v2325_v41 = vmul.f32 %v4218_v37, %v12371_v13  ;;  %v4232_v55 = vld [vmem:[%s4724_s30 + $0x199] sm:$0xff]  ;;  %v4233_v49 = vld [vmem:[%s4724_s30 + $0x1a1] sm:$0xff]  ;;  %v2326_v31 = vmul.f32 %v4219_v59, %v12371_v13  ;;  %v4236_v30 = vld [vmem:[%s4724_s30 + $0x1c9] sm:$0xff] }
 0x1c2   : > { %v2327_v3 = vmul.f32 %v4220_v8, %v12371_v13  ;;  %v2328_v50 = vmul.f32 %v4221_v51, %v12371_v13  ;;  %v2329_v47 = vmul.f32 %v4222_v33, %v12371_v13  ;;  %v4237_v10 = vld [vmem:[%s4724_s30 + $0x1d1] sm:$0xff]  ;;  %v2330_v48 = vmul.f32 %v4223_v20, %v12371_v13  ;;  %v12372_v51 = vld [vmem:[#allocation74_spill] sm:$0xff]  ;;  %v12373_v33 = vld [vmem:[#allocation49_spill] sm:$0xff] }
 0x1c3   : > { %v2331_v58 = vmul.f32 %v4224_v63, %v12371_v13  ;;  %v2332_v25 = vmul.f32 %v4225_v7, %v12371_v13  ;;  %v2333_v37 = vmul.f32 %v4226_v42, %v12371_v13  ;;  %v2334_v18 = vmul.f32 %v4227_v57, %v12371_v13  ;;  %v12374_v7 = vld [vmem:[#allocation13_spill] sm:$0xff] }
 0x1c4   : > { %v2335_v59 = vmul.f32 %v4228_v43, %v12371_v13  ;;  %v2336_v8 = vmul.f32 %v4229_v35, %v12371_v13  ;;  %v2337_v4 = vmul.f32 %v12372_v51, %v12371_v13  ;;  %v2338_v24 = vmul.f32 %v12373_v33, %v12371_v13  ;;  %v12375_v42 = vld [vmem:[#allocation21_spill] sm:$0xff] }
 0x1c5   : > { %v2339_v20 = vmul.f32 %v4232_v55, %v12371_v13  ;;  %v2340_v63 = vmul.f32 %v4233_v49, %v12371_v13  ;;  %v2341_v45 = vmul.f32 %v12374_v7, %v12371_v13  ;;  %v2342_v57 = vmul.f32 %v12375_v42, %v12371_v13  ;;  %v4253_v7 = vld [vmem:[%s4724_s30 + $0x112] sm:$0xff]  ;;  %v4254_v42 = vld [vmem:[%s4724_s30 + $0x122] sm:$0xff] }
 0x1c6   : > { %v2343_v43 = vmul.f32 %v4236_v30, %v12371_v13  ;;  %v2344_v35 = vmul.f32 %v4237_v10, %v12371_v13  ;;  %v9021_v62 = vadd.f32 %v2313_v34, %v8861_v29  ;;  %v9024_v51 = vadd.f32 %v2314_v32, %v8864_v23  ;;  %v4238_v30 = vld [vmem:[%s4724_s30 + $0x62] sm:$0xff]  ;;  %v4240_v13 = vld [vmem:[%s4724_s30 + $0x7a] sm:$0xff] }
 0x1c7   : > { %v9027_v55 = vadd.f32 %v2315_v6, %v8867_v22  ;;  %v9030_v49 = vadd.f32 %v2316_v28, %v8870_v15  ;;  %v9033_v33 = vadd.f32 %v2317_v11, %v8873_v53  ;;  %v9036_v10 = vadd.f32 %v2318_v17, %v8876_v21  ;;  %v4245_v11 = vld [vmem:[%s4724_s30 + $0xb2] sm:$0xff]  ;;  %v4246_v17 = vld [vmem:[%s4724_s30 + $0xc2] sm:$0xff] }
 0x1c8   : > { %v9039_v29 = vadd.f32 %v2319_v52, %v8879_v46  ;;  %v9042_v23 = vadd.f32 %v2320_v0, %v8882_v1  ;;  %v9045_v22 = vadd.f32 %v2321_v44, %v8885_v2  ;;  %v9048_v15 = vadd.f32 %v2322_v60, %v8888_v61  ;;  %v12382_v52 = vld [vmem:[#allocation29_spill] sm:$0xff]  ;;  %v12386_v44 = vld [vmem:[#allocation32_spill] sm:$0xff] }
 0x1c9   : > { %v9051_v53 = vadd.f32 %v2323_v5, %v8891_v14  ;;  %v9054_v21 = vadd.f32 %v2324_v19, %v8894_v9  ;;  %v9057_v46 = vadd.f32 %v2325_v41, %v8897_v16  ;;  %v9060_v1 = vadd.f32 %v2326_v31, %v8900_v26  ;;  %v4239_v9 = vld [vmem:[%s4724_s30 + $0x6a] sm:$0xff]  ;;  %v4243_v41 = vld [vmem:[%s4724_s30 + $0x9a] sm:$0xff] }
 0x1ca   : > { %v9063_v2 = vadd.f32 %v2327_v3, %v8903_v36  ;;  %v9066_v61 = vadd.f32 %v2328_v50, %v8906_v54  ;;  %v9069_v14 = vadd.f32 %v2329_v47, %v8909_v38  ;;  %v9075_v16 = vadd.f32 %v2330_v48, %v8915_v56  ;;  %v4241_v38 = vld [vmem:[%s4724_s30 + $0x82] sm:$0xff]  ;;  %v4242_v50 = vld [vmem:[%s4724_s30 + $0x92] sm:$0xff]  ;;  %v4248_v31 = vld [vmem:[%s4724_s30 + $0xda] sm:$0xff] }
 0x1cb   : > { %v9078_v26 = vadd.f32 %v2331_v58, %v8918_v40  ;;  %v9081_v36 = vadd.f32 %v2332_v25, %v8921_v12  ;;  %v9084_v54 = vadd.f32 %v2333_v37, %v8924_v27  ;;  %v9090_v34 = vadd.f32 %v2334_v18, %v8930_v39  ;;  %v12376_v56 = vld [vmem:[#allocation25_spill] sm:$0xff]  ;;  %v12378_v40 = vld [vmem:[#allocation26_spill] sm:$0xff]  ;;  %v12380_v12 = vld [vmem:[#allocation28_spill] sm:$0xff] }
 0x1cc   : > { %v9093_v32 = vadd.f32 %v2335_v59, %v12376_v56  ;;  %v9096_v6 = vadd.f32 %v2336_v8, %v12378_v40  ;;  %v9099_v28 = vadd.f32 %v2337_v4, %v12380_v12  ;;  %v4244_v27 = vld [vmem:[%s4724_s30 + $0xaa] sm:$0xff]  ;;  %v9105_v39 = vadd.f32 %v2338_v24, %v12382_v52  ;;  %v4249_v3 = vld [vmem:[%s4724_s30 + $0xe2] sm:$0xff]  ;;  %v4250_v59 = vld [vmem:[%s4724_s30 + $0xf2] sm:$0xff] }
 0x1cd   : > { %v12384_v18 = vld [vmem:[#allocation30_spill] sm:$0xff]  ;;  %v9111_v60 = vadd.f32 %v2340_v63, %v12386_v44  ;;  %v12388_v5 = vld [vmem:[#allocation67_spill] sm:$0xff]  ;;  %v4251_v8 = vld [vmem:[%s4724_s30 + $0xfa] sm:$0xff] }
 0x1ce   : > { %12377 = vst [vmem:[#allocation7_spill] sm:$0xff] %v9093_v32  ;;  %12379 = vst [vmem:[#allocation166_spill] sm:$0xff] %v9096_v6  ;;  %v9108_v0 = vadd.f32 %v2339_v20, %v12384_v18  ;;  %v9114_v19 = vadd.f32 %v2341_v45, %v12388_v5  ;;  %v4247_v4 = vld [vmem:[%s4724_s30 + $0xca] sm:$0xff]  ;;  %v4256_v12 = vld [vmem:[%s4724_s30 + $0x13a] sm:$0xff] }
 0x1cf   : > { %12381 = vst [vmem:[#allocation52_spill] sm:$0xff] %v9099_v28  ;;  %12383 = vst [vmem:[#allocation56_spill] sm:$0xff] %v9105_v39  ;;  %v12390_v47 = vld [vmem:[#allocation18_spill] sm:$0xff]  ;;  %v12392_v24 = vld [vmem:[#allocation71_spill] sm:$0xff] }
 0x1d0   : > { %12385 = vst [vmem:[#allocation57_spill] sm:$0xff] %v9108_v0  ;;  %12387 = vst [vmem:[#allocation47_spill] sm:$0xff] %v9111_v60  ;;  %v9120_v48 = vadd.f32 %v2342_v57, %v12390_v47  ;;  %v9123_v58 = vadd.f32 %v2343_v43, %v12392_v24  ;;  %v12394_v25 = vld [vmem:[#allocation75_spill] sm:$0xff]  ;;  %v12396_v45 = vld [vmem:[#allocation94_spill] sm:$0xff] }
 0x1d1   : > { %12389 = vst [vmem:[#allocation70_spill] sm:$0xff] %v9114_v19  ;;  %v9126_v37 = vadd.f32 %v2344_v35, %v12394_v25  ;;  %v4252_v20 = vld [vmem:[%s4724_s30 + $0x10a] sm:$0xff]  ;;  %v2413_v63 = vmul.f32 %v4238_v30, %v12396_v45  ;;  %v2414_v57 = vmul.f32 %v4239_v9, %v12396_v45  ;;  %v2415_v40 = vmul.f32 %v4240_v13, %v12396_v45  ;;  %v4257_v52 = vld [vmem:[%s4724_s30 + $0x142] sm:$0xff]  ;;  %v4258_v18 = vld [vmem:[%s4724_s30 + $0x152] sm:$0xff] }
 0x1d2   : > { %12391 = vst [vmem:[#allocation72_spill] sm:$0xff] %v9120_v48  ;;  %12393 = vst [vmem:[#allocation73_spill] sm:$0xff] %v9123_v58  ;;  %v4255_v56 = vld [vmem:[%s4724_s30 + $0x12a] sm:$0xff]  ;;  %v2416_v43 = vmul.f32 %v4241_v38, %v12396_v45  ;;  %v2417_v35 = vmul.f32 %v4242_v50, %v12396_v45  ;;  %v2418_v30 = vmul.f32 %v4243_v41, %v12396_v45  ;;  %v4259_v13 = vld [vmem:[%s4724_s30 + $0x15a] sm:$0xff] }
 0x1d3   : > { %12395 = vst [vmem:[#allocation8_spill] sm:$0xff] %v9126_v37  ;;  %v2419_v44 = vmul.f32 %v4244_v27, %v12396_v45  ;;  %v2420_v5 = vmul.f32 %v4245_v11, %v12396_v45  ;;  %v2421_v9 = vmul.f32 %v4246_v17, %v12396_v45  ;;  %v4260_v47 = vld [vmem:[%s4724_s30 + $0x16a] sm:$0xff]  ;;  %v4261_v38 = vld [vmem:[%s4724_s30 + $0x172] sm:$0xff]  ;;  %v2422_v24 = vmul.f32 %v4247_v4, %v12396_v45  ;;  %v4264_v41 = vld [vmem:[%s4724_s30 + $0x19a] sm:$0xff] }
 0x1d4   : > { %v2423_v50 = vmul.f32 %v4248_v31, %v12396_v45  ;;  %v2424_v25 = vmul.f32 %v4249_v3, %v12396_v45  ;;  %v2425_v37 = vmul.f32 %v4250_v59, %v12396_v45  ;;  %v4265_v58 = vld [vmem:[%s4724_s30 + $0x1a2] sm:$0xff]  ;;  %v2426_v27 = vmul.f32 %v4251_v8, %v12396_v45  ;;  %v4268_v19 = vld [vmem:[%s4724_s30 + $0x1ca] sm:$0xff]  ;;  %v4269_v60 = vld [vmem:[%s4724_s30 + $0x1d2] sm:$0xff] }
 0x1d5   : > { %v2427_v11 = vmul.f32 %v4252_v20, %v12396_v45  ;;  %v2428_v48 = vmul.f32 %v4253_v7, %v12396_v45  ;;  %v2429_v17 = vmul.f32 %v4254_v42, %v12396_v45  ;;  %v2430_v4 = vmul.f32 %v4255_v56, %v12396_v45  ;;  %v12397_v7 = vld [vmem:[#allocation100_spill] sm:$0xff]  ;;  %v12398_v42 = vld [vmem:[#allocation101_spill] sm:$0xff] }
 0x1d6   : > { %v2431_v31 = vmul.f32 %v4256_v12, %v12396_v45  ;;  %v2432_v3 = vmul.f32 %v4257_v52, %v12396_v45  ;;  %v2433_v59 = vmul.f32 %v4258_v18, %v12396_v45  ;;  %v2434_v0 = vmul.f32 %v4259_v13, %v12396_v45  ;;  %v12399_v52 = vld [vmem:[#allocation102_spill] sm:$0xff]  ;;  %v12400_v18 = vld [vmem:[#allocation20_spill] sm:$0xff] }
 0x1d7   : > { %v2435_v8 = vmul.f32 %v4260_v47, %v12396_v45  ;;  %v2436_v20 = vmul.f32 %v4261_v38, %v12396_v45  ;;  %v2437_v39 = vmul.f32 %v12397_v7, %v12396_v45  ;;  %v2438_v28 = vmul.f32 %v12398_v42, %v12396_v45 }
 0x1d8   : > { %v2439_v56 = vmul.f32 %v4264_v41, %v12396_v45  ;;  %v2440_v12 = vmul.f32 %v4265_v58, %v12396_v45  ;;  %v2441_v6 = vmul.f32 %v12399_v52, %v12396_v45  ;;  %v2442_v13 = vmul.f32 %v12400_v18, %v12396_v45  ;;  %v4285_v52 = vld [vmem:[%s4724_s30 + $0x113] sm:$0xff]  ;;  %v4286_v18 = vld [vmem:[%s4724_s30 + $0x123] sm:$0xff] }
 0x1d9   : > { %v2443_v47 = vmul.f32 %v4268_v19, %v12396_v45  ;;  %v2444_v38 = vmul.f32 %v4269_v60, %v12396_v45  ;;  %v9181_v32 = vadd.f32 %v2413_v63, %v9021_v62  ;;  %v9184_v7 = vadd.f32 %v2414_v57, %v9024_v51  ;;  %v4270_v19 = vld [vmem:[%s4724_s30 + $0x63] sm:$0xff]  ;;  %v4272_v45 = vld [vmem:[%s4724_s30 + $0x7b] sm:$0xff] }
 0x1da   : > { %v9187_v41 = vadd.f32 %v2415_v40, %v9027_v55  ;;  %v9190_v58 = vadd.f32 %v2416_v43, %v9030_v49  ;;  %v9193_v42 = vadd.f32 %v2417_v35, %v9033_v33  ;;  %v9196_v60 = vadd.f32 %v2418_v30, %v9036_v10  ;;  %v4277_v35 = vld [vmem:[%s4724_s30 + $0xb3] sm:$0xff]  ;;  %v4278_v30 = vld [vmem:[%s4724_s30 + $0xc3] sm:$0xff] }
 0x1db   : > { %v9199_v62 = vadd.f32 %v2419_v44, %v9039_v29  ;;  %v9202_v51 = vadd.f32 %v2420_v5, %v9042_v23  ;;  %v9205_v55 = vadd.f32 %v2421_v9, %v9045_v22  ;;  %v9208_v49 = vadd.f32 %v2422_v24, %v9048_v15  ;;  %v12407_v44 = vld [vmem:[#allocation56_spill] sm:$0xff]  ;;  %v12411_v9 = vld [vmem:[#allocation47_spill] sm:$0xff] }
 0x1dc   : > { %v9211_v33 = vadd.f32 %v2423_v50, %v9051_v53  ;;  %v9214_v10 = vadd.f32 %v2424_v25, %v9054_v21  ;;  %v9217_v29 = vadd.f32 %v2425_v37, %v9057_v46  ;;  %v9220_v23 = vadd.f32 %v2426_v27, %v9060_v1  ;;  %v4271_v21 = vld [vmem:[%s4724_s30 + $0x6b] sm:$0xff]  ;;  %v4275_v37 = vld [vmem:[%s4724_s30 + $0x9b] sm:$0xff] }
 0x1dd   : > { %v9223_v22 = vadd.f32 %v2427_v11, %v9063_v2  ;;  %v9226_v15 = vadd.f32 %v2428_v48, %v9066_v61  ;;  %v9229_v53 = vadd.f32 %v2429_v17, %v9069_v14  ;;  %v9235_v46 = vadd.f32 %v2430_v4, %v9075_v16  ;;  %v4273_v14 = vld [vmem:[%s4724_s30 + $0x83] sm:$0xff]  ;;  %v4274_v48 = vld [vmem:[%s4724_s30 + $0x93] sm:$0xff]  ;;  %v4280_v27 = vld [vmem:[%s4724_s30 + $0xdb] sm:$0xff] }
 0x1de   : > { %v9238_v1 = vadd.f32 %v2431_v31, %v9078_v26  ;;  %v9241_v2 = vadd.f32 %v2432_v3, %v9081_v36  ;;  %v9244_v61 = vadd.f32 %v2433_v59, %v9084_v54  ;;  %v9250_v63 = vadd.f32 %v2434_v0, %v9090_v34  ;;  %v12401_v16 = vld [vmem:[#allocation7_spill] sm:$0xff]  ;;  %v12403_v26 = vld [vmem:[#allocation166_spill] sm:$0xff]  ;;  %v12405_v36 = vld [vmem:[#allocation52_spill] sm:$0xff] }
 0x1df   : > { %v9253_v57 = vadd.f32 %v2435_v8, %v12401_v16  ;;  %v9256_v40 = vadd.f32 %v2436_v20, %v12403_v26  ;;  %v9259_v43 = vadd.f32 %v2437_v39, %v12405_v36  ;;  %v4276_v54 = vld [vmem:[%s4724_s30 + $0xab] sm:$0xff]  ;;  %v9265_v34 = vadd.f32 %v2438_v28, %v12407_v44  ;;  %v12409_v0 = vld [vmem:[#allocation57_spill] sm:$0xff]  ;;  %v12415_v17 = vld [vmem:[#allocation72_spill] sm:$0xff] }
 0x1e0   : > { %v9268_v5 = vadd.f32 %v2439_v56, %v12409_v0  ;;  %v9271_v24 = vadd.f32 %v2440_v12, %v12411_v9  ;;  %v12413_v50 = vld [vmem:[#allocation70_spill] sm:$0xff]  ;;  %v9280_v4 = vadd.f32 %v2442_v13, %v12415_v17  ;;  %v12417_v28 = vld [vmem:[#allocation73_spill] sm:$0xff]  ;;  %v12419_v3 = vld [vmem:[#allocation8_spill] sm:$0xff] }
 0x1e1   : > { %12402 = vst [vmem:[#allocation9_spill] sm:$0xff] %v9253_v57  ;;  %12404 = vst [vmem:[#allocation10_spill] sm:$0xff] %v9256_v40  ;;  %v9274_v25 = vadd.f32 %v2441_v6, %v12413_v50  ;;  %v4279_v39 = vld [vmem:[%s4724_s30 + $0xcb] sm:$0xff]  ;;  %v4281_v11 = vld [vmem:[%s4724_s30 + $0xe3] sm:$0xff]  ;;  %v9283_v31 = vadd.f32 %v2443_v47, %v12417_v28  ;;  %v9286_v59 = vadd.f32 %v2444_v38, %v12419_v3 }
 0x1e2   : > { %12406 = vst [vmem:[#allocation6_spill] sm:$0xff] %v9259_v43  ;;  %12408 = vst [vmem:[#allocation79_spill] sm:$0xff] %v9265_v34  ;;  %v4282_v8 = vld [vmem:[%s4724_s30 + $0xf3] sm:$0xff]  ;;  %v4283_v20 = vld [vmem:[%s4724_s30 + $0xfb] sm:$0xff] }
 0x1e3   : > { %12410 = vst [vmem:[#allocation11_spill] sm:$0xff] %v9268_v5  ;;  %12412 = vst [vmem:[#allocation12_spill] sm:$0xff] %v9271_v24  ;;  %v4284_v56 = vld [vmem:[%s4724_s30 + $0x10b] sm:$0xff]  ;;  %v4288_v36 = vld [vmem:[%s4724_s30 + $0x13b] sm:$0xff] }
 0x1e4   : > { %12414 = vst [vmem:[#allocation121_spill] sm:$0xff] %v9274_v25  ;;  %12416 = vst [vmem:[#allocation122_spill] sm:$0xff] %v9280_v4  ;;  %v12421_v6 = vld [vmem:[#allocation95_spill] sm:$0xff]  ;;  %v4289_v44 = vld [vmem:[%s4724_s30 + $0x143] sm:$0xff] }
 0x1e5   : > { %12418 = vst [vmem:[#allocation123_spill] sm:$0xff] %v9283_v31  ;;  %12420 = vst [vmem:[#allocation124_spill] sm:$0xff] %v9286_v59  ;;  %v2513_v12 = vmul.f32 %v4270_v19, %v12421_v6  ;;  %v4287_v16 = vld [vmem:[%s4724_s30 + $0x12b] sm:$0xff]  ;;  %v2514_v13 = vmul.f32 %v4271_v21, %v12421_v6  ;;  %v2515_v26 = vmul.f32 %v4272_v45, %v12421_v6  ;;  %v4290_v0 = vld [vmem:[%s4724_s30 + $0x153] sm:$0xff] }
 0x1e6   : > { %v2516_v47 = vmul.f32 %v4273_v14, %v12421_v6  ;;  %v2517_v38 = vmul.f32 %v4274_v48, %v12421_v6  ;;  %v2518_v19 = vmul.f32 %v4275_v37, %v12421_v6  ;;  %v2519_v9 = vmul.f32 %v4276_v54, %v12421_v6  ;;  %v4291_v45 = vld [vmem:[%s4724_s30 + $0x15b] sm:$0xff]  ;;  %v4292_v17 = vld [vmem:[%s4724_s30 + $0x16b] sm:$0xff]  ;;  %v4293_v14 = vld [vmem:[%s4724_s30 + $0x173] sm:$0xff] }
 0x1e7   : > { %v2520_v50 = vmul.f32 %v4277_v35, %v12421_v6  ;;  %v2521_v21 = vmul.f32 %v4278_v30, %v12421_v6  ;;  %v2522_v28 = vmul.f32 %v4279_v39, %v12421_v6  ;;  %v2523_v48 = vmul.f32 %v4280_v27, %v12421_v6  ;;  %v4296_v37 = vld [vmem:[%s4724_s30 + $0x19b] sm:$0xff]  ;;  %v4297_v31 = vld [vmem:[%s4724_s30 + $0x1a3] sm:$0xff]  ;;  %v4300_v25 = vld [vmem:[%s4724_s30 + $0x1cb] sm:$0xff] }
 0x1e8   : > { %v2524_v3 = vmul.f32 %v4281_v11, %v12421_v6  ;;  %v2525_v59 = vmul.f32 %v4282_v8, %v12421_v6  ;;  %v2526_v54 = vmul.f32 %v4283_v20, %v12421_v6  ;;  %v2527_v35 = vmul.f32 %v4284_v56, %v12421_v6  ;;  %v4301_v24 = vld [vmem:[%s4724_s30 + $0x1d3] sm:$0xff] }
 0x1e9   : > { %v2528_v4 = vmul.f32 %v4285_v52, %v12421_v6  ;;  %v2529_v30 = vmul.f32 %v4286_v18, %v12421_v6  ;;  %v2530_v39 = vmul.f32 %v4287_v16, %v12421_v6  ;;  %v2531_v27 = vmul.f32 %v4288_v36, %v12421_v6  ;;  %v12422_v52 = vld [vmem:[#allocation137_spill] sm:$0xff]  ;;  %v12423_v18 = vld [vmem:[#allocation51_spill] sm:$0xff] }
 0x1ea   : > { %v2532_v11 = vmul.f32 %v4289_v44, %v12421_v6  ;;  %v2533_v8 = vmul.f32 %v4290_v0, %v12421_v6  ;;  %v2534_v5 = vmul.f32 %v4291_v45, %v12421_v6  ;;  %v2535_v20 = vmul.f32 %v4292_v17, %v12421_v6  ;;  %v12424_v44 = vld [vmem:[#allocation27_spill] sm:$0xff] }
 0x1eb   : > { %v2536_v56 = vmul.f32 %v4293_v14, %v12421_v6  ;;  %v2537_v34 = vmul.f32 %v12422_v52, %v12421_v6  ;;  %v2538_v43 = vmul.f32 %v12423_v18, %v12421_v6  ;;  %v2539_v16 = vmul.f32 %v4296_v37, %v12421_v6  ;;  %v12425_v0 = vld [vmem:[#allocation31_spill] sm:$0xff] }
 0x1ec   : > { %v2540_v36 = vmul.f32 %v4297_v31, %v12421_v6  ;;  %v2541_v40 = vmul.f32 %v12424_v44, %v12421_v6  ;;  %v2542_v45 = vmul.f32 %v12425_v0, %v12421_v6  ;;  %v2543_v17 = vmul.f32 %v4300_v25, %v12421_v6  ;;  %v4303_v25 = vld [vmem:[%s4724_s30 + $0x6c] sm:$0xff]  ;;  %v4318_v44 = vld [vmem:[%s4724_s30 + $0x124] sm:$0xff] }
 0x1ed   : > { %v2544_v14 = vmul.f32 %v4301_v24, %v12421_v6  ;;  %v9341_v57 = vadd.f32 %v2513_v12, %v9181_v32  ;;  %v9344_v52 = vadd.f32 %v2514_v13, %v9184_v7  ;;  %v9347_v37 = vadd.f32 %v2515_v26, %v9187_v41  ;;  %v4305_v6 = vld [vmem:[%s4724_s30 + $0x84] sm:$0xff]  ;;  %v4319_v0 = vld [vmem:[%s4724_s30 + $0x12c] sm:$0xff] }
 0x1ee   : > { %v9350_v31 = vadd.f32 %v2516_v47, %v9190_v58  ;;  %v9353_v18 = vadd.f32 %v2517_v38, %v9193_v42  ;;  %v9356_v24 = vadd.f32 %v2518_v19, %v9196_v60  ;;  %v9359_v32 = vadd.f32 %v2519_v9, %v9199_v62  ;;  %v4310_v38 = vld [vmem:[%s4724_s30 + $0xc4] sm:$0xff]  ;;  %v4311_v19 = vld [vmem:[%s4724_s30 + $0xcc] sm:$0xff] }
 0x1ef   : > { %v9362_v7 = vadd.f32 %v2520_v50, %v9202_v51  ;;  %v9365_v41 = vadd.f32 %v2521_v21, %v9205_v55  ;;  %v9368_v58 = vadd.f32 %v2522_v28, %v9208_v49  ;;  %v9371_v42 = vadd.f32 %v2523_v48, %v9211_v33  ;;  %v12436_v9 = vld [vmem:[#allocation79_spill] sm:$0xff]  ;;  %v12440_v21 = vld [vmem:[#allocation12_spill] sm:$0xff]  ;;  %v12442_v48 = vld [vmem:[#allocation121_spill] sm:$0xff] }
 0x1f0   : > { %v9374_v60 = vadd.f32 %v2524_v3, %v9214_v10  ;;  %v9377_v62 = vadd.f32 %v2525_v59, %v9217_v29  ;;  %v9380_v51 = vadd.f32 %v2526_v54, %v9220_v23  ;;  %v9383_v55 = vadd.f32 %v2527_v35, %v9223_v22  ;;  %v4304_v10 = vld [vmem:[%s4724_s30 + $0x7c] sm:$0xff]  ;;  %v4308_v59 = vld [vmem:[%s4724_s30 + $0xac] sm:$0xff]  ;;  %v4313_v54 = vld [vmem:[%s4724_s30 + $0xe4] sm:$0xff] }
 0x1f1   : > { %v9386_v49 = vadd.f32 %v2528_v4, %v9226_v15  ;;  %v9389_v33 = vadd.f32 %v2529_v30, %v9229_v53  ;;  %v9395_v29 = vadd.f32 %v2530_v39, %v9235_v46  ;;  %v9398_v23 = vadd.f32 %v2531_v27, %v9238_v1  ;;  %v4306_v53 = vld [vmem:[%s4724_s30 + $0x94] sm:$0xff]  ;;  %v4307_v4 = vld [vmem:[%s4724_s30 + $0x9c] sm:$0xff]  ;;  %v12432_v1 = vld [vmem:[#allocation10_spill] sm:$0xff] }
 0x1f2   : > { %v9401_v22 = vadd.f32 %v2532_v11, %v9241_v2  ;;  %v9404_v15 = vadd.f32 %v2533_v8, %v9244_v61  ;;  %v9410_v12 = vadd.f32 %v2534_v5, %v9250_v63  ;;  %v12430_v46 = vld [vmem:[#allocation9_spill] sm:$0xff]  ;;  %v9416_v26 = vadd.f32 %v2536_v56, %v12432_v1  ;;  %v12434_v2 = vld [vmem:[#allocation6_spill] sm:$0xff]  ;;  %v4309_v61 = vld [vmem:[%s4724_s30 + $0xb4] sm:$0xff] }
 0x1f3   : > { %12426 = vst [vmem:[#allocation126_spill] sm:$0xff] %v9398_v23  ;;  %v9413_v13 = vadd.f32 %v2535_v20, %v12430_v46  ;;  %v9419_v47 = vadd.f32 %v2537_v34, %v12434_v2  ;;  %v9425_v50 = vadd.f32 %v2538_v43, %v12436_v9  ;;  %v12438_v63 = vld [vmem:[#allocation11_spill] sm:$0xff]  ;;  %v9431_v28 = vadd.f32 %v2540_v36, %v12440_v21  ;;  %v4312_v34 = vld [vmem:[%s4724_s30 + $0xdc] sm:$0xff]  ;;  %v12444_v30 = vld [vmem:[#allocation122_spill] sm:$0xff] }
 0x1f4   : > { %12427 = vst [vmem:[#allocation127_spill] sm:$0xff] %v9401_v22  ;;  %12428 = vst [vmem:[#allocation128_spill] sm:$0xff] %v9404_v15  ;;  %v9428_v5 = vadd.f32 %v2539_v16, %v12438_v63  ;;  %v9434_v3 = vadd.f32 %v2541_v40, %v12442_v48  ;;  %v4314_v35 = vld [vmem:[%s4724_s30 + $0xf4] sm:$0xff]  ;;  %v9440_v39 = vadd.f32 %v2542_v45, %v12444_v30  ;;  %v4315_v20 = vld [vmem:[%s4724_s30 + $0xfc] sm:$0xff] }
 0x1f5   : > { %12429 = vst [vmem:[#allocation132_spill] sm:$0xff] %v9410_v12  ;;  %12431 = vst [vmem:[#allocation133_spill] sm:$0xff] %v9413_v13  ;;  %v12446_v43 = vld [vmem:[#allocation123_spill] sm:$0xff]  ;;  %v12448_v11 = vld [vmem:[#allocation124_spill] sm:$0xff] }
 0x1f6   : > { %12433 = vst [vmem:[#allocation134_spill] sm:$0xff] %v9416_v26  ;;  %12435 = vst [vmem:[#allocation138_spill] sm:$0xff] %v9419_v47  ;;  %v9443_v27 = vadd.f32 %v2543_v17, %v12446_v43  ;;  %v9446_v8 = vadd.f32 %v2544_v14, %v12448_v11  ;;  %v4316_v56 = vld [vmem:[%s4724_s30 + $0x10c] sm:$0xff]  ;;  %v4317_v16 = vld [vmem:[%s4724_s30 + $0x114] sm:$0xff] }
 0x1f7   : > { %12437 = vst [vmem:[#allocation139_spill] sm:$0xff] %v9425_v50  ;;  %12439 = vst [vmem:[#allocation140_spill] sm:$0xff] %v9428_v5  ;;  %v4578_v40 = vld [vmem:[%s10811_s1 + $0x18] ss:$0 sm:$0xff]  ;;  %v4320_v45 = vld [vmem:[%s4724_s30 + $0x13c] sm:$0xff] }
 0x1f8   : > { %12441 = vst [vmem:[#allocation141_spill] sm:$0xff] %v9431_v28  ;;  %12443 = vst [vmem:[#allocation142_spill] sm:$0xff] %v9434_v3  ;;  %v2614_v36 = vmul.f32 %v4578_v40, %v4303_v25  ;;  %v2615_v46 = vmul.f32 %v4578_v40, %v4304_v10  ;;  %v2616_v17 = vmul.f32 %v4578_v40, %v4305_v6  ;;  %v4321_v2 = vld [vmem:[%s4724_s30 + $0x144] sm:$0xff]  ;;  %v4322_v9 = vld [vmem:[%s4724_s30 + $0x154] sm:$0xff] }
 0x1f9   : > { %12445 = vst [vmem:[#allocation143_spill] sm:$0xff] %v9440_v39  ;;  %12447 = vst [vmem:[#allocation144_spill] sm:$0xff] %v9443_v27  ;;  %v2617_v1 = vmul.f32 %v4578_v40, %v4306_v53  ;;  %v2618_v14 = vmul.f32 %v4578_v40, %v4307_v4  ;;  %v4323_v63 = vld [vmem:[%s4724_s30 + $0x15c] sm:$0xff]  ;;  %v2619_v21 = vmul.f32 %v4578_v40, %v4308_v59  ;;  %v4324_v25 = vld [vmem:[%s4724_s30 + $0x16c] sm:$0xff] }
 0x1fa   : > { %12449 = vst [vmem:[#allocation145_spill] sm:$0xff] %v9446_v8  ;;  %v2620_v48 = vmul.f32 %v4578_v40, %v4309_v61  ;;  %v2621_v30 = vmul.f32 %v4578_v40, %v4310_v38  ;;  %v2622_v43 = vmul.f32 %v4578_v40, %v4311_v19  ;;  %v4325_v11 = vld [vmem:[%s4724_s30 + $0x174] sm:$0xff]  ;;  %v2623_v8 = vmul.f32 %v4578_v40, %v4312_v34  ;;  %v4328_v6 = vld [vmem:[%s4724_s30 + $0x19c] sm:$0xff]  ;;  %v4329_v3 = vld [vmem:[%s4724_s30 + $0x1a4] sm:$0xff] }
 0x1fb   : > { %v2624_v27 = vmul.f32 %v4578_v40, %v4313_v54  ;;  %v2625_v39 = vmul.f32 %v4578_v40, %v4314_v35  ;;  %v2626_v10 = vmul.f32 %v4578_v40, %v4315_v20  ;;  %v2627_v53 = vmul.f32 %v4578_v40, %v4316_v56  ;;  %v4332_v50 = vld [vmem:[%s4724_s30 + $0x1cc] sm:$0xff]  ;;  %v4333_v47 = vld [vmem:[%s4724_s30 + $0x1d4] sm:$0xff]  ;;  %v12453_v56 = vld [vmem:[#allocation105_spill] sm:$0xff]  ;;  %s4405_s30 = sshll.u32 %s4685_s16, 12 }
 0x1fc   : > { %v2628_v28 = vmul.f32 %v4578_v40, %v4317_v16  ;;  %v2629_v4 = vmul.f32 %v4578_v40, %v4318_v44  ;;  %v2630_v5 = vmul.f32 %v4578_v40, %v4319_v0  ;;  %v2631_v59 = vmul.f32 %v4578_v40, %v4320_v45  ;;  %v12450_v12 = vld [vmem:[#allocation98_spill] sm:$0xff]  ;;  %v12451_v34 = vld [vmem:[#allocation103_spill] sm:$0xff]  ;;  %v12452_v22 = vld [vmem:[#allocation104_spill] sm:$0xff]  ;;  %s10750_s6 = scalar_lea.hbm %s10813_s3, %s4405_s30 }
 0x1fd   : > { %v2632_v26 = vmul.f32 %v4578_v40, %v4321_v2  ;;  %v2633_v61 = vmul.f32 %v4578_v40, %v4322_v9  ;;  %v2634_v13 = vmul.f32 %v4578_v40, %v4323_v63  ;;  %v2635_v38 = vmul.f32 %v4578_v40, %v4324_v25  ;;  %v12454_v45 = vld [vmem:[#allocation96_spill] sm:$0xff] }
 0x1fe   : > { %v2636_v19 = vmul.f32 %v4578_v40, %v4325_v11  ;;  %v2637_v15 = vmul.f32 %v4578_v40, %v12450_v12  ;;  %v2638_v54 = vmul.f32 %v4578_v40, %v12451_v34  ;;  %v2639_v35 = vmul.f32 %v4578_v40, %v4328_v6 }
 0x1ff   : > { %v2640_v20 = vmul.f32 %v4578_v40, %v4329_v3  ;;  %v2641_v23 = vmul.f32 %v4578_v40, %v12452_v22  ;;  %v9470_v16 = vmul.f32 %v4578_v40, %v12453_v56  ;;  %v9472_v44 = vmul.f32 %v4578_v40, %v4332_v50 }
 0x200   : > { %v9474_v0 = vmul.f32 %v4578_v40, %v4333_v47  ;;  %v2645_v2 = vadd.f32 %v12454_v45, %v9341_v57  ;;  %v2646_v9 = vadd.f32 %v2614_v36, %v9344_v52  ;;  %v2647_v12 = vadd.f32 %v2615_v46, %v9347_v37 }
 0x201   : > { %v2648_v63 = vadd.f32 %v2616_v17, %v9350_v31  ;;  %v2649_v3 = vadd.f32 %v2617_v1, %v9353_v18  ;;  %v2650_v22 = vadd.f32 %v2618_v14, %v9356_v24  ;;  %v2651_v25 = vadd.f32 %v2619_v21, %v9359_v32  ;;  %v12463_v17 = vld [vmem:[#allocation140_spill] sm:$0xff]  ;;  %v12464_v14 = vld [vmem:[#allocation141_spill] sm:$0xff] }
 0x202   : > { %v2652_v50 = vadd.f32 %v2620_v48, %v9362_v7  ;;  %v2653_v47 = vadd.f32 %v2621_v30, %v9365_v41  ;;  %v2654_v40 = vadd.f32 %v2622_v43, %v9368_v58  ;;  %v2655_v57 = vadd.f32 %v2623_v8, %v9371_v42  ;;  %v9498_v41 = vld [vmem:[%s10812_s2] ss:$0 sm:$0xff]  ;;  %v12455_v58 = vld [vmem:[#allocation126_spill] sm:$0xff] }
 0x203   : > { %v2656_v52 = vadd.f32 %v2624_v27, %v9374_v60  ;;  %v2657_v37 = vadd.f32 %v2625_v39, %v9377_v62  ;;  %v2658_v31 = vadd.f32 %v2626_v10, %v9380_v51  ;;  %v2659_v18 = vadd.f32 %v2627_v53, %v9383_v55  ;;  %v12456_v60 = vld [vmem:[#allocation127_spill] sm:$0xff]  ;;  %v12457_v62 = vld [vmem:[#allocation128_spill] sm:$0xff]  ;;  %v12459_v55 = vld [vmem:[#allocation133_spill] sm:$0xff] }
 0x204   : > { %v2660_v24 = vadd.f32 %v2628_v28, %v9386_v49  ;;  %v2661_v32 = vadd.f32 %v2629_v4, %v9389_v33  ;;  %v2662_v7 = vadd.f32 %v2630_v5, %v9395_v29  ;;  %v2663_v42 = vadd.f32 %v2631_v59, %v12455_v58  ;;  %v12458_v51 = vld [vmem:[#allocation132_spill] sm:$0xff]  ;;  %v12460_v49 = vld [vmem:[#allocation134_spill] sm:$0xff]  ;;  %v12462_v29 = vld [vmem:[#allocation139_spill] sm:$0xff] }
 0x205   : > { %v2664_v27 = vadd.f32 %v2632_v26, %v12456_v60  ;;  %v2665_v39 = vadd.f32 %v2633_v61, %v12457_v62  ;;  %v2666_v8 = vadd.f32 %v2634_v13, %v12458_v51  ;;  %v2667_v36 = vadd.f32 %v2635_v38, %v12459_v55  ;;  %v12461_v33 = vld [vmem:[#allocation138_spill] sm:$0xff] }
 0x206   : > { %v2668_v28 = vadd.f32 %v2636_v19, %v12460_v49  ;;  %v2669_v46 = vadd.f32 %v2637_v15, %v12461_v33  ;;  %v2670_v5 = vadd.f32 %v2638_v54, %v12462_v29  ;;  %v2671_v1 = vadd.f32 %v2639_v35, %v12463_v17  ;;  %v12465_v48 = vld [vmem:[#allocation142_spill] sm:$0xff] }
 0x207   : > { %v2672_v21 = vadd.f32 %v2640_v20, %v12464_v14  ;;  %v9511_v30 = vadd.f32 %v2641_v23, %v12465_v48  ;;  %v2684_v26 = vadd.f32 %v9498_v41, %v2645_v2  ;;  %v2685_v43 = vadd.f32 %v9498_v41, %v2646_v9 }
 0x208   : > { %v2686_v13 = vadd.f32 %v9498_v41, %v2647_v12  ;;  %v2687_v11 = vadd.f32 %v9498_v41, %v2648_v63  ;;  %v2688_v10 = vadd.f32 %v9498_v41, %v2649_v3  ;;  %v2689_v15 = vadd.f32 %v9498_v41, %v2650_v22 }
 0x209   : > { %v2690_v6 = vadd.f32 %v9498_v41, %v2651_v25  ;;  %v2691_v53 = vadd.f32 %v9498_v41, %v2652_v50  ;;  %v2692_v4 = vadd.f32 %v9498_v41, %v2653_v47  ;;  %v2693_v23 = vadd.f32 %v9498_v41, %v2654_v40 }
 0x20a   : > { %v2694_v59 = vadd.f32 %v9498_v41, %v2655_v57  ;;  %v2695_v61 = vadd.f32 %v9498_v41, %v2656_v52  ;;  %v2696_v38 = vadd.f32 %v9498_v41, %v2657_v37  ;;  %v2697_v19 = vadd.f32 %v9498_v41, %v2658_v31 }
 0x20b   : > { %v2698_v34 = vadd.f32 %v9498_v41, %v2659_v18  ;;  %v2699_v54 = vadd.f32 %v9498_v41, %v2660_v24  ;;  %v2700_v35 = vadd.f32 %v9498_v41, %v2661_v32  ;;  %v2701_v20 = vadd.f32 %v9498_v41, %v2662_v7 }
 0x20c   : > { %v2702_v56 = vadd.f32 %v9498_v41, %v2663_v42  ;;  %v9533_v45 = vadd.f32 %v9498_v41, %v2664_v27  ;;  %v2704_v2 = vadd.f32 %v9498_v41, %v2665_v39  ;;  %v2705_v9 = vadd.f32 %v9498_v41, %v2666_v8 }
 0x20d   : > { %v2706_v12 = vadd.f32 %v9498_v41, %v2667_v36  ;;  %v2707_v63 = vadd.f32 %v9498_v41, %v2668_v28  ;;  %v2708_v3 = vadd.f32 %v9498_v41, %v2669_v46  ;;  %v2709_v22 = vadd.f32 %v9498_v41, %v2670_v5 }
 0x20e   : > { %v2710_v25 = vadd.f32 %v9498_v41, %v2671_v1  ;;  %v2711_v50 = vadd.f32 %v9498_v41, %v2672_v21  ;;  %v9543_v47 = vmul.f32 0.5, %v2684_v26  ;;  %v9545_v40 = vmul.f32 0.5, %v2685_v43  ;;  %v12495_v21 = vld [vmem:[#allocation143_spill] sm:$0xff] }
 0x20f   : > { %v9547_v57 = vmul.f32 0.5, %v2686_v13  ;;  %v9549_v52 = vmul.f32 0.5, %v2687_v11  ;;  %v9551_v37 = vmul.f32 0.5, %v2688_v10  ;;  %v9553_v31 = vmul.f32 0.5, %v2689_v15 }
 0x210   : > { %12466 = vst [vmem:[#allocation36_spill] sm:$0xff] %v9543_v47  ;;  %12467 = vst [vmem:[#allocation37_spill] sm:$0xff] %v9545_v40  ;;  %v9555_v18 = vmul.f32 0.5, %v2690_v6  ;;  %v9557_v24 = vmul.f32 0.5, %v2691_v53  ;;  %v9559_v32 = vmul.f32 0.5, %v2692_v4  ;;  %v9561_v7 = vmul.f32 0.5, %v2693_v23 }
 0x211   : > { %12468 = vst [vmem:[#allocation39_spill] sm:$0xff] %v9547_v57  ;;  %12469 = vst [vmem:[#allocation40_spill] sm:$0xff] %v9549_v52  ;;  %v9563_v58 = vmul.f32 0.5, %v2694_v59  ;;  %v9565_v42 = vmul.f32 0.5, %v2695_v61  ;;  %v9567_v60 = vmul.f32 0.5, %v2696_v38  ;;  %v9569_v27 = vmul.f32 0.5, %v2697_v19 }
 0x212   : > { %12470 = vst [vmem:[#allocation42_spill] sm:$0xff] %v9551_v37  ;;  %12471 = vst [vmem:[#allocation43_spill] sm:$0xff] %v9553_v31  ;;  %v9571_v62 = vmul.f32 0.5, %v2698_v34  ;;  %v9573_v39 = vmul.f32 0.5, %v2699_v54  ;;  %v9575_v51 = vmul.f32 0.5, %v2700_v35  ;;  %v9577_v8 = vmul.f32 0.5, %v2701_v20 }
 0x213   : > { %12472 = vst [vmem:[#allocation19_spill] sm:$0xff] %v9555_v18  ;;  %12473 = vst [vmem:[#allocation23_spill] sm:$0xff] %v9557_v24  ;;  %v9579_v55 = vmul.f32 0.5, %v2702_v56  ;;  %v9582_v36 = vmul.f32 0.5, %v9533_v45  ;;  %v9584_v49 = vmul.f32 0.5, %v2704_v2  ;;  %v9586_v28 = vmul.f32 0.5, %v2705_v9 }
 0x214   : > { %12474 = vst [vmem:[#allocation146_spill] sm:$0xff] %v9559_v32  ;;  %12475 = vst [vmem:[#allocation53_spill] sm:$0xff] %v9561_v7  ;;  %v9588_v33 = vmul.f32 0.5, %v2706_v12  ;;  %v9590_v46 = vmul.f32 0.5, %v2707_v63  ;;  %v9592_v29 = vmul.f32 0.5, %v2708_v3  ;;  %v9594_v5 = vmul.f32 0.5, %v2709_v22 }
 0x215   : > { %12476 = vst [vmem:[#allocation58_spill] sm:$0xff] %v9563_v58  ;;  %12477 = vst [vmem:[#allocation61_spill] sm:$0xff] %v9565_v42  ;;  %v9596_v17 = vmul.f32 0.5, %v2710_v25  ;;  %v9598_v1 = vmul.f32 0.5, %v2711_v50  ;;  %v9600_v14 = vmul.f32 0.70710677, %v2684_v26  ;;  %v2674_v48 = vadd.f32 %v9470_v16, %v12495_v21 }
 0x216   : > { %12478 = vst [vmem:[#allocation62_spill] sm:$0xff] %v9567_v60  ;;  %12479 = vst [vmem:[#allocation63_spill] sm:$0xff] %v9569_v27  ;;  %v12503_v26 = vld [vmem:[#allocation145_spill] sm:$0xff]  ;;  %v9622_v16 = vmul.f32 0.70710677, %v2692_v4 }
 0x217   : > { %12480 = vst [vmem:[#allocation64_spill] sm:$0xff] %v9571_v62  ;;  %12481 = vst [vmem:[#allocation66_spill] sm:$0xff] %v9573_v39 }
 0x218   : > { %12482 = vst [vmem:[#allocation68_spill] sm:$0xff] %v9575_v51  ;;  %12483 = vst [vmem:[#allocation69_spill] sm:$0xff] %v9577_v8 }
 0x219   : > { %12484 = vst [vmem:[#allocation76_spill] sm:$0xff] %v9579_v55  ;;  %12485 = vst [vmem:[#allocation77_spill] sm:$0xff] %v9582_v36  ;;  %v9612_v36 = vmul.f32 0.70710677, %v2688_v10  ;;  %v9620_v55 = vmul.f32 0.70710677, %v2691_v53 }
 0x21a   : > { %12486 = vst [vmem:[#allocation78_spill] sm:$0xff] %v9584_v49  ;;  %12487 = vst [vmem:[#allocation5_spill] sm:$0xff] %v9586_v28  ;;  %v9604_v49 = vmul.f32 0.70710677, %v2685_v43  ;;  %v9606_v28 = vmul.f32 0.70710677, %v2686_v13  ;;  %v9628_v13 = vadd.f32 %v9498_v41, %v9511_v30 }
 0x21b   : > { %12488 = vst [vmem:[#allocation147_spill] sm:$0xff] %v9588_v33  ;;  %12489 = vst [vmem:[#allocation148_spill] sm:$0xff] %v9590_v46  ;;  %v9608_v33 = vmul.f32 0.70710677, %v2687_v11  ;;  %v12499_v46 = vld [vmem:[#allocation144_spill] sm:$0xff] }
 0x21c   : > { %12490 = vst [vmem:[#allocation149_spill] sm:$0xff] %v9592_v29  ;;  %12491 = vst [vmem:[#allocation150_spill] sm:$0xff] %v9594_v5  ;;  %v2675_v29 = vadd.f32 %v9472_v44, %v12499_v46  ;;  %v9614_v5 = vmul.f32 0.70710677, %v2689_v15  ;;  %v9624_v43 = vmul.f32 0.70710677, %v2693_v23  ;;  %v9637_v15 = vadd.f32 %v9498_v41, %v2674_v48 }
 0x21d   : > { %12492 = vst [vmem:[#allocation155_spill] sm:$0xff] %v9596_v17  ;;  %12493 = vst [vmem:[#allocation156_spill] sm:$0xff] %v9598_v1  ;;  %v9616_v17 = vmul.f32 0.70710677, %v2690_v6  ;;  %v2676_v1 = vadd.f32 %v9474_v0, %v12503_v26  ;;  %v9630_v44 = vmul.f32 0.70710677, %v2694_v59 }
 0x21e   : > { %12494 = vst [vmem:[#allocation157_spill] sm:$0xff] %v9600_v14  ;;  %12496 = vst [vmem:[#allocation162_spill] sm:$0xff] %v9604_v49  ;;  %v9632_v11 = vmul.f32 0.70710677, %v2695_v61  ;;  %v9634_v10 = vmul.f32 0.70710677, %v2696_v38  ;;  %v9646_v4 = vadd.f32 %v9498_v41, %v2675_v29 }
 0x21f   : > { %12497 = vst [vmem:[#allocation163_spill] sm:$0xff] %v9606_v28  ;;  %12498 = vst [vmem:[#allocation15_spill] sm:$0xff] %v9608_v33  ;;  %v9639_v0 = vmul.f32 0.70710677, %v2697_v19  ;;  %v9641_v6 = vmul.f32 0.70710677, %v2698_v34  ;;  %v9655_v61 = vadd.f32 %v9498_v41, %v2676_v1 }
 0x220   : > { %12500 = vst [vmem:[#allocation167_spill] sm:$0xff] %v9612_v36  ;;  %12501 = vst [vmem:[#allocation168_spill] sm:$0xff] %v9614_v5  ;;  %v9643_v53 = vmul.f32 0.70710677, %v2699_v54  ;;  %v9648_v30 = vmul.f32 0.70710677, %v2700_v35 }
 0x221   : > { %12502 = vst [vmem:[#allocation169_spill] sm:$0xff] %v9616_v17  ;;  %12504 = vst [vmem:[#allocation170_spill] sm:$0xff] %v9620_v55  ;;  %v9650_v23 = vmul.f32 0.70710677, %v2701_v20  ;;  %v9652_v59 = vmul.f32 0.70710677, %v2702_v56 }
 0x222   : > { %12505 = vst [vmem:[#allocation171_spill] sm:$0xff] %v9622_v16  ;;  %12506 = vst [vmem:[#allocation172_spill] sm:$0xff] %v9624_v43  ;;  %v9658_v38 = vmul.f32 0.70710677, %v9533_v45  ;;  %v9660_v19 = vmul.f32 0.70710677, %v2704_v2 }
 0x223   : > { %12507 = vst [vmem:[#allocation173_spill] sm:$0xff] %v9630_v44  ;;  %12508 = vst [vmem:[#allocation174_spill] sm:$0xff] %v9632_v11  ;;  %v9662_v34 = vmul.f32 0.70710677, %v2705_v9  ;;  %v9664_v54 = vmul.f32 0.70710677, %v2706_v12 }
 0x224   : > { %12509 = vst [vmem:[#allocation175_spill] sm:$0xff] %v9634_v10  ;;  %12510 = vst [vmem:[#allocation176_spill] sm:$0xff] %v9639_v0  ;;  %v9666_v46 = vmul.f32 0.70710677, %v2707_v63  ;;  %v9668_v35 = vmul.f32 0.70710677, %v2708_v3 }
 0x225   : > { %12511 = vst [vmem:[#allocation177_spill] sm:$0xff] %v9641_v6  ;;  %12512 = vst [vmem:[#allocation35_spill] sm:$0xff] %v9643_v53  ;;  %v9670_v20 = vmul.f32 0.70710677, %v2709_v22  ;;  %v9672_v56 = vmul.f32 0.70710677, %v2710_v25 }
 0x226   : > { %12513 = vst [vmem:[#allocation38_spill] sm:$0xff] %v9648_v30  ;;  %12514 = vst [vmem:[#allocation41_spill] sm:$0xff] %v9650_v23  ;;  %v9674_v29 = vmul.f32 0.70710677, %v2711_v50  ;;  %v9677_v41 = vmul.f32 0.70710677, %v9628_v13 }
 0x227   : > { %12515 = vst [vmem:[#allocation45_spill] sm:$0xff] %v9652_v59  ;;  %12516 = vst [vmem:[#allocation48_spill] sm:$0xff] %v9658_v38  ;;  %v9680_v45 = vmul.f32 0.70710677, %v9637_v15  ;;  %v9683_v2 = vmul.f32 0.70710677, %v9646_v4 }
 0x228   : > { %12517 = vst [vmem:[#allocation55_spill] sm:$0xff] %v9660_v19  ;;  %12518 = vst [vmem:[#allocation83_spill] sm:$0xff] %v9662_v34  ;;  %v9686_v9 = vmul.f32 0.70710677, %v9655_v61  ;;  %v9689_v12 = vand.u32 2147483647, %v9600_v14 }
 0x229   : > { %12519 = vst [vmem:[#allocation17_spill] sm:$0xff] %v9664_v54  ;;  %12520 = vst [vmem:[#allocation84_spill] sm:$0xff] %v9666_v46  ;;  %v9692_v63 = vand.u32 2147483647, %v9604_v49  ;;  %v9695_v3 = vand.u32 2147483647, %v9606_v28 }
 0x22a   : > { %12521 = vst [vmem:[#allocation85_spill] sm:$0xff] %v9668_v35  ;;  %12522 = vst [vmem:[#allocation86_spill] sm:$0xff] %v9670_v20  ;;  %v9698_v22 = vand.u32 2147483647, %v9608_v33  ;;  %v9701_v25 = vand.u32 2147483647, %v9612_v36 }
 0x22b   : > { %12523 = vst [vmem:[#allocation87_spill] sm:$0xff] %v9672_v56  ;;  %12524 = vst [vmem:[#allocation88_spill] sm:$0xff] %v9674_v29  ;;  %v9704_v50 = vand.u32 2147483647, %v9614_v5  ;;  %v9707_v1 = vand.u32 2147483647, %v9616_v17 }
 0x22c   : > { %12525 = vst [vmem:[#allocation136_spill] sm:$0xff] %v9677_v41  ;;  %12526 = vst [vmem:[#allocation154_spill] sm:$0xff] %v9680_v45  ;;  %v9710_v21 = vand.u32 2147483647, %v9620_v55  ;;  %v9713_v48 = vand.u32 2147483647, %v9622_v16 }
 0x22d   : > { %12527 = vst [vmem:[#allocation59_spill] sm:$0xff] %v9683_v2  ;;  %12528 = vst [vmem:[#allocation60_spill] sm:$0xff] %v9686_v9  ;;  %v9716_v26 = vand.u32 2147483647, %v9624_v43  ;;  %v9719_v8 = vand.u32 2147483647, %v9630_v44 }
 0x22e   : > { %v9722_v51 = vand.u32 2147483647, %v9632_v11  ;;  %v9725_v39 = vand.u32 2147483647, %v9634_v10  ;;  %v9728_v62 = vand.u32 2147483647, %v9639_v0 }
 0x22f   : > { %v9731_v27 = vand.u32 2147483647, %v9641_v6  ;;  %v9734_v60 = vand.u32 2147483647, %v9643_v53  ;;  %v9737_v42 = vand.u32 2147483647, %v9648_v30 }
 0x230   : > { %v9740_v58 = vand.u32 2147483647, %v9650_v23  ;;  %v9743_v7 = vand.u32 2147483647, %v9652_v59  ;;  %v9746_v32 = vand.u32 2147483647, %v9658_v38 }
 0x231   : > { %12529 = vst [vmem:[#allocation44_spill] sm:$0xff] %v9731_v27  ;;  %12530 = vst [vmem:[#allocation16_spill] sm:$0xff] %v9734_v60  ;;  %v9749_v24 = vand.u32 2147483647, %v9660_v19  ;;  %v9752_v18 = vand.u32 2147483647, %v9662_v34 }
 0x232   : > { %12531 = vst [vmem:[#allocation46_spill] sm:$0xff] %v9737_v42  ;;  %12532 = vst [vmem:[#allocation152_spill] sm:$0xff] %v9740_v58  ;;  %v9755_v31 = vand.u32 2147483647, %v9664_v54  ;;  %v9758_v37 = vand.u32 2147483647, %v9666_v46 }
 0x233   : > { %12533 = vst [vmem:[#allocation153_spill] sm:$0xff] %v9743_v7  ;;  %12534 = vst [vmem:[#allocation65_spill] sm:$0xff] %v9746_v32  ;;  %v9761_v52 = vand.u32 2147483647, %v9668_v35  ;;  %v9764_v57 = vand.u32 2147483647, %v9670_v20 }
 0x234   : > { %12535 = vst [vmem:[#allocation80_spill] sm:$0xff] %v9749_v24  ;;  %12536 = vst [vmem:[#allocation81_spill] sm:$0xff] %v9752_v18  ;;  %v9767_v40 = vand.u32 2147483647, %v9672_v56  ;;  %v9770_v47 = vand.u32 2147483647, %v9674_v29 }
 0x235   : > { %12537 = vst [vmem:[#allocation82_spill] sm:$0xff] %v9755_v31  ;;  %12538 = vst [vmem:[#allocation99_spill] sm:$0xff] %v9758_v37  ;;  %v9773_v34 = vand.u32 2147483647, %v9677_v41  ;;  %v9776_v54 = vand.u32 2147483647, %v9680_v45 }
 0x236   : > { %12539 = vst [vmem:[#allocation106_spill] sm:$0xff] %v9761_v52  ;;  %12540 = vst [vmem:[#allocation107_spill] sm:$0xff] %v9764_v57  ;;  %v9779_v46 = vand.u32 2147483647, %v9683_v2  ;;  %v9782_v35 = vand.u32 2147483647, %v9686_v9 }
 0x237   : > { %12541 = vst [vmem:[#allocation108_spill] sm:$0xff] %v9767_v40  ;;  %12542 = vst [vmem:[#allocation109_spill] sm:$0xff] %v9770_v47  ;;  %v2812_v20 = vmul.f32 0.3275911, %v9689_v12  ;;  %v2813_v56 = vmul.f32 0.3275911, %v9692_v63 }
 0x238   : > { %12543 = vst [vmem:[#allocation113_spill] sm:$0xff] %v9773_v34  ;;  %12544 = vst [vmem:[#allocation114_spill] sm:$0xff] %v9776_v54  ;;  %v2814_v19 = vmul.f32 0.3275911, %v9695_v3  ;;  %v2815_v29 = vmul.f32 0.3275911, %v9698_v22 }
 0x239   : > { %12545 = vst [vmem:[#allocation115_spill] sm:$0xff] %v9779_v46  ;;  %12546 = vst [vmem:[#allocation50_spill] sm:$0xff] %v9782_v35  ;;  %v2816_v41 = vmul.f32 0.3275911, %v9701_v25  ;;  %v2817_v38 = vmul.f32 0.3275911, %v9704_v50 }
 0x23a   : > { %v2818_v45 = vmul.f32 0.3275911, %v9707_v1  ;;  %v2819_v2 = vmul.f32 0.3275911, %v9710_v21  ;;  %v2820_v59 = vmul.f32 0.3275911, %v9713_v48 }
 0x23b   : > { %v2821_v9 = vmul.f32 0.3275911, %v9716_v26  ;;  %v2822_v23 = vmul.f32 0.3275911, %v9719_v8  ;;  %v2823_v30 = vmul.f32 0.3275911, %v9722_v51 }
 0x23c   : > { %v2824_v53 = vmul.f32 0.3275911, %v9725_v39  ;;  %v2825_v6 = vmul.f32 0.3275911, %v9728_v62  ;;  %v2826_v0 = vmul.f32 0.3275911, %v9731_v27 }
 0x23d   : > { %v2827_v10 = vmul.f32 0.3275911, %v9734_v60  ;;  %v2828_v11 = vmul.f32 0.3275911, %v9737_v42  ;;  %v2829_v44 = vmul.f32 0.3275911, %v9740_v58 }
 0x23e   : > { %v2830_v43 = vmul.f32 0.3275911, %v9743_v7  ;;  %v2831_v16 = vmul.f32 0.3275911, %v9746_v32  ;;  %v2832_v55 = vmul.f32 0.3275911, %v9749_v24 }
 0x23f   : > { %v9806_v17 = vmul.f32 0.5, %v9628_v13  ;;  %v2833_v5 = vmul.f32 0.3275911, %v9752_v18  ;;  %v2834_v36 = vmul.f32 0.3275911, %v9755_v31  ;;  %v2844_v33 = vadd.f32 1.0, %v2812_v20 }
 0x240   : > { %v9811_v28 = vmul.f32 0.5, %v9637_v15  ;;  %v2835_v49 = vmul.f32 0.3275911, %v9758_v37  ;;  %v2836_v14 = vmul.f32 0.3275911, %v9761_v52  ;;  %v2845_v7 = vadd.f32 1.0, %v2813_v56 }
 0x241   : > { %12547 = vst [vmem:[#allocation33_spill] sm:$0xff] %v9806_v17  ;;  %v9816_v32 = vmul.f32 0.5, %v9646_v4  ;;  %v2837_v24 = vmul.f32 0.3275911, %v9764_v57  ;;  %v2838_v13 = vmul.f32 0.3275911, %v9767_v40  ;;  %4448 = vrcp.f32 %v2844_v33 }
 0x242   : > { %12548 = vst [vmem:[#allocation34_spill] sm:$0xff] %v9811_v28  ;;  %v2846_v17 = vadd.f32 1.0, %v2814_v19  ;;  %v9821_v18 = vmul.f32 0.5, %v9655_v61  ;;  %v2839_v20 = vmul.f32 0.3275911, %v9770_v47  ;;  %v2847_v28 = vadd.f32 1.0, %v2815_v29 }
 0x243   : > { %12549 = vst [vmem:[#allocation125_spill] sm:$0xff] %v9816_v32  ;;  %v2840_v15 = vmul.f32 0.3275911, %v9773_v34  ;;  %v2841_v37 = vmul.f32 0.3275911, %v9776_v54  ;;  %v2848_v52 = vadd.f32 1.0, %v2816_v41  ;;  %4450 = vrcp.f32 %v2845_v7 }
 0x244   : > { %12550 = vst [vmem:[#allocation129_spill] sm:$0xff] %v9821_v18  ;;  %v2842_v56 = vmul.f32 0.3275911, %v9779_v46  ;;  %v2843_v4 = vmul.f32 0.3275911, %v9782_v35  ;;  %v2849_v32 = vadd.f32 1.0, %v2817_v38  ;;  %4452 = vrcp.f32 %v2846_v17 }
 0x245   : > { %v2850_v57 = vadd.f32 1.0, %v2818_v45  ;;  %v2851_v19 = vadd.f32 1.0, %v2819_v2  ;;  %v2852_v40 = vadd.f32 1.0, %v2820_v59  ;;  %v2853_v61 = vadd.f32 1.0, %v2821_v9 }
 0x246   : > { %v2854_v18 = vadd.f32 1.0, %v2822_v23  ;;  %v2855_v47 = vadd.f32 1.0, %v2823_v30  ;;  %v2856_v31 = vadd.f32 1.0, %v2824_v53  ;;  %4454 = vrcp.f32 %v2847_v28 }
 0x247   : > { %v2857_v29 = vadd.f32 1.0, %v2825_v6  ;;  %v2858_v34 = vadd.f32 1.0, %v2826_v0  ;;  %v2859_v54 = vadd.f32 1.0, %v2827_v10  ;;  %4456 = vrcp.f32 %v2848_v52 }
 0x248   : > { %v2860_v46 = vadd.f32 1.0, %v2828_v11  ;;  %v2861_v41 = vadd.f32 1.0, %v2829_v44  ;;  %v2862_v33 = vadd.f32 1.0, %v2830_v43  ;;  %4458 = vrcp.f32 %v2849_v32 }
 0x249   : > { %v2863_v35 = vadd.f32 1.0, %v2831_v16  ;;  %v2864_v38 = vadd.f32 1.0, %v2832_v55  ;;  %v9828_v45 = vadd.f32 1.0, %v2833_v5  ;;  %4460 = vrcp.f32 %v2850_v57 }
 0x24a   : > { %v9830_v7 = vadd.f32 1.0, %v2834_v36  ;;  %v9832_v17 = vadd.f32 1.0, %v2835_v49  ;;  %v9834_v30 = vadd.f32 1.0, %v2836_v14  ;;  %4462 = vrcp.f32 %v2851_v19 }
 0x24b   : > { %v9836_v28 = vadd.f32 1.0, %v2837_v24  ;;  %v9838_v10 = vadd.f32 1.0, %v2838_v13  ;;  %v9840_v52 = vadd.f32 1.0, %v2839_v20  ;;  %4464 = vrcp.f32 %v2852_v40 }
 0x24c   : > { %v9842_v32 = vadd.f32 1.0, %v2840_v15  ;;  %v9844_v55 = vadd.f32 1.0, %v2841_v37  ;;  %v9846_v5 = vadd.f32 1.0, %v2842_v56  ;;  %4466 = vrcp.f32 %v2853_v61 }
 0x24d   : > { %v9848_v57 = vadd.f32 1.0, %v2843_v4  ;;  %4468 = vrcp.f32 %v2854_v18  ;;  %v3228_v36 = vsub.f32 0.0, %v9689_v12  ;;  %v3229_v24 = vsub.f32 0.0, %v9692_v63 }
 0x24e   : > { %4470 = vrcp.f32 %v2855_v47  ;;  %v3230_v49 = vsub.f32 0.0, %v9695_v3  ;;  %v3231_v14 = vsub.f32 0.0, %v9698_v22  ;;  %v3232_v40 = vsub.f32 0.0, %v9701_v25  ;;  %v9858_v44 = vpop.eup %4448 }
 0x24f   : > { %4472 = vrcp.f32 %v2856_v31  ;;  %v3233_v37 = vsub.f32 0.0, %v9704_v50  ;;  %v3234_v16 = vsub.f32 0.0, %v9707_v1  ;;  %v3235_v43 = vsub.f32 0.0, %v9710_v21  ;;  %12551 = vst [vmem:[#allocation130_spill] sm:$0xff] %v9858_v44 }
 0x250   : > { %4474 = vrcp.f32 %v2857_v29  ;;  %v3236_v18 = vsub.f32 0.0, %v9713_v48  ;;  %v3237_v47 = vsub.f32 0.0, %v9716_v26  ;;  %v9863_v0 = vpop.eup %4450  ;;  %v3239_v31 = vsub.f32 0.0, %v9722_v51 }
 0x251   : > { %12552 = vst [vmem:[#allocation131_spill] sm:$0xff] %v9863_v0  ;;  %4476 = vrcp.f32 %v2858_v34  ;;  %v9868_v23 = vpop.eup %4452  ;;  %v9906_v59 = vmul.f32 %v3229_v24, %v9692_v63  ;;  %v9915_v34 = vmul.f32 %v3231_v14, %v9698_v22  ;;  %v9932_v22 = vmul.f32 %v3234_v16, %v9707_v1 }
 0x252   : > { %12553 = vst [vmem:[#allocation14_spill] sm:$0xff] %v9868_v23  ;;  %4478 = vrcp.f32 %v2859_v54  ;;  %v2942_v63 = vmul.f32 1.0614054, %v9868_v23 }
 0x253   : > { %v9873_v13 = vpop.eup %4454  ;;  %4480 = vrcp.f32 %v2860_v46  ;;  %12575 = vst [vmem:[#allocation92_spill] sm:$0xff] %v9906_v59  ;;  %12578 = vst [vmem:[#allocation160_spill] sm:$0xff] %v9915_v34 }
 0x254   : > { %12554 = vst [vmem:[#allocation135_spill] sm:$0xff] %v9873_v13  ;;  %v9878_v19 = vpop.eup %4456  ;;  %4482 = vrcp.f32 %v2861_v41  ;;  %v9903_v41 = vmul.f32 %v3228_v36, %v9689_v12  ;;  %v2941_v12 = vmul.f32 1.0614054, %v9863_v0  ;;  %v9926_v36 = vmul.f32 %v3233_v37, %v9704_v50  ;;  %12583 = vst [vmem:[#allocation111_spill] sm:$0xff] %v9932_v22 }
 0x255   : > { %12557 = vst [vmem:[#allocation151_spill] sm:$0xff] %v9878_v19  ;;  %v9883_v6 = vpop.eup %4458  ;;  %4484 = vrcp.f32 %v2862_v33  ;;  %v2940_v33 = vmul.f32 1.0614054, %v9858_v44  ;;  %v9942_v50 = vmul.f32 %v3236_v18, %v9713_v48  ;;  %v2944_v1 = vmul.f32 1.0614054, %v9878_v19 }
 0x256   : > { %12561 = vst [vmem:[#allocation158_spill] sm:$0xff] %v9883_v6  ;;  %v9888_v20 = vpop.eup %4460  ;;  %4486 = vrcp.f32 %v2863_v35  ;;  %12574 = vst [vmem:[#allocation91_spill] sm:$0xff] %v9903_v41  ;;  %v2945_v48 = vmul.f32 1.0614054, %v9883_v6  ;;  %v4338_v37 = vadd.f32 -1.4531521, %v2942_v63 }
 0x257   : > { %12565 = vst [vmem:[#allocation159_spill] sm:$0xff] %v9888_v20  ;;  %v9893_v29 = vpop.eup %4462  ;;  %4488 = vrcp.f32 %v2864_v38  ;;  %v9912_v38 = vmul.f32 %v3230_v49, %v9695_v3  ;;  %12581 = vst [vmem:[#allocation165_spill] sm:$0xff] %v9926_v36  ;;  %v4336_v3 = vadd.f32 -1.4531521, %v2940_v33  ;;  %v9945_v49 = vmul.f32 %v3237_v47, %v9716_v26 }
 0x258   : > { %12569 = vst [vmem:[#allocation54_spill] sm:$0xff] %v9893_v29  ;;  %v9898_v11 = vpop.eup %4464  ;;  %4490 = vrcp.f32 %v9828_v45  ;;  %v9918_v45 = vmul.f32 %v3232_v40, %v9701_v25  ;;  %v9935_v25 = vmul.f32 %v3235_v43, %v9710_v21  ;;  %12586 = vst [vmem:[#allocation117_spill] sm:$0xff] %v9942_v50  ;;  %v12589_v21 = vsub.f32 0.0, %v9719_v8 }
 0x259   : > { %12572 = vst [vmem:[#allocation90_spill] sm:$0xff] %v9898_v11  ;;  %v9908_v54 = vpop.eup %4466  ;;  %4492 = vrcp.f32 %v9830_v7  ;;  %12577 = vst [vmem:[#allocation89_spill] sm:$0xff] %v9912_v38  ;;  %v4337_v26 = vadd.f32 -1.4531521, %v2941_v12  ;;  %v3004_v43 = vmul.f32 %v9858_v44, %v4336_v3  ;;  %v4340_v12 = vadd.f32 -1.4531521, %v2944_v1 }
 0x25a   : > { %12576 = vst [vmem:[#allocation97_spill] sm:$0xff] %v9908_v54  ;;  %12579 = vst [vmem:[#allocation161_spill] sm:$0xff] %v9918_v45  ;;  %v9920_v15 = vpop.eup %4468  ;;  %4494 = vrcp.f32 %v9832_v17  ;;  %v2943_v17 = vmul.f32 1.0614054, %v9873_v13  ;;  %v9954_v14 = vmul.f32 %v12589_v21, %v9719_v8  ;;  %v2947_v8 = vmul.f32 1.0614054, %v9893_v29 }
 0x25b   : > { %12580 = vst [vmem:[#allocation164_spill] sm:$0xff] %v9920_v15  ;;  %v9928_v7 = vpop.eup %4470  ;;  %4496 = vrcp.f32 %v9834_v30  ;;  %12584 = vst [vmem:[#allocation112_spill] sm:$0xff] %v9935_v25  ;;  %v2949_v18 = vmul.f32 1.0614054, %v9908_v54  ;;  %v4341_v3 = vadd.f32 -1.4531521, %v2945_v48  ;;  %v3005_v21 = vmul.f32 %v9863_v0, %v4337_v26 }
 0x25c   : > { %12582 = vst [vmem:[#allocation110_spill] sm:$0xff] %v9928_v7  ;;  %v9937_v24 = vpop.eup %4472  ;;  %4498 = vrcp.f32 %v9836_v28  ;;  %12587 = vst [vmem:[#allocation118_spill] sm:$0xff] %v9945_v49  ;;  %v9957_v28 = vmul.f32 %v3239_v31, %v9722_v51  ;;  %v4339_v47 = vadd.f32 -1.4531521, %v2943_v17  ;;  %v2951_v33 = vmul.f32 1.0614054, %v9928_v7 }
 0x25d   : > { %12585 = vst [vmem:[#allocation116_spill] sm:$0xff] %v9937_v24  ;;  %v9947_v30 = vpop.eup %4474  ;;  %4500 = vrcp.f32 %v9838_v10  ;;  %12590 = vst [vmem:[#allocation120_spill] sm:$0xff] %v9954_v14  ;;  %v2946_v10 = vmul.f32 1.0614054, %v9888_v20  ;;  %v3006_v9 = vmul.f32 %v9868_v23, %v4338_v37  ;;  %v4345_v56 = vadd.f32 -1.4531521, %v2949_v18 }
 0x25e   : > { %12588 = vst [vmem:[#allocation119_spill] sm:$0xff] %v9947_v30  ;;  %12591 = vst [vmem:[#allocation22_spill] sm:$0xff] %v9957_v28  ;;  %v9959_v40 = vpop.eup %4476  ;;  %4502 = vrcp.f32 %v9840_v52  ;;  %v2948_v52 = vmul.f32 1.0614054, %v9898_v11  ;;  %v2953_v17 = vmul.f32 1.0614054, %v9947_v30  ;;  %v3008_v53 = vmul.f32 %v9878_v19, %v4340_v12 }
 0x25f   : > { %12592 = vst [vmem:[#allocation24_spill] sm:$0xff] %v9959_v40  ;;  %v9963_v16 = vpop.eup %4478  ;;  %4504 = vrcp.f32 %v9842_v32  ;;  %v2950_v32 = vmul.f32 1.0614054, %v9920_v15  ;;  %v4342_v35 = vadd.f32 -1.4531521, %v2946_v10 }
 0x260   : > { %12593 = vst [vmem:[#allocation93_spill] sm:$0xff] %v9963_v16  ;;  %v9969_v51 = vpop.eup %4480  ;;  %4506 = vrcp.f32 %v9844_v55  ;;  %v2952_v55 = vmul.f32 1.0614054, %v9937_v24  ;;  %v2954_v1 = vmul.f32 1.0614054, %v9959_v40 }
 0x261   : > { %12594 = vst [vmem:[#allocation74_spill] sm:$0xff] %v9969_v51  ;;  %v9974_v31 = vpop.eup %4482  ;;  %4508 = vrcp.f32 %v9846_v5  ;;  %v4343_v5 = vadd.f32 -1.4531521, %v2947_v8  ;;  %v4344_v61 = vadd.f32 -1.4531521, %v2948_v52  ;;  %v3009_v52 = vmul.f32 %v9883_v6, %v4341_v3 }
 0x262   : > { %12595 = vst [vmem:[#allocation49_spill] sm:$0xff] %v9974_v31  ;;  %v9979_v63 = vpop.eup %4484  ;;  %4510 = vrcp.f32 %v9848_v57  ;;  %v3007_v57 = vmul.f32 %v9873_v13, %v4339_v47  ;;  %v2955_v48 = vmul.f32 1.0614054, %v9963_v16  ;;  %v4346_v26 = vadd.f32 -1.4531521, %v2950_v32 }
 0x263   : > { %12596 = vst [vmem:[#allocation13_spill] sm:$0xff] %v9979_v63  ;;  %v9984_v46 = vpop.eup %4486  ;;  %v4347_v58 = vadd.f32 -1.4531521, %v2951_v33  ;;  %v2956_v37 = vmul.f32 1.0614054, %v9969_v51  ;;  %v3010_v49 = vmul.f32 %v9888_v20, %v4342_v35  ;;  %v3011_v32 = vmul.f32 %v9893_v29, %v4343_v5 }
 0x264   : > { %12597 = vst [vmem:[#allocation21_spill] sm:$0xff] %v9984_v46  ;;  %v9988_v2 = vpop.eup %4488  ;;  %v2957_v8 = vmul.f32 1.0614054, %v9974_v31  ;;  %v4348_v28 = vadd.f32 -1.4531521, %v2952_v55  ;;  %v3012_v25 = vmul.f32 %v9898_v11, %v4344_v61  ;;  %v3013_v55 = vmul.f32 %v9908_v54, %v4345_v56 }
 0x265   : > { %12598 = vst [vmem:[#allocation25_spill] sm:$0xff] %v9988_v2  ;;  %v9992_v4 = vpop.eup %4490  ;;  %v2958_v47 = vmul.f32 1.0614054, %v9979_v63  ;;  %v4349_v14 = vadd.f32 -1.4531521, %v2953_v17  ;;  %v3014_v17 = vmul.f32 %v9920_v15, %v4346_v26  ;;  %v3015_v35 = vmul.f32 %v9928_v7, %v4347_v58 }
 0x266   : > { %12599 = vst [vmem:[#allocation26_spill] sm:$0xff] %v9992_v4  ;;  %v9996_v10 = vpop.eup %4492  ;;  %v2959_v12 = vmul.f32 1.0614054, %v9984_v46  ;;  %v4350_v50 = vadd.f32 -1.4531521, %v2954_v1  ;;  %v3016_v38 = vmul.f32 %v9937_v24, %v4348_v28 }
 0x267   : > { %12600 = vst [vmem:[#allocation28_spill] sm:$0xff] %v9996_v10  ;;  %v10001_v18 = vpop.eup %4494  ;;  %v2960_v3 = vmul.f32 1.0614054, %v9988_v2  ;;  %v4351_v36 = vadd.f32 -1.4531521, %v2955_v48  ;;  %v3017_v41 = vmul.f32 %v9947_v30, %v4349_v14 }
 0x268   : > { %12601 = vst [vmem:[#allocation29_spill] sm:$0xff] %v10001_v18  ;;  %v10006_v33 = vpop.eup %4496  ;;  %v4352_v5 = vadd.f32 -1.4531521, %v2956_v37  ;;  %v4353_v34 = vadd.f32 -1.4531521, %v2957_v8  ;;  %v3018_v37 = vmul.f32 %v9959_v40, %v4350_v50 }
 0x269   : > { %12602 = vst [vmem:[#allocation30_spill] sm:$0xff] %v10006_v33  ;;  %v10011_v22 = vpop.eup %4498  ;;  %v10019_v1 = vadd.f32 1.4214138, %v3004_v43  ;;  %v2961_v56 = vmul.f32 1.0614054, %v9992_v4 }
 0x26a   : > { %12603 = vst [vmem:[#allocation32_spill] sm:$0xff] %v10011_v22  ;;  %v10016_v45 = vpop.eup %4500  ;;  %v4354_v59 = vadd.f32 -1.4531521, %v2958_v47  ;;  %v10025_v48 = vadd.f32 1.4214138, %v3005_v21  ;;  %v3019_v47 = vmul.f32 %v9963_v16, %v4351_v36  ;;  %v3021_v36 = vmul.f32 %v9974_v31, %v4353_v34 }
 0x26b   : > { %12604 = vst [vmem:[#allocation67_spill] sm:$0xff] %v10016_v45  ;;  %v10021_v61 = vpop.eup %4502  ;;  %v2962_v58 = vmul.f32 1.0614054, %v9996_v10  ;;  %v4355_v42 = vadd.f32 -1.4531521, %v2959_v12  ;;  %v3020_v12 = vmul.f32 %v9969_v51, %v4352_v5 }
 0x26c   : > { %12605 = vst [vmem:[#allocation18_spill] sm:$0xff] %v10021_v61  ;;  %v10027_v26 = vpop.eup %4504  ;;  %v10031_v8 = vadd.f32 1.4214138, %v3006_v9  ;;  %v2963_v43 = vmul.f32 1.0614054, %v10001_v18  ;;  %v3022_v7 = vmul.f32 %v9979_v63, %v4354_v59 }
 0x26d   : > { %12606 = vst [vmem:[#allocation71_spill] sm:$0xff] %v10027_v26  ;;  %v10033_v28 = vpop.eup %4506  ;;  %v4356_v60 = vadd.f32 -1.4531521, %v2960_v3  ;;  %v10037_v27 = vadd.f32 1.4214138, %v3007_v57  ;;  %v3023_v51 = vmul.f32 %v9984_v46, %v4355_v42 }
 0x26e   : > { %12607 = vst [vmem:[#allocation75_spill] sm:$0xff] %v10033_v28  ;;  %v10039_v14 = vpop.eup %4508  ;;  %v2964_v21 = vmul.f32 1.0614054, %v10006_v33  ;;  %v2965_v30 = vmul.f32 1.0614054, %v10011_v22 }
 0x26f   : > { %12608 = vst [vmem:[#allocation94_spill] sm:$0xff] %v10039_v14  ;;  %v10044_v50 = vadd.f32 1.4214138, %v3008_v53  ;;  %v10046_v9 = vpop.eup %4510  ;;  %v2966_v40 = vmul.f32 1.0614054, %v10016_v45 }
 0x270   : > { %12610 = vst [vmem:[#allocation101_spill] sm:$0xff] %v10046_v9  ;;  %v2967_v3 = vmul.f32 1.0614054, %v10021_v61  ;;  %v4357_v24 = vadd.f32 -1.4531521, %v2961_v56  ;;  %v3024_v56 = vmul.f32 %v9988_v2, %v4356_v60 }
 0x271   : > { %12609 = vst [vmem:[#allocation100_spill] sm:$0xff] %v10044_v50  ;;  %v2968_v57 = vmul.f32 1.0614054, %v10027_v26  ;;  %v4358_v16 = vadd.f32 -1.4531521, %v2962_v58 }
 0x272   : > { %v3041_v15 = vadd.f32 1.4214138, %v3009_v52  ;;  %v2969_v54 = vmul.f32 1.0614054, %v10033_v28  ;;  %v2970_v53 = vmul.f32 1.0614054, %v10039_v14  ;;  %v3025_v58 = vmul.f32 %v9992_v4, %v4357_v24 }
 0x273   : > { %v4359_v5 = vadd.f32 -1.4531521, %v2963_v43  ;;  %v2971_v11 = vmul.f32 1.0614054, %v10046_v9  ;;  %v4360_v29 = vadd.f32 -1.4531521, %v2964_v21  ;;  %v3026_v52 = vmul.f32 %v9996_v10, %v4358_v16 }
 0x274   : > { %v4361_v20 = vadd.f32 -1.4531521, %v2965_v30  ;;  %v4362_v34 = vadd.f32 -1.4531521, %v2966_v40  ;;  %v4363_v31 = vadd.f32 -1.4531521, %v2967_v3 }
 0x275   : > { %v3042_v6 = vadd.f32 1.4214138, %v3010_v49  ;;  %v4364_v59 = vadd.f32 -1.4531521, %v2968_v57  ;;  %v3043_v63 = vadd.f32 1.4214138, %v3011_v32  ;;  %v3027_v42 = vmul.f32 %v10001_v18, %v4359_v5 }
 0x276   : > { %v3044_v19 = vadd.f32 1.4214138, %v3012_v25  ;;  %v4365_v50 = vadd.f32 -1.4531521, %v2969_v54  ;;  %v4366_v43 = vadd.f32 -1.4531521, %v2970_v53  ;;  %v3028_v30 = vmul.f32 %v10006_v33, %v4360_v29 }
 0x277   : > { %v3045_v46 = vadd.f32 1.4214138, %v3013_v55  ;;  %v4367_v13 = vadd.f32 -1.4531521, %v2971_v11  ;;  %v3029_v60 = vmul.f32 %v10011_v22, %v4361_v20  ;;  %v3046_v40 = vadd.f32 1.4214138, %v3014_v17 }
 0x278   : > { %v3030_v21 = vmul.f32 %v10016_v45, %v4362_v34  ;;  %v3031_v24 = vmul.f32 %v10021_v61, %v4363_v31  ;;  %v3047_v49 = vadd.f32 1.4214138, %v3015_v35  ;;  %v3048_v3 = vadd.f32 1.4214138, %v3016_v38 }
 0x279   : > { %v3032_v16 = vmul.f32 %v10027_v26, %v4364_v59  ;;  %v3049_v25 = vadd.f32 1.4214138, %v3017_v41  ;;  %v3050_v54 = vadd.f32 1.4214138, %v3018_v37  ;;  %v3051_v32 = vadd.f32 1.4214138, %v3019_v47 }
 0x27a   : > { %v3033_v57 = vmul.f32 %v10033_v28, %v4365_v50  ;;  %v3034_v11 = vmul.f32 %v10039_v14, %v4366_v43  ;;  %v3052_v55 = vadd.f32 1.4214138, %v3020_v12  ;;  %v3053_v29 = vadd.f32 1.4214138, %v3021_v36  ;;  %v12615_v43 = vld [vmem:[#allocation135_spill] sm:$0xff] }
 0x27b   : > { %v3035_v20 = vmul.f32 %v10046_v9, %v4367_v13  ;;  %v3054_v17 = vadd.f32 1.4214138, %v3022_v7  ;;  %v3055_v53 = vadd.f32 1.4214138, %v3023_v51  ;;  %v3056_v5 = vadd.f32 1.4214138, %v3024_v56 }
 0x27c   : > { %v3057_v34 = vadd.f32 1.4214138, %v3025_v58  ;;  %v3058_v31 = vadd.f32 1.4214138, %v3026_v52  ;;  %v3059_v35 = vadd.f32 1.4214138, %v3027_v42  ;;  %v3068_v56 = vmul.f32 %v9858_v44, %v10019_v1 }
 0x27d   : > { %v12611_v38 = vsub.f32 0.0, %v9725_v39  ;;  %v3060_v37 = vadd.f32 1.4214138, %v3028_v30  ;;  %v3061_v47 = vadd.f32 1.4214138, %v3029_v60  ;;  %v12613_v12 = vsub.f32 0.0, %v9728_v62 }
 0x27e   : > { %v3062_v50 = vadd.f32 1.4214138, %v3030_v21  ;;  %v3063_v13 = vadd.f32 1.4214138, %v3031_v24  ;;  %v3064_v7 = vadd.f32 1.4214138, %v3032_v16  ;;  %v3070_v52 = vmul.f32 %v9868_v23, %v10031_v8 }
 0x27f   : > { %v10072_v41 = vmul.f32 %v12611_v38, %v9725_v39  ;;  %v10077_v36 = vmul.f32 %v12613_v12, %v9728_v62  ;;  %v3065_v51 = vadd.f32 1.4214138, %v3033_v57  ;;  %v3066_v58 = vadd.f32 1.4214138, %v3034_v11  ;;  %v12616_v30 = vld [vmem:[#allocation100_spill] sm:$0xff]  ;;  %v12617_v62 = vld [vmem:[#allocation151_spill] sm:$0xff] }
 0x280   : > { %v3067_v59 = vadd.f32 1.4214138, %v3035_v20  ;;  %v3069_v39 = vmul.f32 %v9863_v0, %v10025_v48  ;;  %v3071_v42 = vmul.f32 %v12615_v43, %v10037_v27  ;;  %v3072_v60 = vmul.f32 %v12617_v62, %v12616_v30  ;;  %v12618_v21 = vld [vmem:[#allocation158_spill] sm:$0xff]  ;;  %v12619_v16 = vld [vmem:[#allocation159_spill] sm:$0xff]  ;;  %v12622_v12 = vld [vmem:[#allocation97_spill] sm:$0xff] }
 0x281   : > { %12612 = vst [vmem:[#allocation102_spill] sm:$0xff] %v10072_v41  ;;  %12614 = vst [vmem:[#allocation20_spill] sm:$0xff] %v10077_v36  ;;  %v3073_v24 = vmul.f32 %v12618_v21, %v3041_v15  ;;  %v3074_v57 = vmul.f32 %v12619_v16, %v3042_v6  ;;  %v12620_v38 = vld [vmem:[#allocation54_spill] sm:$0xff]  ;;  %v3077_v36 = vmul.f32 %v12622_v12, %v3045_v46  ;;  %v12623_v48 = vld [vmem:[#allocation164_spill] sm:$0xff] }
 0x282   : > { %v3075_v1 = vmul.f32 %v12620_v38, %v3043_v63  ;;  %v12621_v11 = vld [vmem:[#allocation90_spill] sm:$0xff]  ;;  %v3078_v41 = vmul.f32 %v12623_v48, %v3046_v40  ;;  %v12625_v23 = vld [vmem:[#allocation116_spill] sm:$0xff]  ;;  %v12626_v27 = vld [vmem:[#allocation119_spill] sm:$0xff]  ;;  %v3088_v40 = vmul.f32 %v9988_v2, %v3056_v5  ;;  %v3098_v5 = vmul.f32 %v10039_v14, %v3066_v58 }
 0x283   : > { %v3076_v20 = vmul.f32 %v12621_v11, %v3044_v19  ;;  %v12624_v0 = vld [vmem:[#allocation110_spill] sm:$0xff]  ;;  %v3080_v44 = vmul.f32 %v12625_v23, %v3048_v3  ;;  %v3081_v43 = vmul.f32 %v12626_v27, %v3049_v25  ;;  %v12627_v9 = vld [vmem:[#allocation24_spill] sm:$0xff]  ;;  %v12628_v62 = vld [vmem:[#allocation93_spill] sm:$0xff]  ;;  %v3090_v3 = vmul.f32 %v9996_v10, %v3058_v31 }
 0x284   : > { %v3079_v8 = vmul.f32 %v12624_v0, %v3047_v49  ;;  %v3082_v30 = vmul.f32 %v12627_v9, %v3050_v54  ;;  %v3083_v15 = vmul.f32 %v12628_v62, %v3051_v32  ;;  %v12629_v21 = vld [vmem:[#allocation74_spill] sm:$0xff]  ;;  %v12630_v16 = vld [vmem:[#allocation49_spill] sm:$0xff]  ;;  %v3089_v49 = vmul.f32 %v9992_v4, %v3057_v34  ;;  %v12641_v14 = vld [vmem:[#allocation131_spill] sm:$0xff] }
 0x285   : > { %v3084_v6 = vmul.f32 %v12629_v21, %v3052_v55  ;;  %v3085_v63 = vmul.f32 %v12630_v16, %v3053_v29  ;;  %v12631_v38 = vld [vmem:[#allocation13_spill] sm:$0xff]  ;;  %v3091_v25 = vmul.f32 %v10001_v18, %v3059_v35  ;;  %v3092_v54 = vmul.f32 %v10006_v33, %v3060_v37  ;;  %v12634_v33 = vld [vmem:[#allocation44_spill] sm:$0xff] }
 0x286   : > { %v3086_v19 = vmul.f32 %v12631_v38, %v3054_v17  ;;  %v12632_v11 = vld [vmem:[#allocation21_spill] sm:$0xff]  ;;  %v3093_v32 = vmul.f32 %v10011_v22, %v3061_v47  ;;  %v3094_v55 = vmul.f32 %v10016_v45, %v3062_v50  ;;  %v3095_v29 = vmul.f32 %v10021_v61, %v3063_v13 }
 0x287   : > { %v3087_v46 = vmul.f32 %v12632_v11, %v3055_v53  ;;  %v3096_v17 = vmul.f32 %v10027_v26, %v3064_v7  ;;  %v3097_v53 = vmul.f32 %v10033_v28, %v3065_v51  ;;  %v4368_v11 = vadd.f32 -0.28449672, %v3068_v56  ;;  %v12633_v34 = vld [vmem:[#allocation101_spill] sm:$0xff]  ;;  %v12637_v26 = vld [vmem:[#allocation16_spill] sm:$0xff] }
 0x288   : > { %v3099_v4 = vmul.f32 %v12633_v34, %v3067_v59  ;;  %v4369_v31 = vadd.f32 -0.28449672, %v3069_v39  ;;  %v4370_v10 = vadd.f32 -0.28449672, %v3070_v52  ;;  %v4371_v35 = vadd.f32 -0.28449672, %v3071_v42 }
 0x289   : > { %v4372_v18 = vadd.f32 -0.28449672, %v3072_v60  ;;  %v4373_v37 = vadd.f32 -0.28449672, %v3073_v24  ;;  %v12635_v47 = vsub.f32 0.0, %v12634_v33  ;;  %v12638_v51 = vsub.f32 0.0, %v12637_v26 }
 0x28a   : > { %v4374_v13 = vadd.f32 -0.28449672, %v3074_v57  ;;  %v4375_v61 = vadd.f32 -0.28449672, %v3075_v1  ;;  %v4376_v7 = vadd.f32 -0.28449672, %v3076_v20  ;;  %v3133_v28 = vmul.f32 %v12641_v14, %v4369_v31 }
 0x28b   : > { %v10119_v50 = vmul.f32 %v12635_v47, %v12634_v33  ;;  %v10124_v56 = vmul.f32 %v12638_v51, %v12637_v26  ;;  %v4377_v58 = vadd.f32 -0.28449672, %v3077_v36  ;;  %v4378_v59 = vadd.f32 -0.28449672, %v3078_v41  ;;  %v12640_v52 = vld [vmem:[#allocation130_spill] sm:$0xff]  ;;  %v12643_v26 = vld [vmem:[#allocation135_spill] sm:$0xff] }
 0x28c   : > { %v4379_v39 = vadd.f32 -0.28449672, %v3079_v8  ;;  %v3132_v42 = vmul.f32 %v12640_v52, %v4368_v11  ;;  %v4380_v60 = vadd.f32 -0.28449672, %v3080_v44  ;;  %v4381_v24 = vadd.f32 -0.28449672, %v3081_v43 }
 0x28d   : > { %12636 = vst [vmem:[#allocation7_spill] sm:$0xff] %v10119_v50  ;;  %12639 = vst [vmem:[#allocation166_spill] sm:$0xff] %v10124_v56  ;;  %v4382_v34 = vadd.f32 -0.28449672, %v3082_v30  ;;  %v4383_v33 = vadd.f32 -0.28449672, %v3083_v15  ;;  %v3135_v51 = vmul.f32 %v12643_v26, %v4371_v35 }
 0x28e   : > { %v4384_v47 = vadd.f32 -0.28449672, %v3084_v6  ;;  %v4385_v57 = vadd.f32 -0.28449672, %v3085_v63  ;;  %v12642_v1 = vld [vmem:[#allocation14_spill] sm:$0xff]  ;;  %v12644_v56 = vld [vmem:[#allocation151_spill] sm:$0xff] }
 0x28f   : > { %v3134_v20 = vmul.f32 %v12642_v1, %v4370_v10  ;;  %v4386_v50 = vadd.f32 -0.28449672, %v3086_v19  ;;  %v4387_v45 = vadd.f32 -0.28449672, %v3087_v46  ;;  %v4388_v22 = vadd.f32 -0.28449672, %v3088_v40 }
 0x290   : > { %v4389_v36 = vadd.f32 -0.28449672, %v3089_v49  ;;  %v4390_v41 = vadd.f32 -0.28449672, %v3090_v3  ;;  %v4391_v8 = vadd.f32 -0.28449672, %v3091_v25  ;;  %v3136_v11 = vmul.f32 %v12644_v56, %v4372_v18 }
 0x291   : > { %v4392_v44 = vadd.f32 -0.28449672, %v3092_v54  ;;  %v4393_v43 = vadd.f32 -0.28449672, %v3093_v32  ;;  %v4394_v30 = vadd.f32 -0.28449672, %v3094_v55  ;;  %v3141_v3 = vmul.f32 %v12622_v12, %v4377_v58 }
 0x292   : > { %v12645_v52 = vld [vmem:[#allocation158_spill] sm:$0xff]  ;;  %v4395_v15 = vadd.f32 -0.28449672, %v3095_v29  ;;  %v4396_v6 = vadd.f32 -0.28449672, %v3096_v17  ;;  %v12646_v14 = vld [vmem:[#allocation159_spill] sm:$0xff]  ;;  %v3142_v18 = vmul.f32 %v12623_v48, %v4378_v59  ;;  %v3143_v25 = vmul.f32 %v12624_v0, %v4379_v39 }
 0x293   : > { %v3137_v31 = vmul.f32 %v12645_v52, %v4373_v37  ;;  %v4397_v63 = vadd.f32 -0.28449672, %v3097_v53  ;;  %v3138_v10 = vmul.f32 %v12646_v14, %v4374_v13  ;;  %v4398_v19 = vadd.f32 -0.28449672, %v3098_v5  ;;  %v12647_v40 = vld [vmem:[#allocation54_spill] sm:$0xff]  ;;  %v12649_v53 = vld [vmem:[#allocation21_spill] sm:$0xff] }
 0x294   : > { %v4399_v46 = vadd.f32 -0.28449672, %v3099_v4  ;;  %v3139_v1 = vmul.f32 %v12647_v40, %v4375_v61  ;;  %v12648_v35 = vld [vmem:[#allocation90_spill] sm:$0xff]  ;;  %v3144_v54 = vmul.f32 %v12625_v23, %v4380_v60  ;;  %v3145_v32 = vmul.f32 %v12626_v27, %v4381_v24  ;;  %v12651_v58 = vld [vmem:[#allocation28_spill] sm:$0xff]  ;;  %v12652_v39 = vld [vmem:[#allocation29_spill] sm:$0xff] }
 0x295   : > { %v3140_v49 = vmul.f32 %v12648_v35, %v4376_v7  ;;  %v3146_v55 = vmul.f32 %v12627_v9, %v4382_v34  ;;  %v3147_v29 = vmul.f32 %v12628_v62, %v4383_v33  ;;  %v3148_v4 = vmul.f32 %v12629_v21, %v4384_v47  ;;  %v12650_v13 = vld [vmem:[#allocation26_spill] sm:$0xff]  ;;  %v12654_v9 = vld [vmem:[#allocation32_spill] sm:$0xff]  ;;  %v12655_v62 = vld [vmem:[#allocation67_spill] sm:$0xff] }
 0x296   : > { %v3149_v61 = vmul.f32 %v12630_v16, %v4385_v57  ;;  %v3150_v17 = vmul.f32 %v12631_v38, %v4386_v50  ;;  %v3151_v5 = vmul.f32 %v12649_v53, %v4387_v45  ;;  %v3152_v37 = vmul.f32 %v9988_v2, %v4388_v22  ;;  %v12653_v24 = vld [vmem:[#allocation30_spill] sm:$0xff]  ;;  %v12657_v50 = vld [vmem:[#allocation71_spill] sm:$0xff] }
 0x297   : > { %v3153_v7 = vmul.f32 %v12650_v13, %v4389_v36  ;;  %v3154_v59 = vmul.f32 %v12651_v58, %v4390_v41  ;;  %v3155_v60 = vmul.f32 %v12652_v39, %v4391_v8  ;;  %v3156_v34 = vmul.f32 %v12653_v24, %v4392_v44  ;;  %v12656_v21 = vld [vmem:[#allocation18_spill] sm:$0xff]  ;;  %v12658_v45 = vld [vmem:[#allocation75_spill] sm:$0xff]  ;;  %v12660_v13 = vld [vmem:[#allocation101_spill] sm:$0xff] }
 0x298   : > { %v3157_v33 = vmul.f32 %v12654_v9, %v4393_v43  ;;  %v3158_v47 = vmul.f32 %v12655_v62, %v4394_v30  ;;  %v3159_v57 = vmul.f32 %v12656_v21, %v4395_v15  ;;  %v3164_v16 = vadd.f32 0.2548296, %v3132_v42  ;;  %v12659_v22 = vld [vmem:[#allocation94_spill] sm:$0xff] }
 0x299   : > { %v3160_v38 = vmul.f32 %v12657_v50, %v4396_v6  ;;  %v3161_v53 = vmul.f32 %v12658_v45, %v4397_v63  ;;  %v3162_v2 = vmul.f32 %v12659_v22, %v4398_v19  ;;  %v3165_v36 = vadd.f32 0.2548296, %v3133_v28  ;;  %v12661_v9 = vld [vmem:[#allocation46_spill] sm:$0xff] }
 0x29a   : > { %v3163_v41 = vmul.f32 %v12660_v13, %v4399_v46  ;;  %v3166_v58 = vadd.f32 0.2548296, %v3134_v20  ;;  %v3167_v8 = vadd.f32 0.2548296, %v3135_v51  ;;  %v3168_v39 = vadd.f32 0.2548296, %v3136_v11 }
 0x29b   : > { %v3169_v44 = vadd.f32 0.2548296, %v3137_v31  ;;  %v3170_v24 = vadd.f32 0.2548296, %v3138_v10  ;;  %v3171_v43 = vadd.f32 0.2548296, %v3139_v1 }
 0x29c   : > { %v12662_v30 = vsub.f32 0.0, %v12661_v9  ;;  %v3172_v42 = vadd.f32 0.2548296, %v3140_v49  ;;  %v3173_v6 = vadd.f32 0.2548296, %v3141_v3  ;;  %v12663_v63 = vld [vmem:[#allocation130_spill] sm:$0xff]  ;;  %v10173_v3 = vmul.f32 %v12643_v26, %v3167_v8 }
 0x29d   : > { %v3174_v50 = vadd.f32 0.2548296, %v3142_v18  ;;  %v10164_v45 = vmul.f32 %v12663_v63, %v3164_v16  ;;  %v3175_v28 = vadd.f32 0.2548296, %v3143_v25  ;;  %v3176_v19 = vadd.f32 0.2548296, %v3144_v54 }
 0x29e   : > { %v10161_v15 = vmul.f32 %v12662_v30, %v12661_v9  ;;  %v3177_v46 = vadd.f32 0.2548296, %v3145_v32  ;;  %v12664_v20 = vld [vmem:[#allocation131_spill] sm:$0xff]  ;;  %v3178_v11 = vadd.f32 0.2548296, %v3146_v55  ;;  %v12665_v10 = vld [vmem:[#allocation14_spill] sm:$0xff]  ;;  %v10176_v54 = vmul.f32 %v12644_v56, %v3168_v39 }
 0x29f   : > { %v10167_v51 = vmul.f32 %v12664_v20, %v3165_v36  ;;  %v3179_v31 = vadd.f32 0.2548296, %v3147_v29  ;;  %v3180_v1 = vadd.f32 0.2548296, %v3148_v4  ;;  %v10170_v13 = vmul.f32 %v12665_v10, %v3166_v58  ;;  %v12667_v39 = vld [vmem:[#allocation92_spill] sm:$0xff]  ;;  %v12677_v63 = vld [vmem:[#allocation165_spill] sm:$0xff] }
 0x2a0   : > { %v3181_v9 = vadd.f32 0.2548296, %v3149_v61  ;;  %v3182_v30 = vadd.f32 0.2548296, %v3150_v17  ;;  %v3183_v49 = vadd.f32 0.2548296, %v3151_v5  ;;  %v10179_v29 = vmul.f32 %v12645_v52, %v3169_v44 }
 0x2a1   : > { %v3184_v16 = vadd.f32 0.2548296, %v3152_v37  ;;  %v3185_v18 = vadd.f32 0.2548296, %v3153_v7  ;;  %v3186_v25 = vadd.f32 0.2548296, %v3154_v59  ;;  %v10182_v17 = vmul.f32 %v12646_v14, %v3170_v24 }
 0x2a2   : > { %v3187_v32 = vadd.f32 0.2548296, %v3155_v60  ;;  %v3188_v36 = vadd.f32 0.2548296, %v3156_v34  ;;  %v3189_v55 = vadd.f32 0.2548296, %v3157_v33  ;;  %v10185_v7 = vmul.f32 %v12647_v40, %v3171_v43 }
 0x2a3   : > { %v3190_v4 = vadd.f32 0.2548296, %v3158_v47  ;;  %v3191_v58 = vadd.f32 0.2548296, %v3159_v57  ;;  %v3192_v61 = vadd.f32 0.2548296, %v3160_v38  ;;  %v10188_v56 = vmul.f32 %v12648_v35, %v3172_v42 }
 0x2a4   : > { %v3193_v26 = vadd.f32 0.2548296, %v3161_v53  ;;  %v3194_v5 = vadd.f32 0.2548296, %v3162_v2  ;;  %v3195_v37 = vadd.f32 0.2548296, %v3163_v41  ;;  %v10191_v59 = vmul.f32 %v12622_v12, %v3173_v6 }
 0x2a5   : > { %v10194_v52 = vmul.f32 %v12623_v48, %v3174_v50  ;;  %v10197_v38 = vmul.f32 %v12624_v0, %v3175_v28  ;;  %v10200_v14 = vmul.f32 %v12625_v23, %v3176_v19  ;;  %v10203_v2 = vmul.f32 %v12626_v27, %v3177_v46  ;;  %v12666_v40 = vld [vmem:[#allocation91_spill] sm:$0xff]  ;;  %v12668_v60 = vld [vmem:[#allocation24_spill] sm:$0xff]  ;;  %v12669_v12 = vld [vmem:[#allocation93_spill] sm:$0xff] }
 0x2a6   : > { %v3292_v53 = vmul.f32 1.442695, %v12666_v40  ;;  %v3294_v35 = vmul.f32 1.442695, %v12667_v39  ;;  %v10208_v24 = vmul.f32 %v12668_v60, %v3178_v11  ;;  %v10211_v34 = vmul.f32 %v12669_v12, %v3179_v31  ;;  %v12670_v48 = vld [vmem:[#allocation89_spill] sm:$0xff]  ;;  %v12671_v0 = vld [vmem:[#allocation160_spill] sm:$0xff] }
 0x2a7   : > { %v3296_v33 = vmul.f32 1.442695, %v12670_v48  ;;  %v3298_v47 = vmul.f32 1.442695, %v12671_v0  ;;  %v12672_v57 = vld [vmem:[#allocation74_spill] sm:$0xff]  ;;  %v12673_v50 = vld [vmem:[#allocation49_spill] sm:$0xff]  ;;  %v10251_v48 = vmul.f32 %v12655_v62, %v3190_v4 }
 0x2a8   : > { %v10216_v23 = vmul.f32 %v12672_v57, %v3180_v1  ;;  %v10219_v27 = vmul.f32 %v12673_v50, %v3181_v9  ;;  %4512 = vpow2.f32 %v3292_v53  ;;  %v12674_v41 = vld [vmem:[#allocation161_spill] sm:$0xff]  ;;  %v3302_v28 = vmul.f32 1.442695, %v12677_v63  ;;  %v12679_v20 = vld [vmem:[#allocation26_spill] sm:$0xff]  ;;  %v12680_v31 = vld [vmem:[#allocation111_spill] sm:$0xff] }
 0x2a9   : > { %v3300_v8 = vmul.f32 1.442695, %v12674_v41  ;;  %v12675_v44 = vld [vmem:[#allocation13_spill] sm:$0xff]  ;;  %4514 = vpow2.f32 %v3294_v35  ;;  %v10233_v11 = vmul.f32 %v12679_v20, %v3185_v18  ;;  %v3304_v1 = vmul.f32 1.442695, %v12680_v31  ;;  %v12681_v10 = vld [vmem:[#allocation28_spill] sm:$0xff] }
 0x2aa   : > { %v10223_v43 = vmul.f32 %v12675_v44, %v3182_v30  ;;  %v12676_v42 = vld [vmem:[#allocation21_spill] sm:$0xff]  ;;  %4516 = vpow2.f32 %v3296_v33  ;;  %v10237_v9 = vmul.f32 %v12681_v10, %v3186_v25  ;;  %v12684_v39 = vld [vmem:[#allocation30_spill] sm:$0xff]  ;;  %v10254_v25 = vmul.f32 %v12656_v21, %v3191_v58  ;;  %v12688_v0 = vld [vmem:[#allocation71_spill] sm:$0xff] }
 0x2ab   : > { %v10226_v6 = vmul.f32 %v12676_v42, %v3183_v49  ;;  %v12678_v19 = vld [vmem:[#allocation25_spill] sm:$0xff]  ;;  %4518 = vpow2.f32 %v3298_v47  ;;  %v12683_v49 = vld [vmem:[#allocation112_spill] sm:$0xff]  ;;  %v10244_v35 = vmul.f32 %v12684_v39, %v3188_v36  ;;  %v10258_v47 = vmul.f32 %v12688_v0, %v3192_v61  ;;  %v12690_v36 = vld [vmem:[#allocation75_spill] sm:$0xff] }
 0x2ac   : > { %v10230_v46 = vmul.f32 %v12678_v19, %v3184_v16  ;;  %v12682_v30 = vld [vmem:[#allocation29_spill] sm:$0xff]  ;;  %v3306_v53 = vmul.f32 1.442695, %v12683_v49  ;;  %v12685_v16 = vld [vmem:[#allocation32_spill] sm:$0xff]  ;;  %4520 = vpow2.f32 %v3300_v8  ;;  %v10261_v57 = vmul.f32 %v12690_v36, %v3193_v26  ;;  %v12696_v21 = vld [vmem:[#allocation22_spill] sm:$0xff] }
 0x2ad   : > { %v10240_v40 = vmul.f32 %v12682_v30, %v3187_v32  ;;  %v10247_v60 = vmul.f32 %v12685_v16, %v3189_v55  ;;  %v12686_v18 = vld [vmem:[#allocation117_spill] sm:$0xff]  ;;  %4522 = vpow2.f32 %v3302_v28  ;;  %v12687_v32 = vld [vmem:[#allocation118_spill] sm:$0xff]  ;;  %12689 = vst [vmem:[#allocation52_spill] sm:$0xff] %v10258_v47  ;;  %v12692_v55 = vld [vmem:[#allocation120_spill] sm:$0xff]  ;;  %v10265_v41 = vmul.f32 %v12659_v22, %v3194_v5 }
 0x2ae   : > { %v3308_v12 = vmul.f32 1.442695, %v12686_v18  ;;  %v3310_v33 = vmul.f32 1.442695, %v12687_v32  ;;  %12691 = vst [vmem:[#allocation56_spill] sm:$0xff] %v10261_v57  ;;  %4524 = vpow2.f32 %v3304_v1  ;;  %v12694_v62 = vld [vmem:[#allocation101_spill] sm:$0xff] }
 0x2af   : > { %v3312_v50 = vmul.f32 1.442695, %v12692_v55  ;;  %12693 = vst [vmem:[#allocation57_spill] sm:$0xff] %v10265_v41  ;;  %v10268_v4 = vmul.f32 %v12694_v62, %v3195_v37  ;;  %4526 = vpow2.f32 %v3306_v53  ;;  %v3314_v58 = vmul.f32 1.442695, %v12696_v21  ;;  %v12697_v8 = vld [vmem:[#allocation152_spill] sm:$0xff] }
 0x2b0   : > { %v12698_v44 = vsub.f32 0.0, %v12697_v8  ;;  %v12699_v42 = vld [vmem:[#allocation153_spill] sm:$0xff]  ;;  %4528 = vpow2.f32 %v3308_v12  ;;  %v12701_v28 = vld [vmem:[#allocation102_spill] sm:$0xff]  ;;  %v12704_v37 = vld [vmem:[#allocation80_spill] sm:$0xff] }
 0x2b1   : > { %12695 = vst [vmem:[#allocation47_spill] sm:$0xff] %v10268_v4  ;;  %v12700_v26 = vsub.f32 0.0, %v12699_v42  ;;  %v3316_v19 = vmul.f32 1.442695, %v12701_v28  ;;  %v12702_v20 = vld [vmem:[#allocation65_spill] sm:$0xff]  ;;  %v12705_v31 = vsub.f32 0.0, %v12704_v37  ;;  %4530 = vpow2.f32 %v3310_v33 }
 0x2b2   : > { %v3277_v61 = vmul.f32 %v12698_v44, %v12697_v8  ;;  %v12703_v22 = vsub.f32 0.0, %v12702_v20  ;;  %v12706_v10 = vld [vmem:[#allocation20_spill] sm:$0xff]  ;;  %v12707_v49 = vld [vmem:[#allocation81_spill] sm:$0xff]  ;;  %v12709_v16 = vld [vmem:[#allocation82_spill] sm:$0xff]  ;;  %4532 = vpow2.f32 %v3312_v50 }
 0x2b3   : > { %v3278_v63 = vmul.f32 %v12700_v26, %v12699_v42  ;;  %v3280_v1 = vmul.f32 %v12705_v31, %v12704_v37  ;;  %v3318_v30 = vmul.f32 1.442695, %v12706_v10  ;;  %v12708_v53 = vsub.f32 0.0, %v12707_v49  ;;  %v12711_v32 = vld [vmem:[#allocation7_spill] sm:$0xff]  ;;  %v12714_v21 = vld [vmem:[#allocation106_spill] sm:$0xff] }
 0x2b4   : > { %v3279_v5 = vmul.f32 %v12703_v22, %v12702_v20  ;;  %v12710_v18 = vsub.f32 0.0, %v12709_v16  ;;  %v3320_v0 = vmul.f32 1.442695, %v12711_v32  ;;  %v12712_v36 = vld [vmem:[#allocation99_spill] sm:$0xff]  ;;  %v12715_v33 = vsub.f32 0.0, %v12714_v21  ;;  %v12716_v44 = vld [vmem:[#allocation166_spill] sm:$0xff] }
 0x2b5   : > { %v3281_v39 = vmul.f32 %v12708_v53, %v12707_v49  ;;  %v12713_v55 = vsub.f32 0.0, %v12712_v36  ;;  %4534 = vpow2.f32 %v3314_v58  ;;  %v3322_v42 = vmul.f32 1.442695, %v12716_v44  ;;  %v12717_v26 = vld [vmem:[#allocation107_spill] sm:$0xff]  ;;  %v12719_v22 = vld [vmem:[#allocation108_spill] sm:$0xff]  ;;  %v4513_v10 = vpop.eup %4512  ;;  %v12721_v49 = vld [vmem:[#allocation109_spill] sm:$0xff] }
 0x2b6   : > { %v3282_v12 = vmul.f32 %v12710_v18, %v12709_v16  ;;  %v3284_v8 = vmul.f32 %v12715_v33, %v12714_v21  ;;  %v12718_v28 = vsub.f32 0.0, %v12717_v26  ;;  %v12720_v50 = vsub.f32 0.0, %v12719_v22  ;;  %v12723_v18 = vld [vmem:[#allocation113_spill] sm:$0xff]  ;;  %v12725_v21 = vld [vmem:[#allocation114_spill] sm:$0xff] }
 0x2b7   : > { %v3283_v62 = vmul.f32 %v12713_v55, %v12712_v36  ;;  %4536 = vpow2.f32 %v3316_v19  ;;  %v3324_v31 = vmul.f32 1.442695, %v10161_v15  ;;  %v12722_v53 = vsub.f32 0.0, %v12721_v49  ;;  %v4515_v55 = vpop.eup %4514 }
 0x2b8   : > { %v3285_v20 = vmul.f32 %v12718_v28, %v12717_v26  ;;  %v3286_v37 = vmul.f32 %v12720_v50, %v12719_v22  ;;  %v12724_v58 = vsub.f32 0.0, %v12723_v18  ;;  %4538 = vpow2.f32 %v3318_v30  ;;  %v12727_v26 = vld [vmem:[#allocation115_spill] sm:$0xff]  ;;  %v4517_v22 = vpop.eup %4516  ;;  %v12729_v50 = vld [vmem:[#allocation50_spill] sm:$0xff] }
 0x2b9   : > { %v3287_v16 = vmul.f32 %v12722_v53, %v12721_v49  ;;  %v3326_v36 = vmul.f32 1.442695, %v3277_v61  ;;  %v12726_v33 = vsub.f32 0.0, %v12725_v21  ;;  %v12728_v19 = vsub.f32 0.0, %v12727_v26  ;;  %v4519_v61 = vpop.eup %4518 }
 0x2ba   : > { %v3288_v32 = vmul.f32 %v12724_v58, %v12723_v18  ;;  %4540 = vpow2.f32 %v3320_v0  ;;  %v3328_v28 = vmul.f32 1.442695, %v3278_v63  ;;  %v12730_v49 = vsub.f32 0.0, %v12729_v50 }
 0x2bb   : > { %v3289_v44 = vmul.f32 %v12726_v33, %v12725_v21  ;;  %v3290_v15 = vmul.f32 %v12728_v19, %v12727_v26  ;;  %4542 = vpow2.f32 %v3322_v42  ;;  %v3330_v18 = vmul.f32 1.442695, %v3279_v5  ;;  %v4521_v21 = vpop.eup %4520 }
 0x2bc   : > { %v3291_v53 = vmul.f32 %v12730_v49, %v12729_v50  ;;  %v3332_v30 = vmul.f32 1.442695, %v3280_v1  ;;  %4544 = vpow2.f32 %v3324_v31  ;;  %v3334_v58 = vmul.f32 1.442695, %v3281_v39  ;;  %v4523_v0 = vpop.eup %4522 }
 0x2bd   : > { %v3336_v4 = vmul.f32 1.442695, %v3282_v12  ;;  %v3338_v41 = vmul.f32 1.442695, %v3283_v62  ;;  %4546 = vpow2.f32 %v3326_v36  ;;  %v3340_v33 = vmul.f32 1.442695, %v3284_v8  ;;  %v4525_v42 = vpop.eup %4524 }
 0x2be   : > { %v3342_v57 = vmul.f32 1.442695, %v3285_v20  ;;  %v3344_v26 = vmul.f32 1.442695, %v3286_v37  ;;  %4548 = vpow2.f32 %v3328_v28  ;;  %v3346_v63 = vmul.f32 1.442695, %v3287_v16  ;;  %v4527_v12 = vpop.eup %4526 }
 0x2bf   : > { %v3348_v19 = vmul.f32 1.442695, %v3288_v32  ;;  %v10322_v47 = vmul.f32 %v4513_v10, %v10164_v45  ;;  %4550 = vpow2.f32 %v3330_v18  ;;  %v3350_v5 = vmul.f32 1.442695, %v3289_v44  ;;  %v4529_v45 = vpop.eup %4528 }
 0x2c0   : > { %v10325_v1 = vmul.f32 %v4515_v55, %v10167_v51  ;;  %v10328_v39 = vmul.f32 %v4517_v22, %v10170_v13  ;;  %4552 = vpow2.f32 %v3332_v30  ;;  %v3352_v62 = vmul.f32 1.442695, %v3290_v15  ;;  %v4531_v13 = vpop.eup %4530 }
 0x2c1   : > { %v10331_v8 = vmul.f32 %v4519_v61, %v10173_v3  ;;  %v10334_v20 = vmul.f32 %v4521_v21, %v10176_v54  ;;  %4554 = vpow2.f32 %v3334_v58  ;;  %v3354_v37 = vmul.f32 1.442695, %v3291_v53  ;;  %v4533_v16 = vpop.eup %4532 }
 0x2c2   : > { %v10337_v31 = vmul.f32 %v4523_v0, %v10179_v29  ;;  %v10340_v51 = vmul.f32 %v4525_v42, %v10182_v17  ;;  %4556 = vpow2.f32 %v3336_v4  ;;  %v10343_v10 = vmul.f32 %v4527_v12, %v10185_v7  ;;  %v4535_v36 = vpop.eup %4534 }
 0x2c3   : > { %v10346_v3 = vmul.f32 %v4529_v45, %v10188_v56  ;;  %v11335_v54 = vsub.f32 1.0, %v10322_v47  ;;  %4558 = vpow2.f32 %v3338_v41  ;;  %v10350_v32 = vmul.f32 %v4531_v13, %v10191_v59 }
 0x2c4   : > { %v11334_v29 = vsub.f32 1.0, %v10325_v1  ;;  %v11331_v17 = vsub.f32 1.0, %v10328_v39  ;;  %4560 = vpow2.f32 %v3340_v33  ;;  %v10355_v4 = vmul.f32 %v4533_v16, %v10194_v52  ;;  %v4537_v55 = vpop.eup %4536 }
 0x2c5   : > { %v11330_v7 = vsub.f32 1.0, %v10331_v8  ;;  %v11329_v56 = vsub.f32 1.0, %v10334_v20  ;;  %4562 = vpow2.f32 %v3342_v57  ;;  %v10360_v41 = vmul.f32 %v4535_v36, %v10197_v38  ;;  %v4539_v15 = vpop.eup %4538 }
 0x2c6   : > { %v11326_v59 = vsub.f32 1.0, %v10337_v31  ;;  %v11325_v44 = vsub.f32 1.0, %v10340_v51  ;;  %4564 = vpow2.f32 %v3344_v26  ;;  %v10365_v28 = vmul.f32 %v4537_v55, %v10200_v14 }
 0x2c7   : > { %v11327_v52 = vsub.f32 1.0, %v10343_v10  ;;  %v11328_v22 = vsub.f32 1.0, %v10346_v3  ;;  %v4541_v50 = vpop.eup %4540  ;;  %4566 = vpow2.f32 %v3346_v63  ;;  %v10370_v57 = vmul.f32 %v4539_v15, %v10203_v2 }
 0x2c8   : > { %v11332_v38 = vsub.f32 1.0, %v10350_v32  ;;  %v11333_v49 = vsub.f32 1.0, %v10355_v4  ;;  %v4543_v53 = vpop.eup %4542  ;;  %4568 = vpow2.f32 %v3348_v19  ;;  %v10375_v18 = vmul.f32 %v4541_v50, %v10208_v24 }
 0x2c9   : > { %12731 = vst [vmem:[#allocation70_spill] sm:$0xff] %v10370_v57  ;;  %v11336_v14 = vsub.f32 1.0, %v10360_v41  ;;  %v11337_v30 = vsub.f32 1.0, %v10365_v28  ;;  %v4545_v61 = vpop.eup %4544  ;;  %4570 = vpow2.f32 %v3350_v5  ;;  %v10380_v58 = vmul.f32 %v4543_v53, %v10211_v34  ;;  %v12756_v53 = vld [vmem:[#allocation174_spill] sm:$0xff] }
 0x2ca   : > { %12732 = vst [vmem:[#allocation72_spill] sm:$0xff] %v10375_v18  ;;  %v11338_v2 = vsub.f32 1.0, %v10370_v57  ;;  %v10385_v21 = vsub.f32 0.0, %v11335_v54  ;;  %v4547_v33 = vpop.eup %4546  ;;  %4572 = vpow2.f32 %v3352_v62  ;;  %v10388_v24 = vmul.f32 %v4545_v61, %v10216_v23  ;;  %v12737_v62 = vld [vmem:[#allocation157_spill] sm:$0xff]  ;;  %v12750_v54 = vld [vmem:[#allocation171_spill] sm:$0xff] }
 0x2cb   : > { %12733 = vst [vmem:[#allocation73_spill] sm:$0xff] %v10380_v58  ;;  %v11339_v26 = vsub.f32 1.0, %v10375_v18  ;;  %v10393_v0 = vsub.f32 0.0, %v11334_v29  ;;  %v4549_v63 = vpop.eup %4548  ;;  %4574 = vpow2.f32 %v3354_v37  ;;  %v10396_v34 = vmul.f32 %v4547_v33, %v10219_v27 }
 0x2cc   : > { %12734 = vst [vmem:[#allocation8_spill] sm:$0xff] %v10388_v24  ;;  %v11342_v19 = vsub.f32 1.0, %v10380_v58  ;;  %v10401_v42 = vsub.f32 0.0, %v11331_v17  ;;  %v4551_v5 = vpop.eup %4550  ;;  %v10404_v23 = vmul.f32 %v4549_v63, %v10223_v43  ;;  %v11344_v12 = vsub.f32 1.0, %v10388_v24  ;;  %v12739_v43 = vld [vmem:[#allocation162_spill] sm:$0xff] }
 0x2cd   : > { %12735 = vst [vmem:[#allocation95_spill] sm:$0xff] %v10396_v34  ;;  %vm3420_vm0 = vcmp.ge.f32.partialorder %v12737_v62, 0.0  ;;  %v10410_v45 = vsub.f32 0.0, %v11330_v7  ;;  %v10414_v27 = vsub.f32 0.0, %v11329_v56  ;;  %v4553_v37 = vpop.eup %4552  ;;  %v10417_v13 = vmul.f32 %v4551_v5, %v10226_v6  ;;  %v12741_v6 = vld [vmem:[#allocation163_spill] sm:$0xff]  ;;  %v12747_v7 = vld [vmem:[#allocation169_spill] sm:$0xff] }
 0x2ce   : > { %12736 = vst [vmem:[#allocation137_spill] sm:$0xff] %v10404_v23  ;;  %vm3421_vm1 = vcmp.ge.f32.partialorder %v12739_v43, 0.0  ;;  %v10423_v36 = vsub.f32 0.0, %v11326_v59  ;;  %v10427_v55 = vsub.f32 0.0, %v11325_v44  ;;  %v4555_v15 = vpop.eup %4554  ;;  %v10430_v50 = vmul.f32 %v4553_v37, %v10230_v46  ;;  %v12743_v46 = vld [vmem:[#allocation15_spill] sm:$0xff] }
 0x2cf   : > { %12738 = vst [vmem:[#allocation51_spill] sm:$0xff] %v10417_v13  ;;  %vm3422_vm2 = vcmp.ge.f32.partialorder %v12741_v6, 0.0  ;;  %v10436_v61 = vsub.f32 0.0, %v11327_v52  ;;  %v10440_v33 = vsub.f32 0.0, %v11328_v22  ;;  %v4557_v63 = vpop.eup %4556  ;;  %v10443_v5 = vmul.f32 %v4555_v15, %v10233_v11  ;;  %v12744_v37 = vld [vmem:[#allocation167_spill] sm:$0xff]  ;;  %v12746_v15 = vld [vmem:[#allocation168_spill] sm:$0xff] }
 0x2d0   : > { %12740 = vst [vmem:[#allocation27_spill] sm:$0xff] %v10430_v50  ;;  %vm3423_vm3 = vcmp.ge.f32.partialorder %v12743_v46, 0.0  ;;  %vm3424_vm4 = vcmp.ge.f32.partialorder %v12744_v37, 0.0  ;;  %v10450_v59 = vsub.f32 0.0, %v11332_v38  ;;  %v10454_v52 = vsub.f32 0.0, %v11333_v49  ;;  %v4559_v22 = vpop.eup %4558  ;;  %v12751_v11 = vld [vmem:[#allocation172_spill] sm:$0xff] }
 0x2d1   : > { %12742 = vst [vmem:[#allocation31_spill] sm:$0xff] %v10443_v5  ;;  %v10457_v56 = vmul.f32 %v4557_v63, %v10237_v9  ;;  %vm3425_vm5 = vcmp.ge.f32.partialorder %v12746_v15, 0.0  ;;  %vm3426_vm6 = vcmp.ge.f32.partialorder %v12747_v7, 0.0  ;;  %v10464_v17 = vsub.f32 0.0, %v11336_v14  ;;  %v4561_v49 = vpop.eup %4560  ;;  %v12749_v63 = vld [vmem:[#allocation170_spill] sm:$0xff]  ;;  %v12755_v9 = vld [vmem:[#allocation173_spill] sm:$0xff] }
 0x2d2   : > { %v10468_v38 = vsub.f32 0.0, %v11337_v30  ;;  %v10471_v29 = vmul.f32 %v4559_v22, %v10240_v40  ;;  %vm3427_vm7 = vcmp.ge.f32.partialorder %v12749_v63, 0.0  ;;  %vm3428_vm8 = vcmp.ge.f32.partialorder %v12750_v54, 0.0  ;;  %v4563_v44 = vpop.eup %4562  ;;  %v12810_v37 = vld [vmem:[#allocation70_spill] sm:$0xff]  ;;  %v12812_v15 = vld [vmem:[#allocation176_spill] sm:$0xff] }
 0x2d3   : > { %12745 = vst [vmem:[#allocation9_spill] sm:$0xff] %v10457_v56  ;;  %vm3429_vm9 = vcmp.ge.f32.partialorder %v12751_v11, 0.0  ;;  %v10479_v14 = vsub.f32 0.0, %v11338_v2  ;;  %v10483_v30 = vsub.f32 0.0, %v11339_v26  ;;  %v10486_v40 = vmul.f32 %v4561_v49, %v10244_v35  ;;  %v4565_v18 = vpop.eup %4564  ;;  %v12790_v49 = vld [vmem:[#allocation60_spill] sm:$0xff] }
 0x2d4   : > { %12748 = vst [vmem:[#allocation10_spill] sm:$0xff] %v10471_v29  ;;  %vm3430_vm10 = vcmp.ge.f32.partialorder %v12755_v9, 0.0  ;;  %v10494_v2 = vsub.f32 0.0, %v11342_v19  ;;  %v10498_v26 = vsub.f32 0.0, %v11344_v12  ;;  %v10501_v35 = vmul.f32 %v4563_v44, %v10247_v60  ;;  %v4567_v60 = vpop.eup %4566 }
 0x2d5   : > { %12752 = vst [vmem:[#allocation6_spill] sm:$0xff] %v10479_v14  ;;  %12753 = vst [vmem:[#allocation79_spill] sm:$0xff] %v10483_v30  ;;  %v12764_v19 = vsub.f32 1.0, %v10396_v34  ;;  %v12766_v12 = vsub.f32 1.0, %v10404_v23  ;;  %v10517_v44 = vmul.f32 %v4565_v18, %v10251_v48  ;;  %v10529_v48 = vmul.f32 %v4567_v60, %v10254_v25  ;;  %v12787_v30 = vld [vmem:[#allocation56_spill] sm:$0xff] }
 0x2d6   : > { %12754 = vst [vmem:[#allocation11_spill] sm:$0xff] %v10486_v40  ;;  %12758 = vst [vmem:[#allocation12_spill] sm:$0xff] %v10494_v2  ;;  %v3413_v18 = vsub.f32 1.0, %v10501_v35  ;;  %v12778_v14 = vsub.f32 1.0, %v10443_v5  ;;  %v12784_v2 = vld [vmem:[#allocation136_spill] sm:$0xff]  ;;  %v12785_v57 = vsub.f32 1.0, %v10471_v29 }
 0x2d7   : > { %12759 = vst [vmem:[#allocation121_spill] sm:$0xff] %v10498_v26  ;;  %v10510_v58 = vsub.f32 0.0, %v12764_v19  ;;  %v10514_v24 = vsub.f32 0.0, %v12766_v12  ;;  %v12772_v19 = vsub.f32 1.0, %v10417_v13  ;;  %v12773_v12 = vsub.f32 1.0, %v10430_v50  ;;  %v12783_v26 = vld [vmem:[#allocation88_spill] sm:$0xff] }
 0x2d8   : > { %v12779_v50 = vsub.f32 1.0, %v10457_v56  ;;  %v3414_v60 = vsub.f32 1.0, %v10517_v44  ;;  %vm3447_vm15 = vcmp.ge.f32.partialorder %v12783_v26, 0.0  ;;  %vm3448_vm12 = vcmp.ge.f32.partialorder %v12784_v2, 0.0  ;;  %v12789_v44 = vld [vmem:[#allocation59_spill] sm:$0xff] }
 0x2d9   : > { %12765 = vst [vmem:[#allocation122_spill] sm:$0xff] %v10510_v58  ;;  %12767 = vst [vmem:[#allocation123_spill] sm:$0xff] %v10514_v24  ;;  %v3471_v34 = vsub.f32 0.0, %v12772_v19  ;;  %v3472_v23 = vsub.f32 0.0, %v12773_v12  ;;  %v4569_v24 = vpop.eup %4568  ;;  %v3473_v19 = vsub.f32 0.0, %v12778_v14  ;;  %v12780_v58 = vld [vmem:[#allocation52_spill] sm:$0xff] }
 0x2da   : > { %v3474_v12 = vsub.f32 0.0, %v12779_v50  ;;  %v4571_v13 = vpop.eup %4570  ;;  %v3384_v25 = vmul.f32 %v4569_v24, %v12780_v58  ;;  %v3475_v5 = vsub.f32 0.0, %v12785_v57  ;;  %v12786_v14 = vsub.f32 1.0, %v10486_v40  ;;  %v12788_v24 = vld [vmem:[#allocation154_spill] sm:$0xff] }
 0x2db   : > { %v4573_v50 = vpop.eup %4572  ;;  %v3385_v22 = vmul.f32 %v4571_v13, %v12787_v30  ;;  %v3415_v58 = vsub.f32 1.0, %v10529_v48  ;;  %vm3449_vm13 = vcmp.ge.f32.partialorder %v12788_v24, 0.0  ;;  %vm3450_vm11 = vcmp.ge.f32.partialorder %v12789_v44, 0.0  ;;  %v12794_v44 = vld [vmem:[#allocation47_spill] sm:$0xff] }
 0x2dc   : > { %v3476_v56 = vsub.f32 0.0, %v12786_v14  ;;  %vm3451_vm14 = vcmp.ge.f32.partialorder %v12790_v49, 0.0  ;;  %v3477_v26 = vsub.f32 0.0, %v3413_v18  ;;  %v12791_v2 = vsub.f32 1.0, %v10322_v47  ;;  %v4575_v35 = vpop.eup %4574  ;;  %v12792_v14 = vld [vmem:[#allocation57_spill] sm:$0xff]  ;;  %v12814_v9 = vld [vmem:[#allocation79_spill] sm:$0xff] }
 0x2dd   : > { %v3386_v40 = vmul.f32 %v4573_v50, %v12792_v14  ;;  %v3416_v29 = vsub.f32 1.0, %v3384_v25  ;;  %v3478_v30 = vsub.f32 0.0, %v3414_v60  ;;  %v12793_v13 = vsub.f32 1.0, %v10325_v1  ;;  %v12822_v50 = vld [vmem:[#allocation35_spill] sm:$0xff] }
 0x2de   : > { %v3484_v57 = vsel %vm3420_vm0, %v12791_v2, %v10385_v21  ;;  %v3387_v49 = vmul.f32 %v4575_v35, %v12794_v44  ;;  %v3417_v24 = vsub.f32 1.0, %v3385_v22  ;;  %v3479_v16 = vsub.f32 0.0, %v3415_v58  ;;  %v12824_v44 = vld [vmem:[#allocation121_spill] sm:$0xff] }
 0x2df   : > { %v3485_v48 = vsel %vm3421_vm1, %v12793_v13, %v10393_v0  ;;  %v12795_v47 = vsub.f32 1.0, %v10328_v39  ;;  %v3418_v21 = vsub.f32 1.0, %v3386_v40  ;;  %v3480_v62 = vsub.f32 0.0, %v3416_v29  ;;  %v12817_v40 = vld [vmem:[#allocation177_spill] sm:$0xff]  ;;  %v12827_v13 = vld [vmem:[#allocation38_spill] sm:$0xff] }
 0x2e0   : > { %v12796_v25 = vsub.f32 1.0, %v10331_v8  ;;  %v12797_v0 = vsub.f32 1.0, %v10334_v20  ;;  %v3419_v22 = vsub.f32 1.0, %v3387_v49  ;;  %v3481_v35 = vsub.f32 0.0, %v3417_v24 }
 0x2e1   : > { %v3486_v2 = vsel %vm3422_vm2, %v12795_v47, %v10401_v42  ;;  %v12798_v39 = vsub.f32 1.0, %v10337_v31  ;;  %v12799_v8 = vsub.f32 1.0, %v10340_v51  ;;  %v3482_v6 = vsub.f32 0.0, %v3418_v21 }
 0x2e2   : > { %v3487_v1 = vsel %vm3423_vm3, %v12796_v25, %v10410_v45  ;;  %v3488_v43 = vsel %vm3424_vm4, %v12797_v0, %v10414_v27  ;;  %v12800_v20 = vsub.f32 1.0, %v10343_v10  ;;  %v12801_v46 = vsub.f32 1.0, %v10346_v3  ;;  %v12829_v25 = vld [vmem:[#allocation122_spill] sm:$0xff]  ;;  %v12830_v0 = vld [vmem:[#allocation95_spill] sm:$0xff] }
 0x2e3   : > { %v3489_v42 = vsel %vm3425_vm5, %v12798_v39, %v10423_v36  ;;  %v3490_v45 = vsel %vm3426_vm6, %v12799_v8, %v10427_v55  ;;  %v12802_v36 = vsub.f32 1.0, %v10350_v32  ;;  %v3483_v7 = vsub.f32 0.0, %v3419_v22  ;;  %v12807_v32 = vld [vmem:[#allocation175_spill] sm:$0xff]  ;;  %v12832_v8 = vld [vmem:[#allocation41_spill] sm:$0xff] }
 0x2e4   : > { %v3491_v27 = vsel %vm3427_vm7, %v12800_v20, %v10436_v61  ;;  %v3492_v31 = vsel %vm3428_vm8, %v12801_v46, %v10440_v33  ;;  %v12803_v55 = vsub.f32 1.0, %v10355_v4  ;;  %v12804_v61 = vsub.f32 1.0, %v10360_v41  ;;  %v12834_v46 = vld [vmem:[#allocation123_spill] sm:$0xff] }
 0x2e5   : > { %v3493_v51 = vsel %vm3429_vm9, %v12802_v36, %v10450_v59  ;;  %vm12805_vm0 = vcmp.ge.f32.partialorder %v12756_v53, 0.0  ;;  %v12806_v54 = vsub.f32 1.0, %v10365_v28  ;;  %vm12808_vm1 = vcmp.ge.f32.partialorder %v12807_v32, 0.0  ;;  %v12809_v59 = vld [vmem:[#allocation6_spill] sm:$0xff]  ;;  %v12819_v53 = vld [vmem:[#allocation12_spill] sm:$0xff]  ;;  %v12835_v36 = vld [vmem:[#allocation137_spill] sm:$0xff] }
 0x2e6   : > { %v3494_v10 = vsel %vm3430_vm10, %v12803_v55, %v10454_v52  ;;  %v3495_v3 = vsel %vm12805_vm0, %v12804_v61, %v10464_v17  ;;  %v12811_v11 = vsub.f32 1.0, %v12810_v37  ;;  %vm12813_vm2 = vcmp.ge.f32.partialorder %v12812_v15, 0.0  ;;  %v12815_v52 = vld [vmem:[#allocation72_spill] sm:$0xff]  ;;  %v12820_v17 = vld [vmem:[#allocation73_spill] sm:$0xff]  ;;  %v12839_v32 = vld [vmem:[#allocation51_spill] sm:$0xff] }
 0x2e7   : > { %v3496_v33 = vsel %vm12808_vm1, %v12806_v54, %v10468_v38  ;;  %v12816_v63 = vsub.f32 1.0, %v12815_v52  ;;  %vm12818_vm3 = vcmp.ge.f32.partialorder %v12817_v40, 0.0  ;;  %v12821_v49 = vsub.f32 1.0, %v12820_v17  ;;  %v12825_v38 = vld [vmem:[#allocation8_spill] sm:$0xff]  ;;  %v12837_v61 = vld [vmem:[#allocation45_spill] sm:$0xff]  ;;  %v12843_v15 = vld [vmem:[#allocation27_spill] sm:$0xff] }
 0x2e8   : > { %v3497_v4 = vsel %vm12813_vm2, %v12811_v11, %v12809_v59  ;;  %vm12823_vm4 = vcmp.ge.f32.partialorder %v12822_v50, 0.0  ;;  %v12826_v14 = vsub.f32 1.0, %v12825_v38  ;;  %vm12828_vm5 = vcmp.ge.f32.partialorder %v12827_v13, 0.0  ;;  %v12841_v37 = vld [vmem:[#allocation48_spill] sm:$0xff]  ;;  %v12845_v52 = vld [vmem:[#allocation55_spill] sm:$0xff]  ;;  %v12851_v50 = vld [vmem:[#allocation9_spill] sm:$0xff] }
 0x2e9   : > { %v3498_v41 = vsel %vm12818_vm3, %v12816_v63, %v12814_v9  ;;  %v3499_v28 = vsel %vm12823_vm4, %v12821_v49, %v12819_v53  ;;  %v12831_v39 = vsub.f32 1.0, %v12830_v0  ;;  %vm12833_vm6 = vcmp.ge.f32.partialorder %v12832_v8, 0.0  ;;  %v12847_v40 = vld [vmem:[#allocation31_spill] sm:$0xff]  ;;  %v12853_v38 = vld [vmem:[#allocation17_spill] sm:$0xff]  ;;  %v12855_v13 = vld [vmem:[#allocation10_spill] sm:$0xff] }
 0x2ea   : > { %v3500_v47 = vsel %vm12828_vm5, %v12826_v14, %v12824_v44  ;;  %v12836_v55 = vsub.f32 1.0, %v12835_v36  ;;  %vm12838_vm7 = vcmp.ge.f32.partialorder %v12837_v61, 0.0  ;;  %v12840_v59 = vsub.f32 1.0, %v12839_v32  ;;  %v12849_v17 = vld [vmem:[#allocation83_spill] sm:$0xff]  ;;  %v12857_v0 = vld [vmem:[#allocation84_spill] sm:$0xff]  ;;  %v12863_v36 = vld [vmem:[#allocation86_spill] sm:$0xff] }
 0x2eb   : > { %v3501_v20 = vsel %vm12833_vm6, %v12831_v39, %v12829_v25  ;;  %vm12842_vm8 = vcmp.ge.f32.partialorder %v12841_v37, 0.0  ;;  %v12844_v9 = vsub.f32 1.0, %v12843_v15  ;;  %vm12846_vm9 = vcmp.ge.f32.partialorder %v12845_v52, 0.0  ;;  %v12859_v39 = vld [vmem:[#allocation11_spill] sm:$0xff]  ;;  %v12883_v32 = vld [vmem:[#allocation61_spill] sm:$0xff] }
 0x2ec   : > { %v3502_v54 = vsel %vm12838_vm7, %v12836_v55, %v12834_v46  ;;  %v3503_v11 = vsel %vm12842_vm8, %v12840_v59, %v3471_v34  ;;  %v12848_v53 = vsub.f32 1.0, %v12847_v40  ;;  %vm12850_vm10 = vcmp.ge.f32.partialorder %v12849_v17, 0.0  ;;  %v12861_v46 = vld [vmem:[#allocation85_spill] sm:$0xff]  ;;  %v12865_v61 = vld [vmem:[#allocation87_spill] sm:$0xff]  ;;  %v12887_v40 = vld [vmem:[#allocation66_spill] sm:$0xff] }
 0x2ed   : > { %v3504_v63 = vsel %vm12846_vm9, %v12844_v9, %v3472_v23  ;;  %v12852_v44 = vsub.f32 1.0, %v12851_v50  ;;  %vm12854_vm0 = vcmp.ge.f32.partialorder %v12853_v38, 0.0  ;;  %v12856_v25 = vsub.f32 1.0, %v12855_v13  ;;  %v12872_v13 = vld [vmem:[#allocation36_spill] sm:$0xff]  ;;  %v12885_v15 = vld [vmem:[#allocation63_spill] sm:$0xff] }
 0x2ee   : > { %v3505_v49 = vsel %vm12850_vm10, %v12848_v53, %v3473_v19  ;;  %vm12858_vm1 = vcmp.ge.f32.partialorder %v12857_v0, 0.0  ;;  %v12860_v8 = vsub.f32 1.0, %v12859_v39  ;;  %vm12862_vm2 = vcmp.ge.f32.partialorder %v12861_v46, 0.0  ;;  %v12878_v0 = vld [vmem:[#allocation19_spill] sm:$0xff]  ;;  %v12880_v46 = vld [vmem:[#allocation146_spill] sm:$0xff]  ;;  %v12886_v9 = vld [vmem:[#allocation64_spill] sm:$0xff] }
 0x2ef   : > { %v3506_v14 = vsel %vm12854_vm0, %v12852_v44, %v3474_v12  ;;  %v3507_v34 = vsel %vm12858_vm1, %v12856_v25, %v3475_v5  ;;  %vm12864_vm3 = vcmp.ge.f32.partialorder %v12863_v36, 0.0  ;;  %vm12866_vm4 = vcmp.ge.f32.partialorder %v12865_v61, 0.0  ;;  %v12879_v39 = vld [vmem:[#allocation23_spill] sm:$0xff]  ;;  %v12881_v36 = vld [vmem:[#allocation53_spill] sm:$0xff]  ;;  %v12882_v61 = vld [vmem:[#allocation58_spill] sm:$0xff] }
 0x2f0   : > { %v3508_v23 = vsel %vm12862_vm2, %v12860_v8, %v3476_v56  ;;  %v3509_v55 = vsel %vm12864_vm3, %v3413_v18, %v3477_v26  ;;  %v3510_v19 = vsel %vm12866_vm4, %v3414_v60, %v3478_v30  ;;  %v3511_v59 = vsel %vm3447_vm15, %v3415_v58, %v3479_v16  ;;  %v12884_v12 = vld [vmem:[#allocation62_spill] sm:$0xff] }
 0x2f1   : > { %v3512_v37 = vsel %vm3448_vm12, %v3416_v29, %v3480_v62  ;;  %v3513_v5 = vsel %vm3449_vm13, %v3417_v24, %v3481_v35  ;;  %v3514_v52 = vsel %vm3450_vm11, %v3418_v21, %v3482_v6  ;;  %v3515_v56 = vsel %vm3451_vm14, %v3419_v22, %v3483_v7 }
 0x2f2   : > { %v3516_v26 = vadd.f32 1.0, %v3484_v57  ;;  %v3517_v18 = vadd.f32 1.0, %v3485_v48  ;;  %v3518_v60 = vadd.f32 1.0, %v3486_v2  ;;  %v3519_v30 = vadd.f32 1.0, %v3487_v1 }
 0x2f3   : > { %v3520_v53 = vadd.f32 1.0, %v3488_v43  ;;  %v3521_v16 = vadd.f32 1.0, %v3489_v42  ;;  %v3522_v58 = vadd.f32 1.0, %v3490_v45  ;;  %v3523_v17 = vadd.f32 1.0, %v3491_v27 }
 0x2f4   : > { %v3524_v29 = vadd.f32 1.0, %v3492_v31  ;;  %v3525_v62 = vadd.f32 1.0, %v3493_v51  ;;  %v3526_v50 = vadd.f32 1.0, %v3494_v10  ;;  %v3527_v24 = vadd.f32 1.0, %v3495_v3 }
 0x2f5   : > { %v3528_v35 = vadd.f32 1.0, %v3496_v33  ;;  %v3529_v21 = vadd.f32 1.0, %v3497_v4  ;;  %v3530_v6 = vadd.f32 1.0, %v3498_v41  ;;  %v3531_v44 = vadd.f32 1.0, %v3499_v28  ;;  %v12873_v41 = vld [vmem:[#allocation37_spill] sm:$0xff] }
 0x2f6   : > { %v3532_v22 = vadd.f32 1.0, %v3500_v47  ;;  %v3533_v57 = vadd.f32 1.0, %v3501_v20  ;;  %v3534_v7 = vadd.f32 1.0, %v3502_v54  ;;  %v3535_v48 = vadd.f32 1.0, %v3503_v11  ;;  %v12874_v47 = vld [vmem:[#allocation39_spill] sm:$0xff]  ;;  %v12875_v54 = vld [vmem:[#allocation40_spill] sm:$0xff] }
 0x2f7   : > { %v3536_v2 = vadd.f32 1.0, %v3504_v63  ;;  %v3537_v1 = vadd.f32 1.0, %v3505_v49  ;;  %v3538_v43 = vadd.f32 1.0, %v3506_v14  ;;  %v3539_v42 = vadd.f32 1.0, %v3507_v34  ;;  %v12876_v63 = vld [vmem:[#allocation42_spill] sm:$0xff]  ;;  %v12877_v14 = vld [vmem:[#allocation43_spill] sm:$0xff] }
 0x2f8   : > { %v3540_v45 = vadd.f32 1.0, %v3508_v23  ;;  %v3541_v27 = vadd.f32 1.0, %v3509_v55  ;;  %v3542_v31 = vadd.f32 1.0, %v3510_v19  ;;  %v3543_v51 = vadd.f32 1.0, %v3511_v59 }
 0x2f9   : > { %v3544_v10 = vadd.f32 1.0, %v3512_v37  ;;  %v3545_v3 = vadd.f32 1.0, %v3513_v5  ;;  %v3546_v33 = vadd.f32 1.0, %v3514_v52  ;;  %v3547_v38 = vadd.f32 1.0, %v3515_v56 }
 0x2fa   : > { %v3548_v4 = vmul.f32 %v3516_v26, %v12872_v13  ;;  %v3549_v28 = vmul.f32 %v3517_v18, %v12873_v41  ;;  %v3550_v20 = vmul.f32 %v3518_v60, %v12874_v47  ;;  %v3551_v11 = vmul.f32 %v3519_v30, %v12875_v54  ;;  %v12888_v26 = vld [vmem:[#allocation68_spill] sm:$0xff]  ;;  %v12889_v60 = vld [vmem:[#allocation69_spill] sm:$0xff] }
 0x2fb   : > { %v3552_v49 = vmul.f32 %v3520_v53, %v12876_v63  ;;  %v3553_v25 = vmul.f32 %v3521_v16, %v12877_v14  ;;  %v3554_v34 = vmul.f32 %v3522_v58, %v12878_v0  ;;  %v3555_v8 = vmul.f32 %v3523_v17, %v12879_v39  ;;  %v12890_v53 = vld [vmem:[#allocation76_spill] sm:$0xff]  ;;  %v12891_v58 = vld [vmem:[#allocation77_spill] sm:$0xff] }
 0x2fc   : > { %v3556_v23 = vmul.f32 %v3524_v29, %v12880_v46  ;;  %3580 = vst [vmem:[%s10702_s29] sm:$0xff] %v3548_v4  ;;  %v3557_v55 = vmul.f32 %v3525_v62, %v12881_v36  ;;  %v3558_v19 = vmul.f32 %v3526_v50, %v12882_v61  ;;  %v3559_v59 = vmul.f32 %v3527_v24, %v12883_v32  ;;  %v12892_v29 = vld [vmem:[#allocation78_spill] sm:$0xff]  ;;  %v12893_v50 = vld [vmem:[#allocation5_spill] sm:$0xff]  ;;  %v12899_v4 = vld [vmem:[#allocation156_spill] sm:$0xff] }
 0x2fd   : > { %v3560_v37 = vmul.f32 %v3528_v35, %v12884_v12  ;;  %3581 = vst [vmem:[%s10702_s29 + $0x8] sm:$0xff] %v3549_v28  ;;  %3582 = vst [vmem:[%s10702_s29 + $0x10] sm:$0xff] %v3550_v20  ;;  %v3561_v5 = vmul.f32 %v3529_v21, %v12885_v15  ;;  %v3562_v52 = vmul.f32 %v3530_v6, %v12886_v9  ;;  %v12894_v35 = vld [vmem:[#allocation147_spill] sm:$0xff]  ;;  %v12895_v6 = vld [vmem:[#allocation148_spill] sm:$0xff] }
 0x2fe   : > { %3583 = vst [vmem:[%s10702_s29 + $0x18] sm:$0xff] %v3551_v11  ;;  %3584 = vst [vmem:[%s10702_s29 + $0x20] sm:$0xff] %v3552_v49  ;;  %v3563_v56 = vmul.f32 %v3531_v44, %v12887_v40  ;;  %v3564_v18 = vmul.f32 %v3532_v22, %v12888_v26  ;;  %v3565_v30 = vmul.f32 %v3533_v57, %v12889_v60  ;;  %v12896_v22 = vld [vmem:[#allocation149_spill] sm:$0xff] }
 0x2ff   : > { %3585 = vst [vmem:[%s10702_s29 + $0x28] sm:$0xff] %v3553_v25  ;;  %3586 = vst [vmem:[%s10702_s29 + $0x30] sm:$0xff] %v3554_v34  ;;  %v3566_v16 = vmul.f32 %v3534_v7, %v12890_v53  ;;  %v3567_v17 = vmul.f32 %v3535_v48, %v12891_v58  ;;  %v3568_v62 = vmul.f32 %v3536_v2, %v12892_v29  ;;  %v12897_v7 = vld [vmem:[#allocation150_spill] sm:$0xff]  ;;  %v12898_v2 = vld [vmem:[#allocation155_spill] sm:$0xff] }
 0x300   : > { %3587 = vst [vmem:[%s10702_s29 + $0x38] sm:$0xff] %v3555_v8  ;;  %3588 = vst [vmem:[%s10702_s29 + $0x40] sm:$0xff] %v3556_v23  ;;  %v3569_v24 = vmul.f32 %v3537_v1, %v12893_v50  ;;  %v3570_v21 = vmul.f32 %v3538_v43, %v12894_v35  ;;  %v3571_v44 = vmul.f32 %v3539_v42, %v12895_v6  ;;  %v12900_v43 = vld [vmem:[#allocation33_spill] sm:$0xff] }
 0x301   : > { %3589 = vst [vmem:[%s10702_s29 + $0x48] sm:$0xff] %v3557_v55  ;;  %3590 = vst [vmem:[%s10702_s29 + $0x50] sm:$0xff] %v3558_v19  ;;  %v3572_v57 = vmul.f32 %v3540_v45, %v12896_v22  ;;  %v3573_v48 = vmul.f32 %v3541_v27, %v12897_v7  ;;  %v3574_v13 = vmul.f32 %v3542_v31, %v12898_v2  ;;  %v12901_v45 = vld [vmem:[#allocation34_spill] sm:$0xff]  ;;  %v12902_v31 = vld [vmem:[#allocation125_spill] sm:$0xff] }
 0x302   : > { %3591 = vst [vmem:[%s10702_s29 + $0x58] sm:$0xff] %v3559_v59  ;;  %3592 = vst [vmem:[%s10702_s29 + $0x60] sm:$0xff] %v3560_v37  ;;  %v3575_v1 = vmul.f32 %v3543_v51, %v12899_v4  ;;  %v3576_v42 = vmul.f32 %v3544_v10, %v12900_v43  ;;  %v3577_v27 = vmul.f32 %v3545_v3, %v12901_v45  ;;  %v12903_v10 = vld [vmem:[#allocation129_spill] sm:$0xff] }
 0x303   : > { %3593 = vst [vmem:[%s10702_s29 + $0x68] sm:$0xff] %v3561_v5  ;;  %3594 = vst [vmem:[%s10702_s29 + $0x70] sm:$0xff] %v3562_v52  ;;  %v3578_v51 = vmul.f32 %v3546_v33, %v12902_v31  ;;  %v3579_v41 = vmul.f32 %v3547_v38, %v12903_v10 }
 0x304   : > { %3595 = vst [vmem:[%s10702_s29 + $0x78] sm:$0xff] %v3563_v56  ;;  %3596 = vst [vmem:[%s10702_s29 + $0x80] sm:$0xff] %v3564_v18 }
 0x305   : > { %3597 = vst [vmem:[%s10702_s29 + $0x88] sm:$0xff] %v3565_v30  ;;  %3598 = vst [vmem:[%s10702_s29 + $0x90] sm:$0xff] %v3566_v16 }
 0x306   : > { %3599 = vst [vmem:[%s10702_s29 + $0x98] sm:$0xff] %v3567_v17  ;;  %3600 = vst [vmem:[%s10702_s29 + $0xa0] sm:$0xff] %v3568_v62 }
 0x307   : > { %3601 = vst [vmem:[%s10702_s29 + $0xa8] sm:$0xff] %v3569_v24  ;;  %3602 = vst [vmem:[%s10702_s29 + $0xb0] sm:$0xff] %v3570_v21 }
 0x308   : > { %3603 = vst [vmem:[%s10702_s29 + $0xb8] sm:$0xff] %v3571_v44  ;;  %3604 = vst [vmem:[%s10702_s29 + $0xc0] sm:$0xff] %v3572_v57 }
 0x309   : > { %3605 = vst [vmem:[%s10702_s29 + $0xc8] sm:$0xff] %v3573_v48  ;;  %3606 = vst [vmem:[%s10702_s29 + $0xd0] sm:$0xff] %v3574_v13 }
 0x30a   : > { %3607 = vst [vmem:[%s10702_s29 + $0xd8] sm:$0xff] %v3575_v1  ;;  %3608 = vst [vmem:[%s10702_s29 + $0xe0] sm:$0xff] %v3576_v42 }
 0x30b   : > { %3609 = vst [vmem:[%s10702_s29 + $0xe8] sm:$0xff] %v3577_v27  ;;  %3610 = vst [vmem:[%s10702_s29 + $0xf0] sm:$0xff] %v3578_v51 }
 0x30c   : > { %3611 = vst [vmem:[%s10702_s29 + $0xf8] sm:$0xff] %v3579_v41 }
 0x30d   : > { %4592 = shalt.err (!%p4589_p3)
}
 0x30e   : > { %s4593_s17 = scalar_lea.hbm %s10750_s6, 4096  ;;  %s4597_s24 = scalar_lea.hbm %s10813_s3, 8192 }
 0x30f   : > { %p4594_p4 = scmp.ne.s32.totalorder %s10750_s6, %s4593_s17  ;;  %p4598_p9 = scmp.lt.s32.totalorder %s10750_s6, %s10813_s3 }
 0x310   : > { %p4599_p10 = scmp.lt.s32.totalorder %s4597_s24, %s4593_s17 }
 0x311   : > { %p4595_p7 = pnand %p4594_p4, %p4702_p5 }
 0x312   : > { %p4600_p11 = por %p4599_p10, %p4598_p9 }
 0x313   : > { %p4596_p8 = pneg %p4595_p7 }
 0x315   : > { %p4601_p12 = pnand %p4600_p11, %p4596_p8 }
 0x317   : > { %4604 = shalt.err (!%p4601_p12)
}
 0x318   : > { %s4642_s27 = smov 128   ;;  %s4643_s28 = smov 8  }
 0x319   : > { %4407 = dma.vmem_to_hbm [thread:$0]  (%p4702_p5), %s10752_s4, 4096, %s10750_s6, %s10770_s7, %s4642_s27, %s4642_s27, %s4643_s28  }
 0x31a PF: > { %p4413_p13 = scmp.ge.s32.totalorder %s4639_s15, 2  ;;  %s3641_s29 = sand.u32 1, %s4627_s12  }
 0x31b   : > { %s3642_s30 = scalar_lea.sflag [#allocation3], %s3641_s29 }
 0x31c   : > { %p4410_p0 = pnand %p4413_p13, %p4706_p6 }
 0x31e   : > { %p4411_p1 = pneg %p4410_p0 }
 0x320   : > { %4622 = dma.done.wait (%p4411_p1), %s3642_s30, 4096  }
 0x321   : > { %4624 = vsyncadd (%p4411_p1), %s3642_s30, 4294963200  ;;  %p13_p2 = scmp.ge.s32.totalorder %s4689_s18, 4   ;;  %s12904_s12 = smov %s4631_s13 }
 0x322   : > { %s12905_s13 = smov %s4635_s14  ;;  %s12906_s14 = smov %s4700_s21 }
 0x323   : > { %s12907_s15 = smov %s4689_s18  ;;  %15 = sbr.rel (!%p13_p2) target bundleno = 3 (0x3), region = 71 }
 0x328   :  { %3647 = vsyncpa [#allocation3], 1 }
 0x329   :  { %3649 = vsyncpa [#allocation3 + $0x1], 1 }

</bundles_post_ra>
